<compile_context>
chip_gen: v7x
topology: tpu7x:2x2x1
jax: 0.10.0
libtpu: 0.0.40
codegen_flags: <defaults>
</compile_context>

<pallas_src>
import numpy as np

import jax
import jax.numpy as jnp
from jax.experimental import pallas as pl
from jax.experimental.pallas import tpu as pltpu

# Problem geometry (matches the PyTorch module applied to 16x16 single-channel input).
H = 16
W = 16
K = 5
PAD = (K - 1) // 2            # 2
HP = H + 2 * PAD              # 20
WP = W + 2 * PAD              # 20
NPIX = HP * WP                # 400 padded pixels
FLAT = 512                    # lane-padded flattened spatial size (multiple of 128)
EPS = 1e-5                    # PyTorch GroupNorm default


# ---------------------------------------------------------------------------
# In-kernel building blocks (trace-time Python; fully unrolled).
# ---------------------------------------------------------------------------
def _conv5x5(act, w_ref, b_ref):
    """'Same' 5x5 conv on channel-major, padded-flattened activations.

    act:   (Cin, FLAT) f32 value, zero outside the interior 16x16 region.
    w_ref: (K*K, Cout, Cin) VMEM ref (tap-major, pre-transposed to (Cout, Cin)).
    b_ref: (Cout, 1) VMEM ref.
    Returns (Cout, FLAT) f32; only interior lanes are meaningful.
    """
    cin = act.shape[0]
    cout = w_ref.shape[1]
    acc = jnp.zeros((cout, FLAT), jnp.float32)
    for kh in range(K):
        for kw in range(K):
            tap = kh * K + kw
            # Output pixel at flat index q needs act[:, q + s]; rolling by -s
            # brings that value to lane q.  For interior q, q + s stays inside
            # the padded 20x20 image, so the wrap of the roll never matters.
            s = (kh - PAD) * WP + (kw - PAD)
            sh = (-s) % FLAT
            w_t = w_ref[tap]                                   # (Cout, Cin)
            if cin <= cout:
                shifted = act if sh == 0 else pltpu.roll(act, sh, axis=1)
                acc = acc + jnp.dot(w_t, shifted,
                                    preferred_element_type=jnp.float32)
            else:
                contrib = jnp.dot(w_t, act,
                                  preferred_element_type=jnp.float32)
                acc = acc + (contrib if sh == 0
                             else pltpu.roll(contrib, sh, axis=1))
    return acc + b_ref[...]                                    # lane-broadcast bias


def _group_norm_relu(y, mix_ref, gamma_ref, beta_ref, mask):
    """Per-sample GroupNorm (over group channels x 16x16 interior) + ReLU.

    y: (C, FLAT); mix_ref: (C, C) with 1/(gsz*H*W) where channels share a group.
    """
    ym = y * mask                                    # zero out non-interior lanes
    cs = jnp.sum(ym, axis=1, keepdims=True)          # (C, 1) per-channel sums
    css = jnp.sum(ym * ym, axis=1, keepdims=True)    # (C, 1) per-channel sum of sq.
    mean = jnp.dot(mix_ref[...], cs, preferred_element_type=jnp.float32)   # (C, 1)
    ex2 = jnp.dot(mix_ref[...], css, preferred_element_type=jnp.float32)   # (C, 1)
    var = ex2 - mean * mean                          # biased variance (PyTorch GN)
    out = (ym - mean) * jax.lax.rsqrt(var + EPS)
    out = out * gamma_ref[...] + beta_ref[...]
    return jnp.maximum(out, 0.0) * mask              # re-zero padding for next conv


def _net_kernel(x_ref, mask_ref,
                w1_ref, b1_ref, g1_ref, be1_ref, m1_ref,
                w2_ref, b2_ref, g2_ref, be2_ref, m2_ref,
                w3_ref, b3_ref, g3_ref, be3_ref, m3_ref,
                w4_ref, b4_ref,
                o_ref):
    mask = mask_ref[...]                                       # (1, FLAT)
    a = x_ref[0]                                               # (1, FLAT), Cin = 1
    a = _group_norm_relu(_conv5x5(a, w1_ref, b1_ref), m1_ref, g1_ref, be1_ref, mask)
    a = _group_norm_relu(_conv5x5(a, w2_ref, b2_ref), m2_ref, g2_ref, be2_ref, mask)
    a = _group_norm_relu(_conv5x5(a, w3_ref, b3_ref), m3_ref, g3_ref, be3_ref, mask)
    o_ref[0] = _conv5x5(a, w4_ref, b4_ref)                     # (1, FLAT) lane-dense


# ---------------------------------------------------------------------------
# Host-side helpers (tiny constant prep; all fused under jit).
# ---------------------------------------------------------------------------
def _interior_mask():
    m = np.zeros((1, FLAT), np.float32)
    for i in range(PAD, PAD + H):
        m[0, i * WP + PAD:i * WP + PAD + W] = 1.0
    return jnp.asarray(m)


def _mix_matrix(channels, groups):
    gsz = channels // groups
    idx = np.arange(channels)
    same = (idx[:, None] // gsz) == (idx[None, :] // gsz)
    return jnp.asarray(same.astype(np.float32) / float(gsz * H * W))


def _prep_w(w):
    """HWIO (K, K, Cin, Cout) -> tap-major (K*K, Cout, Cin)."""
    kk, _, cin, cout = w.shape
    return jnp.transpose(w, (0, 1, 3, 2)).reshape(kk * kk, cout, cin)


def _prep_x(x_nchw):
    """NCHW (N, 1, H, W) -> zero-padded, flattened (N, 1, FLAT)."""
    n = x_nchw.shape[0]
    xp = jnp.pad(x_nchw[:, 0], ((0, 0), (PAD, PAD), (PAD, PAD)))     # (N, 20, 20)
    xf = jnp.pad(xp.reshape(n, NPIX), ((0, 0), (0, FLAT - NPIX)))    # (N, 512)
    return xf.reshape(n, 1, FLAT)


def _const_spec(arr):
    ndim = arr.ndim
    return pl.BlockSpec(arr.shape, lambda n, _nd=ndim: (0,) * _nd)


@jax.jit
def net_translation5_forward(params, x_nchw):
    """Fused Pallas forward. x_nchw: (N, 1, 16, 16) f32 -> (N, 1, 16, 16) f32."""
    bsz = x_nchw.shape[0]
    w1, b1 = params["conv1"]; g1, be1 = params["norm1"]
    w2, b2 = params["conv2"]; g2, be2 = params["norm2"]
    w3, b3 = params["conv3"]; g3, be3 = params["norm3"]
    w4, b4 = params["conv4"]

    col = lambda v: v.reshape(-1, 1)
    args = (
        _prep_x(x_nchw), _interior_mask(),
        _prep_w(w1), col(b1), col(g1), col(be1), _mix_matrix(8, 4),
        _prep_w(w2), col(b2), col(g2), col(be2), _mix_matrix(32, 16),
        _prep_w(w3), col(b3), col(g3), col(be3), _mix_matrix(8, 4),
        _prep_w(w4), col(b4),
    )

    in_specs = [pl.BlockSpec((1, 1, FLAT), lambda n: (n, 0, 0))]
    in_specs += [_const_spec(a) for a in args[1:]]

    y_flat = pl.pallas_call(
        _net_kernel,
        out_shape=jax.ShapeDtypeStruct((bsz, 1, FLAT), jnp.float32),
        grid_spec=pltpu.PrefetchScalarGridSpec(
            num_scalar_prefetch=0,
            grid=(bsz,),
            in_specs=in_specs,
            out_specs=pl.BlockSpec((1, 1, FLAT), lambda n: (n, 0, 0)),
        ),
        compiler_params=pltpu.CompilerParams(
            dimension_semantics=("parallel",)),
    )(*args)

    # Extract the interior 16x16 region (tiny XLA ops on the host side).
    y = y_flat[:, 0, :NPIX].reshape(bsz, HP, WP)[:, PAD:PAD + H, PAD:PAD + W]
    return y[:, None, :, :]                                    # NCHW like the module


# ---------------------------------------------------------------------------
# Parameter init (deterministic, PyTorch-Conv2d-style uniform bounds).
# ---------------------------------------------------------------------------
def init_params(key):
    def conv_init(k, cin, cout):
        kw_key, kb_key = jax.random.split(k)
        bound = 1.0 / float(cin * K * K) ** 0.5
        w = jax.random.uniform(kw_key, (K, K, cin, cout), jnp.float32, -bound, bound)
        b = jax.random.uniform(kb_key, (cout,), jnp.float32, -bound, bound)
        return w, b

    k1, k2, k3, k4 = jax.random.split(key, 4)
    return {
        "conv1": conv_init(k1, 1, 8),
        "conv2": conv_init(k2, 8, 32),
        "conv3": conv_init(k3, 32, 8),
        "conv4": conv_init(k4, 8, 1),
        # GroupNorm affine params default to ones / zeros (PyTorch init).
        "norm1": (jnp.ones((8,), jnp.float32), jnp.zeros((8,), jnp.float32)),
        "norm2": (jnp.ones((32,), jnp.float32), jnp.zeros((32,), jnp.float32)),
        "norm3": (jnp.ones((8,), jnp.float32), jnp.zeros((8,), jnp.float32)),
    }


# ---------------------------------------------------------------------------
# Pure-JAX reference (NCHW in/out) used to verify the fused kernel.
# ---------------------------------------------------------------------------
def _ref_conv(x, w, b):
    y = jax.lax.conv_general_dilated(
        x, w, window_strides=(1, 1), padding="SAME",
        dimension_numbers=("NHWC", "HWIO", "NHWC"))
    return y + b.reshape(1, 1, 1, -1)


def _ref_groupnorm(x, gamma, beta, groups):
    n, h, w, c = x.shape
    gsz = c // groups
    xg = x.reshape(n, h, w, groups, gsz)
    mean = jnp.mean(xg, axis=(1, 2, 4), keepdims=True)
    var = jnp.mean((xg - mean) ** 2, axis=(1, 2, 4), keepdims=True)
    xg = (xg - mean) * jax.lax.rsqrt(var + EPS)
    x = xg.reshape(n, h, w, c)
    return x * gamma.reshape(1, 1, 1, -1) + beta.reshape(1, 1, 1, -1)


def net_translation5_reference(params, x_nchw):
    w1, b1 = params["conv1"]; g1, be1 = params["norm1"]
    w2, b2 = params["conv2"]; g2, be2 = params["norm2"]
    w3, b3 = params["conv3"]; g3, be3 = params["norm3"]
    w4, b4 = params["conv4"]
    x = jnp.transpose(x_nchw, (0, 2, 3, 1))
    h1 = jax.nn.relu(_ref_groupnorm(_ref_conv(x, w1, b1), g1, be1, 4))
    h2 = jax.nn.relu(_ref_groupnorm(_ref_conv(h1, w2, b2), g2, be2, 16))
    h3 = jax.nn.relu(_ref_groupnorm(_ref_conv(h2, w3, b3), g3, be3, 4))
    y = _ref_conv(h3, w4, b4)
    return jnp.transpose(y, (0, 3, 1, 2))


if __name__ == "__main__":
    key = jax.random.PRNGKey(0)
    pkey, xkey = jax.random.split(key)
    params = init_params(pkey)

    # Small NCHW input consistent with the module: (batch=2, 1, 16, 16).
    x = jax.random.normal(xkey, (2, 1, 16, 16), jnp.float32)

    y = jax.block_until_ready(net_translation5_forward(params, x))
    y_ref = jax.block_until_ready(net_translation5_reference(params, x))

    assert y.shape == (2, 1, 16, 16)
    max_err = float(jnp.max(jnp.abs(y - y_ref)))
    assert max_err < 2e-4, f"mismatch vs reference: {max_err}"

    print("KERNEL_OK")
</pallas_src>

<mosaic_0001>
module attributes {stable_mosaic.version = 11 : i64} {
  func.func @_net_kernel(%arg0: i32, %arg1: memref<1x1x512xf32, #tpu.memory_space<vmem>>, %arg2: memref<1x512xf32, #tpu.memory_space<vmem>>, %arg3: memref<25x8x1xf32, #tpu.memory_space<vmem>>, %arg4: memref<8x1xf32, #tpu.memory_space<vmem>>, %arg5: memref<8x1xf32, #tpu.memory_space<vmem>>, %arg6: memref<8x1xf32, #tpu.memory_space<vmem>>, %arg7: memref<8x8xf32, #tpu.memory_space<vmem>>, %arg8: memref<25x32x8xf32, #tpu.memory_space<vmem>>, %arg9: memref<32x1xf32, #tpu.memory_space<vmem>>, %arg10: memref<32x1xf32, #tpu.memory_space<vmem>>, %arg11: memref<32x1xf32, #tpu.memory_space<vmem>>, %arg12: memref<32x32xf32, #tpu.memory_space<vmem>>, %arg13: memref<25x8x32xf32, #tpu.memory_space<vmem>>, %arg14: memref<8x1xf32, #tpu.memory_space<vmem>>, %arg15: memref<8x1xf32, #tpu.memory_space<vmem>>, %arg16: memref<8x1xf32, #tpu.memory_space<vmem>>, %arg17: memref<8x8xf32, #tpu.memory_space<vmem>>, %arg18: memref<25x1x8xf32, #tpu.memory_space<vmem>>, %arg19: memref<1x1xf32, #tpu.memory_space<vmem>>, %arg20: memref<1x1x512xf32, #tpu.memory_space<vmem>>) attributes {dimension_semantics = [#tpu.dimension_semantics<parallel>], iteration_bounds = array<i64: 2>, scalar_prefetch = 0 : i64, scratch_operands = 0 : i64, tpu.core_type = #tpu.core_type<tc>, window_params = [{transform_indices = @transform_0, window_bounds = array<i64: 1, 1, 512>}, {pipeline_mode = #tpu.pipeline_mode<synchronous>, transform_indices = @transform_1, window_bounds = array<i64: 1, 512>}, {pipeline_mode = #tpu.pipeline_mode<synchronous>, transform_indices = @transform_2, window_bounds = array<i64: 25, 8, 1>}, {pipeline_mode = #tpu.pipeline_mode<synchronous>, transform_indices = @transform_3, window_bounds = array<i64: 8, 1>}, {pipeline_mode = #tpu.pipeline_mode<synchronous>, transform_indices = @transform_4, window_bounds = array<i64: 8, 1>}, {pipeline_mode = #tpu.pipeline_mode<synchronous>, transform_indices = @transform_5, window_bounds = array<i64: 8, 1>}, {pipeline_mode = #tpu.pipeline_mode<synchronous>, transform_indices = @transform_6, window_bounds = array<i64: 8, 8>}, {pipeline_mode = #tpu.pipeline_mode<synchronous>, transform_indices = @transform_7, window_bounds = array<i64: 25, 32, 8>}, {pipeline_mode = #tpu.pipeline_mode<synchronous>, transform_indices = @transform_8, window_bounds = array<i64: 32, 1>}, {pipeline_mode = #tpu.pipeline_mode<synchronous>, transform_indices = @transform_9, window_bounds = array<i64: 32, 1>}, {pipeline_mode = #tpu.pipeline_mode<synchronous>, transform_indices = @transform_10, window_bounds = array<i64: 32, 1>}, {pipeline_mode = #tpu.pipeline_mode<synchronous>, transform_indices = @transform_11, window_bounds = array<i64: 32, 32>}, {pipeline_mode = #tpu.pipeline_mode<synchronous>, transform_indices = @transform_12, window_bounds = array<i64: 25, 8, 32>}, {pipeline_mode = #tpu.pipeline_mode<synchronous>, transform_indices = @transform_13, window_bounds = array<i64: 8, 1>}, {pipeline_mode = #tpu.pipeline_mode<synchronous>, transform_indices = @transform_14, window_bounds = array<i64: 8, 1>}, {pipeline_mode = #tpu.pipeline_mode<synchronous>, transform_indices = @transform_15, window_bounds = array<i64: 8, 1>}, {pipeline_mode = #tpu.pipeline_mode<synchronous>, transform_indices = @transform_16, window_bounds = array<i64: 8, 8>}, {pipeline_mode = #tpu.pipeline_mode<synchronous>, transform_indices = @transform_17, window_bounds = array<i64: 25, 1, 8>}, {pipeline_mode = #tpu.pipeline_mode<synchronous>, transform_indices = @transform_18, window_bounds = array<i64: 1, 1>}, {transform_indices = @transform_19, window_bounds = array<i64: 1, 1, 512>}]} {
    %c0 = arith.constant 0 : index
    %c0_0 = arith.constant 0 : index
    %0 = vector.load %arg2[%c0, %c0_0] : memref<1x512xf32, #tpu.memory_space<vmem>>, vector<1x512xf32>
    %c0_1 = arith.constant 0 : index
    %c0_2 = arith.constant 0 : index
    %c0_3 = arith.constant 0 : index
    %1 = vector.load %arg1[%c0_1, %c0_2, %c0_3] : memref<1x1x512xf32, #tpu.memory_space<vmem>>, vector<1x1x512xf32>
    %2 = vector.shape_cast %1 : vector<1x1x512xf32> to vector<1x512xf32>
    %cst = arith.constant 0.000000e+00 : f32
    %3 = vector.broadcast %cst : f32 to vector<8x512xf32>
    %c0_4 = arith.constant 0 : index
    %c0_5 = arith.constant 0 : index
    %c0_6 = arith.constant 0 : index
    %4 = vector.load %arg3[%c0_4, %c0_5, %c0_6] : memref<25x8x1xf32, #tpu.memory_space<vmem>>, vector<1x8x1xf32>
    %5 = vector.shape_cast %4 : vector<1x8x1xf32> to vector<8x1xf32>
    %c42_i32 = arith.constant 42 : i32
    %6 = tpu.dynamic_rotate %2 by %c42_i32 dim 1 : vector<1x512xf32>, i32 -> vector<1x512xf32>
    %cst_7 = arith.constant dense<0.000000e+00> : vector<8x512xf32>
    %7 = tpu.matmul %5, %6, %cst_7 {dimension_numbers = #tpu.dot_dimension_numbers<[1], [0], [0], [1], [0, 0, 1, 1], [], []>} : vector<8x1xf32>, vector<1x512xf32>, vector<8x512xf32> -> vector<8x512xf32>
    %8 = arith.addf %3, %7 : vector<8x512xf32>
    %c1 = arith.constant 1 : index
    %c0_8 = arith.constant 0 : index
    %c0_9 = arith.constant 0 : index
    %9 = vector.load %arg3[%c1, %c0_8, %c0_9] : memref<25x8x1xf32, #tpu.memory_space<vmem>>, vector<1x8x1xf32>
    %10 = vector.shape_cast %9 : vector<1x8x1xf32> to vector<8x1xf32>
    %c41_i32 = arith.constant 41 : i32
    %11 = tpu.dynamic_rotate %2 by %c41_i32 dim 1 : vector<1x512xf32>, i32 -> vector<1x512xf32>
    %cst_10 = arith.constant dense<0.000000e+00> : vector<8x512xf32>
    %12 = tpu.matmul %10, %11, %cst_10 {dimension_numbers = #tpu.dot_dimension_numbers<[1], [0], [0], [1], [0, 0, 1, 1], [], []>} : vector<8x1xf32>, vector<1x512xf32>, vector<8x512xf32> -> vector<8x512xf32>
    %13 = arith.addf %8, %12 : vector<8x512xf32>
    %c2 = arith.constant 2 : index
    %c0_11 = arith.constant 0 : index
    %c0_12 = arith.constant 0 : index
    %14 = vector.load %arg3[%c2, %c0_11, %c0_12] : memref<25x8x1xf32, #tpu.memory_space<vmem>>, vector<1x8x1xf32>
    %15 = vector.shape_cast %14 : vector<1x8x1xf32> to vector<8x1xf32>
    %c40_i32 = arith.constant 40 : i32
    %16 = tpu.dynamic_rotate %2 by %c40_i32 dim 1 : vector<1x512xf32>, i32 -> vector<1x512xf32>
    %cst_13 = arith.constant dense<0.000000e+00> : vector<8x512xf32>
    %17 = tpu.matmul %15, %16, %cst_13 {dimension_numbers = #tpu.dot_dimension_numbers<[1], [0], [0], [1], [0, 0, 1, 1], [], []>} : vector<8x1xf32>, vector<1x512xf32>, vector<8x512xf32> -> vector<8x512xf32>
    %18 = arith.addf %13, %17 : vector<8x512xf32>
    %c3 = arith.constant 3 : index
    %c0_14 = arith.constant 0 : index
    %c0_15 = arith.constant 0 : index
    %19 = vector.load %arg3[%c3, %c0_14, %c0_15] : memref<25x8x1xf32, #tpu.memory_space<vmem>>, vector<1x8x1xf32>
    %20 = vector.shape_cast %19 : vector<1x8x1xf32> to vector<8x1xf32>
    %c39_i32 = arith.constant 39 : i32
    %21 = tpu.dynamic_rotate %2 by %c39_i32 dim 1 : vector<1x512xf32>, i32 -> vector<1x512xf32>
    %cst_16 = arith.constant dense<0.000000e+00> : vector<8x512xf32>
    %22 = tpu.matmul %20, %21, %cst_16 {dimension_numbers = #tpu.dot_dimension_numbers<[1], [0], [0], [1], [0, 0, 1, 1], [], []>} : vector<8x1xf32>, vector<1x512xf32>, vector<8x512xf32> -> vector<8x512xf32>
    %23 = arith.addf %18, %22 : vector<8x512xf32>
    %c4 = arith.constant 4 : index
    %c0_17 = arith.constant 0 : index
    %c0_18 = arith.constant 0 : index
    %24 = vector.load %arg3[%c4, %c0_17, %c0_18] : memref<25x8x1xf32, #tpu.memory_space<vmem>>, vector<1x8x1xf32>
    %25 = vector.shape_cast %24 : vector<1x8x1xf32> to vector<8x1xf32>
    %c38_i32 = arith.constant 38 : i32
    %26 = tpu.dynamic_rotate %2 by %c38_i32 dim 1 : vector<1x512xf32>, i32 -> vector<1x512xf32>
    %cst_19 = arith.constant dense<0.000000e+00> : vector<8x512xf32>
    %27 = tpu.matmul %25, %26, %cst_19 {dimension_numbers = #tpu.dot_dimension_numbers<[1], [0], [0], [1], [0, 0, 1, 1], [], []>} : vector<8x1xf32>, vector<1x512xf32>, vector<8x512xf32> -> vector<8x512xf32>
    %28 = arith.addf %23, %27 : vector<8x512xf32>
    %c5 = arith.constant 5 : index
    %c0_20 = arith.constant 0 : index
    %c0_21 = arith.constant 0 : index
    %29 = vector.load %arg3[%c5, %c0_20, %c0_21] : memref<25x8x1xf32, #tpu.memory_space<vmem>>, vector<1x8x1xf32>
    %30 = vector.shape_cast %29 : vector<1x8x1xf32> to vector<8x1xf32>
    %c22_i32 = arith.constant 22 : i32
    %31 = tpu.dynamic_rotate %2 by %c22_i32 dim 1 : vector<1x512xf32>, i32 -> vector<1x512xf32>
    %cst_22 = arith.constant dense<0.000000e+00> : vector<8x512xf32>
    %32 = tpu.matmul %30, %31, %cst_22 {dimension_numbers = #tpu.dot_dimension_numbers<[1], [0], [0], [1], [0, 0, 1, 1], [], []>} : vector<8x1xf32>, vector<1x512xf32>, vector<8x512xf32> -> vector<8x512xf32>
    %33 = arith.addf %28, %32 : vector<8x512xf32>
    %c6 = arith.constant 6 : index
    %c0_23 = arith.constant 0 : index
    %c0_24 = arith.constant 0 : index
    %34 = vector.load %arg3[%c6, %c0_23, %c0_24] : memref<25x8x1xf32, #tpu.memory_space<vmem>>, vector<1x8x1xf32>
    %35 = vector.shape_cast %34 : vector<1x8x1xf32> to vector<8x1xf32>
    %c21_i32 = arith.constant 21 : i32
    %36 = tpu.dynamic_rotate %2 by %c21_i32 dim 1 : vector<1x512xf32>, i32 -> vector<1x512xf32>
    %cst_25 = arith.constant dense<0.000000e+00> : vector<8x512xf32>
    %37 = tpu.matmul %35, %36, %cst_25 {dimension_numbers = #tpu.dot_dimension_numbers<[1], [0], [0], [1], [0, 0, 1, 1], [], []>} : vector<8x1xf32>, vector<1x512xf32>, vector<8x512xf32> -> vector<8x512xf32>
    %38 = arith.addf %33, %37 : vector<8x512xf32>
    %c7 = arith.constant 7 : index
    %c0_26 = arith.constant 0 : index
    %c0_27 = arith.constant 0 : index
    %39 = vector.load %arg3[%c7, %c0_26, %c0_27] : memref<25x8x1xf32, #tpu.memory_space<vmem>>, vector<1x8x1xf32>
    %40 = vector.shape_cast %39 : vector<1x8x1xf32> to vector<8x1xf32>
    %c20_i32 = arith.constant 20 : i32
    %41 = tpu.dynamic_rotate %2 by %c20_i32 dim 1 : vector<1x512xf32>, i32 -> vector<1x512xf32>
    %cst_28 = arith.constant dense<0.000000e+00> : vector<8x512xf32>
    %42 = tpu.matmul %40, %41, %cst_28 {dimension_numbers = #tpu.dot_dimension_numbers<[1], [0], [0], [1], [0, 0, 1, 1], [], []>} : vector<8x1xf32>, vector<1x512xf32>, vector<8x512xf32> -> vector<8x512xf32>
    %43 = arith.addf %38, %42 : vector<8x512xf32>
    %c8 = arith.constant 8 : index
    %c0_29 = arith.constant 0 : index
    %c0_30 = arith.constant 0 : index
    %44 = vector.load %arg3[%c8, %c0_29, %c0_30] : memref<25x8x1xf32, #tpu.memory_space<vmem>>, vector<1x8x1xf32>
    %45 = vector.shape_cast %44 : vector<1x8x1xf32> to vector<8x1xf32>
    %c19_i32 = arith.constant 19 : i32
    %46 = tpu.dynamic_rotate %2 by %c19_i32 dim 1 : vector<1x512xf32>, i32 -> vector<1x512xf32>
    %cst_31 = arith.constant dense<0.000000e+00> : vector<8x512xf32>
    %47 = tpu.matmul %45, %46, %cst_31 {dimension_numbers = #tpu.dot_dimension_numbers<[1], [0], [0], [1], [0, 0, 1, 1], [], []>} : vector<8x1xf32>, vector<1x512xf32>, vector<8x512xf32> -> vector<8x512xf32>
    %48 = arith.addf %43, %47 : vector<8x512xf32>
    %c9 = arith.constant 9 : index
    %c0_32 = arith.constant 0 : index
    %c0_33 = arith.constant 0 : index
    %49 = vector.load %arg3[%c9, %c0_32, %c0_33] : memref<25x8x1xf32, #tpu.memory_space<vmem>>, vector<1x8x1xf32>
    %50 = vector.shape_cast %49 : vector<1x8x1xf32> to vector<8x1xf32>
    %c18_i32 = arith.constant 18 : i32
    %51 = tpu.dynamic_rotate %2 by %c18_i32 dim 1 : vector<1x512xf32>, i32 -> vector<1x512xf32>
    %cst_34 = arith.constant dense<0.000000e+00> : vector<8x512xf32>
    %52 = tpu.matmul %50, %51, %cst_34 {dimension_numbers = #tpu.dot_dimension_numbers<[1], [0], [0], [1], [0, 0, 1, 1], [], []>} : vector<8x1xf32>, vector<1x512xf32>, vector<8x512xf32> -> vector<8x512xf32>
    %53 = arith.addf %48, %52 : vector<8x512xf32>
    %c10 = arith.constant 10 : index
    %c0_35 = arith.constant 0 : index
    %c0_36 = arith.constant 0 : index
    %54 = vector.load %arg3[%c10, %c0_35, %c0_36] : memref<25x8x1xf32, #tpu.memory_space<vmem>>, vector<1x8x1xf32>
    %55 = vector.shape_cast %54 : vector<1x8x1xf32> to vector<8x1xf32>
    %c2_i32 = arith.constant 2 : i32
    %56 = tpu.dynamic_rotate %2 by %c2_i32 dim 1 : vector<1x512xf32>, i32 -> vector<1x512xf32>
    %cst_37 = arith.constant dense<0.000000e+00> : vector<8x512xf32>
    %57 = tpu.matmul %55, %56, %cst_37 {dimension_numbers = #tpu.dot_dimension_numbers<[1], [0], [0], [1], [0, 0, 1, 1], [], []>} : vector<8x1xf32>, vector<1x512xf32>, vector<8x512xf32> -> vector<8x512xf32>
    %58 = arith.addf %53, %57 : vector<8x512xf32>
    %c11 = arith.constant 11 : index
    %c0_38 = arith.constant 0 : index
    %c0_39 = arith.constant 0 : index
    %59 = vector.load %arg3[%c11, %c0_38, %c0_39] : memref<25x8x1xf32, #tpu.memory_space<vmem>>, vector<1x8x1xf32>
    %60 = vector.shape_cast %59 : vector<1x8x1xf32> to vector<8x1xf32>
    %c1_i32 = arith.constant 1 : i32
    %61 = tpu.dynamic_rotate %2 by %c1_i32 dim 1 : vector<1x512xf32>, i32 -> vector<1x512xf32>
    %cst_40 = arith.constant dense<0.000000e+00> : vector<8x512xf32>
    %62 = tpu.matmul %60, %61, %cst_40 {dimension_numbers = #tpu.dot_dimension_numbers<[1], [0], [0], [1], [0, 0, 1, 1], [], []>} : vector<8x1xf32>, vector<1x512xf32>, vector<8x512xf32> -> vector<8x512xf32>
    %63 = arith.addf %58, %62 : vector<8x512xf32>
    %c12 = arith.constant 12 : index
    %c0_41 = arith.constant 0 : index
    %c0_42 = arith.constant 0 : index
    %64 = vector.load %arg3[%c12, %c0_41, %c0_42] : memref<25x8x1xf32, #tpu.memory_space<vmem>>, vector<1x8x1xf32>
    %65 = vector.shape_cast %64 : vector<1x8x1xf32> to vector<8x1xf32>
    %cst_43 = arith.constant dense<0.000000e+00> : vector<8x512xf32>
    %66 = tpu.matmul %65, %2, %cst_43 {dimension_numbers = #tpu.dot_dimension_numbers<[1], [0], [0], [1], [0, 0, 1, 1], [], []>} : vector<8x1xf32>, vector<1x512xf32>, vector<8x512xf32> -> vector<8x512xf32>
    %67 = arith.addf %63, %66 : vector<8x512xf32>
    %c13 = arith.constant 13 : index
    %c0_44 = arith.constant 0 : index
    %c0_45 = arith.constant 0 : index
    %68 = vector.load %arg3[%c13, %c0_44, %c0_45] : memref<25x8x1xf32, #tpu.memory_space<vmem>>, vector<1x8x1xf32>
    %69 = vector.shape_cast %68 : vector<1x8x1xf32> to vector<8x1xf32>
    %c511_i32 = arith.constant 511 : i32
    %70 = tpu.dynamic_rotate %2 by %c511_i32 dim 1 : vector<1x512xf32>, i32 -> vector<1x512xf32>
    %cst_46 = arith.constant dense<0.000000e+00> : vector<8x512xf32>
    %71 = tpu.matmul %69, %70, %cst_46 {dimension_numbers = #tpu.dot_dimension_numbers<[1], [0], [0], [1], [0, 0, 1, 1], [], []>} : vector<8x1xf32>, vector<1x512xf32>, vector<8x512xf32> -> vector<8x512xf32>
    %72 = arith.addf %67, %71 : vector<8x512xf32>
    %c14 = arith.constant 14 : index
    %c0_47 = arith.constant 0 : index
    %c0_48 = arith.constant 0 : index
    %73 = vector.load %arg3[%c14, %c0_47, %c0_48] : memref<25x8x1xf32, #tpu.memory_space<vmem>>, vector<1x8x1xf32>
    %74 = vector.shape_cast %73 : vector<1x8x1xf32> to vector<8x1xf32>
    %c510_i32 = arith.constant 510 : i32
    %75 = tpu.dynamic_rotate %2 by %c510_i32 dim 1 : vector<1x512xf32>, i32 -> vector<1x512xf32>
    %cst_49 = arith.constant dense<0.000000e+00> : vector<8x512xf32>
    %76 = tpu.matmul %74, %75, %cst_49 {dimension_numbers = #tpu.dot_dimension_numbers<[1], [0], [0], [1], [0, 0, 1, 1], [], []>} : vector<8x1xf32>, vector<1x512xf32>, vector<8x512xf32> -> vector<8x512xf32>
    %77 = arith.addf %72, %76 : vector<8x512xf32>
    %c15 = arith.constant 15 : index
    %c0_50 = arith.constant 0 : index
    %c0_51 = arith.constant 0 : index
    %78 = vector.load %arg3[%c15, %c0_50, %c0_51] : memref<25x8x1xf32, #tpu.memory_space<vmem>>, vector<1x8x1xf32>
    %79 = vector.shape_cast %78 : vector<1x8x1xf32> to vector<8x1xf32>
    %c494_i32 = arith.constant 494 : i32
    %80 = tpu.dynamic_rotate %2 by %c494_i32 dim 1 : vector<1x512xf32>, i32 -> vector<1x512xf32>
    %cst_52 = arith.constant dense<0.000000e+00> : vector<8x512xf32>
    %81 = tpu.matmul %79, %80, %cst_52 {dimension_numbers = #tpu.dot_dimension_numbers<[1], [0], [0], [1], [0, 0, 1, 1], [], []>} : vector<8x1xf32>, vector<1x512xf32>, vector<8x512xf32> -> vector<8x512xf32>
    %82 = arith.addf %77, %81 : vector<8x512xf32>
    %c16 = arith.constant 16 : index
    %c0_53 = arith.constant 0 : index
    %c0_54 = arith.constant 0 : index
    %83 = vector.load %arg3[%c16, %c0_53, %c0_54] : memref<25x8x1xf32, #tpu.memory_space<vmem>>, vector<1x8x1xf32>
    %84 = vector.shape_cast %83 : vector<1x8x1xf32> to vector<8x1xf32>
    %c493_i32 = arith.constant 493 : i32
    %85 = tpu.dynamic_rotate %2 by %c493_i32 dim 1 : vector<1x512xf32>, i32 -> vector<1x512xf32>
    %cst_55 = arith.constant dense<0.000000e+00> : vector<8x512xf32>
    %86 = tpu.matmul %84, %85, %cst_55 {dimension_numbers = #tpu.dot_dimension_numbers<[1], [0], [0], [1], [0, 0, 1, 1], [], []>} : vector<8x1xf32>, vector<1x512xf32>, vector<8x512xf32> -> vector<8x512xf32>
    %87 = arith.addf %82, %86 : vector<8x512xf32>
    %c17 = arith.constant 17 : index
    %c0_56 = arith.constant 0 : index
    %c0_57 = arith.constant 0 : index
    %88 = vector.load %arg3[%c17, %c0_56, %c0_57] : memref<25x8x1xf32, #tpu.memory_space<vmem>>, vector<1x8x1xf32>
    %89 = vector.shape_cast %88 : vector<1x8x1xf32> to vector<8x1xf32>
    %c492_i32 = arith.constant 492 : i32
    %90 = tpu.dynamic_rotate %2 by %c492_i32 dim 1 : vector<1x512xf32>, i32 -> vector<1x512xf32>
    %cst_58 = arith.constant dense<0.000000e+00> : vector<8x512xf32>
    %91 = tpu.matmul %89, %90, %cst_58 {dimension_numbers = #tpu.dot_dimension_numbers<[1], [0], [0], [1], [0, 0, 1, 1], [], []>} : vector<8x1xf32>, vector<1x512xf32>, vector<8x512xf32> -> vector<8x512xf32>
    %92 = arith.addf %87, %91 : vector<8x512xf32>
    %c18 = arith.constant 18 : index
    %c0_59 = arith.constant 0 : index
    %c0_60 = arith.constant 0 : index
    %93 = vector.load %arg3[%c18, %c0_59, %c0_60] : memref<25x8x1xf32, #tpu.memory_space<vmem>>, vector<1x8x1xf32>
    %94 = vector.shape_cast %93 : vector<1x8x1xf32> to vector<8x1xf32>
    %c491_i32 = arith.constant 491 : i32
    %95 = tpu.dynamic_rotate %2 by %c491_i32 dim 1 : vector<1x512xf32>, i32 -> vector<1x512xf32>
    %cst_61 = arith.constant dense<0.000000e+00> : vector<8x512xf32>
    %96 = tpu.matmul %94, %95, %cst_61 {dimension_numbers = #tpu.dot_dimension_numbers<[1], [0], [0], [1], [0, 0, 1, 1], [], []>} : vector<8x1xf32>, vector<1x512xf32>, vector<8x512xf32> -> vector<8x512xf32>
    %97 = arith.addf %92, %96 : vector<8x512xf32>
    %c19 = arith.constant 19 : index
    %c0_62 = arith.constant 0 : index
    %c0_63 = arith.constant 0 : index
    %98 = vector.load %arg3[%c19, %c0_62, %c0_63] : memref<25x8x1xf32, #tpu.memory_space<vmem>>, vector<1x8x1xf32>
    %99 = vector.shape_cast %98 : vector<1x8x1xf32> to vector<8x1xf32>
    %c490_i32 = arith.constant 490 : i32
    %100 = tpu.dynamic_rotate %2 by %c490_i32 dim 1 : vector<1x512xf32>, i32 -> vector<1x512xf32>
    %cst_64 = arith.constant dense<0.000000e+00> : vector<8x512xf32>
    %101 = tpu.matmul %99, %100, %cst_64 {dimension_numbers = #tpu.dot_dimension_numbers<[1], [0], [0], [1], [0, 0, 1, 1], [], []>} : vector<8x1xf32>, vector<1x512xf32>, vector<8x512xf32> -> vector<8x512xf32>
    %102 = arith.addf %97, %101 : vector<8x512xf32>
    %c20 = arith.constant 20 : index
    %c0_65 = arith.constant 0 : index
    %c0_66 = arith.constant 0 : index
    %103 = vector.load %arg3[%c20, %c0_65, %c0_66] : memref<25x8x1xf32, #tpu.memory_space<vmem>>, vector<1x8x1xf32>
    %104 = vector.shape_cast %103 : vector<1x8x1xf32> to vector<8x1xf32>
    %c474_i32 = arith.constant 474 : i32
    %105 = tpu.dynamic_rotate %2 by %c474_i32 dim 1 : vector<1x512xf32>, i32 -> vector<1x512xf32>
    %cst_67 = arith.constant dense<0.000000e+00> : vector<8x512xf32>
    %106 = tpu.matmul %104, %105, %cst_67 {dimension_numbers = #tpu.dot_dimension_numbers<[1], [0], [0], [1], [0, 0, 1, 1], [], []>} : vector<8x1xf32>, vector<1x512xf32>, vector<8x512xf32> -> vector<8x512xf32>
    %107 = arith.addf %102, %106 : vector<8x512xf32>
    %c21 = arith.constant 21 : index
    %c0_68 = arith.constant 0 : index
    %c0_69 = arith.constant 0 : index
    %108 = vector.load %arg3[%c21, %c0_68, %c0_69] : memref<25x8x1xf32, #tpu.memory_space<vmem>>, vector<1x8x1xf32>
    %109 = vector.shape_cast %108 : vector<1x8x1xf32> to vector<8x1xf32>
    %c473_i32 = arith.constant 473 : i32
    %110 = tpu.dynamic_rotate %2 by %c473_i32 dim 1 : vector<1x512xf32>, i32 -> vector<1x512xf32>
    %cst_70 = arith.constant dense<0.000000e+00> : vector<8x512xf32>
    %111 = tpu.matmul %109, %110, %cst_70 {dimension_numbers = #tpu.dot_dimension_numbers<[1], [0], [0], [1], [0, 0, 1, 1], [], []>} : vector<8x1xf32>, vector<1x512xf32>, vector<8x512xf32> -> vector<8x512xf32>
    %112 = arith.addf %107, %111 : vector<8x512xf32>
    %c22 = arith.constant 22 : index
    %c0_71 = arith.constant 0 : index
    %c0_72 = arith.constant 0 : index
    %113 = vector.load %arg3[%c22, %c0_71, %c0_72] : memref<25x8x1xf32, #tpu.memory_space<vmem>>, vector<1x8x1xf32>
    %114 = vector.shape_cast %113 : vector<1x8x1xf32> to vector<8x1xf32>
    %c472_i32 = arith.constant 472 : i32
    %115 = tpu.dynamic_rotate %2 by %c472_i32 dim 1 : vector<1x512xf32>, i32 -> vector<1x512xf32>
    %cst_73 = arith.constant dense<0.000000e+00> : vector<8x512xf32>
    %116 = tpu.matmul %114, %115, %cst_73 {dimension_numbers = #tpu.dot_dimension_numbers<[1], [0], [0], [1], [0, 0, 1, 1], [], []>} : vector<8x1xf32>, vector<1x512xf32>, vector<8x512xf32> -> vector<8x512xf32>
    %117 = arith.addf %112, %116 : vector<8x512xf32>
    %c23 = arith.constant 23 : index
    %c0_74 = arith.constant 0 : index
    %c0_75 = arith.constant 0 : index
    %118 = vector.load %arg3[%c23, %c0_74, %c0_75] : memref<25x8x1xf32, #tpu.memory_space<vmem>>, vector<1x8x1xf32>
    %119 = vector.shape_cast %118 : vector<1x8x1xf32> to vector<8x1xf32>
    %c471_i32 = arith.constant 471 : i32
    %120 = tpu.dynamic_rotate %2 by %c471_i32 dim 1 : vector<1x512xf32>, i32 -> vector<1x512xf32>
    %cst_76 = arith.constant dense<0.000000e+00> : vector<8x512xf32>
    %121 = tpu.matmul %119, %120, %cst_76 {dimension_numbers = #tpu.dot_dimension_numbers<[1], [0], [0], [1], [0, 0, 1, 1], [], []>} : vector<8x1xf32>, vector<1x512xf32>, vector<8x512xf32> -> vector<8x512xf32>
    %122 = arith.addf %117, %121 : vector<8x512xf32>
    %c24 = arith.constant 24 : index
    %c0_77 = arith.constant 0 : index
    %c0_78 = arith.constant 0 : index
    %123 = vector.load %arg3[%c24, %c0_77, %c0_78] : memref<25x8x1xf32, #tpu.memory_space<vmem>>, vector<1x8x1xf32>
    %124 = vector.shape_cast %123 : vector<1x8x1xf32> to vector<8x1xf32>
    %c470_i32 = arith.constant 470 : i32
    %125 = tpu.dynamic_rotate %2 by %c470_i32 dim 1 : vector<1x512xf32>, i32 -> vector<1x512xf32>
    %cst_79 = arith.constant dense<0.000000e+00> : vector<8x512xf32>
    %126 = tpu.matmul %124, %125, %cst_79 {dimension_numbers = #tpu.dot_dimension_numbers<[1], [0], [0], [1], [0, 0, 1, 1], [], []>} : vector<8x1xf32>, vector<1x512xf32>, vector<8x512xf32> -> vector<8x512xf32>
    %127 = arith.addf %122, %126 : vector<8x512xf32>
    %c0_80 = arith.constant 0 : index
    %c0_81 = arith.constant 0 : index
    %128 = vector.load %arg4[%c0_80, %c0_81] : memref<8x1xf32, #tpu.memory_space<vmem>>, vector<8x1xf32>
    %129 = vector.broadcast %128 : vector<8x1xf32> to vector<8x512xf32>
    %130 = arith.addf %127, %129 : vector<8x512xf32>
    %131 = vector.broadcast %0 : vector<1x512xf32> to vector<8x512xf32>
    %132 = arith.mulf %130, %131 : vector<8x512xf32>
    %cst_82 = arith.constant dense<0.000000e+00> : vector<8xf32>
    %133 = vector.multi_reduction <add>, %132, %cst_82 [1] : vector<8x512xf32> to vector<8xf32>
    %134 = vector.shape_cast %133 : vector<8xf32> to vector<8x1xf32>
    %135 = arith.mulf %132, %132 : vector<8x512xf32>
    %cst_83 = arith.constant dense<0.000000e+00> : vector<8xf32>
    %136 = vector.multi_reduction <add>, %135, %cst_83 [1] : vector<8x512xf32> to vector<8xf32>
    %137 = vector.shape_cast %136 : vector<8xf32> to vector<8x1xf32>
    %c0_84 = arith.constant 0 : index
    %c0_85 = arith.constant 0 : index
    %138 = vector.load %arg7[%c0_84, %c0_85] : memref<8x8xf32, #tpu.memory_space<vmem>>, vector<8x8xf32>
    %cst_86 = arith.constant dense<0.000000e+00> : vector<8x1xf32>
    %139 = tpu.matmul %138, %134, %cst_86 {dimension_numbers = #tpu.dot_dimension_numbers<[1], [0], [0], [1], [0, 0, 1, 1], [], []>} : vector<8x8xf32>, vector<8x1xf32>, vector<8x1xf32> -> vector<8x1xf32>
    %c0_87 = arith.constant 0 : index
    %c0_88 = arith.constant 0 : index
    %140 = vector.load %arg7[%c0_87, %c0_88] : memref<8x8xf32, #tpu.memory_space<vmem>>, vector<8x8xf32>
    %cst_89 = arith.constant dense<0.000000e+00> : vector<8x1xf32>
    %141 = tpu.matmul %140, %137, %cst_89 {dimension_numbers = #tpu.dot_dimension_numbers<[1], [0], [0], [1], [0, 0, 1, 1], [], []>} : vector<8x8xf32>, vector<8x1xf32>, vector<8x1xf32> -> vector<8x1xf32>
    %142 = arith.mulf %139, %139 : vector<8x1xf32>
    %143 = arith.subf %141, %142 : vector<8x1xf32>
    %144 = vector.broadcast %139 : vector<8x1xf32> to vector<8x512xf32>
    %145 = arith.subf %132, %144 : vector<8x512xf32>
    %cst_90 = arith.constant 9.99999974E-6 : f32
    %146 = vector.broadcast %cst_90 : f32 to vector<8x1xf32>
    %147 = arith.addf %143, %146 : vector<8x1xf32>
    %148 = math.rsqrt %147 : vector<8x1xf32>
    %149 = vector.broadcast %148 : vector<8x1xf32> to vector<8x512xf32>
    %150 = arith.mulf %145, %149 : vector<8x512xf32>
    %c0_91 = arith.constant 0 : index
    %c0_92 = arith.constant 0 : index
    %151 = vector.load %arg5[%c0_91, %c0_92] : memref<8x1xf32, #tpu.memory_space<vmem>>, vector<8x1xf32>
    %152 = vector.broadcast %151 : vector<8x1xf32> to vector<8x512xf32>
    %153 = arith.mulf %150, %152 : vector<8x512xf32>
    %c0_93 = arith.constant 0 : index
    %c0_94 = arith.constant 0 : index
    %154 = vector.load %arg6[%c0_93, %c0_94] : memref<8x1xf32, #tpu.memory_space<vmem>>, vector<8x1xf32>
    %155 = vector.broadcast %154 : vector<8x1xf32> to vector<8x512xf32>
    %156 = arith.addf %153, %155 : vector<8x512xf32>
    %cst_95 = arith.constant 0.000000e+00 : f32
    %157 = vector.broadcast %cst_95 : f32 to vector<8x512xf32>
    %158 = arith.maximumf %156, %157 : vector<8x512xf32>
    %159 = vector.broadcast %0 : vector<1x512xf32> to vector<8x512xf32>
    %160 = arith.mulf %158, %159 : vector<8x512xf32>
    %cst_96 = arith.constant 0.000000e+00 : f32
    %161 = vector.broadcast %cst_96 : f32 to vector<32x512xf32>
    %c0_97 = arith.constant 0 : index
    %c0_98 = arith.constant 0 : index
    %c0_99 = arith.constant 0 : index
    %162 = vector.load %arg8[%c0_97, %c0_98, %c0_99] : memref<25x32x8xf32, #tpu.memory_space<vmem>>, vector<1x32x8xf32>
    %163 = vector.shape_cast %162 : vector<1x32x8xf32> to vector<32x8xf32>
    %c42_i32_100 = arith.constant 42 : i32
    %164 = tpu.dynamic_rotate %160 by %c42_i32_100 dim 1 : vector<8x512xf32>, i32 -> vector<8x512xf32>
    %cst_101 = arith.constant dense<0.000000e+00> : vector<32x512xf32>
    %165 = tpu.matmul %163, %164, %cst_101 {dimension_numbers = #tpu.dot_dimension_numbers<[1], [0], [0], [1], [0, 0, 1, 1], [], []>} : vector<32x8xf32>, vector<8x512xf32>, vector<32x512xf32> -> vector<32x512xf32>
    %166 = arith.addf %161, %165 : vector<32x512xf32>
    %c1_102 = arith.constant 1 : index
    %c0_103 = arith.constant 0 : index
    %c0_104 = arith.constant 0 : index
    %167 = vector.load %arg8[%c1_102, %c0_103, %c0_104] : memref<25x32x8xf32, #tpu.memory_space<vmem>>, vector<1x32x8xf32>
    %168 = vector.shape_cast %167 : vector<1x32x8xf32> to vector<32x8xf32>
    %c41_i32_105 = arith.constant 41 : i32
    %169 = tpu.dynamic_rotate %160 by %c41_i32_105 dim 1 : vector<8x512xf32>, i32 -> vector<8x512xf32>
    %cst_106 = arith.constant dense<0.000000e+00> : vector<32x512xf32>
    %170 = tpu.matmul %168, %169, %cst_106 {dimension_numbers = #tpu.dot_dimension_numbers<[1], [0], [0], [1], [0, 0, 1, 1], [], []>} : vector<32x8xf32>, vector<8x512xf32>, vector<32x512xf32> -> vector<32x512xf32>
    %171 = arith.addf %166, %170 : vector<32x512xf32>
    %c2_107 = arith.constant 2 : index
    %c0_108 = arith.constant 0 : index
    %c0_109 = arith.constant 0 : index
    %172 = vector.load %arg8[%c2_107, %c0_108, %c0_109] : memref<25x32x8xf32, #tpu.memory_space<vmem>>, vector<1x32x8xf32>
    %173 = vector.shape_cast %172 : vector<1x32x8xf32> to vector<32x8xf32>
    %c40_i32_110 = arith.constant 40 : i32
    %174 = tpu.dynamic_rotate %160 by %c40_i32_110 dim 1 : vector<8x512xf32>, i32 -> vector<8x512xf32>
    %cst_111 = arith.constant dense<0.000000e+00> : vector<32x512xf32>
    %175 = tpu.matmul %173, %174, %cst_111 {dimension_numbers = #tpu.dot_dimension_numbers<[1], [0], [0], [1], [0, 0, 1, 1], [], []>} : vector<32x8xf32>, vector<8x512xf32>, vector<32x512xf32> -> vector<32x512xf32>
    %176 = arith.addf %171, %175 : vector<32x512xf32>
    %c3_112 = arith.constant 3 : index
    %c0_113 = arith.constant 0 : index
    %c0_114 = arith.constant 0 : index
    %177 = vector.load %arg8[%c3_112, %c0_113, %c0_114] : memref<25x32x8xf32, #tpu.memory_space<vmem>>, vector<1x32x8xf32>
    %178 = vector.shape_cast %177 : vector<1x32x8xf32> to vector<32x8xf32>
    %c39_i32_115 = arith.constant 39 : i32
    %179 = tpu.dynamic_rotate %160 by %c39_i32_115 dim 1 : vector<8x512xf32>, i32 -> vector<8x512xf32>
    %cst_116 = arith.constant dense<0.000000e+00> : vector<32x512xf32>
    %180 = tpu.matmul %178, %179, %cst_116 {dimension_numbers = #tpu.dot_dimension_numbers<[1], [0], [0], [1], [0, 0, 1, 1], [], []>} : vector<32x8xf32>, vector<8x512xf32>, vector<32x512xf32> -> vector<32x512xf32>
    %181 = arith.addf %176, %180 : vector<32x512xf32>
    %c4_117 = arith.constant 4 : index
    %c0_118 = arith.constant 0 : index
    %c0_119 = arith.constant 0 : index
    %182 = vector.load %arg8[%c4_117, %c0_118, %c0_119] : memref<25x32x8xf32, #tpu.memory_space<vmem>>, vector<1x32x8xf32>
    %183 = vector.shape_cast %182 : vector<1x32x8xf32> to vector<32x8xf32>
    %c38_i32_120 = arith.constant 38 : i32
    %184 = tpu.dynamic_rotate %160 by %c38_i32_120 dim 1 : vector<8x512xf32>, i32 -> vector<8x512xf32>
    %cst_121 = arith.constant dense<0.000000e+00> : vector<32x512xf32>
    %185 = tpu.matmul %183, %184, %cst_121 {dimension_numbers = #tpu.dot_dimension_numbers<[1], [0], [0], [1], [0, 0, 1, 1], [], []>} : vector<32x8xf32>, vector<8x512xf32>, vector<32x512xf32> -> vector<32x512xf32>
    %186 = arith.addf %181, %185 : vector<32x512xf32>
    %c5_122 = arith.constant 5 : index
    %c0_123 = arith.constant 0 : index
    %c0_124 = arith.constant 0 : index
    %187 = vector.load %arg8[%c5_122, %c0_123, %c0_124] : memref<25x32x8xf32, #tpu.memory_space<vmem>>, vector<1x32x8xf32>
    %188 = vector.shape_cast %187 : vector<1x32x8xf32> to vector<32x8xf32>
    %c22_i32_125 = arith.constant 22 : i32
    %189 = tpu.dynamic_rotate %160 by %c22_i32_125 dim 1 : vector<8x512xf32>, i32 -> vector<8x512xf32>
    %cst_126 = arith.constant dense<0.000000e+00> : vector<32x512xf32>
    %190 = tpu.matmul %188, %189, %cst_126 {dimension_numbers = #tpu.dot_dimension_numbers<[1], [0], [0], [1], [0, 0, 1, 1], [], []>} : vector<32x8xf32>, vector<8x512xf32>, vector<32x512xf32> -> vector<32x512xf32>
    %191 = arith.addf %186, %190 : vector<32x512xf32>
    %c6_127 = arith.constant 6 : index
    %c0_128 = arith.constant 0 : index
    %c0_129 = arith.constant 0 : index
    %192 = vector.load %arg8[%c6_127, %c0_128, %c0_129] : memref<25x32x8xf32, #tpu.memory_space<vmem>>, vector<1x32x8xf32>
    %193 = vector.shape_cast %192 : vector<1x32x8xf32> to vector<32x8xf32>
    %c21_i32_130 = arith.constant 21 : i32
    %194 = tpu.dynamic_rotate %160 by %c21_i32_130 dim 1 : vector<8x512xf32>, i32 -> vector<8x512xf32>
    %cst_131 = arith.constant dense<0.000000e+00> : vector<32x512xf32>
    %195 = tpu.matmul %193, %194, %cst_131 {dimension_numbers = #tpu.dot_dimension_numbers<[1], [0], [0], [1], [0, 0, 1, 1], [], []>} : vector<32x8xf32>, vector<8x512xf32>, vector<32x512xf32> -> vector<32x512xf32>
    %196 = arith.addf %191, %195 : vector<32x512xf32>
    %c7_132 = arith.constant 7 : index
    %c0_133 = arith.constant 0 : index
    %c0_134 = arith.constant 0 : index
    %197 = vector.load %arg8[%c7_132, %c0_133, %c0_134] : memref<25x32x8xf32, #tpu.memory_space<vmem>>, vector<1x32x8xf32>
    %198 = vector.shape_cast %197 : vector<1x32x8xf32> to vector<32x8xf32>
    %c20_i32_135 = arith.constant 20 : i32
    %199 = tpu.dynamic_rotate %160 by %c20_i32_135 dim 1 : vector<8x512xf32>, i32 -> vector<8x512xf32>
    %cst_136 = arith.constant dense<0.000000e+00> : vector<32x512xf32>
    %200 = tpu.matmul %198, %199, %cst_136 {dimension_numbers = #tpu.dot_dimension_numbers<[1], [0], [0], [1], [0, 0, 1, 1], [], []>} : vector<32x8xf32>, vector<8x512xf32>, vector<32x512xf32> -> vector<32x512xf32>
    %201 = arith.addf %196, %200 : vector<32x512xf32>
    %c8_137 = arith.constant 8 : index
    %c0_138 = arith.constant 0 : index
    %c0_139 = arith.constant 0 : index
    %202 = vector.load %arg8[%c8_137, %c0_138, %c0_139] : memref<25x32x8xf32, #tpu.memory_space<vmem>>, vector<1x32x8xf32>
    %203 = vector.shape_cast %202 : vector<1x32x8xf32> to vector<32x8xf32>
    %c19_i32_140 = arith.constant 19 : i32
    %204 = tpu.dynamic_rotate %160 by %c19_i32_140 dim 1 : vector<8x512xf32>, i32 -> vector<8x512xf32>
    %cst_141 = arith.constant dense<0.000000e+00> : vector<32x512xf32>
    %205 = tpu.matmul %203, %204, %cst_141 {dimension_numbers = #tpu.dot_dimension_numbers<[1], [0], [0], [1], [0, 0, 1, 1], [], []>} : vector<32x8xf32>, vector<8x512xf32>, vector<32x512xf32> -> vector<32x512xf32>
    %206 = arith.addf %201, %205 : vector<32x512xf32>
    %c9_142 = arith.constant 9 : index
    %c0_143 = arith.constant 0 : index
    %c0_144 = arith.constant 0 : index
    %207 = vector.load %arg8[%c9_142, %c0_143, %c0_144] : memref<25x32x8xf32, #tpu.memory_space<vmem>>, vector<1x32x8xf32>
    %208 = vector.shape_cast %207 : vector<1x32x8xf32> to vector<32x8xf32>
    %c18_i32_145 = arith.constant 18 : i32
    %209 = tpu.dynamic_rotate %160 by %c18_i32_145 dim 1 : vector<8x512xf32>, i32 -> vector<8x512xf32>
    %cst_146 = arith.constant dense<0.000000e+00> : vector<32x512xf32>
    %210 = tpu.matmul %208, %209, %cst_146 {dimension_numbers = #tpu.dot_dimension_numbers<[1], [0], [0], [1], [0, 0, 1, 1], [], []>} : vector<32x8xf32>, vector<8x512xf32>, vector<32x512xf32> -> vector<32x512xf32>
    %211 = arith.addf %206, %210 : vector<32x512xf32>
    %c10_147 = arith.constant 10 : index
    %c0_148 = arith.constant 0 : index
    %c0_149 = arith.constant 0 : index
    %212 = vector.load %arg8[%c10_147, %c0_148, %c0_149] : memref<25x32x8xf32, #tpu.memory_space<vmem>>, vector<1x32x8xf32>
    %213 = vector.shape_cast %212 : vector<1x32x8xf32> to vector<32x8xf32>
    %c2_i32_150 = arith.constant 2 : i32
    %214 = tpu.dynamic_rotate %160 by %c2_i32_150 dim 1 : vector<8x512xf32>, i32 -> vector<8x512xf32>
    %cst_151 = arith.constant dense<0.000000e+00> : vector<32x512xf32>
    %215 = tpu.matmul %213, %214, %cst_151 {dimension_numbers = #tpu.dot_dimension_numbers<[1], [0], [0], [1], [0, 0, 1, 1], [], []>} : vector<32x8xf32>, vector<8x512xf32>, vector<32x512xf32> -> vector<32x512xf32>
    %216 = arith.addf %211, %215 : vector<32x512xf32>
    %c11_152 = arith.constant 11 : index
    %c0_153 = arith.constant 0 : index
    %c0_154 = arith.constant 0 : index
    %217 = vector.load %arg8[%c11_152, %c0_153, %c0_154] : memref<25x32x8xf32, #tpu.memory_space<vmem>>, vector<1x32x8xf32>
    %218 = vector.shape_cast %217 : vector<1x32x8xf32> to vector<32x8xf32>
    %c1_i32_155 = arith.constant 1 : i32
    %219 = tpu.dynamic_rotate %160 by %c1_i32_155 dim 1 : vector<8x512xf32>, i32 -> vector<8x512xf32>
    %cst_156 = arith.constant dense<0.000000e+00> : vector<32x512xf32>
    %220 = tpu.matmul %218, %219, %cst_156 {dimension_numbers = #tpu.dot_dimension_numbers<[1], [0], [0], [1], [0, 0, 1, 1], [], []>} : vector<32x8xf32>, vector<8x512xf32>, vector<32x512xf32> -> vector<32x512xf32>
    %221 = arith.addf %216, %220 : vector<32x512xf32>
    %c12_157 = arith.constant 12 : index
    %c0_158 = arith.constant 0 : index
    %c0_159 = arith.constant 0 : index
    %222 = vector.load %arg8[%c12_157, %c0_158, %c0_159] : memref<25x32x8xf32, #tpu.memory_space<vmem>>, vector<1x32x8xf32>
    %223 = vector.shape_cast %222 : vector<1x32x8xf32> to vector<32x8xf32>
    %cst_160 = arith.constant dense<0.000000e+00> : vector<32x512xf32>
    %224 = tpu.matmul %223, %160, %cst_160 {dimension_numbers = #tpu.dot_dimension_numbers<[1], [0], [0], [1], [0, 0, 1, 1], [], []>} : vector<32x8xf32>, vector<8x512xf32>, vector<32x512xf32> -> vector<32x512xf32>
    %225 = arith.addf %221, %224 : vector<32x512xf32>
    %c13_161 = arith.constant 13 : index
    %c0_162 = arith.constant 0 : index
    %c0_163 = arith.constant 0 : index
    %226 = vector.load %arg8[%c13_161, %c0_162, %c0_163] : memref<25x32x8xf32, #tpu.memory_space<vmem>>, vector<1x32x8xf32>
    %227 = vector.shape_cast %226 : vector<1x32x8xf32> to vector<32x8xf32>
    %c511_i32_164 = arith.constant 511 : i32
    %228 = tpu.dynamic_rotate %160 by %c511_i32_164 dim 1 : vector<8x512xf32>, i32 -> vector<8x512xf32>
    %cst_165 = arith.constant dense<0.000000e+00> : vector<32x512xf32>
    %229 = tpu.matmul %227, %228, %cst_165 {dimension_numbers = #tpu.dot_dimension_numbers<[1], [0], [0], [1], [0, 0, 1, 1], [], []>} : vector<32x8xf32>, vector<8x512xf32>, vector<32x512xf32> -> vector<32x512xf32>
    %230 = arith.addf %225, %229 : vector<32x512xf32>
    %c14_166 = arith.constant 14 : index
    %c0_167 = arith.constant 0 : index
    %c0_168 = arith.constant 0 : index
    %231 = vector.load %arg8[%c14_166, %c0_167, %c0_168] : memref<25x32x8xf32, #tpu.memory_space<vmem>>, vector<1x32x8xf32>
    %232 = vector.shape_cast %231 : vector<1x32x8xf32> to vector<32x8xf32>
    %c510_i32_169 = arith.constant 510 : i32
    %233 = tpu.dynamic_rotate %160 by %c510_i32_169 dim 1 : vector<8x512xf32>, i32 -> vector<8x512xf32>
    %cst_170 = arith.constant dense<0.000000e+00> : vector<32x512xf32>
    %234 = tpu.matmul %232, %233, %cst_170 {dimension_numbers = #tpu.dot_dimension_numbers<[1], [0], [0], [1], [0, 0, 1, 1], [], []>} : vector<32x8xf32>, vector<8x512xf32>, vector<32x512xf32> -> vector<32x512xf32>
    %235 = arith.addf %230, %234 : vector<32x512xf32>
    %c15_171 = arith.constant 15 : index
    %c0_172 = arith.constant 0 : index
    %c0_173 = arith.constant 0 : index
    %236 = vector.load %arg8[%c15_171, %c0_172, %c0_173] : memref<25x32x8xf32, #tpu.memory_space<vmem>>, vector<1x32x8xf32>
    %237 = vector.shape_cast %236 : vector<1x32x8xf32> to vector<32x8xf32>
    %c494_i32_174 = arith.constant 494 : i32
    %238 = tpu.dynamic_rotate %160 by %c494_i32_174 dim 1 : vector<8x512xf32>, i32 -> vector<8x512xf32>
    %cst_175 = arith.constant dense<0.000000e+00> : vector<32x512xf32>
    %239 = tpu.matmul %237, %238, %cst_175 {dimension_numbers = #tpu.dot_dimension_numbers<[1], [0], [0], [1], [0, 0, 1, 1], [], []>} : vector<32x8xf32>, vector<8x512xf32>, vector<32x512xf32> -> vector<32x512xf32>
    %240 = arith.addf %235, %239 : vector<32x512xf32>
    %c16_176 = arith.constant 16 : index
    %c0_177 = arith.constant 0 : index
    %c0_178 = arith.constant 0 : index
    %241 = vector.load %arg8[%c16_176, %c0_177, %c0_178] : memref<25x32x8xf32, #tpu.memory_space<vmem>>, vector<1x32x8xf32>
    %242 = vector.shape_cast %241 : vector<1x32x8xf32> to vector<32x8xf32>
    %c493_i32_179 = arith.constant 493 : i32
    %243 = tpu.dynamic_rotate %160 by %c493_i32_179 dim 1 : vector<8x512xf32>, i32 -> vector<8x512xf32>
    %cst_180 = arith.constant dense<0.000000e+00> : vector<32x512xf32>
    %244 = tpu.matmul %242, %243, %cst_180 {dimension_numbers = #tpu.dot_dimension_numbers<[1], [0], [0], [1], [0, 0, 1, 1], [], []>} : vector<32x8xf32>, vector<8x512xf32>, vector<32x512xf32> -> vector<32x512xf32>
    %245 = arith.addf %240, %244 : vector<32x512xf32>
    %c17_181 = arith.constant 17 : index
    %c0_182 = arith.constant 0 : index
    %c0_183 = arith.constant 0 : index
    %246 = vector.load %arg8[%c17_181, %c0_182, %c0_183] : memref<25x32x8xf32, #tpu.memory_space<vmem>>, vector<1x32x8xf32>
    %247 = vector.shape_cast %246 : vector<1x32x8xf32> to vector<32x8xf32>
    %c492_i32_184 = arith.constant 492 : i32
    %248 = tpu.dynamic_rotate %160 by %c492_i32_184 dim 1 : vector<8x512xf32>, i32 -> vector<8x512xf32>
    %cst_185 = arith.constant dense<0.000000e+00> : vector<32x512xf32>
    %249 = tpu.matmul %247, %248, %cst_185 {dimension_numbers = #tpu.dot_dimension_numbers<[1], [0], [0], [1], [0, 0, 1, 1], [], []>} : vector<32x8xf32>, vector<8x512xf32>, vector<32x512xf32> -> vector<32x512xf32>
    %250 = arith.addf %245, %249 : vector<32x512xf32>
    %c18_186 = arith.constant 18 : index
    %c0_187 = arith.constant 0 : index
    %c0_188 = arith.constant 0 : index
    %251 = vector.load %arg8[%c18_186, %c0_187, %c0_188] : memref<25x32x8xf32, #tpu.memory_space<vmem>>, vector<1x32x8xf32>
    %252 = vector.shape_cast %251 : vector<1x32x8xf32> to vector<32x8xf32>
    %c491_i32_189 = arith.constant 491 : i32
    %253 = tpu.dynamic_rotate %160 by %c491_i32_189 dim 1 : vector<8x512xf32>, i32 -> vector<8x512xf32>
    %cst_190 = arith.constant dense<0.000000e+00> : vector<32x512xf32>
    %254 = tpu.matmul %252, %253, %cst_190 {dimension_numbers = #tpu.dot_dimension_numbers<[1], [0], [0], [1], [0, 0, 1, 1], [], []>} : vector<32x8xf32>, vector<8x512xf32>, vector<32x512xf32> -> vector<32x512xf32>
    %255 = arith.addf %250, %254 : vector<32x512xf32>
    %c19_191 = arith.constant 19 : index
    %c0_192 = arith.constant 0 : index
    %c0_193 = arith.constant 0 : index
    %256 = vector.load %arg8[%c19_191, %c0_192, %c0_193] : memref<25x32x8xf32, #tpu.memory_space<vmem>>, vector<1x32x8xf32>
    %257 = vector.shape_cast %256 : vector<1x32x8xf32> to vector<32x8xf32>
    %c490_i32_194 = arith.constant 490 : i32
    %258 = tpu.dynamic_rotate %160 by %c490_i32_194 dim 1 : vector<8x512xf32>, i32 -> vector<8x512xf32>
    %cst_195 = arith.constant dense<0.000000e+00> : vector<32x512xf32>
    %259 = tpu.matmul %257, %258, %cst_195 {dimension_numbers = #tpu.dot_dimension_numbers<[1], [0], [0], [1], [0, 0, 1, 1], [], []>} : vector<32x8xf32>, vector<8x512xf32>, vector<32x512xf32> -> vector<32x512xf32>
    %260 = arith.addf %255, %259 : vector<32x512xf32>
    %c20_196 = arith.constant 20 : index
    %c0_197 = arith.constant 0 : index
    %c0_198 = arith.constant 0 : index
    %261 = vector.load %arg8[%c20_196, %c0_197, %c0_198] : memref<25x32x8xf32, #tpu.memory_space<vmem>>, vector<1x32x8xf32>
    %262 = vector.shape_cast %261 : vector<1x32x8xf32> to vector<32x8xf32>
    %c474_i32_199 = arith.constant 474 : i32
    %263 = tpu.dynamic_rotate %160 by %c474_i32_199 dim 1 : vector<8x512xf32>, i32 -> vector<8x512xf32>
    %cst_200 = arith.constant dense<0.000000e+00> : vector<32x512xf32>
    %264 = tpu.matmul %262, %263, %cst_200 {dimension_numbers = #tpu.dot_dimension_numbers<[1], [0], [0], [1], [0, 0, 1, 1], [], []>} : vector<32x8xf32>, vector<8x512xf32>, vector<32x512xf32> -> vector<32x512xf32>
    %265 = arith.addf %260, %264 : vector<32x512xf32>
    %c21_201 = arith.constant 21 : index
    %c0_202 = arith.constant 0 : index
    %c0_203 = arith.constant 0 : index
    %266 = vector.load %arg8[%c21_201, %c0_202, %c0_203] : memref<25x32x8xf32, #tpu.memory_space<vmem>>, vector<1x32x8xf32>
    %267 = vector.shape_cast %266 : vector<1x32x8xf32> to vector<32x8xf32>
    %c473_i32_204 = arith.constant 473 : i32
    %268 = tpu.dynamic_rotate %160 by %c473_i32_204 dim 1 : vector<8x512xf32>, i32 -> vector<8x512xf32>
    %cst_205 = arith.constant dense<0.000000e+00> : vector<32x512xf32>
    %269 = tpu.matmul %267, %268, %cst_205 {dimension_numbers = #tpu.dot_dimension_numbers<[1], [0], [0], [1], [0, 0, 1, 1], [], []>} : vector<32x8xf32>, vector<8x512xf32>, vector<32x512xf32> -> vector<32x512xf32>
    %270 = arith.addf %265, %269 : vector<32x512xf32>
    %c22_206 = arith.constant 22 : index
    %c0_207 = arith.constant 0 : index
    %c0_208 = arith.constant 0 : index
    %271 = vector.load %arg8[%c22_206, %c0_207, %c0_208] : memref<25x32x8xf32, #tpu.memory_space<vmem>>, vector<1x32x8xf32>
    %272 = vector.shape_cast %271 : vector<1x32x8xf32> to vector<32x8xf32>
    %c472_i32_209 = arith.constant 472 : i32
    %273 = tpu.dynamic_rotate %160 by %c472_i32_209 dim 1 : vector<8x512xf32>, i32 -> vector<8x512xf32>
    %cst_210 = arith.constant dense<0.000000e+00> : vector<32x512xf32>
    %274 = tpu.matmul %272, %273, %cst_210 {dimension_numbers = #tpu.dot_dimension_numbers<[1], [0], [0], [1], [0, 0, 1, 1], [], []>} : vector<32x8xf32>, vector<8x512xf32>, vector<32x512xf32> -> vector<32x512xf32>
    %275 = arith.addf %270, %274 : vector<32x512xf32>
    %c23_211 = arith.constant 23 : index
    %c0_212 = arith.constant 0 : index
    %c0_213 = arith.constant 0 : index
    %276 = vector.load %arg8[%c23_211, %c0_212, %c0_213] : memref<25x32x8xf32, #tpu.memory_space<vmem>>, vector<1x32x8xf32>
    %277 = vector.shape_cast %276 : vector<1x32x8xf32> to vector<32x8xf32>
    %c471_i32_214 = arith.constant 471 : i32
    %278 = tpu.dynamic_rotate %160 by %c471_i32_214 dim 1 : vector<8x512xf32>, i32 -> vector<8x512xf32>
    %cst_215 = arith.constant dense<0.000000e+00> : vector<32x512xf32>
    %279 = tpu.matmul %277, %278, %cst_215 {dimension_numbers = #tpu.dot_dimension_numbers<[1], [0], [0], [1], [0, 0, 1, 1], [], []>} : vector<32x8xf32>, vector<8x512xf32>, vector<32x512xf32> -> vector<32x512xf32>
    %280 = arith.addf %275, %279 : vector<32x512xf32>
    %c24_216 = arith.constant 24 : index
    %c0_217 = arith.constant 0 : index
    %c0_218 = arith.constant 0 : index
    %281 = vector.load %arg8[%c24_216, %c0_217, %c0_218] : memref<25x32x8xf32, #tpu.memory_space<vmem>>, vector<1x32x8xf32>
    %282 = vector.shape_cast %281 : vector<1x32x8xf32> to vector<32x8xf32>
    %c470_i32_219 = arith.constant 470 : i32
    %283 = tpu.dynamic_rotate %160 by %c470_i32_219 dim 1 : vector<8x512xf32>, i32 -> vector<8x512xf32>
    %cst_220 = arith.constant dense<0.000000e+00> : vector<32x512xf32>
    %284 = tpu.matmul %282, %283, %cst_220 {dimension_numbers = #tpu.dot_dimension_numbers<[1], [0], [0], [1], [0, 0, 1, 1], [], []>} : vector<32x8xf32>, vector<8x512xf32>, vector<32x512xf32> -> vector<32x512xf32>
    %285 = arith.addf %280, %284 : vector<32x512xf32>
    %c0_221 = arith.constant 0 : index
    %c0_222 = arith.constant 0 : index
    %286 = vector.load %arg9[%c0_221, %c0_222] : memref<32x1xf32, #tpu.memory_space<vmem>>, vector<32x1xf32>
    %287 = vector.broadcast %286 : vector<32x1xf32> to vector<32x512xf32>
    %288 = arith.addf %285, %287 : vector<32x512xf32>
    %289 = vector.broadcast %0 : vector<1x512xf32> to vector<32x512xf32>
    %290 = arith.mulf %288, %289 : vector<32x512xf32>
    %cst_223 = arith.constant dense<0.000000e+00> : vector<32xf32>
    %291 = vector.multi_reduction <add>, %290, %cst_223 [1] : vector<32x512xf32> to vector<32xf32>
    %292 = vector.shape_cast %291 : vector<32xf32> to vector<32x1xf32>
    %293 = arith.mulf %290, %290 : vector<32x512xf32>
    %cst_224 = arith.constant dense<0.000000e+00> : vector<32xf32>
    %294 = vector.multi_reduction <add>, %293, %cst_224 [1] : vector<32x512xf32> to vector<32xf32>
    %295 = vector.shape_cast %294 : vector<32xf32> to vector<32x1xf32>
    %c0_225 = arith.constant 0 : index
    %c0_226 = arith.constant 0 : index
    %296 = vector.load %arg12[%c0_225, %c0_226] : memref<32x32xf32, #tpu.memory_space<vmem>>, vector<32x32xf32>
    %cst_227 = arith.constant dense<0.000000e+00> : vector<32x1xf32>
    %297 = tpu.matmul %296, %292, %cst_227 {dimension_numbers = #tpu.dot_dimension_numbers<[1], [0], [0], [1], [0, 0, 1, 1], [], []>} : vector<32x32xf32>, vector<32x1xf32>, vector<32x1xf32> -> vector<32x1xf32>
    %c0_228 = arith.constant 0 : index
    %c0_229 = arith.constant 0 : index
    %298 = vector.load %arg12[%c0_228, %c0_229] : memref<32x32xf32, #tpu.memory_space<vmem>>, vector<32x32xf32>
    %cst_230 = arith.constant dense<0.000000e+00> : vector<32x1xf32>
    %299 = tpu.matmul %298, %295, %cst_230 {dimension_numbers = #tpu.dot_dimension_numbers<[1], [0], [0], [1], [0, 0, 1, 1], [], []>} : vector<32x32xf32>, vector<32x1xf32>, vector<32x1xf32> -> vector<32x1xf32>
    %300 = arith.mulf %297, %297 : vector<32x1xf32>
    %301 = arith.subf %299, %300 : vector<32x1xf32>
    %302 = vector.broadcast %297 : vector<32x1xf32> to vector<32x512xf32>
    %303 = arith.subf %290, %302 : vector<32x512xf32>
    %cst_231 = arith.constant 9.99999974E-6 : f32
    %304 = vector.broadcast %cst_231 : f32 to vector<32x1xf32>
    %305 = arith.addf %301, %304 : vector<32x1xf32>
    %306 = math.rsqrt %305 : vector<32x1xf32>
    %307 = vector.broadcast %306 : vector<32x1xf32> to vector<32x512xf32>
    %308 = arith.mulf %303, %307 : vector<32x512xf32>
    %c0_232 = arith.constant 0 : index
    %c0_233 = arith.constant 0 : index
    %309 = vector.load %arg10[%c0_232, %c0_233] : memref<32x1xf32, #tpu.memory_space<vmem>>, vector<32x1xf32>
    %310 = vector.broadcast %309 : vector<32x1xf32> to vector<32x512xf32>
    %311 = arith.mulf %308, %310 : vector<32x512xf32>
    %c0_234 = arith.constant 0 : index
    %c0_235 = arith.constant 0 : index
    %312 = vector.load %arg11[%c0_234, %c0_235] : memref<32x1xf32, #tpu.memory_space<vmem>>, vector<32x1xf32>
    %313 = vector.broadcast %312 : vector<32x1xf32> to vector<32x512xf32>
    %314 = arith.addf %311, %313 : vector<32x512xf32>
    %cst_236 = arith.constant 0.000000e+00 : f32
    %315 = vector.broadcast %cst_236 : f32 to vector<32x512xf32>
    %316 = arith.maximumf %314, %315 : vector<32x512xf32>
    %317 = vector.broadcast %0 : vector<1x512xf32> to vector<32x512xf32>
    %318 = arith.mulf %316, %317 : vector<32x512xf32>
    %cst_237 = arith.constant 0.000000e+00 : f32
    %319 = vector.broadcast %cst_237 : f32 to vector<8x512xf32>
    %c0_238 = arith.constant 0 : index
    %c0_239 = arith.constant 0 : index
    %c0_240 = arith.constant 0 : index
    %320 = vector.load %arg13[%c0_238, %c0_239, %c0_240] : memref<25x8x32xf32, #tpu.memory_space<vmem>>, vector<1x8x32xf32>
    %321 = vector.shape_cast %320 : vector<1x8x32xf32> to vector<8x32xf32>
    %cst_241 = arith.constant dense<0.000000e+00> : vector<8x512xf32>
    %322 = tpu.matmul %321, %318, %cst_241 {dimension_numbers = #tpu.dot_dimension_numbers<[1], [0], [0], [1], [0, 0, 1, 1], [], []>} : vector<8x32xf32>, vector<32x512xf32>, vector<8x512xf32> -> vector<8x512xf32>
    %c42_i32_242 = arith.constant 42 : i32
    %323 = tpu.dynamic_rotate %322 by %c42_i32_242 dim 1 : vector<8x512xf32>, i32 -> vector<8x512xf32>
    %324 = arith.addf %319, %323 : vector<8x512xf32>
    %c1_243 = arith.constant 1 : index
    %c0_244 = arith.constant 0 : index
    %c0_245 = arith.constant 0 : index
    %325 = vector.load %arg13[%c1_243, %c0_244, %c0_245] : memref<25x8x32xf32, #tpu.memory_space<vmem>>, vector<1x8x32xf32>
    %326 = vector.shape_cast %325 : vector<1x8x32xf32> to vector<8x32xf32>
    %cst_246 = arith.constant dense<0.000000e+00> : vector<8x512xf32>
    %327 = tpu.matmul %326, %318, %cst_246 {dimension_numbers = #tpu.dot_dimension_numbers<[1], [0], [0], [1], [0, 0, 1, 1], [], []>} : vector<8x32xf32>, vector<32x512xf32>, vector<8x512xf32> -> vector<8x512xf32>
    %c41_i32_247 = arith.constant 41 : i32
    %328 = tpu.dynamic_rotate %327 by %c41_i32_247 dim 1 : vector<8x512xf32>, i32 -> vector<8x512xf32>
    %329 = arith.addf %324, %328 : vector<8x512xf32>
    %c2_248 = arith.constant 2 : index
    %c0_249 = arith.constant 0 : index
    %c0_250 = arith.constant 0 : index
    %330 = vector.load %arg13[%c2_248, %c0_249, %c0_250] : memref<25x8x32xf32, #tpu.memory_space<vmem>>, vector<1x8x32xf32>
    %331 = vector.shape_cast %330 : vector<1x8x32xf32> to vector<8x32xf32>
    %cst_251 = arith.constant dense<0.000000e+00> : vector<8x512xf32>
    %332 = tpu.matmul %331, %318, %cst_251 {dimension_numbers = #tpu.dot_dimension_numbers<[1], [0], [0], [1], [0, 0, 1, 1], [], []>} : vector<8x32xf32>, vector<32x512xf32>, vector<8x512xf32> -> vector<8x512xf32>
    %c40_i32_252 = arith.constant 40 : i32
    %333 = tpu.dynamic_rotate %332 by %c40_i32_252 dim 1 : vector<8x512xf32>, i32 -> vector<8x512xf32>
    %334 = arith.addf %329, %333 : vector<8x512xf32>
    %c3_253 = arith.constant 3 : index
    %c0_254 = arith.constant 0 : index
    %c0_255 = arith.constant 0 : index
    %335 = vector.load %arg13[%c3_253, %c0_254, %c0_255] : memref<25x8x32xf32, #tpu.memory_space<vmem>>, vector<1x8x32xf32>
    %336 = vector.shape_cast %335 : vector<1x8x32xf32> to vector<8x32xf32>
    %cst_256 = arith.constant dense<0.000000e+00> : vector<8x512xf32>
    %337 = tpu.matmul %336, %318, %cst_256 {dimension_numbers = #tpu.dot_dimension_numbers<[1], [0], [0], [1], [0, 0, 1, 1], [], []>} : vector<8x32xf32>, vector<32x512xf32>, vector<8x512xf32> -> vector<8x512xf32>
    %c39_i32_257 = arith.constant 39 : i32
    %338 = tpu.dynamic_rotate %337 by %c39_i32_257 dim 1 : vector<8x512xf32>, i32 -> vector<8x512xf32>
    %339 = arith.addf %334, %338 : vector<8x512xf32>
    %c4_258 = arith.constant 4 : index
    %c0_259 = arith.constant 0 : index
    %c0_260 = arith.constant 0 : index
    %340 = vector.load %arg13[%c4_258, %c0_259, %c0_260] : memref<25x8x32xf32, #tpu.memory_space<vmem>>, vector<1x8x32xf32>
    %341 = vector.shape_cast %340 : vector<1x8x32xf32> to vector<8x32xf32>
    %cst_261 = arith.constant dense<0.000000e+00> : vector<8x512xf32>
    %342 = tpu.matmul %341, %318, %cst_261 {dimension_numbers = #tpu.dot_dimension_numbers<[1], [0], [0], [1], [0, 0, 1, 1], [], []>} : vector<8x32xf32>, vector<32x512xf32>, vector<8x512xf32> -> vector<8x512xf32>
    %c38_i32_262 = arith.constant 38 : i32
    %343 = tpu.dynamic_rotate %342 by %c38_i32_262 dim 1 : vector<8x512xf32>, i32 -> vector<8x512xf32>
    %344 = arith.addf %339, %343 : vector<8x512xf32>
    %c5_263 = arith.constant 5 : index
    %c0_264 = arith.constant 0 : index
    %c0_265 = arith.constant 0 : index
    %345 = vector.load %arg13[%c5_263, %c0_264, %c0_265] : memref<25x8x32xf32, #tpu.memory_space<vmem>>, vector<1x8x32xf32>
    %346 = vector.shape_cast %345 : vector<1x8x32xf32> to vector<8x32xf32>
    %cst_266 = arith.constant dense<0.000000e+00> : vector<8x512xf32>
    %347 = tpu.matmul %346, %318, %cst_266 {dimension_numbers = #tpu.dot_dimension_numbers<[1], [0], [0], [1], [0, 0, 1, 1], [], []>} : vector<8x32xf32>, vector<32x512xf32>, vector<8x512xf32> -> vector<8x512xf32>
    %c22_i32_267 = arith.constant 22 : i32
    %348 = tpu.dynamic_rotate %347 by %c22_i32_267 dim 1 : vector<8x512xf32>, i32 -> vector<8x512xf32>
    %349 = arith.addf %344, %348 : vector<8x512xf32>
    %c6_268 = arith.constant 6 : index
    %c0_269 = arith.constant 0 : index
    %c0_270 = arith.constant 0 : index
    %350 = vector.load %arg13[%c6_268, %c0_269, %c0_270] : memref<25x8x32xf32, #tpu.memory_space<vmem>>, vector<1x8x32xf32>
    %351 = vector.shape_cast %350 : vector<1x8x32xf32> to vector<8x32xf32>
    %cst_271 = arith.constant dense<0.000000e+00> : vector<8x512xf32>
    %352 = tpu.matmul %351, %318, %cst_271 {dimension_numbers = #tpu.dot_dimension_numbers<[1], [0], [0], [1], [0, 0, 1, 1], [], []>} : vector<8x32xf32>, vector<32x512xf32>, vector<8x512xf32> -> vector<8x512xf32>
    %c21_i32_272 = arith.constant 21 : i32
    %353 = tpu.dynamic_rotate %352 by %c21_i32_272 dim 1 : vector<8x512xf32>, i32 -> vector<8x512xf32>
    %354 = arith.addf %349, %353 : vector<8x512xf32>
    %c7_273 = arith.constant 7 : index
    %c0_274 = arith.constant 0 : index
    %c0_275 = arith.constant 0 : index
    %355 = vector.load %arg13[%c7_273, %c0_274, %c0_275] : memref<25x8x32xf32, #tpu.memory_space<vmem>>, vector<1x8x32xf32>
    %356 = vector.shape_cast %355 : vector<1x8x32xf32> to vector<8x32xf32>
    %cst_276 = arith.constant dense<0.000000e+00> : vector<8x512xf32>
    %357 = tpu.matmul %356, %318, %cst_276 {dimension_numbers = #tpu.dot_dimension_numbers<[1], [0], [0], [1], [0, 0, 1, 1], [], []>} : vector<8x32xf32>, vector<32x512xf32>, vector<8x512xf32> -> vector<8x512xf32>
    %c20_i32_277 = arith.constant 20 : i32
    %358 = tpu.dynamic_rotate %357 by %c20_i32_277 dim 1 : vector<8x512xf32>, i32 -> vector<8x512xf32>
    %359 = arith.addf %354, %358 : vector<8x512xf32>
    %c8_278 = arith.constant 8 : index
    %c0_279 = arith.constant 0 : index
    %c0_280 = arith.constant 0 : index
    %360 = vector.load %arg13[%c8_278, %c0_279, %c0_280] : memref<25x8x32xf32, #tpu.memory_space<vmem>>, vector<1x8x32xf32>
    %361 = vector.shape_cast %360 : vector<1x8x32xf32> to vector<8x32xf32>
    %cst_281 = arith.constant dense<0.000000e+00> : vector<8x512xf32>
    %362 = tpu.matmul %361, %318, %cst_281 {dimension_numbers = #tpu.dot_dimension_numbers<[1], [0], [0], [1], [0, 0, 1, 1], [], []>} : vector<8x32xf32>, vector<32x512xf32>, vector<8x512xf32> -> vector<8x512xf32>
    %c19_i32_282 = arith.constant 19 : i32
    %363 = tpu.dynamic_rotate %362 by %c19_i32_282 dim 1 : vector<8x512xf32>, i32 -> vector<8x512xf32>
    %364 = arith.addf %359, %363 : vector<8x512xf32>
    %c9_283 = arith.constant 9 : index
    %c0_284 = arith.constant 0 : index
    %c0_285 = arith.constant 0 : index
    %365 = vector.load %arg13[%c9_283, %c0_284, %c0_285] : memref<25x8x32xf32, #tpu.memory_space<vmem>>, vector<1x8x32xf32>
    %366 = vector.shape_cast %365 : vector<1x8x32xf32> to vector<8x32xf32>
    %cst_286 = arith.constant dense<0.000000e+00> : vector<8x512xf32>
    %367 = tpu.matmul %366, %318, %cst_286 {dimension_numbers = #tpu.dot_dimension_numbers<[1], [0], [0], [1], [0, 0, 1, 1], [], []>} : vector<8x32xf32>, vector<32x512xf32>, vector<8x512xf32> -> vector<8x512xf32>
    %c18_i32_287 = arith.constant 18 : i32
    %368 = tpu.dynamic_rotate %367 by %c18_i32_287 dim 1 : vector<8x512xf32>, i32 -> vector<8x512xf32>
    %369 = arith.addf %364, %368 : vector<8x512xf32>
    %c10_288 = arith.constant 10 : index
    %c0_289 = arith.constant 0 : index
    %c0_290 = arith.constant 0 : index
    %370 = vector.load %arg13[%c10_288, %c0_289, %c0_290] : memref<25x8x32xf32, #tpu.memory_space<vmem>>, vector<1x8x32xf32>
    %371 = vector.shape_cast %370 : vector<1x8x32xf32> to vector<8x32xf32>
    %cst_291 = arith.constant dense<0.000000e+00> : vector<8x512xf32>
    %372 = tpu.matmul %371, %318, %cst_291 {dimension_numbers = #tpu.dot_dimension_numbers<[1], [0], [0], [1], [0, 0, 1, 1], [], []>} : vector<8x32xf32>, vector<32x512xf32>, vector<8x512xf32> -> vector<8x512xf32>
    %c2_i32_292 = arith.constant 2 : i32
    %373 = tpu.dynamic_rotate %372 by %c2_i32_292 dim 1 : vector<8x512xf32>, i32 -> vector<8x512xf32>
    %374 = arith.addf %369, %373 : vector<8x512xf32>
    %c11_293 = arith.constant 11 : index
    %c0_294 = arith.constant 0 : index
    %c0_295 = arith.constant 0 : index
    %375 = vector.load %arg13[%c11_293, %c0_294, %c0_295] : memref<25x8x32xf32, #tpu.memory_space<vmem>>, vector<1x8x32xf32>
    %376 = vector.shape_cast %375 : vector<1x8x32xf32> to vector<8x32xf32>
    %cst_296 = arith.constant dense<0.000000e+00> : vector<8x512xf32>
    %377 = tpu.matmul %376, %318, %cst_296 {dimension_numbers = #tpu.dot_dimension_numbers<[1], [0], [0], [1], [0, 0, 1, 1], [], []>} : vector<8x32xf32>, vector<32x512xf32>, vector<8x512xf32> -> vector<8x512xf32>
    %c1_i32_297 = arith.constant 1 : i32
    %378 = tpu.dynamic_rotate %377 by %c1_i32_297 dim 1 : vector<8x512xf32>, i32 -> vector<8x512xf32>
    %379 = arith.addf %374, %378 : vector<8x512xf32>
    %c12_298 = arith.constant 12 : index
    %c0_299 = arith.constant 0 : index
    %c0_300 = arith.constant 0 : index
    %380 = vector.load %arg13[%c12_298, %c0_299, %c0_300] : memref<25x8x32xf32, #tpu.memory_space<vmem>>, vector<1x8x32xf32>
    %381 = vector.shape_cast %380 : vector<1x8x32xf32> to vector<8x32xf32>
    %cst_301 = arith.constant dense<0.000000e+00> : vector<8x512xf32>
    %382 = tpu.matmul %381, %318, %cst_301 {dimension_numbers = #tpu.dot_dimension_numbers<[1], [0], [0], [1], [0, 0, 1, 1], [], []>} : vector<8x32xf32>, vector<32x512xf32>, vector<8x512xf32> -> vector<8x512xf32>
    %383 = arith.addf %379, %382 : vector<8x512xf32>
    %c13_302 = arith.constant 13 : index
    %c0_303 = arith.constant 0 : index
    %c0_304 = arith.constant 0 : index
    %384 = vector.load %arg13[%c13_302, %c0_303, %c0_304] : memref<25x8x32xf32, #tpu.memory_space<vmem>>, vector<1x8x32xf32>
    %385 = vector.shape_cast %384 : vector<1x8x32xf32> to vector<8x32xf32>
    %cst_305 = arith.constant dense<0.000000e+00> : vector<8x512xf32>
    %386 = tpu.matmul %385, %318, %cst_305 {dimension_numbers = #tpu.dot_dimension_numbers<[1], [0], [0], [1], [0, 0, 1, 1], [], []>} : vector<8x32xf32>, vector<32x512xf32>, vector<8x512xf32> -> vector<8x512xf32>
    %c511_i32_306 = arith.constant 511 : i32
    %387 = tpu.dynamic_rotate %386 by %c511_i32_306 dim 1 : vector<8x512xf32>, i32 -> vector<8x512xf32>
    %388 = arith.addf %383, %387 : vector<8x512xf32>
    %c14_307 = arith.constant 14 : index
    %c0_308 = arith.constant 0 : index
    %c0_309 = arith.constant 0 : index
    %389 = vector.load %arg13[%c14_307, %c0_308, %c0_309] : memref<25x8x32xf32, #tpu.memory_space<vmem>>, vector<1x8x32xf32>
    %390 = vector.shape_cast %389 : vector<1x8x32xf32> to vector<8x32xf32>
    %cst_310 = arith.constant dense<0.000000e+00> : vector<8x512xf32>
    %391 = tpu.matmul %390, %318, %cst_310 {dimension_numbers = #tpu.dot_dimension_numbers<[1], [0], [0], [1], [0, 0, 1, 1], [], []>} : vector<8x32xf32>, vector<32x512xf32>, vector<8x512xf32> -> vector<8x512xf32>
    %c510_i32_311 = arith.constant 510 : i32
    %392 = tpu.dynamic_rotate %391 by %c510_i32_311 dim 1 : vector<8x512xf32>, i32 -> vector<8x512xf32>
    %393 = arith.addf %388, %392 : vector<8x512xf32>
    %c15_312 = arith.constant 15 : index
    %c0_313 = arith.constant 0 : index
    %c0_314 = arith.constant 0 : index
    %394 = vector.load %arg13[%c15_312, %c0_313, %c0_314] : memref<25x8x32xf32, #tpu.memory_space<vmem>>, vector<1x8x32xf32>
    %395 = vector.shape_cast %394 : vector<1x8x32xf32> to vector<8x32xf32>
    %cst_315 = arith.constant dense<0.000000e+00> : vector<8x512xf32>
    %396 = tpu.matmul %395, %318, %cst_315 {dimension_numbers = #tpu.dot_dimension_numbers<[1], [0], [0], [1], [0, 0, 1, 1], [], []>} : vector<8x32xf32>, vector<32x512xf32>, vector<8x512xf32> -> vector<8x512xf32>
    %c494_i32_316 = arith.constant 494 : i32
    %397 = tpu.dynamic_rotate %396 by %c494_i32_316 dim 1 : vector<8x512xf32>, i32 -> vector<8x512xf32>
    %398 = arith.addf %393, %397 : vector<8x512xf32>
    %c16_317 = arith.constant 16 : index
    %c0_318 = arith.constant 0 : index
    %c0_319 = arith.constant 0 : index
    %399 = vector.load %arg13[%c16_317, %c0_318, %c0_319] : memref<25x8x32xf32, #tpu.memory_space<vmem>>, vector<1x8x32xf32>
    %400 = vector.shape_cast %399 : vector<1x8x32xf32> to vector<8x32xf32>
    %cst_320 = arith.constant dense<0.000000e+00> : vector<8x512xf32>
    %401 = tpu.matmul %400, %318, %cst_320 {dimension_numbers = #tpu.dot_dimension_numbers<[1], [0], [0], [1], [0, 0, 1, 1], [], []>} : vector<8x32xf32>, vector<32x512xf32>, vector<8x512xf32> -> vector<8x512xf32>
    %c493_i32_321 = arith.constant 493 : i32
    %402 = tpu.dynamic_rotate %401 by %c493_i32_321 dim 1 : vector<8x512xf32>, i32 -> vector<8x512xf32>
    %403 = arith.addf %398, %402 : vector<8x512xf32>
    %c17_322 = arith.constant 17 : index
    %c0_323 = arith.constant 0 : index
    %c0_324 = arith.constant 0 : index
    %404 = vector.load %arg13[%c17_322, %c0_323, %c0_324] : memref<25x8x32xf32, #tpu.memory_space<vmem>>, vector<1x8x32xf32>
    %405 = vector.shape_cast %404 : vector<1x8x32xf32> to vector<8x32xf32>
    %cst_325 = arith.constant dense<0.000000e+00> : vector<8x512xf32>
    %406 = tpu.matmul %405, %318, %cst_325 {dimension_numbers = #tpu.dot_dimension_numbers<[1], [0], [0], [1], [0, 0, 1, 1], [], []>} : vector<8x32xf32>, vector<32x512xf32>, vector<8x512xf32> -> vector<8x512xf32>
    %c492_i32_326 = arith.constant 492 : i32
    %407 = tpu.dynamic_rotate %406 by %c492_i32_326 dim 1 : vector<8x512xf32>, i32 -> vector<8x512xf32>
    %408 = arith.addf %403, %407 : vector<8x512xf32>
    %c18_327 = arith.constant 18 : index
    %c0_328 = arith.constant 0 : index
    %c0_329 = arith.constant 0 : index
    %409 = vector.load %arg13[%c18_327, %c0_328, %c0_329] : memref<25x8x32xf32, #tpu.memory_space<vmem>>, vector<1x8x32xf32>
    %410 = vector.shape_cast %409 : vector<1x8x32xf32> to vector<8x32xf32>
    %cst_330 = arith.constant dense<0.000000e+00> : vector<8x512xf32>
    %411 = tpu.matmul %410, %318, %cst_330 {dimension_numbers = #tpu.dot_dimension_numbers<[1], [0], [0], [1], [0, 0, 1, 1], [], []>} : vector<8x32xf32>, vector<32x512xf32>, vector<8x512xf32> -> vector<8x512xf32>
    %c491_i32_331 = arith.constant 491 : i32
    %412 = tpu.dynamic_rotate %411 by %c491_i32_331 dim 1 : vector<8x512xf32>, i32 -> vector<8x512xf32>
    %413 = arith.addf %408, %412 : vector<8x512xf32>
    %c19_332 = arith.constant 19 : index
    %c0_333 = arith.constant 0 : index
    %c0_334 = arith.constant 0 : index
    %414 = vector.load %arg13[%c19_332, %c0_333, %c0_334] : memref<25x8x32xf32, #tpu.memory_space<vmem>>, vector<1x8x32xf32>
    %415 = vector.shape_cast %414 : vector<1x8x32xf32> to vector<8x32xf32>
    %cst_335 = arith.constant dense<0.000000e+00> : vector<8x512xf32>
    %416 = tpu.matmul %415, %318, %cst_335 {dimension_numbers = #tpu.dot_dimension_numbers<[1], [0], [0], [1], [0, 0, 1, 1], [], []>} : vector<8x32xf32>, vector<32x512xf32>, vector<8x512xf32> -> vector<8x512xf32>
    %c490_i32_336 = arith.constant 490 : i32
    %417 = tpu.dynamic_rotate %416 by %c490_i32_336 dim 1 : vector<8x512xf32>, i32 -> vector<8x512xf32>
    %418 = arith.addf %413, %417 : vector<8x512xf32>
    %c20_337 = arith.constant 20 : index
    %c0_338 = arith.constant 0 : index
    %c0_339 = arith.constant 0 : index
    %419 = vector.load %arg13[%c20_337, %c0_338, %c0_339] : memref<25x8x32xf32, #tpu.memory_space<vmem>>, vector<1x8x32xf32>
    %420 = vector.shape_cast %419 : vector<1x8x32xf32> to vector<8x32xf32>
    %cst_340 = arith.constant dense<0.000000e+00> : vector<8x512xf32>
    %421 = tpu.matmul %420, %318, %cst_340 {dimension_numbers = #tpu.dot_dimension_numbers<[1], [0], [0], [1], [0, 0, 1, 1], [], []>} : vector<8x32xf32>, vector<32x512xf32>, vector<8x512xf32> -> vector<8x512xf32>
    %c474_i32_341 = arith.constant 474 : i32
    %422 = tpu.dynamic_rotate %421 by %c474_i32_341 dim 1 : vector<8x512xf32>, i32 -> vector<8x512xf32>
    %423 = arith.addf %418, %422 : vector<8x512xf32>
    %c21_342 = arith.constant 21 : index
    %c0_343 = arith.constant 0 : index
    %c0_344 = arith.constant 0 : index
    %424 = vector.load %arg13[%c21_342, %c0_343, %c0_344] : memref<25x8x32xf32, #tpu.memory_space<vmem>>, vector<1x8x32xf32>
    %425 = vector.shape_cast %424 : vector<1x8x32xf32> to vector<8x32xf32>
    %cst_345 = arith.constant dense<0.000000e+00> : vector<8x512xf32>
    %426 = tpu.matmul %425, %318, %cst_345 {dimension_numbers = #tpu.dot_dimension_numbers<[1], [0], [0], [1], [0, 0, 1, 1], [], []>} : vector<8x32xf32>, vector<32x512xf32>, vector<8x512xf32> -> vector<8x512xf32>
    %c473_i32_346 = arith.constant 473 : i32
    %427 = tpu.dynamic_rotate %426 by %c473_i32_346 dim 1 : vector<8x512xf32>, i32 -> vector<8x512xf32>
    %428 = arith.addf %423, %427 : vector<8x512xf32>
    %c22_347 = arith.constant 22 : index
    %c0_348 = arith.constant 0 : index
    %c0_349 = arith.constant 0 : index
    %429 = vector.load %arg13[%c22_347, %c0_348, %c0_349] : memref<25x8x32xf32, #tpu.memory_space<vmem>>, vector<1x8x32xf32>
    %430 = vector.shape_cast %429 : vector<1x8x32xf32> to vector<8x32xf32>
    %cst_350 = arith.constant dense<0.000000e+00> : vector<8x512xf32>
    %431 = tpu.matmul %430, %318, %cst_350 {dimension_numbers = #tpu.dot_dimension_numbers<[1], [0], [0], [1], [0, 0, 1, 1], [], []>} : vector<8x32xf32>, vector<32x512xf32>, vector<8x512xf32> -> vector<8x512xf32>
    %c472_i32_351 = arith.constant 472 : i32
    %432 = tpu.dynamic_rotate %431 by %c472_i32_351 dim 1 : vector<8x512xf32>, i32 -> vector<8x512xf32>
    %433 = arith.addf %428, %432 : vector<8x512xf32>
    %c23_352 = arith.constant 23 : index
    %c0_353 = arith.constant 0 : index
    %c0_354 = arith.constant 0 : index
    %434 = vector.load %arg13[%c23_352, %c0_353, %c0_354] : memref<25x8x32xf32, #tpu.memory_space<vmem>>, vector<1x8x32xf32>
    %435 = vector.shape_cast %434 : vector<1x8x32xf32> to vector<8x32xf32>
    %cst_355 = arith.constant dense<0.000000e+00> : vector<8x512xf32>
    %436 = tpu.matmul %435, %318, %cst_355 {dimension_numbers = #tpu.dot_dimension_numbers<[1], [0], [0], [1], [0, 0, 1, 1], [], []>} : vector<8x32xf32>, vector<32x512xf32>, vector<8x512xf32> -> vector<8x512xf32>
    %c471_i32_356 = arith.constant 471 : i32
    %437 = tpu.dynamic_rotate %436 by %c471_i32_356 dim 1 : vector<8x512xf32>, i32 -> vector<8x512xf32>
    %438 = arith.addf %433, %437 : vector<8x512xf32>
    %c24_357 = arith.constant 24 : index
    %c0_358 = arith.constant 0 : index
    %c0_359 = arith.constant 0 : index
    %439 = vector.load %arg13[%c24_357, %c0_358, %c0_359] : memref<25x8x32xf32, #tpu.memory_space<vmem>>, vector<1x8x32xf32>
    %440 = vector.shape_cast %439 : vector<1x8x32xf32> to vector<8x32xf32>
    %cst_360 = arith.constant dense<0.000000e+00> : vector<8x512xf32>
    %441 = tpu.matmul %440, %318, %cst_360 {dimension_numbers = #tpu.dot_dimension_numbers<[1], [0], [0], [1], [0, 0, 1, 1], [], []>} : vector<8x32xf32>, vector<32x512xf32>, vector<8x512xf32> -> vector<8x512xf32>
    %c470_i32_361 = arith.constant 470 : i32
    %442 = tpu.dynamic_rotate %441 by %c470_i32_361 dim 1 : vector<8x512xf32>, i32 -> vector<8x512xf32>
    %443 = arith.addf %438, %442 : vector<8x512xf32>
    %c0_362 = arith.constant 0 : index
    %c0_363 = arith.constant 0 : index
    %444 = vector.load %arg14[%c0_362, %c0_363] : memref<8x1xf32, #tpu.memory_space<vmem>>, vector<8x1xf32>
    %445 = vector.broadcast %444 : vector<8x1xf32> to vector<8x512xf32>
    %446 = arith.addf %443, %445 : vector<8x512xf32>
    %447 = vector.broadcast %0 : vector<1x512xf32> to vector<8x512xf32>
    %448 = arith.mulf %446, %447 : vector<8x512xf32>
    %cst_364 = arith.constant dense<0.000000e+00> : vector<8xf32>
    %449 = vector.multi_reduction <add>, %448, %cst_364 [1] : vector<8x512xf32> to vector<8xf32>
    %450 = vector.shape_cast %449 : vector<8xf32> to vector<8x1xf32>
    %451 = arith.mulf %448, %448 : vector<8x512xf32>
    %cst_365 = arith.constant dense<0.000000e+00> : vector<8xf32>
    %452 = vector.multi_reduction <add>, %451, %cst_365 [1] : vector<8x512xf32> to vector<8xf32>
    %453 = vector.shape_cast %452 : vector<8xf32> to vector<8x1xf32>
    %c0_366 = arith.constant 0 : index
    %c0_367 = arith.constant 0 : index
    %454 = vector.load %arg17[%c0_366, %c0_367] : memref<8x8xf32, #tpu.memory_space<vmem>>, vector<8x8xf32>
    %cst_368 = arith.constant dense<0.000000e+00> : vector<8x1xf32>
    %455 = tpu.matmul %454, %450, %cst_368 {dimension_numbers = #tpu.dot_dimension_numbers<[1], [0], [0], [1], [0, 0, 1, 1], [], []>} : vector<8x8xf32>, vector<8x1xf32>, vector<8x1xf32> -> vector<8x1xf32>
    %c0_369 = arith.constant 0 : index
    %c0_370 = arith.constant 0 : index
    %456 = vector.load %arg17[%c0_369, %c0_370] : memref<8x8xf32, #tpu.memory_space<vmem>>, vector<8x8xf32>
    %cst_371 = arith.constant dense<0.000000e+00> : vector<8x1xf32>
    %457 = tpu.matmul %456, %453, %cst_371 {dimension_numbers = #tpu.dot_dimension_numbers<[1], [0], [0], [1], [0, 0, 1, 1], [], []>} : vector<8x8xf32>, vector<8x1xf32>, vector<8x1xf32> -> vector<8x1xf32>
    %458 = arith.mulf %455, %455 : vector<8x1xf32>
    %459 = arith.subf %457, %458 : vector<8x1xf32>
    %460 = vector.broadcast %455 : vector<8x1xf32> to vector<8x512xf32>
    %461 = arith.subf %448, %460 : vector<8x512xf32>
    %cst_372 = arith.constant 9.99999974E-6 : f32
    %462 = vector.broadcast %cst_372 : f32 to vector<8x1xf32>
    %463 = arith.addf %459, %462 : vector<8x1xf32>
    %464 = math.rsqrt %463 : vector<8x1xf32>
    %465 = vector.broadcast %464 : vector<8x1xf32> to vector<8x512xf32>
    %466 = arith.mulf %461, %465 : vector<8x512xf32>
    %c0_373 = arith.constant 0 : index
    %c0_374 = arith.constant 0 : index
    %467 = vector.load %arg15[%c0_373, %c0_374] : memref<8x1xf32, #tpu.memory_space<vmem>>, vector<8x1xf32>
    %468 = vector.broadcast %467 : vector<8x1xf32> to vector<8x512xf32>
    %469 = arith.mulf %466, %468 : vector<8x512xf32>
    %c0_375 = arith.constant 0 : index
    %c0_376 = arith.constant 0 : index
    %470 = vector.load %arg16[%c0_375, %c0_376] : memref<8x1xf32, #tpu.memory_space<vmem>>, vector<8x1xf32>
    %471 = vector.broadcast %470 : vector<8x1xf32> to vector<8x512xf32>
    %472 = arith.addf %469, %471 : vector<8x512xf32>
    %cst_377 = arith.constant 0.000000e+00 : f32
    %473 = vector.broadcast %cst_377 : f32 to vector<8x512xf32>
    %474 = arith.maximumf %472, %473 : vector<8x512xf32>
    %475 = vector.broadcast %0 : vector<1x512xf32> to vector<8x512xf32>
    %476 = arith.mulf %474, %475 : vector<8x512xf32>
    %cst_378 = arith.constant 0.000000e+00 : f32
    %477 = vector.broadcast %cst_378 : f32 to vector<1x512xf32>
    %c0_379 = arith.constant 0 : index
    %c0_380 = arith.constant 0 : index
    %c0_381 = arith.constant 0 : index
    %478 = vector.load %arg18[%c0_379, %c0_380, %c0_381] : memref<25x1x8xf32, #tpu.memory_space<vmem>>, vector<1x1x8xf32>
    %479 = vector.shape_cast %478 : vector<1x1x8xf32> to vector<1x8xf32>
    %cst_382 = arith.constant dense<0.000000e+00> : vector<1x512xf32>
    %480 = tpu.matmul %479, %476, %cst_382 {dimension_numbers = #tpu.dot_dimension_numbers<[1], [0], [0], [1], [0, 0, 1, 1], [], []>} : vector<1x8xf32>, vector<8x512xf32>, vector<1x512xf32> -> vector<1x512xf32>
    %c42_i32_383 = arith.constant 42 : i32
    %481 = tpu.dynamic_rotate %480 by %c42_i32_383 dim 1 : vector<1x512xf32>, i32 -> vector<1x512xf32>
    %482 = arith.addf %477, %481 : vector<1x512xf32>
    %c1_384 = arith.constant 1 : index
    %c0_385 = arith.constant 0 : index
    %c0_386 = arith.constant 0 : index
    %483 = vector.load %arg18[%c1_384, %c0_385, %c0_386] : memref<25x1x8xf32, #tpu.memory_space<vmem>>, vector<1x1x8xf32>
    %484 = vector.shape_cast %483 : vector<1x1x8xf32> to vector<1x8xf32>
    %cst_387 = arith.constant dense<0.000000e+00> : vector<1x512xf32>
    %485 = tpu.matmul %484, %476, %cst_387 {dimension_numbers = #tpu.dot_dimension_numbers<[1], [0], [0], [1], [0, 0, 1, 1], [], []>} : vector<1x8xf32>, vector<8x512xf32>, vector<1x512xf32> -> vector<1x512xf32>
    %c41_i32_388 = arith.constant 41 : i32
    %486 = tpu.dynamic_rotate %485 by %c41_i32_388 dim 1 : vector<1x512xf32>, i32 -> vector<1x512xf32>
    %487 = arith.addf %482, %486 : vector<1x512xf32>
    %c2_389 = arith.constant 2 : index
    %c0_390 = arith.constant 0 : index
    %c0_391 = arith.constant 0 : index
    %488 = vector.load %arg18[%c2_389, %c0_390, %c0_391] : memref<25x1x8xf32, #tpu.memory_space<vmem>>, vector<1x1x8xf32>
    %489 = vector.shape_cast %488 : vector<1x1x8xf32> to vector<1x8xf32>
    %cst_392 = arith.constant dense<0.000000e+00> : vector<1x512xf32>
    %490 = tpu.matmul %489, %476, %cst_392 {dimension_numbers = #tpu.dot_dimension_numbers<[1], [0], [0], [1], [0, 0, 1, 1], [], []>} : vector<1x8xf32>, vector<8x512xf32>, vector<1x512xf32> -> vector<1x512xf32>
    %c40_i32_393 = arith.constant 40 : i32
    %491 = tpu.dynamic_rotate %490 by %c40_i32_393 dim 1 : vector<1x512xf32>, i32 -> vector<1x512xf32>
    %492 = arith.addf %487, %491 : vector<1x512xf32>
    %c3_394 = arith.constant 3 : index
    %c0_395 = arith.constant 0 : index
    %c0_396 = arith.constant 0 : index
    %493 = vector.load %arg18[%c3_394, %c0_395, %c0_396] : memref<25x1x8xf32, #tpu.memory_space<vmem>>, vector<1x1x8xf32>
    %494 = vector.shape_cast %493 : vector<1x1x8xf32> to vector<1x8xf32>
    %cst_397 = arith.constant dense<0.000000e+00> : vector<1x512xf32>
    %495 = tpu.matmul %494, %476, %cst_397 {dimension_numbers = #tpu.dot_dimension_numbers<[1], [0], [0], [1], [0, 0, 1, 1], [], []>} : vector<1x8xf32>, vector<8x512xf32>, vector<1x512xf32> -> vector<1x512xf32>
    %c39_i32_398 = arith.constant 39 : i32
    %496 = tpu.dynamic_rotate %495 by %c39_i32_398 dim 1 : vector<1x512xf32>, i32 -> vector<1x512xf32>
    %497 = arith.addf %492, %496 : vector<1x512xf32>
    %c4_399 = arith.constant 4 : index
    %c0_400 = arith.constant 0 : index
    %c0_401 = arith.constant 0 : index
    %498 = vector.load %arg18[%c4_399, %c0_400, %c0_401] : memref<25x1x8xf32, #tpu.memory_space<vmem>>, vector<1x1x8xf32>
    %499 = vector.shape_cast %498 : vector<1x1x8xf32> to vector<1x8xf32>
    %cst_402 = arith.constant dense<0.000000e+00> : vector<1x512xf32>
    %500 = tpu.matmul %499, %476, %cst_402 {dimension_numbers = #tpu.dot_dimension_numbers<[1], [0], [0], [1], [0, 0, 1, 1], [], []>} : vector<1x8xf32>, vector<8x512xf32>, vector<1x512xf32> -> vector<1x512xf32>
    %c38_i32_403 = arith.constant 38 : i32
    %501 = tpu.dynamic_rotate %500 by %c38_i32_403 dim 1 : vector<1x512xf32>, i32 -> vector<1x512xf32>
    %502 = arith.addf %497, %501 : vector<1x512xf32>
    %c5_404 = arith.constant 5 : index
    %c0_405 = arith.constant 0 : index
    %c0_406 = arith.constant 0 : index
    %503 = vector.load %arg18[%c5_404, %c0_405, %c0_406] : memref<25x1x8xf32, #tpu.memory_space<vmem>>, vector<1x1x8xf32>
    %504 = vector.shape_cast %503 : vector<1x1x8xf32> to vector<1x8xf32>
    %cst_407 = arith.constant dense<0.000000e+00> : vector<1x512xf32>
    %505 = tpu.matmul %504, %476, %cst_407 {dimension_numbers = #tpu.dot_dimension_numbers<[1], [0], [0], [1], [0, 0, 1, 1], [], []>} : vector<1x8xf32>, vector<8x512xf32>, vector<1x512xf32> -> vector<1x512xf32>
    %c22_i32_408 = arith.constant 22 : i32
    %506 = tpu.dynamic_rotate %505 by %c22_i32_408 dim 1 : vector<1x512xf32>, i32 -> vector<1x512xf32>
    %507 = arith.addf %502, %506 : vector<1x512xf32>
    %c6_409 = arith.constant 6 : index
    %c0_410 = arith.constant 0 : index
    %c0_411 = arith.constant 0 : index
    %508 = vector.load %arg18[%c6_409, %c0_410, %c0_411] : memref<25x1x8xf32, #tpu.memory_space<vmem>>, vector<1x1x8xf32>
    %509 = vector.shape_cast %508 : vector<1x1x8xf32> to vector<1x8xf32>
    %cst_412 = arith.constant dense<0.000000e+00> : vector<1x512xf32>
    %510 = tpu.matmul %509, %476, %cst_412 {dimension_numbers = #tpu.dot_dimension_numbers<[1], [0], [0], [1], [0, 0, 1, 1], [], []>} : vector<1x8xf32>, vector<8x512xf32>, vector<1x512xf32> -> vector<1x512xf32>
    %c21_i32_413 = arith.constant 21 : i32
    %511 = tpu.dynamic_rotate %510 by %c21_i32_413 dim 1 : vector<1x512xf32>, i32 -> vector<1x512xf32>
    %512 = arith.addf %507, %511 : vector<1x512xf32>
    %c7_414 = arith.constant 7 : index
    %c0_415 = arith.constant 0 : index
    %c0_416 = arith.constant 0 : index
    %513 = vector.load %arg18[%c7_414, %c0_415, %c0_416] : memref<25x1x8xf32, #tpu.memory_space<vmem>>, vector<1x1x8xf32>
    %514 = vector.shape_cast %513 : vector<1x1x8xf32> to vector<1x8xf32>
    %cst_417 = arith.constant dense<0.000000e+00> : vector<1x512xf32>
    %515 = tpu.matmul %514, %476, %cst_417 {dimension_numbers = #tpu.dot_dimension_numbers<[1], [0], [0], [1], [0, 0, 1, 1], [], []>} : vector<1x8xf32>, vector<8x512xf32>, vector<1x512xf32> -> vector<1x512xf32>
    %c20_i32_418 = arith.constant 20 : i32
    %516 = tpu.dynamic_rotate %515 by %c20_i32_418 dim 1 : vector<1x512xf32>, i32 -> vector<1x512xf32>
    %517 = arith.addf %512, %516 : vector<1x512xf32>
    %c8_419 = arith.constant 8 : index
    %c0_420 = arith.constant 0 : index
    %c0_421 = arith.constant 0 : index
    %518 = vector.load %arg18[%c8_419, %c0_420, %c0_421] : memref<25x1x8xf32, #tpu.memory_space<vmem>>, vector<1x1x8xf32>
    %519 = vector.shape_cast %518 : vector<1x1x8xf32> to vector<1x8xf32>
    %cst_422 = arith.constant dense<0.000000e+00> : vector<1x512xf32>
    %520 = tpu.matmul %519, %476, %cst_422 {dimension_numbers = #tpu.dot_dimension_numbers<[1], [0], [0], [1], [0, 0, 1, 1], [], []>} : vector<1x8xf32>, vector<8x512xf32>, vector<1x512xf32> -> vector<1x512xf32>
    %c19_i32_423 = arith.constant 19 : i32
    %521 = tpu.dynamic_rotate %520 by %c19_i32_423 dim 1 : vector<1x512xf32>, i32 -> vector<1x512xf32>
    %522 = arith.addf %517, %521 : vector<1x512xf32>
    %c9_424 = arith.constant 9 : index
    %c0_425 = arith.constant 0 : index
    %c0_426 = arith.constant 0 : index
    %523 = vector.load %arg18[%c9_424, %c0_425, %c0_426] : memref<25x1x8xf32, #tpu.memory_space<vmem>>, vector<1x1x8xf32>
    %524 = vector.shape_cast %523 : vector<1x1x8xf32> to vector<1x8xf32>
    %cst_427 = arith.constant dense<0.000000e+00> : vector<1x512xf32>
    %525 = tpu.matmul %524, %476, %cst_427 {dimension_numbers = #tpu.dot_dimension_numbers<[1], [0], [0], [1], [0, 0, 1, 1], [], []>} : vector<1x8xf32>, vector<8x512xf32>, vector<1x512xf32> -> vector<1x512xf32>
    %c18_i32_428 = arith.constant 18 : i32
    %526 = tpu.dynamic_rotate %525 by %c18_i32_428 dim 1 : vector<1x512xf32>, i32 -> vector<1x512xf32>
    %527 = arith.addf %522, %526 : vector<1x512xf32>
    %c10_429 = arith.constant 10 : index
    %c0_430 = arith.constant 0 : index
    %c0_431 = arith.constant 0 : index
    %528 = vector.load %arg18[%c10_429, %c0_430, %c0_431] : memref<25x1x8xf32, #tpu.memory_space<vmem>>, vector<1x1x8xf32>
    %529 = vector.shape_cast %528 : vector<1x1x8xf32> to vector<1x8xf32>
    %cst_432 = arith.constant dense<0.000000e+00> : vector<1x512xf32>
    %530 = tpu.matmul %529, %476, %cst_432 {dimension_numbers = #tpu.dot_dimension_numbers<[1], [0], [0], [1], [0, 0, 1, 1], [], []>} : vector<1x8xf32>, vector<8x512xf32>, vector<1x512xf32> -> vector<1x512xf32>
    %c2_i32_433 = arith.constant 2 : i32
    %531 = tpu.dynamic_rotate %530 by %c2_i32_433 dim 1 : vector<1x512xf32>, i32 -> vector<1x512xf32>
    %532 = arith.addf %527, %531 : vector<1x512xf32>
    %c11_434 = arith.constant 11 : index
    %c0_435 = arith.constant 0 : index
    %c0_436 = arith.constant 0 : index
    %533 = vector.load %arg18[%c11_434, %c0_435, %c0_436] : memref<25x1x8xf32, #tpu.memory_space<vmem>>, vector<1x1x8xf32>
    %534 = vector.shape_cast %533 : vector<1x1x8xf32> to vector<1x8xf32>
    %cst_437 = arith.constant dense<0.000000e+00> : vector<1x512xf32>
    %535 = tpu.matmul %534, %476, %cst_437 {dimension_numbers = #tpu.dot_dimension_numbers<[1], [0], [0], [1], [0, 0, 1, 1], [], []>} : vector<1x8xf32>, vector<8x512xf32>, vector<1x512xf32> -> vector<1x512xf32>
    %c1_i32_438 = arith.constant 1 : i32
    %536 = tpu.dynamic_rotate %535 by %c1_i32_438 dim 1 : vector<1x512xf32>, i32 -> vector<1x512xf32>
    %537 = arith.addf %532, %536 : vector<1x512xf32>
    %c12_439 = arith.constant 12 : index
    %c0_440 = arith.constant 0 : index
    %c0_441 = arith.constant 0 : index
    %538 = vector.load %arg18[%c12_439, %c0_440, %c0_441] : memref<25x1x8xf32, #tpu.memory_space<vmem>>, vector<1x1x8xf32>
    %539 = vector.shape_cast %538 : vector<1x1x8xf32> to vector<1x8xf32>
    %cst_442 = arith.constant dense<0.000000e+00> : vector<1x512xf32>
    %540 = tpu.matmul %539, %476, %cst_442 {dimension_numbers = #tpu.dot_dimension_numbers<[1], [0], [0], [1], [0, 0, 1, 1], [], []>} : vector<1x8xf32>, vector<8x512xf32>, vector<1x512xf32> -> vector<1x512xf32>
    %541 = arith.addf %537, %540 : vector<1x512xf32>
    %c13_443 = arith.constant 13 : index
    %c0_444 = arith.constant 0 : index
    %c0_445 = arith.constant 0 : index
    %542 = vector.load %arg18[%c13_443, %c0_444, %c0_445] : memref<25x1x8xf32, #tpu.memory_space<vmem>>, vector<1x1x8xf32>
    %543 = vector.shape_cast %542 : vector<1x1x8xf32> to vector<1x8xf32>
    %cst_446 = arith.constant dense<0.000000e+00> : vector<1x512xf32>
    %544 = tpu.matmul %543, %476, %cst_446 {dimension_numbers = #tpu.dot_dimension_numbers<[1], [0], [0], [1], [0, 0, 1, 1], [], []>} : vector<1x8xf32>, vector<8x512xf32>, vector<1x512xf32> -> vector<1x512xf32>
    %c511_i32_447 = arith.constant 511 : i32
    %545 = tpu.dynamic_rotate %544 by %c511_i32_447 dim 1 : vector<1x512xf32>, i32 -> vector<1x512xf32>
    %546 = arith.addf %541, %545 : vector<1x512xf32>
    %c14_448 = arith.constant 14 : index
    %c0_449 = arith.constant 0 : index
    %c0_450 = arith.constant 0 : index
    %547 = vector.load %arg18[%c14_448, %c0_449, %c0_450] : memref<25x1x8xf32, #tpu.memory_space<vmem>>, vector<1x1x8xf32>
    %548 = vector.shape_cast %547 : vector<1x1x8xf32> to vector<1x8xf32>
    %cst_451 = arith.constant dense<0.000000e+00> : vector<1x512xf32>
    %549 = tpu.matmul %548, %476, %cst_451 {dimension_numbers = #tpu.dot_dimension_numbers<[1], [0], [0], [1], [0, 0, 1, 1], [], []>} : vector<1x8xf32>, vector<8x512xf32>, vector<1x512xf32> -> vector<1x512xf32>
    %c510_i32_452 = arith.constant 510 : i32
    %550 = tpu.dynamic_rotate %549 by %c510_i32_452 dim 1 : vector<1x512xf32>, i32 -> vector<1x512xf32>
    %551 = arith.addf %546, %550 : vector<1x512xf32>
    %c15_453 = arith.constant 15 : index
    %c0_454 = arith.constant 0 : index
    %c0_455 = arith.constant 0 : index
    %552 = vector.load %arg18[%c15_453, %c0_454, %c0_455] : memref<25x1x8xf32, #tpu.memory_space<vmem>>, vector<1x1x8xf32>
    %553 = vector.shape_cast %552 : vector<1x1x8xf32> to vector<1x8xf32>
    %cst_456 = arith.constant dense<0.000000e+00> : vector<1x512xf32>
    %554 = tpu.matmul %553, %476, %cst_456 {dimension_numbers = #tpu.dot_dimension_numbers<[1], [0], [0], [1], [0, 0, 1, 1], [], []>} : vector<1x8xf32>, vector<8x512xf32>, vector<1x512xf32> -> vector<1x512xf32>
    %c494_i32_457 = arith.constant 494 : i32
    %555 = tpu.dynamic_rotate %554 by %c494_i32_457 dim 1 : vector<1x512xf32>, i32 -> vector<1x512xf32>
    %556 = arith.addf %551, %555 : vector<1x512xf32>
    %c16_458 = arith.constant 16 : index
    %c0_459 = arith.constant 0 : index
    %c0_460 = arith.constant 0 : index
    %557 = vector.load %arg18[%c16_458, %c0_459, %c0_460] : memref<25x1x8xf32, #tpu.memory_space<vmem>>, vector<1x1x8xf32>
    %558 = vector.shape_cast %557 : vector<1x1x8xf32> to vector<1x8xf32>
    %cst_461 = arith.constant dense<0.000000e+00> : vector<1x512xf32>
    %559 = tpu.matmul %558, %476, %cst_461 {dimension_numbers = #tpu.dot_dimension_numbers<[1], [0], [0], [1], [0, 0, 1, 1], [], []>} : vector<1x8xf32>, vector<8x512xf32>, vector<1x512xf32> -> vector<1x512xf32>
    %c493_i32_462 = arith.constant 493 : i32
    %560 = tpu.dynamic_rotate %559 by %c493_i32_462 dim 1 : vector<1x512xf32>, i32 -> vector<1x512xf32>
    %561 = arith.addf %556, %560 : vector<1x512xf32>
    %c17_463 = arith.constant 17 : index
    %c0_464 = arith.constant 0 : index
    %c0_465 = arith.constant 0 : index
    %562 = vector.load %arg18[%c17_463, %c0_464, %c0_465] : memref<25x1x8xf32, #tpu.memory_space<vmem>>, vector<1x1x8xf32>
    %563 = vector.shape_cast %562 : vector<1x1x8xf32> to vector<1x8xf32>
    %cst_466 = arith.constant dense<0.000000e+00> : vector<1x512xf32>
    %564 = tpu.matmul %563, %476, %cst_466 {dimension_numbers = #tpu.dot_dimension_numbers<[1], [0], [0], [1], [0, 0, 1, 1], [], []>} : vector<1x8xf32>, vector<8x512xf32>, vector<1x512xf32> -> vector<1x512xf32>
    %c492_i32_467 = arith.constant 492 : i32
    %565 = tpu.dynamic_rotate %564 by %c492_i32_467 dim 1 : vector<1x512xf32>, i32 -> vector<1x512xf32>
    %566 = arith.addf %561, %565 : vector<1x512xf32>
    %c18_468 = arith.constant 18 : index
    %c0_469 = arith.constant 0 : index
    %c0_470 = arith.constant 0 : index
    %567 = vector.load %arg18[%c18_468, %c0_469, %c0_470] : memref<25x1x8xf32, #tpu.memory_space<vmem>>, vector<1x1x8xf32>
    %568 = vector.shape_cast %567 : vector<1x1x8xf32> to vector<1x8xf32>
    %cst_471 = arith.constant dense<0.000000e+00> : vector<1x512xf32>
    %569 = tpu.matmul %568, %476, %cst_471 {dimension_numbers = #tpu.dot_dimension_numbers<[1], [0], [0], [1], [0, 0, 1, 1], [], []>} : vector<1x8xf32>, vector<8x512xf32>, vector<1x512xf32> -> vector<1x512xf32>
    %c491_i32_472 = arith.constant 491 : i32
    %570 = tpu.dynamic_rotate %569 by %c491_i32_472 dim 1 : vector<1x512xf32>, i32 -> vector<1x512xf32>
    %571 = arith.addf %566, %570 : vector<1x512xf32>
    %c19_473 = arith.constant 19 : index
    %c0_474 = arith.constant 0 : index
    %c0_475 = arith.constant 0 : index
    %572 = vector.load %arg18[%c19_473, %c0_474, %c0_475] : memref<25x1x8xf32, #tpu.memory_space<vmem>>, vector<1x1x8xf32>
    %573 = vector.shape_cast %572 : vector<1x1x8xf32> to vector<1x8xf32>
    %cst_476 = arith.constant dense<0.000000e+00> : vector<1x512xf32>
    %574 = tpu.matmul %573, %476, %cst_476 {dimension_numbers = #tpu.dot_dimension_numbers<[1], [0], [0], [1], [0, 0, 1, 1], [], []>} : vector<1x8xf32>, vector<8x512xf32>, vector<1x512xf32> -> vector<1x512xf32>
    %c490_i32_477 = arith.constant 490 : i32
    %575 = tpu.dynamic_rotate %574 by %c490_i32_477 dim 1 : vector<1x512xf32>, i32 -> vector<1x512xf32>
    %576 = arith.addf %571, %575 : vector<1x512xf32>
    %c20_478 = arith.constant 20 : index
    %c0_479 = arith.constant 0 : index
    %c0_480 = arith.constant 0 : index
    %577 = vector.load %arg18[%c20_478, %c0_479, %c0_480] : memref<25x1x8xf32, #tpu.memory_space<vmem>>, vector<1x1x8xf32>
    %578 = vector.shape_cast %577 : vector<1x1x8xf32> to vector<1x8xf32>
    %cst_481 = arith.constant dense<0.000000e+00> : vector<1x512xf32>
    %579 = tpu.matmul %578, %476, %cst_481 {dimension_numbers = #tpu.dot_dimension_numbers<[1], [0], [0], [1], [0, 0, 1, 1], [], []>} : vector<1x8xf32>, vector<8x512xf32>, vector<1x512xf32> -> vector<1x512xf32>
    %c474_i32_482 = arith.constant 474 : i32
    %580 = tpu.dynamic_rotate %579 by %c474_i32_482 dim 1 : vector<1x512xf32>, i32 -> vector<1x512xf32>
    %581 = arith.addf %576, %580 : vector<1x512xf32>
    %c21_483 = arith.constant 21 : index
    %c0_484 = arith.constant 0 : index
    %c0_485 = arith.constant 0 : index
    %582 = vector.load %arg18[%c21_483, %c0_484, %c0_485] : memref<25x1x8xf32, #tpu.memory_space<vmem>>, vector<1x1x8xf32>
    %583 = vector.shape_cast %582 : vector<1x1x8xf32> to vector<1x8xf32>
    %cst_486 = arith.constant dense<0.000000e+00> : vector<1x512xf32>
    %584 = tpu.matmul %583, %476, %cst_486 {dimension_numbers = #tpu.dot_dimension_numbers<[1], [0], [0], [1], [0, 0, 1, 1], [], []>} : vector<1x8xf32>, vector<8x512xf32>, vector<1x512xf32> -> vector<1x512xf32>
    %c473_i32_487 = arith.constant 473 : i32
    %585 = tpu.dynamic_rotate %584 by %c473_i32_487 dim 1 : vector<1x512xf32>, i32 -> vector<1x512xf32>
    %586 = arith.addf %581, %585 : vector<1x512xf32>
    %c22_488 = arith.constant 22 : index
    %c0_489 = arith.constant 0 : index
    %c0_490 = arith.constant 0 : index
    %587 = vector.load %arg18[%c22_488, %c0_489, %c0_490] : memref<25x1x8xf32, #tpu.memory_space<vmem>>, vector<1x1x8xf32>
    %588 = vector.shape_cast %587 : vector<1x1x8xf32> to vector<1x8xf32>
    %cst_491 = arith.constant dense<0.000000e+00> : vector<1x512xf32>
    %589 = tpu.matmul %588, %476, %cst_491 {dimension_numbers = #tpu.dot_dimension_numbers<[1], [0], [0], [1], [0, 0, 1, 1], [], []>} : vector<1x8xf32>, vector<8x512xf32>, vector<1x512xf32> -> vector<1x512xf32>
    %c472_i32_492 = arith.constant 472 : i32
    %590 = tpu.dynamic_rotate %589 by %c472_i32_492 dim 1 : vector<1x512xf32>, i32 -> vector<1x512xf32>
    %591 = arith.addf %586, %590 : vector<1x512xf32>
    %c23_493 = arith.constant 23 : index
    %c0_494 = arith.constant 0 : index
    %c0_495 = arith.constant 0 : index
    %592 = vector.load %arg18[%c23_493, %c0_494, %c0_495] : memref<25x1x8xf32, #tpu.memory_space<vmem>>, vector<1x1x8xf32>
    %593 = vector.shape_cast %592 : vector<1x1x8xf32> to vector<1x8xf32>
    %cst_496 = arith.constant dense<0.000000e+00> : vector<1x512xf32>
    %594 = tpu.matmul %593, %476, %cst_496 {dimension_numbers = #tpu.dot_dimension_numbers<[1], [0], [0], [1], [0, 0, 1, 1], [], []>} : vector<1x8xf32>, vector<8x512xf32>, vector<1x512xf32> -> vector<1x512xf32>
    %c471_i32_497 = arith.constant 471 : i32
    %595 = tpu.dynamic_rotate %594 by %c471_i32_497 dim 1 : vector<1x512xf32>, i32 -> vector<1x512xf32>
    %596 = arith.addf %591, %595 : vector<1x512xf32>
    %c24_498 = arith.constant 24 : index
    %c0_499 = arith.constant 0 : index
    %c0_500 = arith.constant 0 : index
    %597 = vector.load %arg18[%c24_498, %c0_499, %c0_500] : memref<25x1x8xf32, #tpu.memory_space<vmem>>, vector<1x1x8xf32>
    %598 = vector.shape_cast %597 : vector<1x1x8xf32> to vector<1x8xf32>
    %cst_501 = arith.constant dense<0.000000e+00> : vector<1x512xf32>
    %599 = tpu.matmul %598, %476, %cst_501 {dimension_numbers = #tpu.dot_dimension_numbers<[1], [0], [0], [1], [0, 0, 1, 1], [], []>} : vector<1x8xf32>, vector<8x512xf32>, vector<1x512xf32> -> vector<1x512xf32>
    %c470_i32_502 = arith.constant 470 : i32
    %600 = tpu.dynamic_rotate %599 by %c470_i32_502 dim 1 : vector<1x512xf32>, i32 -> vector<1x512xf32>
    %601 = arith.addf %596, %600 : vector<1x512xf32>
    %c0_503 = arith.constant 0 : index
    %c0_504 = arith.constant 0 : index
    %602 = vector.load %arg19[%c0_503, %c0_504] : memref<1x1xf32, #tpu.memory_space<vmem>>, vector<1x1xf32>
    %603 = vector.broadcast %602 : vector<1x1xf32> to vector<1x512xf32>
    %604 = arith.addf %601, %603 : vector<1x512xf32>
    %c0_505 = arith.constant 0 : index
    %c0_506 = arith.constant 0 : index
    %c0_507 = arith.constant 0 : index
    %605 = vector.load %arg20[%c0_505, %c0_506, %c0_507] : memref<1x1x512xf32, #tpu.memory_space<vmem>>, vector<1x1x512xf32>
    %606 = vector.shape_cast %605 : vector<1x1x512xf32> to vector<1x512xf32>
    %607 = vector.shape_cast %604 : vector<1x512xf32> to vector<1x1x512xf32>
    tpu.vector_store %arg20[%c0_505, %c0_506, %c0_507], %607 {strides = array<i32>} : memref<1x1x512xf32, #tpu.memory_space<vmem>>, vector<1x1x512xf32>,
    return
  }
  func.func @transform_0(%arg0: i32) -> (i32, i32, i32) {
    %c0_i32 = arith.constant 0 : i32
    %c0_i32_0 = arith.constant 0 : i32
    %c0_i32_1 = arith.constant 0 : i32
    return %arg0, %c0_i32, %c0_i32_0 : i32, i32, i32
  }
  func.func @transform_1(%arg0: i32) -> (i32, i32) {
    %c0_i32 = arith.constant 0 : i32
    %c0_i32_0 = arith.constant 0 : i32
    %c0_i32_1 = arith.constant 0 : i32
    return %c0_i32, %c0_i32_0 : i32, i32
  }
  func.func @transform_2(%arg0: i32) -> (i32, i32, i32) {
    %c0_i32 = arith.constant 0 : i32
    %c0_i32_0 = arith.constant 0 : i32
    %c0_i32_1 = arith.constant 0 : i32
    %c0_i32_2 = arith.constant 0 : i32
    return %c0_i32, %c0_i32_0, %c0_i32_1 : i32, i32, i32
  }
  func.func @transform_3(%arg0: i32) -> (i32, i32) {
    %c0_i32 = arith.constant 0 : i32
    %c0_i32_0 = arith.constant 0 : i32
    %c0_i32_1 = arith.constant 0 : i32
    return %c0_i32, %c0_i32_0 : i32, i32
  }
  func.func @transform_4(%arg0: i32) -> (i32, i32) {
    %c0_i32 = arith.constant 0 : i32
    %c0_i32_0 = arith.constant 0 : i32
    %c0_i32_1 = arith.constant 0 : i32
    return %c0_i32, %c0_i32_0 : i32, i32
  }
  func.func @transform_5(%arg0: i32) -> (i32, i32) {
    %c0_i32 = arith.constant 0 : i32
    %c0_i32_0 = arith.constant 0 : i32
    %c0_i32_1 = arith.constant 0 : i32
    return %c0_i32, %c0_i32_0 : i32, i32
  }
  func.func @transform_6(%arg0: i32) -> (i32, i32) {
    %c0_i32 = arith.constant 0 : i32
    %c0_i32_0 = arith.constant 0 : i32
    %c0_i32_1 = arith.constant 0 : i32
    return %c0_i32, %c0_i32_0 : i32, i32
  }
  func.func @transform_7(%arg0: i32) -> (i32, i32, i32) {
    %c0_i32 = arith.constant 0 : i32
    %c0_i32_0 = arith.constant 0 : i32
    %c0_i32_1 = arith.constant 0 : i32
    %c0_i32_2 = arith.constant 0 : i32
    return %c0_i32, %c0_i32_0, %c0_i32_1 : i32, i32, i32
  }
  func.func @transform_8(%arg0: i32) -> (i32, i32) {
    %c0_i32 = arith.constant 0 : i32
    %c0_i32_0 = arith.constant 0 : i32
    %c0_i32_1 = arith.constant 0 : i32
    return %c0_i32, %c0_i32_0 : i32, i32
  }
  func.func @transform_9(%arg0: i32) -> (i32, i32) {
    %c0_i32 = arith.constant 0 : i32
    %c0_i32_0 = arith.constant 0 : i32
    %c0_i32_1 = arith.constant 0 : i32
    return %c0_i32, %c0_i32_0 : i32, i32
  }
  func.func @transform_10(%arg0: i32) -> (i32, i32) {
    %c0_i32 = arith.constant 0 : i32
    %c0_i32_0 = arith.constant 0 : i32
    %c0_i32_1 = arith.constant 0 : i32
    return %c0_i32, %c0_i32_0 : i32, i32
  }
  func.func @transform_11(%arg0: i32) -> (i32, i32) {
    %c0_i32 = arith.constant 0 : i32
    %c0_i32_0 = arith.constant 0 : i32
    %c0_i32_1 = arith.constant 0 : i32
    return %c0_i32, %c0_i32_0 : i32, i32
  }
  func.func @transform_12(%arg0: i32) -> (i32, i32, i32) {
    %c0_i32 = arith.constant 0 : i32
    %c0_i32_0 = arith.constant 0 : i32
    %c0_i32_1 = arith.constant 0 : i32
    %c0_i32_2 = arith.constant 0 : i32
    return %c0_i32, %c0_i32_0, %c0_i32_1 : i32, i32, i32
  }
  func.func @transform_13(%arg0: i32) -> (i32, i32) {
    %c0_i32 = arith.constant 0 : i32
    %c0_i32_0 = arith.constant 0 : i32
    %c0_i32_1 = arith.constant 0 : i32
    return %c0_i32, %c0_i32_0 : i32, i32
  }
  func.func @transform_14(%arg0: i32) -> (i32, i32) {
    %c0_i32 = arith.constant 0 : i32
    %c0_i32_0 = arith.constant 0 : i32
    %c0_i32_1 = arith.constant 0 : i32
    return %c0_i32, %c0_i32_0 : i32, i32
  }
  func.func @transform_15(%arg0: i32) -> (i32, i32) {
    %c0_i32 = arith.constant 0 : i32
    %c0_i32_0 = arith.constant 0 : i32
    %c0_i32_1 = arith.constant 0 : i32
    return %c0_i32, %c0_i32_0 : i32, i32
  }
  func.func @transform_16(%arg0: i32) -> (i32, i32) {
    %c0_i32 = arith.constant 0 : i32
    %c0_i32_0 = arith.constant 0 : i32
    %c0_i32_1 = arith.constant 0 : i32
    return %c0_i32, %c0_i32_0 : i32, i32
  }
  func.func @transform_17(%arg0: i32) -> (i32, i32, i32) {
    %c0_i32 = arith.constant 0 : i32
    %c0_i32_0 = arith.constant 0 : i32
    %c0_i32_1 = arith.constant 0 : i32
    %c0_i32_2 = arith.constant 0 : i32
    return %c0_i32, %c0_i32_0, %c0_i32_1 : i32, i32, i32
  }
  func.func @transform_18(%arg0: i32) -> (i32, i32) {
    %c0_i32 = arith.constant 0 : i32
    %c0_i32_0 = arith.constant 0 : i32
    %c0_i32_1 = arith.constant 0 : i32
    return %c0_i32, %c0_i32_0 : i32, i32
  }
  func.func @transform_19(%arg0: i32) -> (i32, i32, i32) {
    %c0_i32 = arith.constant 0 : i32
    %c0_i32_0 = arith.constant 0 : i32
    %c0_i32_1 = arith.constant 0 : i32
    return %arg0, %c0_i32, %c0_i32_0 : i32, i32, i32
  }
}

</mosaic_0001>

<bundles_post_ra>
// kernel: squeeze.3
= control target key start
LH: loop header
LB: loop body
LE: loop exit
PB: predicated region body
PF: predicated region fallthrough
CT: control target
= control target key end

     0   :  { %s141_s14 = smov 3  ;;  %s144_s15 = smov 3  ;;  %vm146_vm0 = vcmask 916480   ;;  %vm159_vm1 = vcmask 982016   ;;  %vm175_vm2 = vcmask 1014784   ;;  %vm21_vm3 = vcmask 162816   ;;  %s358_s0 = inlined_call_operand.vmem [shape: f32[2,400], index: 0, kind: input, shape index: {}]   ;;  %s359_s1 = inlined_call_operand.vmem [shape: f32[2,20,20], index: 1, kind: output, shape index: {}]  }
   0x1   :  { %v189_v0 = vld [vmem:[%s358_s0 + $0x2] sm:$0x3]  ;;  %v188_v1 = vld [vmem:[%s358_s0 + $0x4] sm:$0x3]  ;;  %v18_v2 = vld [vmem:[%s358_s0] sm:$0x3] }
   0x2   :  { %17 = vst [vmem:[#allocation0 + $0x8] sm:$0x3] %v189_v0  ;;  %13 = vst [vmem:[#allocation0 + $0x10] sm:$0x3] %v188_v1  ;;  %v187_v3 = vld [vmem:[%s358_s0 + $0x6] sm:$0x3] }
   0x3   :  { %19 = vst [vmem:[#allocation0] sm:$0x3] %v18_v2  ;;  %8 = vst [vmem:[#allocation0 + $0x18] sm:$0x3] %v187_v3  ;;  %s24_s0 = smov 3  ;;  %s170_s16 = smov 3 }
   0x4   :  { %s173_s17 = smov 3  ;;  %s231_s18 = smov 116   ;;  %vm150_vm4 = vcmask 130048   ;;  %vm153_vm5 = vcmask 162944   ;;  %vm163_vm6 = vcmask 64512   ;;  %vm179_vm7 = vcmask 31744  }
   0x5   :  { %s232_s19 = smov 124   ;;  %s233_s20 = smov 16   ;;  %vm166_vm8 = vcmask 162880   ;;  %vm182_vm9 = vcmask 162848  }
   0x6   :  { %s234_s21 = smov 108   ;;  %s45_s24 = smov 3 }
   0x7   :  { %s53_s25 = smov 3  ;;  %s235_s26 = smov 8  }
   0x8   :  { %s236_s27 = smov 4   ;;  %s67_s28 = smov 3 }
   0x9   :  { %v32_v4 = vld [vmem:[#allocation0 + $0x8] sm:$0x3]   ;;  %v25_v5 = vld [vmem:[#allocation0 + $0x11] ss:$-1 sm:%s24_s0]   ;;  %s237_s29 = smov 104   ;;  %s238_s30 = smov 96  }
   0xa   :  { %v142_v6 = vld [vmem:[#allocation0 + $0x9] ss:$-1 sm:%s141_s14]   ;;  %33 = vrot.lane.b32.xlu0 %v32_v4, %s231_s18  ;;  %26 = vrot.lane.b32.xlu1 %v25_v5, %s232_s19  ;;  %v145_v7 = vld [vmem:[#allocation0 + $0x11] ss:$-1 sm:%s144_s15]   ;;  %v38_v9 = vld [vmem:[#allocation0] sm:$0x3]  }
   0xb   :  { %v147_v8 = vsel %vm146_vm0, %v145_v7, %v142_v6  ;;  %v156_v10 = vld [vmem:[#allocation0] sm:$0x3]   ;;  %v158_v11 = vld [vmem:[#allocation0 + $0x8] sm:$0x3]   ;;  %v171_v12 = vld [vmem:[#allocation0 + $0x11] ss:$-1 sm:%s170_s16]  }
   0xc   :  { %v174_v13 = vld [vmem:[#allocation0 + $0x19] ss:$-1 sm:%s173_s17]   ;;  %v20_v14 = vld [vmem:[#allocation0] sm:$0x3]   ;;  %v160_v15 = vsel %vm159_vm1, %v158_v11, %v156_v10  ;;  %v46_v17 = vld [vmem:[#allocation0 + $0x11] ss:$-1 sm:%s45_s24]  }
   0xd   :  { %22 = vst.msk [vmem:[%s359_s1] ss:$24 sm:$0x3] %vm21_vm3, %v20_v14   ;;  %v176_v16 = vsel %vm175_vm2, %v174_v13, %v171_v12  ;;  %v54_v18 = vld [vmem:[#allocation0 + $0x9] ss:$-1 sm:%s53_s25]   ;;  %s75_s2 = smov 3 }
   0xe   :  { %148 = vrot.lane.b32.xlu0 %v147_v8, %s233_s20  ;;  %39 = vrot.lane.b32.xlu1 %v38_v9, %s234_s21  ;;  %v60_v19 = vld [vmem:[#allocation0] sm:$0x3]   ;;  %v68_v20 = vld [vmem:[#allocation0 + $0x11] ss:$-1 sm:%s67_s28]   ;;  %s239_s3 = smov 88   ;;  %s240_s4 = smov 84  }
   0xf   :  { %v76_v21 = vld [vmem:[#allocation0 + $0x9] ss:$-1 sm:%s75_s2]   ;;  %v82_v22 = vld [vmem:[#allocation0] sm:$0x3]   ;;  %s89_s5 = smov 3  ;;  %s97_s6 = smov 3 }
  0x10   :  { %s241_s7 = smov 76   ;;  %s242_s8 = smov 68   ;;  %v90_v23 = vld [vmem:[#allocation0 + $0x11] ss:$-1 sm:%s89_s5]   ;;  %v98_v24 = vld [vmem:[#allocation0 + $0x9] ss:$-1 sm:%s97_s6]  }
  0x11   :  { %s111_s9 = smov 3  ;;  %s243_s10 = smov 64   ;;  %v104_v25 = vld [vmem:[#allocation0] sm:$0x3]  }
  0x12   :  { %161 = vrot.lane.b32.xlu0 %v160_v15, %s235_s26  ;;  %177 = vrot.lane.b32.xlu1 %v176_v16, %s236_s27  ;;  %s244_s11 = smov 56   ;;  %v112_v26 = vld [vmem:[#allocation0 + $0x11] ss:$-1 sm:%s111_s9]   ;;  %s119_s12 = smov 3  ;;  %v126_v28 = vld [vmem:[#allocation0] sm:$0x3]  }
  0x13   :  { %s245_s13 = smov 48   ;;  %s246_s0 = smov 44   ;;  %v120_v27 = vld [vmem:[#allocation0 + $0x9] ss:$-1 sm:%s119_s12]  }
  0x14   :  { %s133_s14 = smov 3  ;;  %s247_s15 = smov 36  }
  0x15   :  { %s248_s16 = smov 28   ;;  %v134_v29 = vld [vmem:[#allocation0 + $0x11] ss:$-1 sm:%s133_s14]   ;;  %s249_s17 = smov 24  }
  0x16   :  { %47 = vrot.lane.b32.xlu0 %v46_v17, %s237_s29  ;;  %55 = vrot.lane.b32.xlu1 %v54_v18, %s238_s30 }
  0x1a   :  { %61 = vrot.lane.b32.xlu0 %v60_v19, %s239_s3  ;;  %69 = vrot.lane.b32.xlu1 %v68_v20, %s240_s4 }
  0x1e   :  { %77 = vrot.lane.b32.xlu0 %v76_v21, %s241_s7  ;;  %83 = vrot.lane.b32.xlu1 %v82_v22, %s242_s8 }
  0x22   :  { %91 = vrot.lane.b32.xlu0 %v90_v23, %s243_s10  ;;  %99 = vrot.lane.b32.xlu1 %v98_v24, %s244_s11 }
  0x26   :  { %105 = vrot.lane.b32.xlu0 %v104_v25, %s245_s13  ;;  %113 = vrot.lane.b32.xlu1 %v112_v26, %s246_s0 }
  0x2a   :  { %121 = vrot.lane.b32.xlu0 %v120_v27, %s247_s15  ;;  %127 = vrot.lane.b32.xlu1 %v126_v28, %s248_s16 }
  0x2e   :  { %135 = vrot.lane.b32.xlu0 %v134_v29, %s249_s17 }
  0x7c   :  { %v34_v30 = vpop.permute.xlu0 %33   ;;  %v27_v31 = vpop.permute.xlu1 %26  }
  0x7d   :  { %191 = vst.msk [vmem:[%s359_s1 + $0x7] ss:$24 sm:$0x3] %vm21_vm3, %v34_v30   ;;  %190 = vst.msk [vmem:[%s359_s1 + $0x25] ss:$-24 sm:$0x3] %vm21_vm3, %v27_v31  }
  0x80   :  { %v149_v32 = vpop.permute.xlu0 %148   ;;  %v40_v33 = vpop.permute.xlu1 %39  }
  0x81   :  { %206 = vst.msk [vmem:[%s359_s1 + $0x24] ss:$-24 sm:$0x3] %vm150_vm4, %v149_v32  }
  0x82   :  { %192 = vst.msk [vmem:[%s359_s1 + $0x1] ss:$24 sm:$0x3] %vm21_vm3, %v40_v33  }
  0x83   :  { %207 = vst.msk [vmem:[%s359_s1 + $0x24] ss:$-24 sm:$0x3] %vm153_vm5, %v149_v32  }
  0x84   :  { %v162_v34 = vpop.permute.xlu0 %161   ;;  %v178_v35 = vpop.permute.xlu1 %177  }
  0x85   :  { %208 = vst.msk [vmem:[%s359_s1 + $0x6] ss:$24 sm:$0x3] %vm163_vm6, %v162_v34  }
  0x86   :  { %210 = vst.msk [vmem:[%s359_s1 + $0x2b] ss:$-24 sm:$0x3] %vm179_vm7, %v178_v35  }
  0x87   :  { %209 = vst.msk [vmem:[%s359_s1 + $0x6] ss:$24 sm:$0x3] %vm166_vm8, %v162_v34  }
  0x88   :  { %211 = vst.msk [vmem:[%s359_s1 + $0x2b] ss:$-24 sm:$0x3] %vm182_vm9, %v178_v35   ;;  %v48_v36 = vpop.permute.xlu0 %47   ;;  %v56_v37 = vpop.permute.xlu1 %55  }
  0x89   :  { %193 = vst.msk [vmem:[%s359_s1 + $0x26] ss:$-24 sm:$0x3] %vm21_vm3, %v48_v36   ;;  %194 = vst.msk [vmem:[%s359_s1 + $0x20] ss:$-24 sm:$0x3] %vm21_vm3, %v56_v37  }
  0x8c   :  { %v62_v38 = vpop.permute.xlu0 %61   ;;  %v70_v39 = vpop.permute.xlu1 %69  }
  0x8d   :  { %195 = vst.msk [vmem:[%s359_s1 + $0x2] ss:$24 sm:$0x3] %vm21_vm3, %v62_v38   ;;  %196 = vst.msk [vmem:[%s359_s1 + $0x27] ss:$-24 sm:$0x3] %vm21_vm3, %v70_v39  }
  0x90   :  { %v78_v40 = vpop.permute.xlu0 %77   ;;  %v84_v41 = vpop.permute.xlu1 %83  }
  0x91   :  { %197 = vst.msk [vmem:[%s359_s1 + $0x21] ss:$-24 sm:$0x3] %vm21_vm3, %v78_v40   ;;  %198 = vst.msk [vmem:[%s359_s1 + $0x3] ss:$24 sm:$0x3] %vm21_vm3, %v84_v41  }
  0x94   :  { %v92_v42 = vpop.permute.xlu0 %91   ;;  %v100_v43 = vpop.permute.xlu1 %99  }
  0x95   :  { %199 = vst.msk [vmem:[%s359_s1 + $0x28] ss:$-24 sm:$0x3] %vm21_vm3, %v92_v42   ;;  %200 = vst.msk [vmem:[%s359_s1 + $0x22] ss:$-24 sm:$0x3] %vm21_vm3, %v100_v43  }
  0x98   :  { %v106_v44 = vpop.permute.xlu0 %105   ;;  %v114_v45 = vpop.permute.xlu1 %113  }
  0x99   :  { %201 = vst.msk [vmem:[%s359_s1 + $0x4] ss:$24 sm:$0x3] %vm21_vm3, %v106_v44   ;;  %202 = vst.msk [vmem:[%s359_s1 + $0x29] ss:$-24 sm:$0x3] %vm21_vm3, %v114_v45  }
  0x9c   :  { %v122_v46 = vpop.permute.xlu0 %121   ;;  %v128_v47 = vpop.permute.xlu1 %127  }
  0x9d   :  { %203 = vst.msk [vmem:[%s359_s1 + $0x23] ss:$-24 sm:$0x3] %vm21_vm3, %v122_v46   ;;  %204 = vst.msk [vmem:[%s359_s1 + $0x5] ss:$24 sm:$0x3] %vm21_vm3, %v128_v47  }
  0xa0   :  { %v136_v48 = vpop.permute.xlu0 %135  }
  0xa1   :  { %205 = vst.msk [vmem:[%s359_s1 + $0x2a] ss:$-24 sm:$0x3] %vm21_vm3, %v136_v48  }

// kernel: net_translation5_forward.1
= control target key start
LH: loop header
LB: loop body
LE: loop exit
PB: predicated region body
PF: predicated region fallthrough
CT: control target
= control target key end

     0   :  { %s21517_s20 = smov 0   ;;  %s25446_s0 = inlined_call_operand.vmem [shape: f32[2,1,512], index: 0, kind: input, shape index: {}]   ;;  %s25447_s1 = inlined_call_operand.vmem [shape: f32[1,512], index: 1, kind: input, shape index: {}]   ;;  %s25448_s2 = inlined_call_operand.vmem [shape: f32[25,8,1], index: 2, kind: input, shape index: {}]   ;;  %s25449_s3 = inlined_call_operand.vmem [shape: f32[8,1], index: 3, kind: input, shape index: {}]   ;;  %s25450_s4 = inlined_call_operand.vmem [shape: f32[8,1], index: 4, kind: input, shape index: {}]   ;;  %s25451_s5 = inlined_call_operand.vmem [shape: f32[8,1], index: 5, kind: input, shape index: {}]   ;;  %s25452_s6 = inlined_call_operand.vmem [shape: f32[8,8], index: 6, kind: input, shape index: {}, may-alias: {6,16}]   ;;  %s25453_s7 = inlined_call_operand.vmem [shape: f32[25,32,8], index: 7, kind: input, shape index: {}]   ;;  %s25454_s8 = inlined_call_operand.vmem [shape: f32[32,1], index: 8, kind: input, shape index: {}]   ;;  %s25455_s9 = inlined_call_operand.vmem [shape: f32[32,1], index: 9, kind: input, shape index: {}]   ;;  %s25456_s10 = inlined_call_operand.vmem [shape: f32[32,1], index: 10, kind: input, shape index: {}]   ;;  %s25457_s11 = inlined_call_operand.vmem [shape: f32[32,32], index: 11, kind: input, shape index: {}]   ;;  %s25458_s12 = inlined_call_operand.vmem [shape: f32[25,8,32], index: 12, kind: input, shape index: {}]   ;;  %s25459_s13 = inlined_call_operand.vmem [shape: f32[8,1], index: 13, kind: input, shape index: {}]   ;;  %s25460_s14 = inlined_call_operand.vmem [shape: f32[8,1], index: 14, kind: input, shape index: {}]   ;;  %s25461_s15 = inlined_call_operand.vmem [shape: f32[8,1], index: 15, kind: input, shape index: {}]   ;;  %s25462_s16 = inlined_call_operand.vmem [shape: f32[8,8], index: 16, kind: input, shape index: {}, may-alias: {6,16}]   ;;  %s25463_s17 = inlined_call_operand.vmem [shape: f32[25,1,8], index: 17, kind: input, shape index: {}]   ;;  %s25464_s18 = inlined_call_operand.<no memory space> [shape: f32[1,1], index: 18, kind: input, shape index: {}]   ;;  %s25465_s19 = inlined_call_operand.vmem [shape: f32[2,1,512], index: 19, kind: output, shape index: {}]  }
   0x1   :  { %25567 = sst [smem:[#allocation34_spill]] %s25446_s0  ;;  %v24_v0 = vstv %s25464_s18 }
   0x2   :  { %25568 = sst [smem:[#allocation35_spill]] %s25447_s1  ;;  %25 = vst [vmem:[#allocation2] sm:$0x1] %v24_v0 }
   0x3   :  { %25569 = sst [smem:[#allocation36_spill]] %s25448_s2 }
   0x4   :  { %25570 = sst [smem:[#allocation37_spill]] %s25449_s3 }
   0x5   :  { %25571 = sst [smem:[#allocation38_spill]] %s25450_s4 }
   0x6   :  { %25572 = sst [smem:[#allocation39_spill]] %s25451_s5 }
   0x7   :  { %25573 = sst [smem:[#allocation40_spill]] %s25452_s6 }
   0x8   :  { %25574 = sst [smem:[#allocation41_spill]] %s25453_s7 }
   0x9   :  { %25575 = sst [smem:[#allocation42_spill]] %s25454_s8 }
   0xa   :  { %25576 = sst [smem:[#allocation43_spill]] %s25455_s9 }
   0xb   :  { %25577 = sst [smem:[#allocation44_spill]] %s25456_s10 }
   0xc   :  { %25578 = sst [smem:[#allocation45_spill]] %s25457_s11 }
   0xd   :  { %25579 = sst [smem:[#allocation46_spill]] %s25458_s12 }
   0xe   :  { %25580 = sst [smem:[#allocation47_spill]] %s25459_s13 }
   0xf   :  { %25581 = sst [smem:[#allocation48_spill]] %s25460_s14 }
  0x10   :  { %25582 = sst [smem:[#allocation49_spill]] %s25461_s15 }
  0x11   :  { %25583 = sst [smem:[#allocation50_spill]] %s25463_s17 }
  0x12   :  { %25584 = sst [smem:[#allocation51_spill]] %s25465_s19 }
  0x13 LB: > { %25585 = sst [smem:[#allocation3_spill]] %s21384_s20  ;;  %s19721_s21 = sadd.s32 4294967295, %s21384_s20   ;;  %s21384_s20 = sphi %s21517_s20, %s31_s20  }
  0x14   : > { %p19725_p0 = scmp.ge.s32.totalorder %s21384_s20, 1  ;;  %p538_p1 = scmp.lt.s32.totalorder %s21384_s20, 3 }
  0x16   : > { %p539_p2 = pnand %p19725_p0, %p538_p1 }
  0x18   : > { %542 = sbr.rel (%p539_p2) target bundleno = 3953 (0xf71), region = 96 }
  0x1f   : > { %p592_p3 = scmp.lt.s32.totalorder %s19721_s21, 1  ;;  %v25534_v1 = vlaneseq  ;;  %v25535_v3 = vmov 0.0   ;;  %s25589_s2 = sld [smem:[#allocation34_spill]]  ;;  %vm658_vm1 = vcmask 1040384   ;;  %vm654_vm2 = vcmask 7168  }
  0x20   : > { %735 = vmatprep.mubr.f32.mxu0 %v25535_v3  ;;  %806 = vmatprep.mubr.f32.mxu1 %v25535_v3  ;;  %s25520_s24 = smov 41   ;;  %s25522_s25 = smov 42  }
  0x21   : > { %s25830_s21 = smov (!%p592_p3, %s19721_s21), 1  ;;  %v21528_v2 = vshrl.u32 %v25534_v1, 7  ;;  %s25518_s3 = smov 40   ;;  %v21676_v13 = vand.u32 127, %v25534_v1 }
  0x22   : > { %25586 = sst [smem:[#allocation4_spill]] %s25830_s21  ;;  %s25467_s18 = sshll.u32 %s25830_s21, 2 }
  0x23   : > { %25587 = vst [vmem:[#allocation5_spill] sm:$0xff] %v21528_v2  ;;  %v618_v4 = vsub.s32 3, %v21528_v2  ;;  %v21535_v5 = vsub.s32 0, %v21528_v2  ;;  %v614_v6 = vsub.s32 2, %v21528_v2  ;;  %v610_v7 = vsub.s32 1, %v21528_v2  ;;  %s25516_s26 = smov 39  }
  0x24   : > { %s25514_s27 = smov 38   ;;  %s25512_s28 = smov 22   ;;  %vm649_vm0 = vcmp.lt.s32.totalorder %v21676_v13, 41  ;;  %vm634_vm3 = vcmp.lt.s32.totalorder %v21676_v13, 42  ;;  %vm980_vm4 = vcmp.lt.s32.totalorder %v21676_v13, 40  ;;  %vm1156_vm5 = vcmp.lt.s32.totalorder %v21676_v13, 39 }
  0x25   : > { %25588 = vst [vmem:[#allocation6_spill] sm:$0xff] %v21535_v5  ;;  %s595_s23 = scalar_lea.vmem %s25589_s2, %s25467_s18  ;;  %s25510_s29 = smov 21   ;;  %vm1332_vm6 = vcmp.lt.s32.totalorder %v21676_v13, 38  ;;  %vm1508_vm7 = vcmp.lt.s32.totalorder %v21676_v13, 22  ;;  %vm1684_vm8 = vcmp.lt.s32.totalorder %v21676_v13, 21  ;;  %vm1860_vm9 = vcmp.lt.s32.totalorder %v21676_v13, 20 }
  0x26   : > { %v601_v8 = vld [vmem:[%s595_s23] sm:$0xf]  ;;  %s25498_s0 = smov 20   ;;  %s25496_s30 = smov 19   ;;  %vm25533_vm10 = vcmp.lt.s32.totalorder %v21676_v13, 19  ;;  %vm25532_vm11 = vcmp.lt.s32.totalorder %v21676_v13, 18 }
  0x27   : > { %v21546_v9 = vrot.slane %v601_v8, %v618_v4  ;;  %v21549_v10 = vrot.slane %v601_v8, %v21535_v5  ;;  %v21557_v11 = vrot.slane %v601_v8, %v614_v6  ;;  %v21561_v12 = vrot.slane %v601_v8, %v610_v7  ;;  %s25478_s1 = smov 18   ;;  %s25474_s22 = smov 2  }
  0x28   : > { %s25468_s2 = smov 1   ;;  %s25472_s23 = smov 127   ;;  %vm25531_vm12 = vcmp.lt.s32.totalorder %v21676_v13, 2  ;;  %vm25530_vm13 = vcmp.lt.s32.totalorder %v21676_v13, 1  ;;  %vm25500_vm14 = vcmp.lt.s32.totalorder %v21676_v13, 127  ;;  %vm25501_vm15 = vcmp.lt.s32.totalorder %v21676_v13, 126 }
  0x29   : > { %647 = vrot.lane.b32.xlu1 %v21546_v9, %s25520_s24  ;;  %641 = vrot.lane.b32.xlu0 %v21549_v10, %s25520_s24  ;;  %s25470_s18 = smov 126   ;;  %s25597_s6 = sld [smem:[#allocation40_spill]] }
  0x2a   : > { %s25598_s4 = sld [smem:[#allocation38_spill]]  ;;  %s25599_s5 = sld [smem:[#allocation39_spill]] }
  0x2b   : > { %s25608_s7 = sld [smem:[#allocation41_spill]]  ;;  %s25615_s20 = smov 88  }
  0x2c   : > { %s25617_s19 = smov 86   ;;  %s25618_s8 = sld [smem:[#allocation42_spill]] }
  0x2d   : > { %645 = vrot.lane.b32.xlu1 %v21557_v11, %s25520_s24  ;;  %643 = vrot.lane.b32.xlu0 %v21561_v12, %s25520_s24  ;;  %s25657_s9 = sld [smem:[#allocation43_spill]]  ;;  %s25658_s10 = sld [smem:[#allocation44_spill]] }
  0x2e   : > { %s25659_s11 = sld [smem:[#allocation45_spill]]  ;;  %s25660_s13 = sld [smem:[#allocation47_spill]] }
  0x2f   : > { %s25661_s12 = sld [smem:[#allocation46_spill]]  ;;  %s25662_s14 = smov 42  }
  0x30   : > { %s25663_s21 = smov 41   ;;  %s25666_s15 = smov 38  }
  0x31   : > { %626 = vrot.lane.b32.xlu1 %v21561_v12, %s25522_s25  ;;  %624 = vrot.lane.b32.xlu0 %v21549_v10, %s25522_s25  ;;  %s25668_s17 = smov 21  }
  0x35   : > { %628 = vrot.lane.b32.xlu1 %v21557_v11, %s25522_s25  ;;  %630 = vrot.lane.b32.xlu0 %v21546_v9, %s25522_s25 }
  0x39   : > { %974 = vrot.lane.b32.xlu1 %v21561_v12, %s25518_s3  ;;  %972 = vrot.lane.b32.xlu0 %v21549_v10, %s25518_s3 }
  0x3d   : > { %976 = vrot.lane.b32.xlu1 %v21557_v11, %s25518_s3  ;;  %978 = vrot.lane.b32.xlu0 %v21546_v9, %s25518_s3 }
  0x41   : > { %1150 = vrot.lane.b32.xlu1 %v21561_v12, %s25516_s26  ;;  %1148 = vrot.lane.b32.xlu0 %v21549_v10, %s25516_s26 }
  0x45   : > { %1152 = vrot.lane.b32.xlu1 %v21557_v11, %s25516_s26  ;;  %1154 = vrot.lane.b32.xlu0 %v21546_v9, %s25516_s26 }
  0x49   : > { %1326 = vrot.lane.b32.xlu1 %v21561_v12, %s25514_s27  ;;  %1324 = vrot.lane.b32.xlu0 %v21549_v10, %s25514_s27 }
  0x4d   : > { %1328 = vrot.lane.b32.xlu1 %v21557_v11, %s25514_s27  ;;  %1330 = vrot.lane.b32.xlu0 %v21546_v9, %s25514_s27 }
  0x51   : > { %1502 = vrot.lane.b32.xlu1 %v21561_v12, %s25512_s28  ;;  %1500 = vrot.lane.b32.xlu0 %v21549_v10, %s25512_s28 }
  0x55   : > { %1504 = vrot.lane.b32.xlu1 %v21557_v11, %s25512_s28  ;;  %1506 = vrot.lane.b32.xlu0 %v21546_v9, %s25512_s28 }
  0x59   : > { %1678 = vrot.lane.b32.xlu1 %v21561_v12, %s25510_s29  ;;  %1676 = vrot.lane.b32.xlu0 %v21549_v10, %s25510_s29 }
  0x5d   : > { %1680 = vrot.lane.b32.xlu1 %v21557_v11, %s25510_s29  ;;  %1682 = vrot.lane.b32.xlu0 %v21546_v9, %s25510_s29 }
  0x61   : > { %1854 = vrot.lane.b32.xlu1 %v21561_v12, %s25498_s0  ;;  %1852 = vrot.lane.b32.xlu0 %v21549_v10, %s25498_s0 }
  0x65   : > { %1856 = vrot.lane.b32.xlu1 %v21557_v11, %s25498_s0  ;;  %1858 = vrot.lane.b32.xlu0 %v21546_v9, %s25498_s0  ;;  %s25591_s0 = sld [smem:[#allocation37_spill]] }
  0x69   : > { %2030 = vrot.lane.b32.xlu1 %v21561_v12, %s25496_s30  ;;  %2028 = vrot.lane.b32.xlu0 %v21549_v10, %s25496_s30 }
  0x6d   : > { %2032 = vrot.lane.b32.xlu1 %v21557_v11, %s25496_s30  ;;  %2034 = vrot.lane.b32.xlu0 %v21546_v9, %s25496_s30  ;;  %s25602_s30 = smov 18  }
  0x71   : > { %2206 = vrot.lane.b32.xlu1 %v21561_v12, %s25478_s1  ;;  %2204 = vrot.lane.b32.xlu0 %v21549_v10, %s25478_s1 }
  0x75   : > { %2208 = vrot.lane.b32.xlu1 %v21557_v11, %s25478_s1  ;;  %2210 = vrot.lane.b32.xlu0 %v21546_v9, %s25478_s1  ;;  %s25482_s1 = smov 108  }
  0x79   : > { %2382 = vrot.lane.b32.xlu1 %v21561_v12, %s25474_s22  ;;  %2380 = vrot.lane.b32.xlu0 %v21549_v10, %s25474_s22 }
  0x7d   : > { %2384 = vrot.lane.b32.xlu1 %v21557_v11, %s25474_s22  ;;  %2386 = vrot.lane.b32.xlu0 %v21546_v9, %s25474_s22  ;;  %s25590_s22 = sld [smem:[#allocation36_spill]] }
  0x81   : > { %2558 = vrot.lane.b32.xlu1 %v21561_v12, %s25468_s2  ;;  %2556 = vrot.lane.b32.xlu0 %v21549_v10, %s25468_s2 }
  0x83   : > { %v19728_v21 = vld [vmem:[%s25590_s22 + $0x8] sm:$0xff]  ;;  %v602_v31 = vld [vmem:[%s25590_s22] sm:$0xff]  ;;  %v19741_v40 = vld [vmem:[%s25590_s22 + $0x10] sm:$0xff] }
  0x84   : > { %v19748_v49 = vld [vmem:[%s25590_s22 + $0x18] sm:$0xff]  ;;  %v19755_v58 = vld [vmem:[%s25590_s22 + $0x20] sm:$0xff] }
  0x85   : > { %2560 = vrot.lane.b32.xlu1 %v21557_v11, %s25468_s2  ;;  %2562 = vrot.lane.b32.xlu0 %v21546_v9, %s25468_s2  ;;  %s25476_s2 = smov 110  }
  0x89   : > { %2893 = vrot.lane.b32.xlu0 %v21561_v12, %s25472_s23  ;;  %2895 = vrot.lane.b32.xlu1 %v21557_v11, %s25472_s23 }
  0x8d   : > { %2891 = vrot.lane.b32.xlu0 %v21549_v10, %s25472_s23  ;;  %2897 = vrot.lane.b32.xlu1 %v21546_v9, %s25472_s23  ;;  %s25600_s23 = smov 20  }
  0x91   : > { %3069 = vrot.lane.b32.xlu0 %v21561_v12, %s25470_s18  ;;  %3071 = vrot.lane.b32.xlu1 %v21557_v11, %s25470_s18 }
  0x95   : > { %3067 = vrot.lane.b32.xlu0 %v21549_v10, %s25470_s18  ;;  %3073 = vrot.lane.b32.xlu1 %v21546_v9, %s25470_s18  ;;  %s25480_s18 = smov 109  }
  0x99   : > { %3245 = vrot.lane.b32.xlu0 %v21561_v12, %s25476_s2  ;;  %3247 = vrot.lane.b32.xlu1 %v21557_v11, %s25476_s2 }
  0x9b   : > { %v648_v14 = vpop.permute.xlu1 %647  ;;  %v642_v15 = vpop.permute.xlu0 %641 }
  0x9c   : > { %v653_v22 = vsel %vm649_vm0, %v648_v14, %v642_v15 }
  0x9d   : > { %3243 = vrot.lane.b32.xlu0 %v21549_v10, %s25476_s2  ;;  %3249 = vrot.lane.b32.xlu1 %v21546_v9, %s25476_s2  ;;  %s25604_s2 = smov 1  }
  0x9f   : > { %v646_v16 = vpop.permute.xlu1 %645  ;;  %v644_v17 = vpop.permute.xlu0 %643 }
  0xa0   : > { %v652_v18 = vsel %vm649_vm0, %v642_v15, %v644_v17  ;;  %v650_v19 = vsel %vm649_vm0, %v646_v16, %v648_v14  ;;  %v651_v20 = vsel %vm649_vm0, %v644_v17, %v646_v16  ;;  %v19762_v15 = vld [vmem:[%s25590_s22 + $0x28] sm:$0xff] }
  0xa1   : > { %19729 = vmatprep.subr.msk.mxu0 %vm658_vm1, %v652_v18  ;;  %19732 = vmatprep.subr.msk.mxu1 %vm658_vm1, %v650_v19 }
  0xa2   : > { %19730 = vmatpush1.msk.msra.mxu0 %vm658_vm1, %v653_v22  ;;  %19733 = vmatpush1.msk.msra.mxu1 %vm658_vm1, %v651_v20 }
  0xa3   : > { %v627_v23 = vpop.permute.xlu1 %626  ;;  %19731 = vmatmul.mubr.msk.f32.vlgmr.msra.gmra.mrb[0].mxu0 %vm654_vm2, %v19728_v21  ;;  %19734 = vmatmul.mubr.msk.f32.vlgmr.msra.gmra.mrb[0].mxu1 %vm654_vm2, %v19728_v21  ;;  %v625_v24 = vpop.permute.xlu0 %624 }
  0xa4   : > { %3421 = vrot.lane.b32.xlu0 %v21561_v12, %s25480_s18  ;;  %v637_v25 = vsel %vm634_vm3, %v625_v24, %v627_v23  ;;  %3423 = vrot.lane.b32.xlu1 %v21557_v11, %s25480_s18 }
  0xa5   : > { %19735 = vmatprep.subr.msk.mxu0 %vm658_vm1, %v637_v25  ;;  %892 = vmatprep.mubr.f32.mxu0 %v25535_v3 }
  0xa6   : > { %963 = vmatprep.mubr.f32.mxu1 %v25535_v3 }
  0xa7   : > { %v629_v26 = vpop.permute.xlu1 %628  ;;  %v631_v27 = vpop.permute.xlu0 %630 }
  0xa8   : > { %v636_v28 = vsel %vm634_vm3, %v627_v23, %v629_v26  ;;  %v638_v29 = vsel %vm634_vm3, %v631_v27, %v625_v24  ;;  %v635_v30 = vsel %vm634_vm3, %v629_v26, %v631_v27  ;;  %3419 = vrot.lane.b32.xlu0 %v21549_v10, %s25480_s18  ;;  %3425 = vrot.lane.b32.xlu1 %v21546_v9, %s25480_s18  ;;  %s25484_s18 = smov 107   ;;  %v19769_v24 = vld [vmem:[%s25590_s22 + $0x30] sm:$0xff] }
  0xa9   : > { %19736 = vmatpush1.msk.msra.mxu0 %vm658_vm1, %v638_v29  ;;  %19738 = vmatprep.subr.msk.mxu1 %vm658_vm1, %v635_v30 }
  0xaa   : > { %19739 = vmatpush1.msk.msra.mxu1 %vm658_vm1, %v636_v28 }
  0xab   : > { %v975_v32 = vpop.permute.xlu1 %974  ;;  %19737 = vmatmul.mubr.msk.f32.vlgmr.msra.gmra.mrb[0].mxu0 %vm654_vm2, %v602_v31  ;;  %19740 = vmatmul.mubr.msk.f32.vlgmr.msra.gmra.mrb[0].mxu1 %vm654_vm2, %v602_v31  ;;  %v973_v33 = vpop.permute.xlu0 %972 }
  0xac   : > { %3597 = vrot.lane.b32.xlu0 %v21561_v12, %s25482_s1  ;;  %v983_v34 = vsel %vm980_vm4, %v973_v33, %v975_v32  ;;  %3599 = vrot.lane.b32.xlu1 %v21557_v11, %s25482_s1 }
  0xad   : > { %19742 = vmatprep.subr.msk.mxu0 %vm658_vm1, %v983_v34  ;;  %1064 = vmatprep.mubr.f32.mxu0 %v25535_v3 }
  0xae   : > { %1135 = vmatprep.mubr.f32.mxu1 %v25535_v3 }
  0xaf   : > { %v977_v35 = vpop.permute.xlu1 %976  ;;  %v979_v36 = vpop.permute.xlu0 %978 }
  0xb0   : > { %v982_v37 = vsel %vm980_vm4, %v975_v32, %v977_v35  ;;  %v984_v38 = vsel %vm980_vm4, %v979_v36, %v973_v33  ;;  %v981_v39 = vsel %vm980_vm4, %v977_v35, %v979_v36  ;;  %3595 = vrot.lane.b32.xlu0 %v21549_v10, %s25482_s1  ;;  %3601 = vrot.lane.b32.xlu1 %v21546_v9, %s25482_s1  ;;  %s25486_s1 = smov 106   ;;  %v19776_v33 = vld [vmem:[%s25590_s22 + $0x38] sm:$0xff] }
  0xb1   : > { %19743 = vmatpush1.msk.msra.mxu0 %vm658_vm1, %v984_v38  ;;  %19745 = vmatprep.subr.msk.mxu1 %vm658_vm1, %v981_v39 }
  0xb2   : > { %19746 = vmatpush1.msk.msra.mxu1 %vm658_vm1, %v982_v37 }
  0xb3   : > { %v1151_v41 = vpop.permute.xlu1 %1150  ;;  %19744 = vmatmul.mubr.msk.f32.vlgmr.msra.gmra.mrb[0].mxu0 %vm654_vm2, %v19741_v40  ;;  %19747 = vmatmul.mubr.msk.f32.vlgmr.msra.gmra.mrb[0].mxu1 %vm654_vm2, %v19741_v40  ;;  %v1149_v42 = vpop.permute.xlu0 %1148 }
  0xb4   : > { %3773 = vrot.lane.b32.xlu0 %v21561_v12, %s25484_s18  ;;  %v1159_v43 = vsel %vm1156_vm5, %v1149_v42, %v1151_v41  ;;  %3775 = vrot.lane.b32.xlu1 %v21557_v11, %s25484_s18 }
  0xb5   : > { %19749 = vmatprep.subr.msk.mxu0 %vm658_vm1, %v1159_v43  ;;  %1240 = vmatprep.mubr.f32.mxu0 %v25535_v3 }
  0xb6   : > { %1311 = vmatprep.mubr.f32.mxu1 %v25535_v3 }
  0xb7   : > { %v1153_v44 = vpop.permute.xlu1 %1152  ;;  %v1155_v45 = vpop.permute.xlu0 %1154 }
  0xb8   : > { %v1158_v46 = vsel %vm1156_vm5, %v1151_v41, %v1153_v44  ;;  %v1160_v47 = vsel %vm1156_vm5, %v1155_v45, %v1149_v42  ;;  %v1157_v48 = vsel %vm1156_vm5, %v1153_v44, %v1155_v45  ;;  %3771 = vrot.lane.b32.xlu0 %v21549_v10, %s25484_s18  ;;  %3777 = vrot.lane.b32.xlu1 %v21546_v9, %s25484_s18  ;;  %s25488_s18 = smov 90   ;;  %v19783_v42 = vld [vmem:[%s25590_s22 + $0x40] sm:$0xff] }
  0xb9   : > { %19750 = vmatpush1.msk.msra.mxu0 %vm658_vm1, %v1160_v47  ;;  %19752 = vmatprep.subr.msk.mxu1 %vm658_vm1, %v1157_v48 }
  0xba   : > { %19753 = vmatpush1.msk.msra.mxu1 %vm658_vm1, %v1158_v46  ;;  %v21411_v46 = vmov 0  }
  0xbb   : > { %v1327_v50 = vpop.permute.xlu1 %1326  ;;  %19751 = vmatmul.mubr.msk.f32.vlgmr.msra.gmra.mrb[0].mxu0 %vm654_vm2, %v19748_v49  ;;  %19754 = vmatmul.mubr.msk.f32.vlgmr.msra.gmra.mrb[0].mxu1 %vm654_vm2, %v19748_v49  ;;  %v1325_v51 = vpop.permute.xlu0 %1324 }
  0xbc   : > { %3949 = vrot.lane.b32.xlu0 %v21561_v12, %s25486_s1  ;;  %v1335_v52 = vsel %vm1332_vm6, %v1325_v51, %v1327_v50  ;;  %3951 = vrot.lane.b32.xlu1 %v21557_v11, %s25486_s1 }
  0xbd   : > { %19756 = vmatprep.subr.msk.mxu0 %vm658_vm1, %v1335_v52  ;;  %1416 = vmatprep.mubr.f32.mxu0 %v25535_v3  ;;  %v19790_v52 = vld [vmem:[%s25590_s22 + $0x48] sm:$0xff] }
  0xbe   : > { %1487 = vmatprep.mubr.f32.mxu1 %v25535_v3  ;;  %21364 = vset.pattern.permute.xlu0 %v21411_v46 }
  0xbf   : > { %v1329_v53 = vpop.permute.xlu1 %1328  ;;  %v1331_v54 = vpop.permute.xlu0 %1330  ;;  %21365 = vset.pattern.permute.xlu1 %v21411_v46  ;;  %v19832_v46 = vld [vmem:[%s25590_s22 + $0x78] sm:$0xff] }
  0xc0   : > { %v1334_v55 = vsel %vm1332_vm6, %v1327_v50, %v1329_v53  ;;  %v1336_v56 = vsel %vm1332_vm6, %v1331_v54, %v1325_v51  ;;  %v1333_v57 = vsel %vm1332_vm6, %v1329_v53, %v1331_v54  ;;  %3947 = vrot.lane.b32.xlu0 %v21549_v10, %s25486_s1  ;;  %3953 = vrot.lane.b32.xlu1 %v21546_v9, %s25486_s1  ;;  %s25490_s1 = smov 89   ;;  %v5001_v53 = vld [vmem:[%s25591_s0] sm:$0xff]  ;;  %s25601_s0 = smov 19  }
  0xc1   : > { %19757 = vmatpush1.msk.msra.mxu0 %vm658_vm1, %v1336_v56  ;;  %19759 = vmatprep.subr.msk.mxu1 %vm658_vm1, %v1333_v57 }
  0xc2   : > { %19760 = vmatpush1.msk.msra.mxu1 %vm658_vm1, %v1334_v55 }
  0xc3   : > { %v1503_v59 = vpop.permute.xlu1 %1502  ;;  %19758 = vmatmul.mubr.msk.f32.vlgmr.msra.gmra.mrb[0].mxu0 %vm654_vm2, %v19755_v58  ;;  %19761 = vmatmul.mubr.msk.f32.vlgmr.msra.gmra.mrb[0].mxu1 %vm654_vm2, %v19755_v58  ;;  %v1501_v60 = vpop.permute.xlu0 %1500 }
  0xc4   : > { %4125 = vrot.lane.b32.xlu0 %v21561_v12, %s25488_s18  ;;  %v1511_v61 = vsel %vm1508_vm7, %v1501_v60, %v1503_v59  ;;  %4127 = vrot.lane.b32.xlu1 %v21557_v11, %s25488_s18 }
  0xc5   : > { %19763 = vmatprep.subr.msk.mxu0 %vm658_vm1, %v1511_v61  ;;  %1592 = vmatprep.mubr.f32.mxu0 %v25535_v3 }
  0xc6   : > { %1663 = vmatprep.mubr.f32.mxu1 %v25535_v3 }
  0xc7   : > { %v1505_v62 = vpop.permute.xlu1 %1504  ;;  %v1507_v63 = vpop.permute.xlu0 %1506 }
  0xc8   : > { %v1510_v0 = vsel %vm1508_vm7, %v1503_v59, %v1505_v62  ;;  %v1512_v8 = vsel %vm1508_vm7, %v1507_v63, %v1501_v60  ;;  %v1509_v14 = vsel %vm1508_vm7, %v1505_v62, %v1507_v63  ;;  %4123 = vrot.lane.b32.xlu0 %v21549_v10, %s25488_s18  ;;  %4129 = vrot.lane.b32.xlu1 %v21546_v9, %s25488_s18  ;;  %s25492_s18 = smov 88   ;;  %v19797_v62 = vld [vmem:[%s25590_s22 + $0x50] sm:$0xff] }
  0xc9   : > { %19764 = vmatpush1.msk.msra.mxu0 %vm658_vm1, %v1512_v8  ;;  %19766 = vmatprep.subr.msk.mxu1 %vm658_vm1, %v1509_v14 }
  0xca   : > { %19767 = vmatpush1.msk.msra.mxu1 %vm658_vm1, %v1510_v0 }
  0xcb   : > { %v1679_v16 = vpop.permute.xlu1 %1678  ;;  %19765 = vmatmul.mubr.msk.f32.vlgmr.msra.gmra.mrb[0].mxu0 %vm654_vm2, %v19762_v15  ;;  %19768 = vmatmul.mubr.msk.f32.vlgmr.msra.gmra.mrb[0].mxu1 %vm654_vm2, %v19762_v15  ;;  %v1677_v17 = vpop.permute.xlu0 %1676 }
  0xcc   : > { %4301 = vrot.lane.b32.xlu0 %v21561_v12, %s25490_s1  ;;  %v1687_v18 = vsel %vm1684_vm8, %v1677_v17, %v1679_v16  ;;  %4303 = vrot.lane.b32.xlu1 %v21557_v11, %s25490_s1 }
  0xcd   : > { %19770 = vmatprep.subr.msk.mxu0 %vm658_vm1, %v1687_v18  ;;  %1768 = vmatprep.mubr.f32.mxu0 %v25535_v3 }
  0xce   : > { %1839 = vmatprep.mubr.f32.mxu1 %v25535_v3 }
  0xcf   : > { %v1681_v19 = vpop.permute.xlu1 %1680  ;;  %v1683_v20 = vpop.permute.xlu0 %1682 }
  0xd0   : > { %v1686_v21 = vsel %vm1684_vm8, %v1679_v16, %v1681_v19  ;;  %v1688_v22 = vsel %vm1684_vm8, %v1683_v20, %v1677_v17  ;;  %v1685_v23 = vsel %vm1684_vm8, %v1681_v19, %v1683_v20  ;;  %4299 = vrot.lane.b32.xlu0 %v21549_v10, %s25490_s1  ;;  %4305 = vrot.lane.b32.xlu1 %v21546_v9, %s25490_s1  ;;  %s25494_s1 = smov 87   ;;  %v19804_v19 = vld [vmem:[%s25590_s22 + $0x58] sm:$0xff] }
  0xd1   : > { %19771 = vmatpush1.msk.msra.mxu0 %vm658_vm1, %v1688_v22  ;;  %19773 = vmatprep.subr.msk.mxu1 %vm658_vm1, %v1685_v23 }
  0xd2   : > { %19774 = vmatpush1.msk.msra.mxu1 %vm658_vm1, %v1686_v21 }
  0xd3   : > { %v1855_v25 = vpop.permute.xlu1 %1854  ;;  %19772 = vmatmul.mubr.msk.f32.vlgmr.msra.gmra.mrb[0].mxu0 %vm654_vm2, %v19769_v24  ;;  %19775 = vmatmul.mubr.msk.f32.vlgmr.msra.gmra.mrb[0].mxu1 %vm654_vm2, %v19769_v24  ;;  %v1853_v26 = vpop.permute.xlu0 %1852 }
  0xd4   : > { %4477 = vrot.lane.b32.xlu0 %v21561_v12, %s25492_s18  ;;  %v1863_v27 = vsel %vm1860_vm9, %v1853_v26, %v1855_v25  ;;  %4479 = vrot.lane.b32.xlu1 %v21557_v11, %s25492_s18 }
  0xd5   : > { %19777 = vmatprep.subr.msk.mxu0 %vm658_vm1, %v1863_v27  ;;  %1944 = vmatprep.mubr.f32.mxu0 %v25535_v3 }
  0xd6   : > { %2015 = vmatprep.mubr.f32.mxu1 %v25535_v3 }
  0xd7   : > { %v1857_v28 = vpop.permute.xlu1 %1856  ;;  %v1859_v29 = vpop.permute.xlu0 %1858 }
  0xd8   : > { %v1862_v30 = vsel %vm1860_vm9, %v1855_v25, %v1857_v28  ;;  %v1864_v31 = vsel %vm1860_vm9, %v1859_v29, %v1853_v26  ;;  %v1861_v32 = vsel %vm1860_vm9, %v1857_v28, %v1859_v29  ;;  %4475 = vrot.lane.b32.xlu0 %v21549_v10, %s25492_s18  ;;  %4481 = vrot.lane.b32.xlu1 %v21546_v9, %s25492_s18  ;;  %s25524_s18 = smov 86  }
  0xd9   : > { %19778 = vmatpush1.msk.msra.mxu0 %vm658_vm1, %v1864_v31  ;;  %19780 = vmatprep.subr.msk.mxu1 %vm658_vm1, %v1861_v32 }
  0xda   : > { %19781 = vmatpush1.msk.msra.mxu1 %vm658_vm1, %v1862_v30  ;;  %v19818_v30 = vld [vmem:[%s25590_s22 + $0x68] sm:$0xff] }
  0xdb   : > { %v2031_v34 = vpop.permute.xlu1 %2030  ;;  %19779 = vmatmul.mubr.msk.f32.vlgmr.msra.gmra.mrb[0].mxu0 %vm654_vm2, %v19776_v33  ;;  %19782 = vmatmul.mubr.msk.f32.vlgmr.msra.gmra.mrb[0].mxu1 %vm654_vm2, %v19776_v33  ;;  %v2029_v35 = vpop.permute.xlu0 %2028 }
  0xdc   : > { %4653 = vrot.lane.b32.xlu0 %v21561_v12, %s25494_s1  ;;  %v2039_v36 = vsel %vm25533_vm10, %v2029_v35, %v2031_v34  ;;  %4655 = vrot.lane.b32.xlu1 %v21557_v11, %s25494_s1 }
  0xdd   : > { %19784 = vmatprep.subr.msk.mxu0 %vm658_vm1, %v2039_v36  ;;  %2120 = vmatprep.mubr.f32.mxu0 %v25535_v3 }
  0xde   : > { %2191 = vmatprep.mubr.f32.mxu1 %v25535_v3 }
  0xdf   : > { %v2033_v37 = vpop.permute.xlu1 %2032  ;;  %v2035_v38 = vpop.permute.xlu0 %2034 }
  0xe0   : > { %v2038_v39 = vsel %vm25533_vm10, %v2031_v34, %v2033_v37  ;;  %v2040_v40 = vsel %vm25533_vm10, %v2035_v38, %v2029_v35  ;;  %v2037_v41 = vsel %vm25533_vm10, %v2033_v37, %v2035_v38  ;;  %4651 = vrot.lane.b32.xlu0 %v21549_v10, %s25494_s1  ;;  %4657 = vrot.lane.b32.xlu1 %v21546_v9, %s25494_s1  ;;  %s25592_s1 = sld [smem:[#allocation35_spill]] }
  0xe1   : > { %19785 = vmatpush1.msk.msra.mxu0 %vm658_vm1, %v2040_v40  ;;  %19787 = vmatprep.subr.msk.mxu1 %vm658_vm1, %v2037_v41 }
  0xe2   : > { %19788 = vmatpush1.msk.msra.mxu1 %vm658_vm1, %v2038_v39  ;;  %v19825_v39 = vld [vmem:[%s25590_s22 + $0x70] sm:$0xff] }
  0xe3   : > { %v2207_v43 = vpop.permute.xlu1 %2206  ;;  %19786 = vmatmul.mubr.msk.f32.vlgmr.msra.gmra.mrb[0].mxu0 %vm654_vm2, %v19783_v42  ;;  %19789 = vmatmul.mubr.msk.f32.vlgmr.msra.gmra.mrb[0].mxu1 %vm654_vm2, %v19783_v42  ;;  %v2205_v44 = vpop.permute.xlu0 %2204 }
  0xe4   : > { %4829 = vrot.lane.b32.xlu0 %v21561_v12, %s25524_s18  ;;  %v2215_v45 = vsel %vm25532_vm11, %v2205_v44, %v2207_v43  ;;  %4831 = vrot.lane.b32.xlu1 %v21557_v11, %s25524_s18 }
  0xe5   : > { %19791 = vmatprep.subr.msk.mxu0 %vm658_vm1, %v2215_v45  ;;  %2296 = vmatprep.mubr.f32.mxu0 %v25535_v3 }
  0xe6   : > { %2367 = vmatprep.mubr.f32.mxu1 %v25535_v3 }
  0xe7   : > { %v2209_v47 = vpop.permute.xlu1 %2208  ;;  %v2211_v48 = vpop.permute.xlu0 %2210 }
  0xe8   : > { %v2214_v49 = vsel %vm25532_vm11, %v2207_v43, %v2209_v47  ;;  %v2216_v50 = vsel %vm25532_vm11, %v2211_v48, %v2205_v44  ;;  %v2213_v51 = vsel %vm25532_vm11, %v2209_v47, %v2211_v48  ;;  %4827 = vrot.lane.b32.xlu0 %v21549_v10, %s25524_s18  ;;  %4833 = vrot.lane.b32.xlu1 %v21546_v9, %s25524_s18  ;;  %s25611_s18 = smov 107  }
  0xe9   : > { %19792 = vmatpush1.msk.msra.mxu0 %vm658_vm1, %v2216_v50  ;;  %19794 = vmatprep.subr.msk.mxu1 %vm658_vm1, %v2213_v51 }
  0xea   : > { %19795 = vmatpush1.msk.msra.mxu1 %vm658_vm1, %v2214_v49 }
  0xeb   : > { %v2383_v54 = vpop.permute.xlu1 %2382  ;;  %19793 = vmatmul.mubr.msk.f32.vlgmr.msra.gmra.mrb[0].mxu0 %vm654_vm2, %v19790_v52  ;;  %19796 = vmatmul.mubr.msk.f32.vlgmr.msra.gmra.mrb[0].mxu1 %vm654_vm2, %v19790_v52  ;;  %v2381_v55 = vpop.permute.xlu0 %2380 }
  0xec   : > { %v2391_v56 = vsel %vm25531_vm12, %v2381_v55, %v2383_v54  ;;  %2472 = vmatprep.mubr.f32.mxu0 %v25535_v3  ;;  %2543 = vmatprep.mubr.f32.mxu1 %v25535_v3 }
  0xed   : > { %19798 = vmatprep.subr.msk.mxu0 %vm658_vm1, %v2391_v56  ;;  %5004 = vperm.xlu0 %21364, %v5001_v53  }
  0xef   : > { %v2385_v57 = vpop.permute.xlu1 %2384  ;;  %v2387_v58 = vpop.permute.xlu0 %2386 }
  0xf0   : > { %v2390_v59 = vsel %vm25531_vm12, %v2383_v54, %v2385_v57  ;;  %v2392_v60 = vsel %vm25531_vm12, %v2387_v58, %v2381_v55  ;;  %v2389_v61 = vsel %vm25531_vm12, %v2385_v57, %v2387_v58  ;;  %v19839_v55 = vld [vmem:[%s25590_s22 + $0x80] sm:$0xff] }
  0xf1   : > { %19799 = vmatpush1.msk.msra.mxu0 %vm658_vm1, %v2392_v60  ;;  %19801 = vmatprep.subr.msk.mxu1 %vm658_vm1, %v2389_v61 }
  0xf2   : > { %19802 = vmatpush1.msk.msra.mxu1 %vm658_vm1, %v2390_v59 }
  0xf3   : > { %v2559_v63 = vpop.permute.xlu1 %2558  ;;  %19800 = vmatmul.mubr.msk.f32.vlgmr.msra.gmra.mrb[0].mxu0 %vm654_vm2, %v19797_v62  ;;  %19803 = vmatmul.mubr.msk.f32.vlgmr.msra.gmra.mrb[0].mxu1 %vm654_vm2, %v19797_v62  ;;  %v2557_v0 = vpop.permute.xlu0 %2556 }
  0xf4   : > { %v2567_v8 = vsel %vm25530_vm13, %v2557_v0, %v2559_v63  ;;  %2648 = vmatprep.mubr.f32.mxu0 %v25535_v3  ;;  %2719 = vmatprep.mubr.f32.mxu1 %v25535_v3 }
  0xf5   : > { %19805 = vmatprep.subr.msk.mxu0 %vm658_vm1, %v2567_v8 }
  0xf7   : > { %v2561_v14 = vpop.permute.xlu1 %2560  ;;  %v2563_v15 = vpop.permute.xlu0 %2562 }
  0xf8   : > { %v2566_v16 = vsel %vm25530_vm13, %v2559_v63, %v2561_v14  ;;  %v2568_v17 = vsel %vm25530_vm13, %v2563_v15, %v2557_v0  ;;  %v2565_v18 = vsel %vm25530_vm13, %v2561_v14, %v2563_v15  ;;  %v19846_v0 = vld [vmem:[%s25590_s22 + $0x88] sm:$0xff] }
  0xf9   : > { %19806 = vmatpush1.msk.msra.mxu0 %vm658_vm1, %v2568_v17  ;;  %19808 = vmatprep.subr.msk.mxu1 %vm658_vm1, %v2565_v18 }
  0xfa   : > { %19809 = vmatpush1.msk.msra.mxu1 %vm658_vm1, %v2566_v16  ;;  %19812 = vmatprep.subr.msk.mxu0 %vm658_vm1, %v21561_v12 }
  0xfb   : > { %19807 = vmatmul.mubr.msk.f32.vlgmr.msra.gmra.mrb[0].mxu0 %vm654_vm2, %v19804_v19  ;;  %19810 = vmatmul.mubr.msk.f32.vlgmr.msra.gmra.mrb[0].mxu1 %vm654_vm2, %v19804_v19  ;;  %v2894_v20 = vpop.permute.xlu0 %2893  ;;  %v2896_v21 = vpop.permute.xlu1 %2895 }
  0xfc   : > { %19815 = vmatprep.subr.msk.mxu1 %vm658_vm1, %v21546_v9  ;;  %19813 = vmatpush1.msk.msra.mxu0 %vm658_vm1, %v21549_v10  ;;  %v2901_v22 = vsel %vm25500_vm14, %v2894_v20, %v2896_v21  ;;  %v19811_v9 = vld [vmem:[%s25590_s22 + $0x60] sm:$0xff] }
  0xfd   : > { %2807 = vmatprep.mubr.f32.mxu0 %v25535_v3  ;;  %19816 = vmatpush1.msk.msra.mxu1 %vm658_vm1, %v21557_v11 }
  0xfe   : > { %2878 = vmatprep.mubr.f32.mxu1 %v25535_v3  ;;  %19819 = vmatprep.subr.msk.mxu0 %vm658_vm1, %v2901_v22 }
  0xff   : > { %v2892_v12 = vpop.permute.xlu0 %2891  ;;  %v2898_v23 = vpop.permute.xlu1 %2897 }
 0x100   : > { %v2903_v10 = vsel %vm25500_vm14, %v2898_v23, %v2892_v12  ;;  %v2902_v24 = vsel %vm25500_vm14, %v2892_v12, %v2894_v20  ;;  %v2900_v25 = vsel %vm25500_vm14, %v2896_v21, %v2898_v23  ;;  %vm25502_vm14 = vcmp.lt.s32.totalorder %v21676_v13, 110  ;;  %v19853_v21 = vld [vmem:[%s25590_s22 + $0x90] sm:$0xff] }
 0x101   : > { %19822 = vmatprep.subr.msk.mxu1 %vm658_vm1, %v2903_v10 }
 0x103   : > { %19814 = vmatmul.mubr.msk.f32.vlgmr.msra.gmra.mrb[0].mxu0 %vm654_vm2, %v19811_v9  ;;  %19817 = vmatmul.mubr.msk.f32.vlgmr.msra.gmra.mrb[0].mxu1 %vm654_vm2, %v19811_v9  ;;  %v3070_v11 = vpop.permute.xlu0 %3069  ;;  %v3072_v26 = vpop.permute.xlu1 %3071 }
 0x104   : > { %19820 = vmatpush1.msk.msra.mxu0 %vm658_vm1, %v2902_v24  ;;  %19823 = vmatpush1.msk.msra.mxu1 %vm658_vm1, %v2900_v25  ;;  %v3077_v27 = vsel %vm25501_vm15, %v3070_v11, %v3072_v26 }
 0x105   : > { %2983 = vmatprep.mubr.f32.mxu0 %v25535_v3  ;;  %3054 = vmatprep.mubr.f32.mxu1 %v25535_v3 }
 0x106   : > { %19826 = vmatprep.subr.msk.mxu0 %vm658_vm1, %v3077_v27 }
 0x107   : > { %v3068_v28 = vpop.permute.xlu0 %3067  ;;  %v3074_v29 = vpop.permute.xlu1 %3073 }
 0x108   : > { %v3079_v31 = vsel %vm25501_vm15, %v3074_v29, %v3068_v28  ;;  %v3078_v32 = vsel %vm25501_vm15, %v3068_v28, %v3070_v11  ;;  %v3076_v33 = vsel %vm25501_vm15, %v3072_v26, %v3074_v29  ;;  %vm25503_vm15 = vcmp.lt.s32.totalorder %v21676_v13, 109  ;;  %v19860_v26 = vld [vmem:[%s25590_s22 + $0x98] sm:$0xff] }
 0x109   : > { %19829 = vmatprep.subr.msk.mxu1 %vm658_vm1, %v3079_v31 }
 0x10b   : > { %19821 = vmatmul.mubr.msk.f32.vlgmr.msra.gmra.mrb[0].mxu0 %vm654_vm2, %v19818_v30  ;;  %19824 = vmatmul.mubr.msk.f32.vlgmr.msra.gmra.mrb[0].mxu1 %vm654_vm2, %v19818_v30  ;;  %v3246_v34 = vpop.permute.xlu0 %3245  ;;  %v3248_v35 = vpop.permute.xlu1 %3247 }
 0x10c   : > { %19827 = vmatpush1.msk.msra.mxu0 %vm658_vm1, %v3078_v32  ;;  %19830 = vmatpush1.msk.msra.mxu1 %vm658_vm1, %v3076_v33  ;;  %v3253_v36 = vsel %vm25502_vm14, %v3246_v34, %v3248_v35 }
 0x10d   : > { %3159 = vmatprep.mubr.f32.mxu0 %v25535_v3  ;;  %3230 = vmatprep.mubr.f32.mxu1 %v25535_v3 }
 0x10e   : > { %19833 = vmatprep.subr.msk.mxu0 %vm658_vm1, %v3253_v36 }
 0x10f   : > { %v3244_v37 = vpop.permute.xlu0 %3243  ;;  %v3250_v38 = vpop.permute.xlu1 %3249 }
 0x110   : > { %v3255_v40 = vsel %vm25502_vm14, %v3250_v38, %v3244_v37  ;;  %v3254_v41 = vsel %vm25502_vm14, %v3244_v37, %v3246_v34  ;;  %v3252_v42 = vsel %vm25502_vm14, %v3248_v35, %v3250_v38  ;;  %vm25504_vm14 = vcmp.lt.s32.totalorder %v21676_v13, 108  ;;  %v19867_v35 = vld [vmem:[%s25590_s22 + $0xa0] sm:$0xff] }
 0x111   : > { %19836 = vmatprep.subr.msk.mxu1 %vm658_vm1, %v3255_v40 }
 0x113   : > { %19828 = vmatmul.mubr.msk.f32.vlgmr.msra.gmra.mrb[0].mxu0 %vm654_vm2, %v19825_v39  ;;  %19831 = vmatmul.mubr.msk.f32.vlgmr.msra.gmra.mrb[0].mxu1 %vm654_vm2, %v19825_v39 }
 0x114   : > { %19834 = vmatpush1.msk.msra.mxu0 %vm658_vm1, %v3254_v41  ;;  %19837 = vmatpush1.msk.msra.mxu1 %vm658_vm1, %v3252_v42 }
 0x115   : > { %3335 = vmatprep.mubr.f32.mxu0 %v25535_v3  ;;  %3406 = vmatprep.mubr.f32.mxu1 %v25535_v3 }
 0x116   : > { %v3422_v43 = vpop.permute.xlu0 %3421  ;;  %v3424_v44 = vpop.permute.xlu1 %3423 }
 0x117   : > { %v3429_v45 = vsel %vm25503_vm15, %v3422_v43, %v3424_v44 }
 0x118   : > { %19840 = vmatprep.subr.msk.mxu0 %vm658_vm1, %v3429_v45 }
 0x11a   : > { %v3420_v47 = vpop.permute.xlu0 %3419  ;;  %v3426_v48 = vpop.permute.xlu1 %3425 }
 0x11b   : > { %19835 = vmatmul.mubr.msk.f32.vlgmr.msra.gmra.mrb[0].mxu0 %vm654_vm2, %v19832_v46  ;;  %19838 = vmatmul.mubr.msk.f32.vlgmr.msra.gmra.mrb[0].mxu1 %vm654_vm2, %v19832_v46  ;;  %v3430_v49 = vsel %vm25503_vm15, %v3420_v47, %v3422_v43  ;;  %v3428_v50 = vsel %vm25503_vm15, %v3424_v44, %v3426_v48  ;;  %v3431_v51 = vsel %vm25503_vm15, %v3426_v48, %v3420_v47  ;;  %vm25505_vm15 = vcmp.lt.s32.totalorder %v21676_v13, 107  ;;  %v19874_v44 = vld [vmem:[%s25590_s22 + $0xa8] sm:$0xff] }
 0x11c   : > { %19841 = vmatpush1.msk.msra.mxu0 %vm658_vm1, %v3430_v49  ;;  %19843 = vmatprep.subr.msk.mxu1 %vm658_vm1, %v3431_v51 }
 0x11d   : > { %19844 = vmatpush1.msk.msra.mxu1 %vm658_vm1, %v3428_v50  ;;  %3511 = vmatprep.mubr.f32.mxu0 %v25535_v3 }
 0x11e   : > { %v3598_v52 = vpop.permute.xlu0 %3597  ;;  %v3600_v53 = vpop.permute.xlu1 %3599  ;;  %3582 = vmatprep.mubr.f32.mxu1 %v25535_v3 }
 0x11f   : > { %v3605_v54 = vsel %vm25504_vm14, %v3598_v52, %v3600_v53 }
 0x120   : > { %19847 = vmatprep.subr.msk.mxu0 %vm658_vm1, %v3605_v54 }
 0x122   : > { %v3596_v56 = vpop.permute.xlu0 %3595  ;;  %v3602_v57 = vpop.permute.xlu1 %3601 }
 0x123   : > { %19842 = vmatmul.mubr.msk.f32.vlgmr.msra.gmra.mrb[0].mxu0 %vm654_vm2, %v19839_v55  ;;  %19845 = vmatmul.mubr.msk.f32.vlgmr.msra.gmra.mrb[0].mxu1 %vm654_vm2, %v19839_v55  ;;  %v3606_v58 = vsel %vm25504_vm14, %v3596_v56, %v3598_v52  ;;  %v3604_v59 = vsel %vm25504_vm14, %v3600_v53, %v3602_v57  ;;  %v3607_v60 = vsel %vm25504_vm14, %v3602_v57, %v3596_v56  ;;  %vm25506_vm14 = vcmp.lt.s32.totalorder %v21676_v13, 106  ;;  %v19881_v53 = vld [vmem:[%s25590_s22 + $0xb0] sm:$0xff] }
 0x124   : > { %19848 = vmatpush1.msk.msra.mxu0 %vm658_vm1, %v3606_v58  ;;  %19850 = vmatprep.subr.msk.mxu1 %vm658_vm1, %v3607_v60 }
 0x125   : > { %19851 = vmatpush1.msk.msra.mxu1 %vm658_vm1, %v3604_v59  ;;  %3687 = vmatprep.mubr.f32.mxu0 %v25535_v3 }
 0x126   : > { %v3774_v61 = vpop.permute.xlu0 %3773  ;;  %v3776_v62 = vpop.permute.xlu1 %3775  ;;  %3758 = vmatprep.mubr.f32.mxu1 %v25535_v3 }
 0x127   : > { %v3781_v63 = vsel %vm25505_vm15, %v3774_v61, %v3776_v62 }
 0x128   : > { %19854 = vmatprep.subr.msk.mxu0 %vm658_vm1, %v3781_v63 }
 0x12a   : > { %v3772_v8 = vpop.permute.xlu0 %3771  ;;  %v3778_v14 = vpop.permute.xlu1 %3777 }
 0x12b   : > { %19849 = vmatmul.mubr.msk.f32.vlgmr.msra.gmra.mrb[0].mxu0 %vm654_vm2, %v19846_v0  ;;  %19852 = vmatmul.mubr.msk.f32.vlgmr.msra.gmra.mrb[0].mxu1 %vm654_vm2, %v19846_v0  ;;  %v3782_v15 = vsel %vm25505_vm15, %v3772_v8, %v3774_v61  ;;  %v3780_v16 = vsel %vm25505_vm15, %v3776_v62, %v3778_v14  ;;  %v3783_v17 = vsel %vm25505_vm15, %v3778_v14, %v3772_v8  ;;  %vm25507_vm15 = vcmp.lt.s32.totalorder %v21676_v13, 90  ;;  %v19888_v62 = vld [vmem:[%s25590_s22 + $0xb8] sm:$0xff] }
 0x12c   : > { %19855 = vmatpush1.msk.msra.mxu0 %vm658_vm1, %v3782_v15  ;;  %19857 = vmatprep.subr.msk.mxu1 %vm658_vm1, %v3783_v17  ;;  %v600_v17 = vld [vmem:[%s25592_s1] sm:$0xf]  ;;  %s25603_s1 = smov 2  }
 0x12d   : > { %19858 = vmatpush1.msk.msra.mxu1 %vm658_vm1, %v3780_v16  ;;  %3863 = vmatprep.mubr.f32.mxu0 %v25535_v3  ;;  %v19895_v16 = vld [vmem:[%s25590_s22 + $0xc0] sm:$0xff]  ;;  %s25763_s22 = sld [smem:[#allocation49_spill]] }
 0x12e   : > { %v3950_v18 = vpop.permute.xlu0 %3949  ;;  %v3952_v19 = vpop.permute.xlu1 %3951  ;;  %3934 = vmatprep.mubr.f32.mxu1 %v25535_v3 }
 0x12f   : > { %v3957_v20 = vsel %vm25506_vm14, %v3950_v18, %v3952_v19 }
 0x130   : > { %19861 = vmatprep.subr.msk.mxu0 %vm658_vm1, %v3957_v20 }
 0x132   : > { %v3948_v22 = vpop.permute.xlu0 %3947  ;;  %v3954_v12 = vpop.permute.xlu1 %3953 }
 0x133   : > { %19856 = vmatmul.mubr.msk.f32.vlgmr.msra.gmra.mrb[0].mxu0 %vm654_vm2, %v19853_v21  ;;  %19859 = vmatmul.mubr.msk.f32.vlgmr.msra.gmra.mrb[0].mxu1 %vm654_vm2, %v19853_v21  ;;  %v3958_v23 = vsel %vm25506_vm14, %v3948_v22, %v3950_v18  ;;  %v3956_v9 = vsel %vm25506_vm14, %v3952_v19, %v3954_v12  ;;  %v3959_v10 = vsel %vm25506_vm14, %v3954_v12, %v3948_v22  ;;  %vm25508_vm14 = vcmp.lt.s32.totalorder %v21676_v13, 89 }
 0x134   : > { %19862 = vmatpush1.msk.msra.mxu0 %vm658_vm1, %v3958_v23  ;;  %19864 = vmatprep.subr.msk.mxu1 %vm658_vm1, %v3959_v10  ;;  %v22256_v19 = vrot.slane %v600_v17, %v21535_v5  ;;  %v22260_v22 = vrot.slane %v600_v17, %v610_v7  ;;  %v22264_v12 = vrot.slane %v600_v17, %v614_v6 }
 0x135   : > { %19865 = vmatpush1.msk.msra.mxu1 %vm658_vm1, %v3956_v9  ;;  %4039 = vmatprep.mubr.f32.mxu0 %v25535_v3 }
 0x136   : > { %v4126_v24 = vpop.permute.xlu0 %4125  ;;  %v4128_v25 = vpop.permute.xlu1 %4127  ;;  %4110 = vmatprep.mubr.f32.mxu1 %v25535_v3  ;;  %25593 = vst [vmem:[#allocation7_spill] sm:$0xff] %v22256_v19  ;;  %25594 = vst [vmem:[#allocation8_spill] sm:$0xff] %v22260_v22 }
 0x137   : > { %v4133_v11 = vsel %vm25507_vm15, %v4126_v24, %v4128_v25  ;;  %25595 = vst [vmem:[#allocation9_spill] sm:$0xff] %v22264_v12 }
 0x138   : > { %19868 = vmatprep.subr.msk.mxu0 %vm658_vm1, %v4133_v11 }
 0x13a   : > { %v4124_v27 = vpop.permute.xlu0 %4123  ;;  %v4130_v28 = vpop.permute.xlu1 %4129 }
 0x13b   : > { %19863 = vmatmul.mubr.msk.f32.vlgmr.msra.gmra.mrb[0].mxu0 %vm654_vm2, %v19860_v26  ;;  %19866 = vmatmul.mubr.msk.f32.vlgmr.msra.gmra.mrb[0].mxu1 %vm654_vm2, %v19860_v26  ;;  %v4134_v29 = vsel %vm25507_vm15, %v4124_v27, %v4126_v24  ;;  %v4132_v30 = vsel %vm25507_vm15, %v4128_v25, %v4130_v28  ;;  %v4135_v31 = vsel %vm25507_vm15, %v4130_v28, %v4124_v27  ;;  %vm25509_vm15 = vcmp.lt.s32.totalorder %v21676_v13, 88 }
 0x13c   : > { %19869 = vmatpush1.msk.msra.mxu0 %vm658_vm1, %v4134_v29  ;;  %19871 = vmatprep.subr.msk.mxu1 %vm658_vm1, %v4135_v31  ;;  %v22268_v26 = vrot.slane %v600_v17, %v618_v4 }
 0x13d   : > { %19872 = vmatpush1.msk.msra.mxu1 %vm658_vm1, %v4132_v30  ;;  %4215 = vmatprep.mubr.f32.mxu0 %v25535_v3 }
 0x13e   : > { %v4302_v32 = vpop.permute.xlu0 %4301  ;;  %v4304_v33 = vpop.permute.xlu1 %4303  ;;  %4286 = vmatprep.mubr.f32.mxu1 %v25535_v3  ;;  %25596 = vst [vmem:[#allocation10_spill] sm:$0xff] %v22268_v26 }
 0x13f   : > { %v4309_v34 = vsel %vm25508_vm14, %v4302_v32, %v4304_v33 }
 0x140   : > { %19875 = vmatprep.subr.msk.mxu0 %vm658_vm1, %v4309_v34 }
 0x142   : > { %v4300_v36 = vpop.permute.xlu0 %4299  ;;  %v4306_v37 = vpop.permute.xlu1 %4305 }
 0x143   : > { %19870 = vmatmul.mubr.msk.f32.vlgmr.msra.gmra.mrb[0].mxu0 %vm654_vm2, %v19867_v35  ;;  %19873 = vmatmul.mubr.msk.f32.vlgmr.msra.gmra.mrb[0].mxu1 %vm654_vm2, %v19867_v35  ;;  %v4310_v38 = vsel %vm25508_vm14, %v4300_v36, %v4302_v32  ;;  %v4308_v39 = vsel %vm25508_vm14, %v4304_v33, %v4306_v37  ;;  %v4311_v40 = vsel %vm25508_vm14, %v4306_v37, %v4300_v36  ;;  %vm4659_vm14 = vcmp.lt.s32.totalorder %v21676_v13, 87 }
 0x144   : > { %19876 = vmatpush1.msk.msra.mxu0 %vm658_vm1, %v4310_v38  ;;  %19878 = vmatprep.subr.msk.mxu1 %vm658_vm1, %v4311_v40  ;;  %v5050_v38 = vld [vmem:[%s25597_s6] sm:$0xff]  ;;  %s25667_s6 = smov 22  }
 0x145   : > { %19879 = vmatpush1.msk.msra.mxu1 %vm658_vm1, %v4308_v39  ;;  %4391 = vmatprep.mubr.f32.mxu0 %v25535_v3 }
 0x146   : > { %v4478_v41 = vpop.permute.xlu0 %4477  ;;  %v4480_v42 = vpop.permute.xlu1 %4479  ;;  %4462 = vmatprep.mubr.f32.mxu1 %v25535_v3 }
 0x147   : > { %v4485_v43 = vsel %vm25509_vm15, %v4478_v41, %v4480_v42 }
 0x148   : > { %19882 = vmatprep.subr.msk.mxu0 %vm658_vm1, %v4485_v43 }
 0x14a   : > { %v4476_v45 = vpop.permute.xlu0 %4475  ;;  %v4482_v46 = vpop.permute.xlu1 %4481 }
 0x14b   : > { %19877 = vmatmul.mubr.msk.f32.vlgmr.msra.gmra.mrb[0].mxu0 %vm654_vm2, %v19874_v44  ;;  %19880 = vmatmul.mubr.msk.f32.vlgmr.msra.gmra.mrb[0].mxu1 %vm654_vm2, %v19874_v44  ;;  %v4486_v47 = vsel %vm25509_vm15, %v4476_v45, %v4478_v41  ;;  %v4484_v48 = vsel %vm25509_vm15, %v4480_v42, %v4482_v46  ;;  %v4487_v49 = vsel %vm25509_vm15, %v4482_v46, %v4476_v45  ;;  %vm4835_vm15 = vcmp.lt.s32.totalorder %v21676_v13, 86  ;;  %v5217_v45 = vld [vmem:[%s25598_s4] sm:$0xff]  ;;  %s25612_s4 = smov 106  }
 0x14c   : > { %19883 = vmatpush1.msk.msra.mxu0 %vm658_vm1, %v4486_v47  ;;  %19885 = vmatprep.subr.msk.mxu1 %vm658_vm1, %v4487_v49  ;;  %v5227_v49 = vld [vmem:[%s25599_s5] sm:$0xff]  ;;  %s25613_s5 = smov 90  }
 0x14d   : > { %19886 = vmatpush1.msk.msra.mxu1 %vm658_vm1, %v4484_v48  ;;  %4567 = vmatprep.mubr.f32.mxu0 %v25535_v3 }
 0x14e   : > { %v4654_v50 = vpop.permute.xlu0 %4653  ;;  %v4656_v51 = vpop.permute.xlu1 %4655  ;;  %4638 = vmatprep.mubr.f32.mxu1 %v25535_v3 }
 0x14f   : > { %v4661_v52 = vsel %vm4659_vm14, %v4654_v50, %v4656_v51 }
 0x150   : > { %19889 = vmatprep.subr.msk.mxu0 %vm658_vm1, %v4661_v52 }
 0x152   : > { %v4652_v54 = vpop.permute.xlu0 %4651  ;;  %v4658_v55 = vpop.permute.xlu1 %4657 }
 0x153   : > { %19884 = vmatmul.mubr.msk.f32.vlgmr.msra.gmra.mrb[0].mxu0 %vm654_vm2, %v19881_v53  ;;  %19887 = vmatmul.mubr.msk.f32.vlgmr.msra.gmra.mrb[0].mxu1 %vm654_vm2, %v19881_v53  ;;  %v4662_v56 = vsel %vm4659_vm14, %v4652_v54, %v4654_v50  ;;  %v4660_v57 = vsel %vm4659_vm14, %v4656_v51, %v4658_v55  ;;  %v4663_v58 = vsel %vm4659_vm14, %v4658_v55, %v4652_v54 }
 0x154   : > { %19890 = vmatpush1.msk.msra.mxu0 %vm658_vm1, %v4662_v56  ;;  %19892 = vmatprep.subr.msk.mxu1 %vm658_vm1, %v4663_v58 }
 0x155   : > { %19893 = vmatpush1.msk.msra.mxu1 %vm658_vm1, %v4660_v57  ;;  %4743 = vmatprep.mubr.f32.mxu0 %v25535_v3 }
 0x156   : > { %v4830_v59 = vpop.permute.xlu0 %4829  ;;  %v4832_v60 = vpop.permute.xlu1 %4831  ;;  %4814 = vmatprep.mubr.f32.mxu1 %v25535_v3 }
 0x157   : > { %v4837_v61 = vsel %vm4835_vm15, %v4830_v59, %v4832_v60 }
 0x158   : > { %19896 = vmatprep.subr.msk.mxu0 %vm658_vm1, %v4837_v61 }
 0x15a   : > { %v4828_v63 = vpop.permute.xlu0 %4827  ;;  %v4834_v0 = vpop.permute.xlu1 %4833 }
 0x15b   : > { %19891 = vmatmul.mubr.msk.f32.vlgmr.msra.gmra.mrb[0].mxu0 %vm654_vm2, %v19888_v62  ;;  %19894 = vmatmul.mubr.msk.f32.vlgmr.msra.gmra.mrb[0].mxu1 %vm654_vm2, %v19888_v62  ;;  %v4838_v8 = vsel %vm4835_vm15, %v4828_v63, %v4830_v59  ;;  %v4836_v14 = vsel %vm4835_vm15, %v4832_v60, %v4834_v0  ;;  %v4839_v15 = vsel %vm4835_vm15, %v4834_v0, %v4828_v63 }
 0x15c   : > { %19897 = vmatpush1.msk.msra.mxu0 %vm658_vm1, %v4838_v8  ;;  %19899 = vmatprep.subr.msk.mxu1 %vm658_vm1, %v4839_v15 }
 0x15d   : > { %19900 = vmatpush1.msk.msra.mxu1 %vm658_vm1, %v4836_v14  ;;  %4919 = vmatprep.mubr.f32.mxu0 %v25535_v3  ;;  %vm21412_vm1 = vmmov 0  }
 0x15e   : > { %4990 = vmatprep.mubr.f32.mxu1 %v25535_v3  ;;  %20384 = vmatprep.subr.mxu0 %v25535_v3 }
 0x15f   : > { %20389 = vmatprep.subr.mxu1 %v25535_v3 }
 0x163   : > { %19898 = vmatmul.mubr.msk.f32.vlgmr.msra.gmra.mrb[0].mxu0 %vm654_vm2, %v19895_v16  ;;  %19901 = vmatmul.mubr.msk.f32.vlgmr.msra.gmra.mrb[0].mxu1 %vm654_vm2, %v19895_v16  ;;  %vm5051_vm2 = vcmask 64512  }
 0x164   : > { %20386 = vmatprep.mubr.msk.f32.mxu0 %vm21412_vm1, %v25535_v3  ;;  %20391 = vmatprep.mubr.msk.f32.mxu1 %vm21412_vm1, %v25535_v3 }
 0x16c   : > { %v5005_v18 = vpop.permute.xlu0 %5004 }
 0x236   : > { %v4921_v20 = vpop.f32.mrb[0].mxu0  ;;  %v4992_v21 = vpop.f32.mrb[0].mxu1 }
 0x237   : > { %v5007_v23 = vadd.f32 %v5005_v18, %v4921_v20  ;;  %v5009_v9 = vadd.f32 %v5005_v18, %v4992_v21  ;;  %v4923_v10 = vpop.f32.mrb[1].mxu0  ;;  %v4994_v24 = vpop.f32.mrb[1].mxu1 }
 0x238   : > { %v5008_v25 = vadd.f32 %v5005_v18, %v4923_v10  ;;  %v5010_v11 = vadd.f32 %v5005_v18, %v4994_v24 }
 0x239   : > { %v5032_v27 = vmul.f32 %v22256_v19, %v5007_v23  ;;  %v5034_v7 = vmul.f32 %v22264_v12, %v5009_v9 }
 0x23a   : > { %v5033_v28 = vmul.f32 %v22260_v22, %v5008_v25  ;;  %v5035_v6 = vmul.f32 %v22268_v26, %v5010_v11 }
 0x23b   : > { %v5041_v29 = vmul.f32 %v5032_v27, %v5032_v27  ;;  %v5043_v33 = vmul.f32 %v5034_v7, %v5034_v7 }
 0x23c   : > { %v5042_v30 = vmul.f32 %v5033_v28, %v5033_v28  ;;  %v5036_v31 = vadd.f32 %v5033_v28, %v5032_v27  ;;  %v5044_v36 = vmul.f32 %v5035_v6, %v5035_v6 }
 0x23e   : > { %v5037_v32 = vadd.f32 %v5036_v31, %v5034_v7  ;;  %v5045_v34 = vadd.f32 %v5042_v30, %v5041_v29 }
 0x240   : > { %v5038_v35 = vadd.f32 %v5037_v32, %v5035_v6  ;;  %v5046_v37 = vadd.f32 %v5045_v34, %v5043_v33  ;;  %v19904_v32 = vld [vmem:[%s25608_s7 + $0x20] sm:$0xff] }
 0x242   : > { %5039 = vadd.xlane.f32.xlu1 %v5038_v35  ;;  %v5047_v4 = vadd.f32 %v5046_v37, %v5044_v36  ;;  %v19905_v37 = vld [vmem:[%s25608_s7 + $0x28] sm:$0xff] }
 0x244   : > { %5048 = vadd.xlane.f32.xlu0 %v5047_v4 }
 0x2cf   : > { %v5040_v39 = vpop.xlane.xlu1 %5039 }
 0x2d0   : > { %20385 = vmatpush3.msra.mxu0 %v5040_v39 }
 0x2d1   : > { %v5049_v40 = vpop.xlane.xlu0 %5048  ;;  %20387 = vmatmul.mubr.msk.f32.vlgmr.msra.gmra.mrb[2].mxu0 %vm5051_vm2, %v5050_v38 }
 0x2d2   : > { %20390 = vmatpush3.msra.mxu1 %v5049_v40  ;;  %5354 = vmatprep.mubr.f32.mxu0 %v25535_v3 }
 0x2d3   : > { %20392 = vmatmul.mubr.msk.f32.vlgmr.msra.gmra.mrb[2].mxu1 %vm5051_vm2, %v5050_v38 }
 0x2d4   : > { %5443 = vmatprep.mubr.f32.mxu1 %v25535_v3 }
 0x3a4   : > { %v5121_v41 = vpop.f32.mrb[2].mxu0 }
 0x3a5   : > { %v5195_v42 = vmul.f32 %v5121_v41, %v5121_v41  ;;  %5199 = vperm.xlu1 %21365, %v5121_v41   ;;  %v20388_v43 = vpop.f32.mrb[3].mxu0  ;;  %v19906_v41 = vld [vmem:[%s25608_s7 + $0x30] sm:$0xff] }
 0x3a6   : > { %v5191_v44 = vpop.f32.mrb[2].mxu1 }
 0x3a7   : > { %v5196_v46 = vsub.f32 %v5191_v44, %v5195_v42  ;;  %v20393_v47 = vpop.f32.mrb[3].mxu1 }
 0x3a9   : > { %v5206_v48 = vadd.f32 1e-05, %v5196_v46  ;;  %5220 = vperm.xlu1 %21365, %v5217_v45   ;;  %v19907_v46 = vld [vmem:[%s25608_s7 + $0x38] sm:$0xff] }
 0x3ab   : > { %21366 = vrsqrt.f32 %v5206_v48 }
 0x3ad   : > { %5230 = vperm.xlu1 %21365, %v5227_v49  }
 0x3b5   : > { %v21367_v50 = vpop.eup %21366 }
 0x3b6   : > { %5210 = vperm.xlu0 %21364, %v21367_v50   ;;  %v5245_v50 = vld [vmem:[%s25608_s7] sm:$0xff] }
 0x424   : > { %v5200_v51 = vpop.permute.xlu1 %5199 }
 0x425   : > { %v5202_v53 = vsub.f32 %v5032_v27, %v5200_v51  ;;  %v5203_v54 = vsub.f32 %v5033_v28, %v5200_v51  ;;  %v5204_v55 = vsub.f32 %v5034_v7, %v5200_v51  ;;  %v5205_v56 = vsub.f32 %v5035_v6, %v5200_v51 }
 0x428   : > { %v5221_v52 = vpop.permute.xlu1 %5220 }
 0x42c   : > { %v5231_v14 = vpop.permute.xlu1 %5230 }
 0x435   : > { %v5211_v57 = vpop.permute.xlu0 %5210 }
 0x436   : > { %v5213_v58 = vmul.f32 %v5211_v57, %v5202_v53  ;;  %v5214_v59 = vmul.f32 %v5211_v57, %v5203_v54  ;;  %v5215_v60 = vmul.f32 %v5211_v57, %v5204_v55  ;;  %v5216_v61 = vmul.f32 %v5211_v57, %v5205_v56  ;;  %v5246_v55 = vld [vmem:[%s25608_s7 + $0x8] sm:$0xff] }
 0x438   : > { %v5223_v62 = vmul.f32 %v5221_v52, %v5213_v58  ;;  %v5224_v63 = vmul.f32 %v5221_v52, %v5214_v59  ;;  %v5225_v0 = vmul.f32 %v5221_v52, %v5215_v60  ;;  %v5226_v8 = vmul.f32 %v5221_v52, %v5216_v61  ;;  %v5247_v60 = vld [vmem:[%s25608_s7 + $0x10] sm:$0xff]  ;;  %v5248_v61 = vld [vmem:[%s25608_s7 + $0x18] sm:$0xff] }
 0x43a   : > { %v5233_v15 = vadd.f32 %v5231_v14, %v5223_v62  ;;  %v5234_v16 = vadd.f32 %v5231_v14, %v5224_v63  ;;  %v5235_v17 = vadd.f32 %v5231_v14, %v5225_v0  ;;  %v5236_v18 = vadd.f32 %v5231_v14, %v5226_v8  ;;  %v19924_v0 = vld [vmem:[%s25608_s7 + $0x40] sm:$0xff] }
 0x43c   : > { %v5237_v20 = vmax.f32 %v5233_v15, 0.0  ;;  %v5238_v21 = vmax.f32 %v5234_v16, 0.0  ;;  %v5239_v23 = vmax.f32 %v5235_v17, 0.0  ;;  %v5240_v9 = vmax.f32 %v5236_v18, 0.0  ;;  %v19925_v18 = vld [vmem:[%s25608_s7 + $0x48] sm:$0xff] }
 0x43e   : > { %v22292_v10 = vmul.f32 %v5237_v20, %v22256_v19  ;;  %v22295_v24 = vmul.f32 %v5238_v21, %v22260_v22  ;;  %v22302_v25 = vmul.f32 %v5239_v23, %v22264_v12  ;;  %v22305_v11 = vmul.f32 %v5240_v9, %v22268_v26  ;;  %v19926_v21 = vld [vmem:[%s25608_s7 + $0x50] sm:$0xff] }
 0x440   : > { %5268 = vrot.lane.b32.xlu1 %v22295_v24, %s25520_s24  ;;  %5266 = vrot.lane.b32.xlu0 %v22292_v10, %s25520_s24 }
 0x444   : > { %5270 = vrot.lane.b32.xlu1 %v22302_v25, %s25520_s24  ;;  %5272 = vrot.lane.b32.xlu0 %v22305_v11, %s25520_s24  ;;  %s25609_s24 = smov 109  }
 0x448   : > { %5251 = vrot.lane.b32.xlu1 %v22295_v24, %s25522_s25  ;;  %5249 = vrot.lane.b32.xlu0 %v22292_v10, %s25522_s25 }
 0x44c   : > { %5253 = vrot.lane.b32.xlu1 %v22302_v25, %s25522_s25  ;;  %5255 = vrot.lane.b32.xlu0 %v22305_v11, %s25522_s25  ;;  %s25610_s25 = smov 108  }
 0x450   : > { %5665 = vrot.lane.b32.xlu1 %v22295_v24, %s25518_s3  ;;  %5663 = vrot.lane.b32.xlu0 %v22292_v10, %s25518_s3 }
 0x454   : > { %5667 = vrot.lane.b32.xlu1 %v22302_v25, %s25518_s3  ;;  %5669 = vrot.lane.b32.xlu0 %v22305_v11, %s25518_s3  ;;  %s25614_s3 = smov 89  }
 0x458   : > { %5888 = vrot.lane.b32.xlu1 %v22295_v24, %s25516_s26  ;;  %5886 = vrot.lane.b32.xlu0 %v22292_v10, %s25516_s26 }
 0x45c   : > { %5890 = vrot.lane.b32.xlu1 %v22302_v25, %s25516_s26  ;;  %5892 = vrot.lane.b32.xlu0 %v22305_v11, %s25516_s26  ;;  %s25616_s26 = smov 87  }
 0x460   : > { %6111 = vrot.lane.b32.xlu1 %v22295_v24, %s25514_s27  ;;  %6109 = vrot.lane.b32.xlu0 %v22292_v10, %s25514_s27 }
 0x464   : > { %6113 = vrot.lane.b32.xlu1 %v22302_v25, %s25514_s27  ;;  %6115 = vrot.lane.b32.xlu0 %v22305_v11, %s25514_s27  ;;  %s25607_s27 = smov 110  }
 0x468   : > { %6334 = vrot.lane.b32.xlu1 %v22295_v24, %s25512_s28  ;;  %6332 = vrot.lane.b32.xlu0 %v22292_v10, %s25512_s28 }
 0x46c   : > { %6336 = vrot.lane.b32.xlu1 %v22302_v25, %s25512_s28  ;;  %6338 = vrot.lane.b32.xlu0 %v22305_v11, %s25512_s28  ;;  %s25606_s28 = smov 126  }
 0x470   : > { %6557 = vrot.lane.b32.xlu1 %v22295_v24, %s25510_s29  ;;  %6555 = vrot.lane.b32.xlu0 %v22292_v10, %s25510_s29 }
 0x474   : > { %6559 = vrot.lane.b32.xlu1 %v22302_v25, %s25510_s29  ;;  %6561 = vrot.lane.b32.xlu0 %v22305_v11, %s25510_s29  ;;  %s25605_s29 = smov 127  }
 0x478   : > { %6780 = vrot.lane.b32.xlu1 %v22295_v24, %s25600_s23  ;;  %6778 = vrot.lane.b32.xlu0 %v22292_v10, %s25600_s23 }
 0x47c   : > { %6782 = vrot.lane.b32.xlu1 %v22302_v25, %s25600_s23  ;;  %6784 = vrot.lane.b32.xlu0 %v22305_v11, %s25600_s23 }
 0x480   : > { %7003 = vrot.lane.b32.xlu1 %v22295_v24, %s25601_s0  ;;  %7001 = vrot.lane.b32.xlu0 %v22292_v10, %s25601_s0 }
 0x484   : > { %7005 = vrot.lane.b32.xlu1 %v22302_v25, %s25601_s0  ;;  %7007 = vrot.lane.b32.xlu0 %v22305_v11, %s25601_s0 }
 0x488   : > { %7226 = vrot.lane.b32.xlu1 %v22295_v24, %s25602_s30  ;;  %7224 = vrot.lane.b32.xlu0 %v22292_v10, %s25602_s30 }
 0x48c   : > { %7228 = vrot.lane.b32.xlu1 %v22302_v25, %s25602_s30  ;;  %7230 = vrot.lane.b32.xlu0 %v22305_v11, %s25602_s30 }
 0x490   : > { %7449 = vrot.lane.b32.xlu1 %v22295_v24, %s25603_s1  ;;  %7447 = vrot.lane.b32.xlu0 %v22292_v10, %s25603_s1 }
 0x494   : > { %7451 = vrot.lane.b32.xlu1 %v22302_v25, %s25603_s1  ;;  %7453 = vrot.lane.b32.xlu0 %v22305_v11, %s25603_s1 }
 0x498   : > { %7672 = vrot.lane.b32.xlu1 %v22295_v24, %s25604_s2  ;;  %7670 = vrot.lane.b32.xlu0 %v22292_v10, %s25604_s2 }
 0x49c   : > { %7674 = vrot.lane.b32.xlu1 %v22302_v25, %s25604_s2  ;;  %7676 = vrot.lane.b32.xlu0 %v22305_v11, %s25604_s2 }
 0x4a0   : > { %8108 = vrot.lane.b32.xlu1 %v22302_v25, %s25605_s29  ;;  %8106 = vrot.lane.b32.xlu0 %v22295_v24, %s25605_s29 }
 0x4a4   : > { %8110 = vrot.lane.b32.xlu1 %v22305_v11, %s25605_s29  ;;  %8104 = vrot.lane.b32.xlu0 %v22292_v10, %s25605_s29 }
 0x4a8   : > { %8331 = vrot.lane.b32.xlu1 %v22302_v25, %s25606_s28  ;;  %8329 = vrot.lane.b32.xlu0 %v22295_v24, %s25606_s28 }
 0x4ac   : > { %8333 = vrot.lane.b32.xlu1 %v22305_v11, %s25606_s28  ;;  %8327 = vrot.lane.b32.xlu0 %v22292_v10, %s25606_s28 }
 0x4b0   : > { %8554 = vrot.lane.b32.xlu1 %v22302_v25, %s25607_s27  ;;  %8552 = vrot.lane.b32.xlu0 %v22295_v24, %s25607_s27 }
 0x4b2   : > { %v5269_v27 = vpop.permute.xlu1 %5268  ;;  %v5267_v28 = vpop.permute.xlu0 %5266 }
 0x4b3   : > { %v5276_v7 = vsel %vm649_vm0, %v5267_v28, %v5269_v27 }
 0x4b4   : > { %8556 = vrot.lane.b32.xlu1 %v22305_v11, %s25607_s27  ;;  %8550 = vrot.lane.b32.xlu0 %v22292_v10, %s25607_s27 }
 0x4b5   : > { %5290 = vmatprep.subr.mxu0 %v5276_v7 }
 0x4b6   : > { %v5271_v29 = vpop.permute.xlu1 %5270  ;;  %v5273_v30 = vpop.permute.xlu0 %5272 }
 0x4b7   : > { %v5277_v6 = vsel %vm649_vm0, %v5273_v30, %v5267_v28  ;;  %v5274_v31 = vsel %vm649_vm0, %v5271_v29, %v5273_v30  ;;  %v5275_v33 = vsel %vm649_vm0, %v5269_v27, %v5271_v29  ;;  %v19927_v27 = vld [vmem:[%s25608_s7 + $0x58] sm:$0xff]  ;;  %v19936_v28 = vld [vmem:[%s25608_s7 + $0x60] sm:$0xff] }
 0x4b8   : > { %8777 = vrot.lane.b32.xlu1 %v22302_v25, %s25609_s24  ;;  %8775 = vrot.lane.b32.xlu0 %v22295_v24, %s25609_s24 }
 0x4b9   : > { %5291 = vmatpush1.msra.mxu0 %v5277_v6  ;;  %5379 = vmatprep.subr.mxu1 %v5274_v31 }
 0x4ba   : > { %19908 = vmatmul.mubr.msk.f32.vlgmr.msra.gmra.mrb[4].mxu0 %vm5051_vm2, %v19904_v32  ;;  %5380 = vmatpush1.msra.mxu1 %v5275_v33  ;;  %v5252_v34 = vpop.permute.xlu1 %5251  ;;  %v5250_v35 = vpop.permute.xlu0 %5249  ;;  %v19937_v33 = vld [vmem:[%s25608_s7 + $0x68] sm:$0xff] }
 0x4bb   : > { %19912 = vmatmul.mubr.msk.f32.vlgmr.msra.gmra.mrb[4].mxu1 %vm5051_vm2, %v19904_v32  ;;  %5360 = vmatprep.mubr.f32.mxu0 %v25535_v3  ;;  %v5259_v36 = vsel %vm634_vm3, %v5250_v35, %v5252_v34 }
 0x4bc   : > { %8779 = vrot.lane.b32.xlu1 %v22305_v11, %s25609_s24  ;;  %8773 = vrot.lane.b32.xlu0 %v22292_v10, %s25609_s24 }
 0x4bd   : > { %5480 = vmatprep.subr.mxu0 %v5259_v36  ;;  %5449 = vmatprep.mubr.f32.mxu1 %v25535_v3 }
 0x4be   : > { %19909 = vmatmul.mubr.msk.f32.gmra.mrb[6].mxu0 %vm5051_vm2, %v19905_v37  ;;  %v5254_v4 = vpop.permute.xlu1 %5253  ;;  %v5256_v38 = vpop.permute.xlu0 %5255 }
 0x4bf   : > { %19913 = vmatmul.mubr.msk.f32.gmra.mrb[6].mxu1 %vm5051_vm2, %v19905_v37  ;;  %5366 = vmatprep.mubr.f32.mxu0 %v25535_v3  ;;  %v5260_v39 = vsel %vm634_vm3, %v5256_v38, %v5250_v35  ;;  %v5257_v40 = vsel %vm634_vm3, %v5254_v4, %v5256_v38  ;;  %v5258_v42 = vsel %vm634_vm3, %v5252_v34, %v5254_v4  ;;  %v19938_v34 = vld [vmem:[%s25608_s7 + $0x70] sm:$0xff]  ;;  %v19939_v37 = vld [vmem:[%s25608_s7 + $0x78] sm:$0xff]  ;;  %v19948_v4 = vld [vmem:[%s25608_s7 + $0x80] sm:$0xff] }
 0x4c0   : > { %9000 = vrot.lane.b32.xlu1 %v22302_v25, %s25610_s25  ;;  %8998 = vrot.lane.b32.xlu0 %v22295_v24, %s25610_s25 }
 0x4c1   : > { %5481 = vmatpush1.msra.mxu0 %v5260_v39  ;;  %5569 = vmatprep.subr.mxu1 %v5257_v40 }
 0x4c2   : > { %19910 = vmatmul.mubr.msk.f32.gmra.mrb[8].mxu0 %vm5051_vm2, %v19906_v41  ;;  %5455 = vmatprep.mubr.f32.mxu1 %v25535_v3  ;;  %v5666_v43 = vpop.permute.xlu1 %5665  ;;  %v5664_v44 = vpop.permute.xlu0 %5663 }
 0x4c3   : > { %5570 = vmatpush1.msra.mxu1 %v5258_v42  ;;  %5372 = vmatprep.mubr.f32.mxu0 %v25535_v3  ;;  %v5673_v45 = vsel %vm980_vm4, %v5664_v44, %v5666_v43 }
 0x4c4   : > { %19914 = vmatmul.mubr.msk.f32.gmra.mrb[8].mxu1 %vm5051_vm2, %v19906_v41  ;;  %9002 = vrot.lane.b32.xlu1 %v22305_v11, %s25610_s25 }
 0x4c5   : > { %8996 = vrot.lane.b32.xlu0 %v22292_v10, %s25610_s25  ;;  %5687 = vmatprep.subr.mxu0 %v5673_v45  ;;  %v10776_v45 = vld [vmem:[%s25618_s8 + $0x8] sm:$0xff] }
 0x4c6   : > { %19911 = vmatmul.mubr.msk.f32.gmra.mrb[10].mxu0 %vm5051_vm2, %v19907_v46  ;;  %5461 = vmatprep.mubr.f32.mxu1 %v25535_v3  ;;  %v5668_v47 = vpop.permute.xlu1 %5667  ;;  %v5670_v48 = vpop.permute.xlu0 %5669 }
 0x4c7   : > { %5544 = vmatprep.mubr.f32.mxu0 %v25535_v3  ;;  %v5671_v49 = vsel %vm980_vm4, %v5668_v47, %v5670_v48  ;;  %v5674_v51 = vsel %vm980_vm4, %v5670_v48, %v5664_v44  ;;  %v5672_v56 = vsel %vm980_vm4, %v5666_v43, %v5668_v47  ;;  %v19949_v44 = vld [vmem:[%s25608_s7 + $0x88] sm:$0xff]  ;;  %v19950_v47 = vld [vmem:[%s25608_s7 + $0x90] sm:$0xff]  ;;  %v10778_v48 = vld [vmem:[%s25618_s8 + $0x18] sm:$0xff] }
 0x4c8   : > { %19915 = vmatmul.mubr.msk.f32.gmra.mrb[10].mxu1 %vm5051_vm2, %v19907_v46  ;;  %9223 = vrot.lane.b32.xlu1 %v22302_v25, %s25611_s18  ;;  %v10775_v46 = vld [vmem:[%s25618_s8] sm:$0xff] }
 0x4c9   : > { %9221 = vrot.lane.b32.xlu0 %v22295_v24, %s25611_s18  ;;  %5776 = vmatprep.subr.mxu1 %v5671_v49  ;;  %v10777_v49 = vld [vmem:[%s25618_s8 + $0x10] sm:$0xff]  ;;  %s25665_s8 = smov 39  }
 0x4ca   : > { %19916 = vmatmul.mubr.msk.f32.vlgmr.msra.gmra.mrb[4].mxu0 %vm5051_vm2, %v5245_v50  ;;  %5633 = vmatprep.mubr.f32.mxu1 %v25535_v3  ;;  %v5889_v52 = vpop.permute.xlu1 %5888  ;;  %v5887_v53 = vpop.permute.xlu0 %5886 }
 0x4cb   : > { %5688 = vmatpush1.msra.mxu0 %v5674_v51  ;;  %5550 = vmatprep.mubr.f32.mxu0 %v25535_v3  ;;  %v5896_v54 = vsel %vm1156_vm5, %v5887_v53, %v5889_v52 }
 0x4cc   : > { %19920 = vmatmul.mubr.msk.f32.vlgmr.msra.gmra.mrb[4].mxu1 %vm5051_vm2, %v5245_v50  ;;  %9225 = vrot.lane.b32.xlu1 %v22305_v11, %s25611_s18 }
 0x4cd   : > { %5777 = vmatpush1.msra.mxu1 %v5672_v56  ;;  %9219 = vrot.lane.b32.xlu0 %v22292_v10, %s25611_s18 }
 0x4ce   : > { %5910 = vmatprep.subr.mxu0 %v5896_v54  ;;  %19917 = vmatmul.mubr.msk.f32.gmra.mrb[6].mxu0 %vm5051_vm2, %v5246_v55  ;;  %v5891_v57 = vpop.permute.xlu1 %5890  ;;  %v5893_v58 = vpop.permute.xlu0 %5892 }
 0x4cf   : > { %5639 = vmatprep.mubr.f32.mxu1 %v25535_v3  ;;  %5556 = vmatprep.mubr.f32.mxu0 %v25535_v3  ;;  %v5894_v59 = vsel %vm1156_vm5, %v5891_v57, %v5893_v58  ;;  %v5897_v15 = vsel %vm1156_vm5, %v5893_v58, %v5887_v53  ;;  %v5895_v17 = vsel %vm1156_vm5, %v5889_v52, %v5891_v57  ;;  %v19951_v52 = vld [vmem:[%s25608_s7 + $0x98] sm:$0xff]  ;;  %v19960_v53 = vld [vmem:[%s25608_s7 + $0xa0] sm:$0xff] }
 0x4d0   : > { %19921 = vmatmul.mubr.msk.f32.gmra.mrb[6].mxu1 %vm5051_vm2, %v5246_v55  ;;  %9446 = vrot.lane.b32.xlu1 %v22302_v25, %s25612_s4 }
 0x4d1   : > { %9444 = vrot.lane.b32.xlu0 %v22295_v24, %s25612_s4  ;;  %5999 = vmatprep.subr.mxu1 %v5894_v59  ;;  %v19961_v59 = vld [vmem:[%s25608_s7 + $0xa8] sm:$0xff] }
 0x4d2   : > { %19918 = vmatmul.mubr.msk.f32.gmra.mrb[8].mxu0 %vm5051_vm2, %v5247_v60  ;;  %5645 = vmatprep.mubr.f32.mxu1 %v25535_v3  ;;  %v6112_v62 = vpop.permute.xlu1 %6111  ;;  %v6110_v63 = vpop.permute.xlu0 %6109 }
 0x4d3   : > { %5562 = vmatprep.mubr.f32.mxu0 %v25535_v3  ;;  %v6119_v16 = vsel %vm1332_vm6, %v6110_v63, %v6112_v62 }
 0x4d4   : > { %19922 = vmatmul.mubr.msk.f32.gmra.mrb[8].mxu1 %vm5051_vm2, %v5247_v60  ;;  %9448 = vrot.lane.b32.xlu1 %v22305_v11, %s25612_s4 }
 0x4d5   : > { %9442 = vrot.lane.b32.xlu0 %v22292_v10, %s25612_s4  ;;  %5651 = vmatprep.mubr.f32.mxu1 %v25535_v3 }
 0x4d6   : > { %19919 = vmatmul.mubr.msk.f32.gmra.mrb[10].mxu0 %vm5051_vm2, %v5248_v61  ;;  %v6114_v8 = vpop.permute.xlu1 %6113  ;;  %v6116_v14 = vpop.permute.xlu0 %6115 }
 0x4d7   : > { %5751 = vmatprep.mubr.f32.mxu0 %v25535_v3  ;;  %v6117_v20 = vsel %vm1332_vm6, %v6114_v8, %v6116_v14  ;;  %v6120_v30 = vsel %vm1332_vm6, %v6116_v14, %v6110_v63  ;;  %v6118_v6 = vsel %vm1332_vm6, %v6112_v62, %v6114_v8  ;;  %v19972_v8 = vld [vmem:[%s25608_s7 + $0xc0] sm:$0xff] }
 0x4d8   : > { %19923 = vmatmul.mubr.msk.f32.gmra.mrb[10].mxu1 %vm5051_vm2, %v5248_v61  ;;  %9669 = vrot.lane.b32.xlu1 %v22302_v25, %s25613_s5  ;;  %v19962_v61 = vld [vmem:[%s25608_s7 + $0xb0] sm:$0xff] }
 0x4d9   : > { %9667 = vrot.lane.b32.xlu0 %v22295_v24, %s25613_s5  ;;  %5840 = vmatprep.mubr.f32.mxu1 %v25535_v3 }
 0x4da   : > { %19928 = vmatmul.mubr.msk.f32.vlgmr.msra.gmra.mrb[4].mxu0 %vm5051_vm2, %v19924_v0  ;;  %v6335_v23 = vpop.permute.xlu1 %6334  ;;  %v6333_v9 = vpop.permute.xlu0 %6332 }
 0x4db   : > { %5911 = vmatpush1.msra.mxu0 %v5897_v15  ;;  %5757 = vmatprep.mubr.f32.mxu0 %v25535_v3  ;;  %v6342_v31 = vsel %vm1508_vm7, %v6333_v9, %v6335_v23 }
 0x4dc   : > { %19932 = vmatmul.mubr.msk.f32.vlgmr.msra.gmra.mrb[4].mxu1 %vm5051_vm2, %v19924_v0  ;;  %6133 = vmatprep.subr.mxu0 %v6119_v16  ;;  %v19963_v0 = vld [vmem:[%s25608_s7 + $0xb8] sm:$0xff] }
 0x4dd   : > { %6000 = vmatpush1.msra.mxu1 %v5895_v17  ;;  %9671 = vrot.lane.b32.xlu1 %v22305_v11, %s25613_s5 }
 0x4de   : > { %6222 = vmatprep.subr.mxu1 %v6117_v20  ;;  %9665 = vrot.lane.b32.xlu0 %v22292_v10, %s25613_s5  ;;  %v6337_v7 = vpop.permute.xlu1 %6336  ;;  %v6339_v29 = vpop.permute.xlu0 %6338  ;;  %v19973_v20 = vld [vmem:[%s25608_s7 + $0xc8] sm:$0xff] }
 0x4df   : > { %19929 = vmatmul.mubr.msk.f32.gmra.mrb[6].mxu0 %vm5051_vm2, %v19925_v18  ;;  %5846 = vmatprep.mubr.f32.mxu1 %v25535_v3  ;;  %v6340_v32 = vsel %vm1508_vm7, %v6337_v7, %v6339_v29  ;;  %v6343_v40 = vsel %vm1508_vm7, %v6339_v29, %v6333_v9  ;;  %v6341_v41 = vsel %vm1508_vm7, %v6335_v23, %v6337_v7  ;;  %v19974_v23 = vld [vmem:[%s25608_s7 + $0xd0] sm:$0xff]  ;;  %v19984_v7 = vld [vmem:[%s25608_s7 + $0xe0] sm:$0xff] }
 0x4e0   : > { %19933 = vmatmul.mubr.msk.f32.gmra.mrb[6].mxu1 %vm5051_vm2, %v19925_v18  ;;  %5763 = vmatprep.mubr.f32.mxu0 %v25535_v3 }
 0x4e1   : > { %9892 = vrot.lane.b32.xlu1 %v22302_v25, %s25614_s3  ;;  %5852 = vmatprep.mubr.f32.mxu1 %v25535_v3 }
 0x4e2   : > { %9890 = vrot.lane.b32.xlu0 %v22295_v24, %s25614_s3  ;;  %v22629_v35 = vpop.permute.xlu1 %6557  ;;  %v6556_v36 = vpop.permute.xlu0 %6555 }
 0x4e3   : > { %19930 = vmatmul.mubr.msk.f32.gmra.mrb[8].mxu0 %vm5051_vm2, %v19926_v21  ;;  %v6565_v42 = vsel %vm1684_vm8, %v6556_v36, %v22629_v35 }
 0x4e4   : > { %19934 = vmatmul.mubr.msk.f32.gmra.mrb[8].mxu1 %vm5051_vm2, %v19926_v21  ;;  %5769 = vmatprep.mubr.f32.mxu0 %v25535_v3 }
 0x4e5   : > { %9894 = vrot.lane.b32.xlu1 %v22305_v11, %s25614_s3  ;;  %5858 = vmatprep.mubr.f32.mxu1 %v25535_v3 }
 0x4e6   : > { %9888 = vrot.lane.b32.xlu0 %v22292_v10, %s25614_s3  ;;  %v6560_v38 = vpop.permute.xlu1 %6559  ;;  %v6562_v39 = vpop.permute.xlu0 %6561 }
 0x4e7   : > { %19931 = vmatmul.mubr.msk.f32.gmra.mrb[10].mxu0 %vm5051_vm2, %v19927_v27  ;;  %v6563_v43 = vsel %vm1684_vm8, %v6560_v38, %v6562_v39  ;;  %v6566_v56 = vsel %vm1684_vm8, %v6562_v39, %v6556_v36  ;;  %v6564_v57 = vsel %vm1684_vm8, %v22629_v35, %v6560_v38  ;;  %v19986_v35 = vld [vmem:[%s25608_s7 + $0xf0] sm:$0xff]  ;;  %v19996_v38 = vld [vmem:[%s25608_s7 + $0x100] sm:$0xff] }
 0x4e8   : > { %19935 = vmatmul.mubr.msk.f32.gmra.mrb[10].mxu1 %vm5051_vm2, %v19927_v27  ;;  %5974 = vmatprep.mubr.f32.mxu0 %v25535_v3 }
 0x4e9   : > { %10115 = vrot.lane.b32.xlu1 %v22302_v25, %s25615_s20  ;;  %6063 = vmatprep.mubr.f32.mxu1 %v25535_v3 }
 0x4ea   : > { %10113 = vrot.lane.b32.xlu0 %v22295_v24, %s25615_s20  ;;  %v6781_v50 = vpop.permute.xlu1 %6780  ;;  %v6779_v51 = vpop.permute.xlu0 %6778 }
 0x4eb   : > { %19940 = vmatmul.mubr.msk.f32.vlgmr.msra.gmra.mrb[4].mxu0 %vm5051_vm2, %v19936_v28  ;;  %v6788_v58 = vsel %vm1860_vm9, %v6779_v51, %v6781_v50 }
 0x4ec   : > { %6134 = vmatpush1.msra.mxu0 %v6120_v30  ;;  %19944 = vmatmul.mubr.msk.f32.vlgmr.msra.gmra.mrb[4].mxu1 %vm5051_vm2, %v19936_v28  ;;  %v19975_v28 = vld [vmem:[%s25608_s7 + $0xd8] sm:$0xff] }
 0x4ed   : > { %6223 = vmatpush1.msra.mxu1 %v6118_v6  ;;  %6356 = vmatprep.subr.mxu0 %v6342_v31 }
 0x4ee   : > { %6445 = vmatprep.subr.mxu1 %v6340_v32  ;;  %10117 = vrot.lane.b32.xlu1 %v22305_v11, %s25615_s20  ;;  %v6783_v54 = vpop.permute.xlu1 %6782  ;;  %v6785_v55 = vpop.permute.xlu0 %6784 }
 0x4ef   : > { %10111 = vrot.lane.b32.xlu0 %v22292_v10, %s25615_s20  ;;  %5980 = vmatprep.mubr.f32.mxu0 %v25535_v3  ;;  %v6786_v60 = vsel %vm1860_vm9, %v6783_v54, %v6785_v55  ;;  %v6789_v16 = vsel %vm1860_vm9, %v6785_v55, %v6779_v51  ;;  %v6787_v17 = vsel %vm1860_vm9, %v6781_v50, %v6783_v54  ;;  %v20008_v50 = vld [vmem:[%s25608_s7 + $0x120] sm:$0xff] }
 0x4f0   : > { %19941 = vmatmul.mubr.msk.f32.gmra.mrb[6].mxu0 %vm5051_vm2, %v19937_v33  ;;  %6069 = vmatprep.mubr.f32.mxu1 %v25535_v3 }
 0x4f1   : > { %19945 = vmatmul.mubr.msk.f32.gmra.mrb[6].mxu1 %vm5051_vm2, %v19937_v33  ;;  %5986 = vmatprep.mubr.f32.mxu0 %v25535_v3  ;;  %v19985_v33 = vld [vmem:[%s25608_s7 + $0xe8] sm:$0xff] }
 0x4f2   : > { %10338 = vrot.lane.b32.xlu1 %v22302_v25, %s25616_s26  ;;  %6075 = vmatprep.mubr.f32.mxu1 %v25535_v3  ;;  %v7004_v62 = vpop.permute.xlu1 %7003  ;;  %v7002_v63 = vpop.permute.xlu0 %7001 }
 0x4f3   : > { %10336 = vrot.lane.b32.xlu0 %v22295_v24, %s25616_s26  ;;  %v7011_v18 = vsel %vm25533_vm10, %v7002_v63, %v7004_v62 }
 0x4f4   : > { %19942 = vmatmul.mubr.msk.f32.gmra.mrb[8].mxu0 %vm5051_vm2, %v19938_v34 }
 0x4f5   : > { %19946 = vmatmul.mubr.msk.f32.gmra.mrb[8].mxu1 %vm5051_vm2, %v19938_v34  ;;  %5992 = vmatprep.mubr.f32.mxu0 %v25535_v3 }
 0x4f6   : > { %10340 = vrot.lane.b32.xlu1 %v22305_v11, %s25616_s26  ;;  %6081 = vmatprep.mubr.f32.mxu1 %v25535_v3  ;;  %v7006_v14 = vpop.permute.xlu1 %7005  ;;  %v7008_v15 = vpop.permute.xlu0 %7007 }
 0x4f7   : > { %10334 = vrot.lane.b32.xlu0 %v22292_v10, %s25616_s26  ;;  %v7009_v21 = vsel %vm25533_vm10, %v7006_v14, %v7008_v15  ;;  %v7012_v6 = vsel %vm25533_vm10, %v7008_v15, %v7002_v63  ;;  %v7010_v31 = vsel %vm25533_vm10, %v7004_v62, %v7006_v14  ;;  %v20021_v63 = vld [vmem:[%s25608_s7 + $0x148] sm:$0xff]  ;;  %v20032_v14 = vld [vmem:[%s25608_s7 + $0x160] sm:$0xff] }
 0x4f8   : > { %19943 = vmatmul.mubr.msk.f32.gmra.mrb[10].mxu0 %vm5051_vm2, %v19939_v37 }
 0x4f9   : > { %19947 = vmatmul.mubr.msk.f32.gmra.mrb[10].mxu1 %vm5051_vm2, %v19939_v37  ;;  %6197 = vmatprep.mubr.f32.mxu0 %v25535_v3 }
 0x4fa   : > { %10561 = vrot.lane.b32.xlu1 %v22302_v25, %s25617_s19  ;;  %6286 = vmatprep.mubr.f32.mxu1 %v25535_v3  ;;  %v7227_v9 = vpop.permute.xlu1 %7226  ;;  %v7225_v27 = vpop.permute.xlu0 %7224 }
 0x4fb   : > { %10559 = vrot.lane.b32.xlu0 %v22295_v24, %s25617_s19  ;;  %v7234_v32 = vsel %vm25532_vm11, %v7225_v27, %v7227_v9 }
 0x4fc   : > { %19952 = vmatmul.mubr.msk.f32.vlgmr.msra.gmra.mrb[4].mxu0 %vm5051_vm2, %v19948_v4 }
 0x4fd   : > { %6357 = vmatpush1.msra.mxu0 %v6343_v40  ;;  %19956 = vmatmul.mubr.msk.f32.vlgmr.msra.gmra.mrb[4].mxu1 %vm5051_vm2, %v19948_v4  ;;  %v19987_v4 = vld [vmem:[%s25608_s7 + $0xf8] sm:$0xff] }
 0x4fe   : > { %6446 = vmatpush1.msra.mxu1 %v6341_v41  ;;  %6579 = vmatprep.subr.mxu0 %v6565_v42  ;;  %v7229_v29 = vpop.permute.xlu1 %7228  ;;  %v7231_v30 = vpop.permute.xlu0 %7230 }
 0x4ff   : > { %6668 = vmatprep.subr.mxu1 %v6563_v43  ;;  %10563 = vrot.lane.b32.xlu1 %v22305_v11, %s25617_s19  ;;  %v7232_v34 = vsel %vm25532_vm11, %v7229_v29, %v7231_v30  ;;  %v7235_v41 = vsel %vm25532_vm11, %v7231_v30, %v7225_v27  ;;  %v7233_v42 = vsel %vm25532_vm11, %v7227_v9, %v7229_v29  ;;  %v20044_v9 = vld [vmem:[%s25608_s7 + $0x180] sm:$0xff]  ;;  %vm25622_vm11 = vcmp.lt.s32.totalorder %v21676_v13, 126 }
 0x500   : > { %10557 = vrot.lane.b32.xlu0 %v22292_v10, %s25617_s19  ;;  %6203 = vmatprep.mubr.f32.mxu0 %v25535_v3  ;;  %vm25623_vm10 = vmmov %vm25622_vm11 }
 0x501   : > { %19953 = vmatmul.mubr.msk.f32.gmra.mrb[6].mxu0 %vm5051_vm2, %v19949_v44  ;;  %6292 = vmatprep.mubr.f32.mxu1 %v25535_v3 }
 0x502   : > { %19957 = vmatmul.mubr.msk.f32.gmra.mrb[6].mxu1 %vm5051_vm2, %v19949_v44  ;;  %6209 = vmatprep.mubr.f32.mxu0 %v25535_v3  ;;  %v7450_v36 = vpop.permute.xlu1 %7449  ;;  %v7448_v37 = vpop.permute.xlu0 %7447  ;;  %v19997_v44 = vld [vmem:[%s25608_s7 + $0x108] sm:$0xff] }
 0x503   : > { %10786 = vperm.xlu1 %21365, %v10776_v45   ;;  %6298 = vmatprep.mubr.f32.mxu1 %v25535_v3  ;;  %v7457_v43 = vsel %vm25531_vm12, %v7448_v37, %v7450_v36 }
 0x504   : > { %10781 = vperm.xlu0 %21364, %v10775_v46   ;;  %v19998_v46 = vld [vmem:[%s25608_s7 + $0x110] sm:$0xff] }
 0x505   : > { %19954 = vmatmul.mubr.msk.f32.gmra.mrb[8].mxu0 %vm5051_vm2, %v19950_v47 }
 0x506   : > { %19958 = vmatmul.mubr.msk.f32.gmra.mrb[8].mxu1 %vm5051_vm2, %v19950_v47  ;;  %6215 = vmatprep.mubr.f32.mxu0 %v25535_v3  ;;  %v7452_v39 = vpop.permute.xlu1 %7451  ;;  %v7454_v40 = vpop.permute.xlu0 %7453 }
 0x507   : > { %10796 = vperm.xlu1 %21365, %v10778_v48   ;;  %6304 = vmatprep.mubr.f32.mxu1 %v25535_v3  ;;  %v7455_v45 = vsel %vm25531_vm12, %v7452_v39, %v7454_v40  ;;  %v7456_v54 = vsel %vm25531_vm12, %v7450_v36, %v7452_v39  ;;  %v20056_v36 = vld [vmem:[%s25608_s7 + $0x1a0] sm:$0xff] }
 0x508   : > { %10791 = vperm.xlu0 %21364, %v10777_v49   ;;  %v19999_v49 = vld [vmem:[%s25608_s7 + $0x118] sm:$0xff] }
 0x509   : > { %19955 = vmatmul.mubr.msk.f32.gmra.mrb[10].mxu0 %vm5051_vm2, %v19951_v52 }
 0x50a   : > { %19959 = vmatmul.mubr.msk.f32.gmra.mrb[10].mxu1 %vm5051_vm2, %v19951_v52  ;;  %6420 = vmatprep.mubr.f32.mxu0 %v25535_v3  ;;  %v7673_v47 = vpop.permute.xlu1 %7672  ;;  %v7671_v48 = vpop.permute.xlu0 %7670 }
 0x50b   : > { %6509 = vmatprep.mubr.f32.mxu1 %v25535_v3  ;;  %v7680_v55 = vsel %vm25530_vm13, %v7671_v48, %v7673_v47 }
 0x50d   : > { %19964 = vmatmul.mubr.msk.f32.vlgmr.msra.gmra.mrb[4].mxu0 %vm5051_vm2, %v19960_v53 }
 0x50e   : > { %6580 = vmatpush1.msra.mxu0 %v6566_v56  ;;  %19968 = vmatmul.mubr.msk.f32.vlgmr.msra.gmra.mrb[4].mxu1 %vm5051_vm2, %v19960_v53  ;;  %v7675_v51 = vpop.permute.xlu1 %7674  ;;  %v7677_v52 = vpop.permute.xlu0 %7676  ;;  %v7458_v53 = vsel %vm25531_vm12, %v7454_v40, %v7448_v37  ;;  %v20009_v56 = vld [vmem:[%s25608_s7 + $0x128] sm:$0xff] }
 0x50f   : > { %6669 = vmatpush1.msra.mxu1 %v6564_v57  ;;  %6802 = vmatprep.subr.mxu0 %v6788_v58  ;;  %v7678_v57 = vsel %vm25530_vm13, %v7675_v51, %v7677_v52  ;;  %v20010_v58 = vld [vmem:[%s25608_s7 + $0x130] sm:$0xff]  ;;  %v7679_v62 = vsel %vm25530_vm13, %v7673_v47, %v7675_v51  ;;  %v20068_v47 = vld [vmem:[%s25608_s7 + $0x1c0] sm:$0xff] }
 0x510   : > { %6891 = vmatprep.subr.mxu1 %v6786_v60  ;;  %6426 = vmatprep.mubr.f32.mxu0 %v25535_v3  ;;  %v20020_v60 = vld [vmem:[%s25608_s7 + $0x140] sm:$0xff] }
 0x511   : > { %19965 = vmatmul.mubr.msk.f32.gmra.mrb[6].mxu0 %vm5051_vm2, %v19961_v59  ;;  %6515 = vmatprep.mubr.f32.mxu1 %v25535_v3 }
 0x512   : > { %19969 = vmatmul.mubr.msk.f32.gmra.mrb[6].mxu1 %vm5051_vm2, %v19961_v59  ;;  %6432 = vmatprep.mubr.f32.mxu0 %v25535_v3  ;;  %v20011_v59 = vld [vmem:[%s25608_s7 + $0x138] sm:$0xff] }
 0x513   : > { %6521 = vmatprep.mubr.f32.mxu1 %v25535_v3 }
 0x515   : > { %19966 = vmatmul.mubr.msk.f32.gmra.mrb[8].mxu0 %vm5051_vm2, %v19962_v61 }
 0x516   : > { %19970 = vmatmul.mubr.msk.f32.gmra.mrb[8].mxu1 %vm5051_vm2, %v19962_v61  ;;  %6438 = vmatprep.mubr.f32.mxu0 %v25535_v3  ;;  %v7681_v61 = vsel %vm25530_vm13, %v7677_v52, %v7671_v48  ;;  %vm25619_vm13 = vcmp.lt.s32.totalorder %v21676_v13, 127 }
 0x517   : > { %6527 = vmatprep.mubr.f32.mxu1 %v25535_v3  ;;  %vm25620_vm12 = vmmov %vm25619_vm13 }
 0x519   : > { %19967 = vmatmul.mubr.msk.f32.gmra.mrb[10].mxu0 %vm5051_vm2, %v19963_v0 }
 0x51a   : > { %19971 = vmatmul.mubr.msk.f32.gmra.mrb[10].mxu1 %vm5051_vm2, %v19963_v0  ;;  %6643 = vmatprep.mubr.f32.mxu0 %v25535_v3  ;;  %v20022_v0 = vld [vmem:[%s25608_s7 + $0x150] sm:$0xff] }
 0x51b   : > { %6732 = vmatprep.mubr.f32.mxu1 %v25535_v3 }
 0x51d   : > { %19976 = vmatmul.mubr.msk.f32.vlgmr.msra.gmra.mrb[4].mxu0 %vm5051_vm2, %v19972_v8 }
 0x51e   : > { %6803 = vmatpush1.msra.mxu0 %v6789_v16  ;;  %19980 = vmatmul.mubr.msk.f32.vlgmr.msra.gmra.mrb[4].mxu1 %vm5051_vm2, %v19972_v8  ;;  %v20023_v8 = vld [vmem:[%s25608_s7 + $0x158] sm:$0xff] }
 0x51f   : > { %6892 = vmatpush1.msra.mxu1 %v6787_v17  ;;  %7025 = vmatprep.subr.mxu0 %v7011_v18  ;;  %v20033_v18 = vld [vmem:[%s25608_s7 + $0x168] sm:$0xff] }
 0x520   : > { %7114 = vmatprep.subr.mxu1 %v7009_v21  ;;  %6649 = vmatprep.mubr.f32.mxu0 %v25535_v3 }
 0x521   : > { %19977 = vmatmul.mubr.msk.f32.gmra.mrb[6].mxu0 %vm5051_vm2, %v19973_v20  ;;  %6738 = vmatprep.mubr.f32.mxu1 %v25535_v3 }
 0x522   : > { %19981 = vmatmul.mubr.msk.f32.gmra.mrb[6].mxu1 %vm5051_vm2, %v19973_v20  ;;  %6655 = vmatprep.mubr.f32.mxu0 %v25535_v3 }
 0x523   : > { %6744 = vmatprep.mubr.f32.mxu1 %v25535_v3 }
 0x525   : > { %19978 = vmatmul.mubr.msk.f32.gmra.mrb[8].mxu0 %vm5051_vm2, %v19974_v23 }
 0x526   : > { %19982 = vmatmul.mubr.msk.f32.gmra.mrb[8].mxu1 %vm5051_vm2, %v19974_v23  ;;  %6661 = vmatprep.mubr.f32.mxu0 %v25535_v3  ;;  %v20035_v23 = vld [vmem:[%s25608_s7 + $0x178] sm:$0xff] }
 0x527   : > { %6750 = vmatprep.mubr.f32.mxu1 %v25535_v3 }
 0x529   : > { %19979 = vmatmul.mubr.msk.f32.gmra.mrb[10].mxu0 %vm5051_vm2, %v19975_v28 }
 0x52a   : > { %19983 = vmatmul.mubr.msk.f32.gmra.mrb[10].mxu1 %vm5051_vm2, %v19975_v28  ;;  %6866 = vmatprep.mubr.f32.mxu0 %v25535_v3 }
 0x52b   : > { %6955 = vmatprep.mubr.f32.mxu1 %v25535_v3 }
 0x52d   : > { %19988 = vmatmul.mubr.msk.f32.vlgmr.msra.gmra.mrb[4].mxu0 %vm5051_vm2, %v19984_v7 }
 0x52e   : > { %7026 = vmatpush1.msra.mxu0 %v7012_v6  ;;  %19992 = vmatmul.mubr.msk.f32.vlgmr.msra.gmra.mrb[4].mxu1 %vm5051_vm2, %v19984_v7  ;;  %v20045_v6 = vld [vmem:[%s25608_s7 + $0x188] sm:$0xff] }
 0x52f   : > { %7115 = vmatpush1.msra.mxu1 %v7010_v31  ;;  %7248 = vmatprep.subr.mxu0 %v7234_v32  ;;  %v20046_v32 = vld [vmem:[%s25608_s7 + $0x190] sm:$0xff] }
 0x530   : > { %7337 = vmatprep.subr.mxu1 %v7232_v34  ;;  %6872 = vmatprep.mubr.f32.mxu0 %v25535_v3 }
 0x531   : > { %19989 = vmatmul.mubr.msk.f32.gmra.mrb[6].mxu0 %vm5051_vm2, %v19985_v33  ;;  %6961 = vmatprep.mubr.f32.mxu1 %v25535_v3 }
 0x532   : > { %19993 = vmatmul.mubr.msk.f32.gmra.mrb[6].mxu1 %vm5051_vm2, %v19985_v33  ;;  %6878 = vmatprep.mubr.f32.mxu0 %v25535_v3 }
 0x533   : > { %6967 = vmatprep.mubr.f32.mxu1 %v25535_v3 }
 0x535   : > { %19990 = vmatmul.mubr.msk.f32.gmra.mrb[8].mxu0 %vm5051_vm2, %v19986_v35 }
 0x536   : > { %19994 = vmatmul.mubr.msk.f32.gmra.mrb[8].mxu1 %vm5051_vm2, %v19986_v35  ;;  %6884 = vmatprep.mubr.f32.mxu0 %v25535_v3  ;;  %v20047_v35 = vld [vmem:[%s25608_s7 + $0x198] sm:$0xff] }
 0x537   : > { %6973 = vmatprep.mubr.f32.mxu1 %v25535_v3 }
 0x539   : > { %19991 = vmatmul.mubr.msk.f32.gmra.mrb[10].mxu0 %vm5051_vm2, %v19987_v4 }
 0x53a   : > { %19995 = vmatmul.mubr.msk.f32.gmra.mrb[10].mxu1 %vm5051_vm2, %v19987_v4  ;;  %7089 = vmatprep.mubr.f32.mxu0 %v25535_v3 }
 0x53b   : > { %7178 = vmatprep.mubr.f32.mxu1 %v25535_v3 }
 0x53d   : > { %20000 = vmatmul.mubr.msk.f32.vlgmr.msra.gmra.mrb[4].mxu0 %vm5051_vm2, %v19996_v38 }
 0x53e   : > { %7249 = vmatpush1.msra.mxu0 %v7235_v41  ;;  %20004 = vmatmul.mubr.msk.f32.vlgmr.msra.gmra.mrb[4].mxu1 %vm5051_vm2, %v19996_v38  ;;  %v20057_v41 = vld [vmem:[%s25608_s7 + $0x1a8] sm:$0xff] }
 0x53f   : > { %7338 = vmatpush1.msra.mxu1 %v7233_v42  ;;  %7471 = vmatprep.subr.mxu0 %v7457_v43  ;;  %v20058_v43 = vld [vmem:[%s25608_s7 + $0x1b0] sm:$0xff] }
 0x540   : > { %7560 = vmatprep.subr.mxu1 %v7455_v45  ;;  %7095 = vmatprep.mubr.f32.mxu0 %v25535_v3 }
 0x541   : > { %20001 = vmatmul.mubr.msk.f32.gmra.mrb[6].mxu0 %vm5051_vm2, %v19997_v44  ;;  %7184 = vmatprep.mubr.f32.mxu1 %v25535_v3 }
 0x542   : > { %20005 = vmatmul.mubr.msk.f32.gmra.mrb[6].mxu1 %vm5051_vm2, %v19997_v44  ;;  %7101 = vmatprep.mubr.f32.mxu0 %v25535_v3 }
 0x543   : > { %7190 = vmatprep.mubr.f32.mxu1 %v25535_v3 }
 0x545   : > { %20002 = vmatmul.mubr.msk.f32.gmra.mrb[8].mxu0 %vm5051_vm2, %v19998_v46 }
 0x546   : > { %20006 = vmatmul.mubr.msk.f32.gmra.mrb[8].mxu1 %vm5051_vm2, %v19998_v46  ;;  %7107 = vmatprep.mubr.f32.mxu0 %v25535_v3  ;;  %v20059_v46 = vld [vmem:[%s25608_s7 + $0x1b8] sm:$0xff] }
 0x547   : > { %7196 = vmatprep.mubr.f32.mxu1 %v25535_v3 }
 0x549   : > { %20003 = vmatmul.mubr.msk.f32.gmra.mrb[10].mxu0 %vm5051_vm2, %v19999_v49 }
 0x54a   : > { %20007 = vmatmul.mubr.msk.f32.gmra.mrb[10].mxu1 %vm5051_vm2, %v19999_v49  ;;  %7312 = vmatprep.mubr.f32.mxu0 %v25535_v3 }
 0x54b   : > { %7401 = vmatprep.mubr.f32.mxu1 %v25535_v3 }
 0x54d   : > { %20012 = vmatmul.mubr.msk.f32.vlgmr.msra.gmra.mrb[4].mxu0 %vm5051_vm2, %v20008_v50 }
 0x54e   : > { %7472 = vmatpush1.msra.mxu0 %v7458_v53  ;;  %20016 = vmatmul.mubr.msk.f32.vlgmr.msra.gmra.mrb[4].mxu1 %vm5051_vm2, %v20008_v50  ;;  %v20069_v53 = vld [vmem:[%s25608_s7 + $0x1c8] sm:$0xff] }
 0x54f   : > { %7561 = vmatpush1.msra.mxu1 %v7456_v54  ;;  %7694 = vmatprep.subr.mxu0 %v7680_v55  ;;  %v20070_v55 = vld [vmem:[%s25608_s7 + $0x1d0] sm:$0xff] }
 0x550   : > { %7783 = vmatprep.subr.mxu1 %v7678_v57  ;;  %7318 = vmatprep.mubr.f32.mxu0 %v25535_v3 }
 0x551   : > { %20013 = vmatmul.mubr.msk.f32.gmra.mrb[6].mxu0 %vm5051_vm2, %v20009_v56  ;;  %7407 = vmatprep.mubr.f32.mxu1 %v25535_v3 }
 0x552   : > { %20017 = vmatmul.mubr.msk.f32.gmra.mrb[6].mxu1 %vm5051_vm2, %v20009_v56  ;;  %7324 = vmatprep.mubr.f32.mxu0 %v25535_v3 }
 0x553   : > { %7413 = vmatprep.mubr.f32.mxu1 %v25535_v3 }
 0x555   : > { %20014 = vmatmul.mubr.msk.f32.gmra.mrb[8].mxu0 %vm5051_vm2, %v20010_v58 }
 0x556   : > { %20018 = vmatmul.mubr.msk.f32.gmra.mrb[8].mxu1 %vm5051_vm2, %v20010_v58  ;;  %7330 = vmatprep.mubr.f32.mxu0 %v25535_v3  ;;  %v20071_v58 = vld [vmem:[%s25608_s7 + $0x1d8] sm:$0xff] }
 0x557   : > { %7419 = vmatprep.mubr.f32.mxu1 %v25535_v3 }
 0x559   : > { %20015 = vmatmul.mubr.msk.f32.gmra.mrb[10].mxu0 %vm5051_vm2, %v20011_v59 }
 0x55a   : > { %20019 = vmatmul.mubr.msk.f32.gmra.mrb[10].mxu1 %vm5051_vm2, %v20011_v59  ;;  %7535 = vmatprep.mubr.f32.mxu0 %v25535_v3  ;;  %v20080_v59 = vld [vmem:[%s25608_s7 + $0x1e0] sm:$0xff] }
 0x55b   : > { %7624 = vmatprep.mubr.f32.mxu1 %v25535_v3 }
 0x55d   : > { %20024 = vmatmul.mubr.msk.f32.vlgmr.msra.gmra.mrb[4].mxu0 %vm5051_vm2, %v20020_v60 }
 0x55e   : > { %7695 = vmatpush1.msra.mxu0 %v7681_v61  ;;  %20028 = vmatmul.mubr.msk.f32.vlgmr.msra.gmra.mrb[4].mxu1 %vm5051_vm2, %v20020_v60 }
 0x55f   : > { %7784 = vmatpush1.msra.mxu1 %v7679_v62  ;;  %7905 = vmatprep.subr.mxu0 %v22295_v24  ;;  %v8109_v24 = vpop.permute.xlu1 %8108 }
 0x560   : > { %7994 = vmatprep.subr.mxu1 %v22305_v11  ;;  %7541 = vmatprep.mubr.f32.mxu0 %v25535_v3  ;;  %v8107_v11 = vpop.permute.xlu0 %8106 }
 0x561   : > { %20025 = vmatmul.mubr.msk.f32.gmra.mrb[6].mxu0 %vm5051_vm2, %v20021_v63  ;;  %7630 = vmatprep.mubr.f32.mxu1 %v25535_v3  ;;  %v8113_v17 = vsel %vm25619_vm13, %v8107_v11, %v8109_v24  ;;  %vm25621_vm13 = vmmov %vm25620_vm12 }
 0x562   : > { %20029 = vmatmul.mubr.msk.f32.gmra.mrb[6].mxu1 %vm5051_vm2, %v20021_v63  ;;  %7547 = vmatprep.mubr.f32.mxu0 %v25535_v3 }
 0x563   : > { %7636 = vmatprep.mubr.f32.mxu1 %v25535_v3  ;;  %v8111_v15 = vpop.permute.xlu1 %8110 }
 0x564   : > { %v8105_v16 = vpop.permute.xlu0 %8104  ;;  %v8112_v29 = vsel %vm25621_vm13, %v8109_v24, %v8111_v15  ;;  %v20081_v24 = vld [vmem:[%s25608_s7 + $0x1e8] sm:$0xff] }
 0x565   : > { %20026 = vmatmul.mubr.msk.f32.gmra.mrb[8].mxu0 %vm5051_vm2, %v20022_v0  ;;  %v8115_v20 = vsel %vm25620_vm12, %v8111_v15, %v8105_v16  ;;  %v8114_v7 = vsel %vm25620_vm12, %v8105_v16, %v8107_v11  ;;  %vm25625_vm12 = vcmp.lt.s32.totalorder %v21676_v13, 110  ;;  %v20083_v16 = vld [vmem:[%s25608_s7 + $0x1f8] sm:$0xff] }
 0x566   : > { %20030 = vmatmul.mubr.msk.f32.gmra.mrb[8].mxu1 %vm5051_vm2, %v20022_v0  ;;  %7553 = vmatprep.mubr.f32.mxu0 %v25535_v3  ;;  %vm25626_vm13 = vmmov %vm25625_vm12 }
 0x567   : > { %7642 = vmatprep.mubr.f32.mxu1 %v25535_v3 }
 0x568   : > { %v8330_v21 = vpop.permute.xlu0 %8329 }
 0x569   : > { %20027 = vmatmul.mubr.msk.f32.gmra.mrb[10].mxu0 %vm5051_vm2, %v20023_v8 }
 0x56a   : > { %20031 = vmatmul.mubr.msk.f32.gmra.mrb[10].mxu1 %vm5051_vm2, %v20023_v8  ;;  %7758 = vmatprep.mubr.f32.mxu0 %v25535_v3  ;;  %v20082_v8 = vld [vmem:[%s25608_s7 + $0x1f0] sm:$0xff] }
 0x56b   : > { %7847 = vmatprep.mubr.f32.mxu1 %v25535_v3 }
 0x56c   : > { %v8328_v28 = vpop.permute.xlu0 %8327 }
 0x56d   : > { %20036 = vmatmul.mubr.msk.f32.vlgmr.msra.gmra.mrb[4].mxu0 %vm5051_vm2, %v20032_v14  ;;  %v8337_v38 = vsel %vm25623_vm10, %v8328_v28, %v8330_v21 }
 0x56e   : > { %7906 = vmatpush1.msra.mxu0 %v22292_v10  ;;  %20040 = vmatmul.mubr.msk.f32.vlgmr.msra.gmra.mrb[4].mxu1 %vm5051_vm2, %v20032_v14  ;;  %v20034_v10 = vld [vmem:[%s25608_s7 + $0x170] sm:$0xff] }
 0x56f   : > { %7995 = vmatpush1.msra.mxu1 %v22302_v25  ;;  %8128 = vmatprep.subr.mxu0 %v8113_v17  ;;  %v8332_v25 = vpop.permute.xlu1 %8331  ;;  %v20092_v17 = vld [vmem:[%s25608_s7 + $0x200] sm:$0xff] }
 0x570   : > { %8217 = vmatprep.subr.mxu1 %v8115_v20  ;;  %7764 = vmatprep.mubr.f32.mxu0 %v25535_v3  ;;  %v8336_v30 = vsel %vm25622_vm11, %v8330_v21, %v8332_v25  ;;  %v8553_v34 = vpop.permute.xlu0 %8552  ;;  %vm25624_vm11 = vmmov %vm25623_vm10 }
 0x571   : > { %20037 = vmatmul.mubr.msk.f32.gmra.mrb[6].mxu0 %vm5051_vm2, %v20033_v18  ;;  %7853 = vmatprep.mubr.f32.mxu1 %v25535_v3 }
 0x572   : > { %20041 = vmatmul.mubr.msk.f32.gmra.mrb[6].mxu1 %vm5051_vm2, %v20033_v18  ;;  %7770 = vmatprep.mubr.f32.mxu0 %v25535_v3 }
 0x573   : > { %7859 = vmatprep.mubr.f32.mxu1 %v25535_v3  ;;  %v8334_v27 = vpop.permute.xlu1 %8333 }
 0x574   : > { %v8338_v31 = vsel %vm25623_vm10, %v8334_v27, %v8328_v28  ;;  %v8551_v4 = vpop.permute.xlu0 %8550  ;;  %v8335_v39 = vsel %vm25624_vm11, %v8332_v25, %v8334_v27  ;;  %vm25627_vm10 = vmmov %vm25625_vm12  ;;  %v20094_v27 = vld [vmem:[%s25608_s7 + $0x210] sm:$0xff] }
 0x575   : > { %20038 = vmatmul.mubr.msk.f32.gmra.mrb[8].mxu0 %vm5051_vm2, %v20034_v10  ;;  %v8560_v50 = vsel %vm25627_vm10, %v8551_v4, %v8553_v34  ;;  %vm25628_vm11 = vmmov %vm25627_vm10 }
 0x576   : > { %20042 = vmatmul.mubr.msk.f32.gmra.mrb[8].mxu1 %vm5051_vm2, %v20034_v10  ;;  %7776 = vmatprep.mubr.f32.mxu0 %v25535_v3 }
 0x577   : > { %7865 = vmatprep.mubr.f32.mxu1 %v25535_v3  ;;  %v8555_v33 = vpop.permute.xlu1 %8554 }
 0x578   : > { %v8559_v40 = vsel %vm25625_vm12, %v8553_v34, %v8555_v33  ;;  %v8776_v45 = vpop.permute.xlu0 %8775  ;;  %vm25629_vm12 = vcmp.lt.s32.totalorder %v21676_v13, 109 }
 0x579   : > { %20039 = vmatmul.mubr.msk.f32.gmra.mrb[10].mxu0 %vm5051_vm2, %v20035_v23  ;;  %vm25631_vm10 = vmmov %vm25629_vm12 }
 0x57a   : > { %20043 = vmatmul.mubr.msk.f32.gmra.mrb[10].mxu1 %vm5051_vm2, %v20035_v23  ;;  %7969 = vmatprep.mubr.f32.mxu0 %v25535_v3  ;;  %v20093_v23 = vld [vmem:[%s25608_s7 + $0x208] sm:$0xff] }
 0x57b   : > { %8058 = vmatprep.mubr.f32.mxu1 %v25535_v3  ;;  %v8557_v37 = vpop.permute.xlu1 %8556 }
 0x57c   : > { %v8561_v42 = vsel %vm25626_vm13, %v8557_v37, %v8551_v4  ;;  %v8774_v49 = vpop.permute.xlu0 %8773  ;;  %v8558_v51 = vsel %vm25628_vm11, %v8555_v33, %v8557_v37  ;;  %vm25630_vm13 = vmmov %vm25629_vm12  ;;  %v20106_v37 = vld [vmem:[%s25608_s7 + $0x230] sm:$0xff] }
 0x57d   : > { %20048 = vmatmul.mubr.msk.f32.vlgmr.msra.gmra.mrb[4].mxu0 %vm5051_vm2, %v20044_v9  ;;  %v8783_v62 = vsel %vm25631_vm10, %v8774_v49, %v8776_v45  ;;  %vm25632_vm11 = vmmov %vm25631_vm10 }
 0x57e   : > { %8129 = vmatpush1.msra.mxu0 %v8114_v7  ;;  %20052 = vmatmul.mubr.msk.f32.vlgmr.msra.gmra.mrb[4].mxu1 %vm5051_vm2, %v20044_v9 }
 0x57f   : > { %8218 = vmatpush1.msra.mxu1 %v8112_v29  ;;  %8351 = vmatprep.subr.mxu0 %v8336_v30  ;;  %v8778_v44 = vpop.permute.xlu1 %8777  ;;  %v20095_v29 = vld [vmem:[%s25608_s7 + $0x218] sm:$0xff]  ;;  %v20104_v30 = vld [vmem:[%s25608_s7 + $0x220] sm:$0xff] }
 0x580   : > { %8440 = vmatprep.subr.mxu1 %v8338_v31  ;;  %7975 = vmatprep.mubr.f32.mxu0 %v25535_v3  ;;  %v8782_v52 = vsel %vm25629_vm12, %v8776_v45, %v8778_v44  ;;  %v8999_v57 = vpop.permute.xlu0 %8998  ;;  %vm25633_vm12 = vcmp.lt.s32.totalorder %v21676_v13, 108 }
 0x581   : > { %20049 = vmatmul.mubr.msk.f32.gmra.mrb[6].mxu0 %vm5051_vm2, %v20045_v6  ;;  %8064 = vmatprep.mubr.f32.mxu1 %v25535_v3  ;;  %vm25635_vm10 = vmmov %vm25633_vm12 }
 0x582   : > { %20053 = vmatmul.mubr.msk.f32.gmra.mrb[6].mxu1 %vm5051_vm2, %v20045_v6  ;;  %7981 = vmatprep.mubr.f32.mxu0 %v25535_v3 }
 0x583   : > { %8070 = vmatprep.mubr.f32.mxu1 %v25535_v3  ;;  %v8780_v48 = vpop.permute.xlu1 %8779 }
 0x584   : > { %v8784_v54 = vsel %vm25630_vm13, %v8780_v48, %v8774_v49  ;;  %v8997_v61 = vpop.permute.xlu0 %8996  ;;  %v8781_v63 = vsel %vm25632_vm11, %v8778_v44, %v8780_v48  ;;  %vm25634_vm13 = vmmov %vm25633_vm12  ;;  %v20118_v48 = vld [vmem:[%s25608_s7 + $0x250] sm:$0xff] }
 0x585   : > { %20050 = vmatmul.mubr.msk.f32.gmra.mrb[8].mxu0 %vm5051_vm2, %v20046_v32  ;;  %v9006_v10 = vsel %vm25635_vm10, %v8997_v61, %v8999_v57  ;;  %vm25636_vm11 = vmmov %vm25635_vm10 }
 0x586   : > { %20054 = vmatmul.mubr.msk.f32.gmra.mrb[8].mxu1 %vm5051_vm2, %v20046_v32  ;;  %7987 = vmatprep.mubr.f32.mxu0 %v25535_v3 }
 0x587   : > { %8076 = vmatprep.mubr.f32.mxu1 %v25535_v3  ;;  %v9001_v56 = vpop.permute.xlu1 %9000 }
 0x588   : > { %v9005_v0 = vsel %vm25633_vm12, %v8999_v57, %v9001_v56  ;;  %v9222_v15 = vpop.permute.xlu0 %9221  ;;  %vm25637_vm12 = vcmp.lt.s32.totalorder %v21676_v13, 107 }
 0x589   : > { %20051 = vmatmul.mubr.msk.f32.gmra.mrb[10].mxu0 %vm5051_vm2, %v20047_v35  ;;  %vm25639_vm10 = vmmov %vm25637_vm12 }
 0x58a   : > { %20055 = vmatmul.mubr.msk.f32.gmra.mrb[10].mxu1 %vm5051_vm2, %v20047_v35  ;;  %8192 = vmatprep.mubr.f32.mxu0 %v25535_v3  ;;  %v20105_v35 = vld [vmem:[%s25608_s7 + $0x228] sm:$0xff] }
 0x58b   : > { %8281 = vmatprep.mubr.f32.mxu1 %v25535_v3  ;;  %v9003_v60 = vpop.permute.xlu1 %9002 }
 0x58c   : > { %v9007_v11 = vsel %vm25634_vm13, %v9003_v60, %v8997_v61  ;;  %v9220_v20 = vpop.permute.xlu0 %9219  ;;  %v9004_v25 = vsel %vm25636_vm11, %v9001_v56, %v9003_v60  ;;  %vm25638_vm13 = vmmov %vm25637_vm12  ;;  %v20130_v60 = vld [vmem:[%s25608_s7 + $0x270] sm:$0xff] }
 0x58d   : > { %20060 = vmatmul.mubr.msk.f32.vlgmr.msra.gmra.mrb[4].mxu0 %vm5051_vm2, %v20056_v36  ;;  %v9229_v32 = vsel %vm25639_vm10, %v9220_v20, %v9222_v15  ;;  %vm25640_vm11 = vmmov %vm25639_vm10 }
 0x58e   : > { %8352 = vmatpush1.msra.mxu0 %v8337_v38  ;;  %20064 = vmatmul.mubr.msk.f32.vlgmr.msra.gmra.mrb[4].mxu1 %vm5051_vm2, %v20056_v36 }
 0x58f   : > { %8441 = vmatpush1.msra.mxu1 %v8335_v39  ;;  %8574 = vmatprep.subr.mxu0 %v8559_v40  ;;  %v9224_v14 = vpop.permute.xlu1 %9223  ;;  %v20107_v39 = vld [vmem:[%s25608_s7 + $0x238] sm:$0xff]  ;;  %v20116_v40 = vld [vmem:[%s25608_s7 + $0x240] sm:$0xff] }
 0x590   : > { %8663 = vmatprep.subr.mxu1 %v8561_v42  ;;  %8198 = vmatprep.mubr.f32.mxu0 %v25535_v3  ;;  %v9228_v21 = vsel %vm25637_vm12, %v9222_v15, %v9224_v14  ;;  %v9445_v7 = vpop.permute.xlu0 %9444  ;;  %vm25641_vm12 = vcmp.lt.s32.totalorder %v21676_v13, 106 }
 0x591   : > { %20061 = vmatmul.mubr.msk.f32.gmra.mrb[6].mxu0 %vm5051_vm2, %v20057_v41  ;;  %8287 = vmatprep.mubr.f32.mxu1 %v25535_v3  ;;  %vm25643_vm10 = vmmov %vm25641_vm12 }
 0x592   : > { %20065 = vmatmul.mubr.msk.f32.gmra.mrb[6].mxu1 %vm5051_vm2, %v20057_v41  ;;  %8204 = vmatprep.mubr.f32.mxu0 %v25535_v3 }
 0x593   : > { %8293 = vmatprep.mubr.f32.mxu1 %v25535_v3  ;;  %v9226_v18 = vpop.permute.xlu1 %9225 }
 0x594   : > { %v9230_v9 = vsel %vm25638_vm13, %v9226_v18, %v9220_v20  ;;  %v9443_v31 = vpop.permute.xlu0 %9442  ;;  %v9227_v33 = vsel %vm25640_vm11, %v9224_v14, %v9226_v18  ;;  %vm25642_vm13 = vmmov %vm25641_vm12  ;;  %v20142_v18 = vld [vmem:[%s25608_s7 + $0x290] sm:$0xff] }
 0x595   : > { %20062 = vmatmul.mubr.msk.f32.gmra.mrb[8].mxu0 %vm5051_vm2, %v20058_v43  ;;  %vm25644_vm11 = vmmov %vm25643_vm10 }
 0x596   : > { %20066 = vmatmul.mubr.msk.f32.gmra.mrb[8].mxu1 %vm5051_vm2, %v20058_v43  ;;  %8210 = vmatprep.mubr.f32.mxu0 %v25535_v3  ;;  %v9452_v43 = vsel %vm25643_vm10, %v9443_v31, %v9445_v7 }
 0x597   : > { %8299 = vmatprep.mubr.f32.mxu1 %v25535_v3  ;;  %v9447_v28 = vpop.permute.xlu1 %9446 }
 0x598   : > { %v9451_v34 = vsel %vm25641_vm12, %v9445_v7, %v9447_v28  ;;  %v9668_v38 = vpop.permute.xlu0 %9667  ;;  %vm25645_vm12 = vcmp.lt.s32.totalorder %v21676_v13, 90 }
 0x599   : > { %20063 = vmatmul.mubr.msk.f32.gmra.mrb[10].mxu0 %vm5051_vm2, %v20059_v46  ;;  %vm25647_vm10 = vmmov %vm25645_vm12 }
 0x59a   : > { %20067 = vmatmul.mubr.msk.f32.gmra.mrb[10].mxu1 %vm5051_vm2, %v20059_v46  ;;  %8415 = vmatprep.mubr.f32.mxu0 %v25535_v3  ;;  %v20117_v46 = vld [vmem:[%s25608_s7 + $0x248] sm:$0xff] }
 0x59b   : > { %8504 = vmatprep.mubr.f32.mxu1 %v25535_v3  ;;  %v9449_v6 = vpop.permute.xlu1 %9448 }
 0x59c   : > { %v9453_v36 = vsel %vm25642_vm13, %v9449_v6, %v9443_v31  ;;  %v9666_v42 = vpop.permute.xlu0 %9665  ;;  %v9450_v44 = vsel %vm25644_vm11, %v9447_v28, %v9449_v6  ;;  %vm25646_vm13 = vmmov %vm25645_vm12  ;;  %v20154_v6 = vld [vmem:[%s25608_s7 + $0x2b0] sm:$0xff] }
 0x59d   : > { %20072 = vmatmul.mubr.msk.f32.vlgmr.msra.gmra.mrb[4].mxu0 %vm5051_vm2, %v20068_v47  ;;  %vm25648_vm11 = vmmov %vm25647_vm10 }
 0x59e   : > { %8575 = vmatpush1.msra.mxu0 %v8560_v50  ;;  %20076 = vmatmul.mubr.msk.f32.vlgmr.msra.gmra.mrb[4].mxu1 %vm5051_vm2, %v20068_v47 }
 0x59f   : > { %8664 = vmatpush1.msra.mxu1 %v8558_v51  ;;  %8797 = vmatprep.subr.mxu0 %v8782_v52  ;;  %v9670_v4 = vpop.permute.xlu1 %9669  ;;  %v20119_v51 = vld [vmem:[%s25608_s7 + $0x258] sm:$0xff]  ;;  %v20128_v52 = vld [vmem:[%s25608_s7 + $0x260] sm:$0xff] }
 0x5a0   : > { %8886 = vmatprep.subr.mxu1 %v8784_v54  ;;  %8421 = vmatprep.mubr.f32.mxu0 %v25535_v3  ;;  %v9674_v45 = vsel %vm25645_vm12, %v9668_v38, %v9670_v4  ;;  %v9891_v50 = vpop.permute.xlu0 %9890  ;;  %vm25649_vm12 = vcmp.lt.s32.totalorder %v21676_v13, 89 }
 0x5a1   : > { %20073 = vmatmul.mubr.msk.f32.gmra.mrb[6].mxu0 %vm5051_vm2, %v20069_v53  ;;  %8510 = vmatprep.mubr.f32.mxu1 %v25535_v3 }
 0x5a2   : > { %20077 = vmatmul.mubr.msk.f32.gmra.mrb[6].mxu1 %vm5051_vm2, %v20069_v53  ;;  %8427 = vmatprep.mubr.f32.mxu0 %v25535_v3 }
 0x5a3   : > { %8516 = vmatprep.mubr.f32.mxu1 %v25535_v3  ;;  %v9672_v41 = vpop.permute.xlu1 %9671 }
 0x5a4   : > { %v9676_v47 = vsel %vm25646_vm13, %v9672_v41, %v9666_v42  ;;  %v9889_v54 = vpop.permute.xlu0 %9888  ;;  %v9673_v56 = vsel %vm25648_vm11, %v9670_v4, %v9672_v41  ;;  %vm25650_vm13 = vmmov %vm25649_vm12  ;;  %v20166_v41 = vld [vmem:[%s25608_s7 + $0x2d0] sm:$0xff] }
 0x5a5   : > { %20074 = vmatmul.mubr.msk.f32.gmra.mrb[8].mxu0 %vm5051_vm2, %v20070_v55 }
 0x5a6   : > { %20078 = vmatmul.mubr.msk.f32.gmra.mrb[8].mxu1 %vm5051_vm2, %v20070_v55  ;;  %8433 = vmatprep.mubr.f32.mxu0 %v25535_v3  ;;  %v9675_v55 = vsel %vm25647_vm10, %v9666_v42, %v9668_v38  ;;  %vm25651_vm10 = vmmov %vm25649_vm12  ;;  %v20167_v42 = vld [vmem:[%s25608_s7 + $0x2d8] sm:$0xff] }
 0x5a7   : > { %8522 = vmatprep.mubr.f32.mxu1 %v25535_v3  ;;  %v9893_v49 = vpop.permute.xlu1 %9892  ;;  %vm25652_vm11 = vmmov %vm25651_vm10 }
 0x5a8   : > { %v9897_v57 = vsel %vm25649_vm12, %v9891_v50, %v9893_v49  ;;  %vm25653_vm12 = vcmp.lt.s32.totalorder %v21676_v13, 88 }
 0x5a9   : > { %20075 = vmatmul.mubr.msk.f32.gmra.mrb[10].mxu0 %vm5051_vm2, %v20071_v58 }
 0x5aa   : > { %20079 = vmatmul.mubr.msk.f32.gmra.mrb[10].mxu1 %vm5051_vm2, %v20071_v58  ;;  %8638 = vmatprep.mubr.f32.mxu0 %v25535_v3  ;;  %v20129_v58 = vld [vmem:[%s25608_s7 + $0x268] sm:$0xff] }
 0x5ab   : > { %8727 = vmatprep.mubr.f32.mxu1 %v25535_v3  ;;  %v9895_v53 = vpop.permute.xlu1 %9894 }
 0x5ac   : > { %v9896_v14 = vsel %vm25652_vm11, %v9893_v49, %v9895_v53  ;;  %v20188_v49 = vld [vmem:[%s25608_s7 + $0x300] sm:$0xff] }
 0x5ad   : > { %20084 = vmatmul.mubr.msk.f32.vlgmr.msra.gmra.mrb[4].mxu0 %vm5051_vm2, %v20080_v59 }
 0x5ae   : > { %8798 = vmatpush1.msra.mxu0 %v8783_v62  ;;  %20088 = vmatmul.mubr.msk.f32.vlgmr.msra.gmra.mrb[4].mxu1 %vm5051_vm2, %v20080_v59  ;;  %v9899_v59 = vsel %vm25650_vm13, %v9895_v53, %v9889_v54  ;;  %v10114_v62 = vpop.permute.xlu0 %10113  ;;  %vm25654_vm13 = vmmov %vm25653_vm12 }
 0x5af   : > { %8887 = vmatpush1.msra.mxu1 %v8781_v63  ;;  %9020 = vmatprep.subr.mxu0 %v9005_v0  ;;  %v10116_v61 = vpop.permute.xlu1 %10115  ;;  %v20131_v63 = vld [vmem:[%s25608_s7 + $0x278] sm:$0xff]  ;;  %v20140_v0 = vld [vmem:[%s25608_s7 + $0x280] sm:$0xff] }
 0x5b0   : > { %9109 = vmatprep.subr.mxu1 %v9007_v11  ;;  %8644 = vmatprep.mubr.f32.mxu0 %v25535_v3  ;;  %v10120_v15 = vsel %vm25653_vm12, %v10114_v62, %v10116_v61 }
 0x5b1   : > { %20085 = vmatmul.mubr.msk.f32.gmra.mrb[6].mxu0 %vm5051_vm2, %v20081_v24  ;;  %8733 = vmatprep.mubr.f32.mxu1 %v25535_v3 }
 0x5b2   : > { %20089 = vmatmul.mubr.msk.f32.gmra.mrb[6].mxu1 %vm5051_vm2, %v20081_v24  ;;  %8650 = vmatprep.mubr.f32.mxu0 %v25535_v3  ;;  %v10112_v11 = vpop.permute.xlu0 %10111 }
 0x5b3   : > { %8739 = vmatprep.mubr.f32.mxu1 %v25535_v3  ;;  %v10118_v24 = vpop.permute.xlu1 %10117 }
 0x5b5   : > { %20086 = vmatmul.mubr.msk.f32.gmra.mrb[8].mxu0 %vm5051_vm2, %v20082_v8 }
 0x5b6   : > { %20090 = vmatmul.mubr.msk.f32.gmra.mrb[8].mxu1 %vm5051_vm2, %v20082_v8  ;;  %8656 = vmatprep.mubr.f32.mxu0 %v25535_v3  ;;  %v9898_v8 = vsel %vm25651_vm10, %v9889_v54, %v9891_v50  ;;  %vm25655_vm10 = vmmov %vm25653_vm12  ;;  %v20189_v50 = vld [vmem:[%s25608_s7 + $0x308] sm:$0xff]  ;;  %vm10891_vm12 = vcmask 261120  }
 0x5b7   : > { %8745 = vmatprep.mubr.f32.mxu1 %v25535_v3  ;;  %v10339_v20 = vpop.permute.xlu1 %10338  ;;  %vm25656_vm11 = vmmov %vm25655_vm10 }
 0x5b8   : > { %v10119_v28 = vsel %vm25656_vm11, %v10116_v61, %v10118_v24 }
 0x5b9   : > { %20087 = vmatmul.mubr.msk.f32.gmra.mrb[10].mxu0 %vm5051_vm2, %v20083_v16 }
 0x5ba   : > { %20091 = vmatmul.mubr.msk.f32.gmra.mrb[10].mxu1 %vm5051_vm2, %v20083_v16  ;;  %8861 = vmatprep.mubr.f32.mxu0 %v25535_v3  ;;  %v20141_v16 = vld [vmem:[%s25608_s7 + $0x288] sm:$0xff] }
 0x5bb   : > { %8950 = vmatprep.mubr.f32.mxu1 %v25535_v3 }
 0x5bd   : > { %20096 = vmatmul.mubr.msk.f32.vlgmr.msra.gmra.mrb[4].mxu0 %vm5051_vm2, %v20092_v17 }
 0x5be   : > { %9021 = vmatpush1.msra.mxu0 %v9006_v10  ;;  %20100 = vmatmul.mubr.msk.f32.vlgmr.msra.gmra.mrb[4].mxu1 %vm5051_vm2, %v20092_v17  ;;  %v10122_v17 = vsel %vm25654_vm13, %v10118_v24, %v10112_v11  ;;  %v10337_v10 = vpop.permute.xlu0 %10336 }
 0x5bf   : > { %9110 = vmatpush1.msra.mxu1 %v9004_v25  ;;  %9243 = vmatprep.subr.mxu0 %v9228_v21  ;;  %v20143_v25 = vld [vmem:[%s25608_s7 + $0x298] sm:$0xff]  ;;  %v20152_v21 = vld [vmem:[%s25608_s7 + $0x2a0] sm:$0xff]  ;;  %v10343_v7 = vsel %vm4659_vm14, %v10337_v10, %v10339_v20 }
 0x5c0   : > { %9332 = vmatprep.subr.mxu1 %v9230_v9  ;;  %8867 = vmatprep.mubr.f32.mxu0 %v25535_v3 }
 0x5c1   : > { %20097 = vmatmul.mubr.msk.f32.gmra.mrb[6].mxu0 %vm5051_vm2, %v20093_v23  ;;  %8956 = vmatprep.mubr.f32.mxu1 %v25535_v3 }
 0x5c2   : > { %20101 = vmatmul.mubr.msk.f32.gmra.mrb[6].mxu1 %vm5051_vm2, %v20093_v23  ;;  %8873 = vmatprep.mubr.f32.mxu0 %v25535_v3  ;;  %v10341_v23 = vpop.permute.xlu1 %10340  ;;  %v10335_v9 = vpop.permute.xlu0 %10334 }
 0x5c3   : > { %8962 = vmatprep.mubr.f32.mxu1 %v25535_v3  ;;  %v10342_v4 = vsel %vm4659_vm14, %v10339_v20, %v10341_v23 }
 0x5c5   : > { %20098 = vmatmul.mubr.msk.f32.gmra.mrb[8].mxu0 %vm5051_vm2, %v20094_v27 }
 0x5c6   : > { %20102 = vmatmul.mubr.msk.f32.gmra.mrb[8].mxu1 %vm5051_vm2, %v20094_v27  ;;  %8879 = vmatprep.mubr.f32.mxu0 %v25535_v3  ;;  %v10121_v27 = vsel %vm25655_vm10, %v10112_v11, %v10114_v62  ;;  %v10562_v31 = vpop.permute.xlu1 %10561  ;;  %vm25694_vm10 = vcmp.lt.s32.totalorder %v21676_v13, 18 }
 0x5c7   : > { %8968 = vmatprep.mubr.f32.mxu1 %v25535_v3  ;;  %vm25695_vm11 = vmmov %vm25694_vm10 }
 0x5c9   : > { %20099 = vmatmul.mubr.msk.f32.gmra.mrb[10].mxu0 %vm5051_vm2, %v20095_v29 }
 0x5ca   : > { %20103 = vmatmul.mubr.msk.f32.gmra.mrb[10].mxu1 %vm5051_vm2, %v20095_v29  ;;  %9084 = vmatprep.mubr.f32.mxu0 %v25535_v3  ;;  %v20153_v29 = vld [vmem:[%s25608_s7 + $0x2a8] sm:$0xff] }
 0x5cb   : > { %9173 = vmatprep.mubr.f32.mxu1 %v25535_v3 }
 0x5cd   : > { %20108 = vmatmul.mubr.msk.f32.vlgmr.msra.gmra.mrb[4].mxu0 %vm5051_vm2, %v20104_v30 }
 0x5ce   : > { %9244 = vmatpush1.msra.mxu0 %v9229_v32  ;;  %20112 = vmatmul.mubr.msk.f32.vlgmr.msra.gmra.mrb[4].mxu1 %vm5051_vm2, %v20104_v30  ;;  %v10345_v30 = vsel %vm4659_vm14, %v10341_v23, %v10335_v9  ;;  %v10560_v32 = vpop.permute.xlu0 %10559 }
 0x5cf   : > { %9333 = vmatpush1.msra.mxu1 %v9227_v33  ;;  %9466 = vmatprep.subr.mxu0 %v9451_v34  ;;  %v20155_v33 = vld [vmem:[%s25608_s7 + $0x2b8] sm:$0xff]  ;;  %v20164_v34 = vld [vmem:[%s25608_s7 + $0x2c0] sm:$0xff]  ;;  %v10566_v38 = vsel %vm4835_vm15, %v10560_v32, %v10562_v31 }
 0x5d0   : > { %9555 = vmatprep.subr.mxu1 %v9453_v36  ;;  %9090 = vmatprep.mubr.f32.mxu0 %v25535_v3 }
 0x5d1   : > { %20109 = vmatmul.mubr.msk.f32.gmra.mrb[6].mxu0 %vm5051_vm2, %v20105_v35  ;;  %9179 = vmatprep.mubr.f32.mxu1 %v25535_v3 }
 0x5d2   : > { %20113 = vmatmul.mubr.msk.f32.gmra.mrb[6].mxu1 %vm5051_vm2, %v20105_v35  ;;  %9096 = vmatprep.mubr.f32.mxu0 %v25535_v3  ;;  %v10564_v35 = vpop.permute.xlu1 %10563  ;;  %v10558_v36 = vpop.permute.xlu0 %10557 }
 0x5d3   : > { %9185 = vmatprep.mubr.f32.mxu1 %v25535_v3 }
 0x5d5   : > { %20110 = vmatmul.mubr.msk.f32.gmra.mrb[8].mxu0 %vm5051_vm2, %v20106_v37 }
 0x5d6   : > { %20114 = vmatmul.mubr.msk.f32.gmra.mrb[8].mxu1 %vm5051_vm2, %v20106_v37  ;;  %9102 = vmatprep.mubr.f32.mxu0 %v25535_v3  ;;  %v10344_v37 = vsel %vm4659_vm14, %v10335_v9, %v10337_v10  ;;  %v10782_v53 = vpop.permute.xlu0 %10781 }
 0x5d7   : > { %9191 = vmatprep.mubr.f32.mxu1 %v25535_v3 }
 0x5d9   : > { %20111 = vmatmul.mubr.msk.f32.gmra.mrb[10].mxu0 %vm5051_vm2, %v20107_v39 }
 0x5da   : > { %20115 = vmatmul.mubr.msk.f32.gmra.mrb[10].mxu1 %vm5051_vm2, %v20107_v39  ;;  %9307 = vmatprep.mubr.f32.mxu0 %v25535_v3  ;;  %v20165_v39 = vld [vmem:[%s25608_s7 + $0x2c8] sm:$0xff] }
 0x5db   : > { %9396 = vmatprep.mubr.f32.mxu1 %v25535_v3 }
 0x5dd   : > { %20120 = vmatmul.mubr.msk.f32.vlgmr.msra.gmra.mrb[4].mxu0 %vm5051_vm2, %v20116_v40 }
 0x5de   : > { %9467 = vmatpush1.msra.mxu0 %v9452_v43  ;;  %20124 = vmatmul.mubr.msk.f32.vlgmr.msra.gmra.mrb[4].mxu1 %vm5051_vm2, %v20116_v40  ;;  %v10568_v40 = vsel %vm4835_vm15, %v10564_v35, %v10558_v36  ;;  %v20176_v43 = vld [vmem:[%s25608_s7 + $0x2e0] sm:$0xff] }
 0x5df   : > { %9556 = vmatpush1.msra.mxu1 %v9450_v44  ;;  %9689 = vmatprep.subr.mxu0 %v9674_v45  ;;  %v10567_v44 = vsel %vm4835_vm15, %v10558_v36, %v10560_v32  ;;  %v10565_v45 = vsel %vm4835_vm15, %v10562_v31, %v10564_v35 }
 0x5e0   : > { %9778 = vmatprep.subr.mxu1 %v9676_v47  ;;  %9313 = vmatprep.mubr.f32.mxu0 %v25535_v3  ;;  %v20178_v47 = vld [vmem:[%s25608_s7 + $0x2f0] sm:$0xff] }
 0x5e1   : > { %20121 = vmatmul.mubr.msk.f32.gmra.mrb[6].mxu0 %vm5051_vm2, %v20117_v46  ;;  %9402 = vmatprep.mubr.f32.mxu1 %v25535_v3 }
 0x5e2   : > { %20125 = vmatmul.mubr.msk.f32.gmra.mrb[6].mxu1 %vm5051_vm2, %v20117_v46  ;;  %9319 = vmatprep.mubr.f32.mxu0 %v25535_v3  ;;  %v20177_v46 = vld [vmem:[%s25608_s7 + $0x2e8] sm:$0xff] }
 0x5e3   : > { %9408 = vmatprep.mubr.f32.mxu1 %v25535_v3 }
 0x5e5   : > { %20122 = vmatmul.mubr.msk.f32.gmra.mrb[8].mxu0 %vm5051_vm2, %v20118_v48 }
 0x5e6   : > { %20126 = vmatmul.mubr.msk.f32.gmra.mrb[8].mxu1 %vm5051_vm2, %v20118_v48  ;;  %9325 = vmatprep.mubr.f32.mxu0 %v25535_v3  ;;  %v20179_v48 = vld [vmem:[%s25608_s7 + $0x2f8] sm:$0xff] }
 0x5e7   : > { %9414 = vmatprep.mubr.f32.mxu1 %v25535_v3 }
 0x5e9   : > { %20123 = vmatmul.mubr.msk.f32.gmra.mrb[10].mxu0 %vm5051_vm2, %v20119_v51 }
 0x5ea   : > { %20127 = vmatmul.mubr.msk.f32.gmra.mrb[10].mxu1 %vm5051_vm2, %v20119_v51  ;;  %9530 = vmatprep.mubr.f32.mxu0 %v25535_v3  ;;  %v20190_v51 = vld [vmem:[%s25608_s7 + $0x310] sm:$0xff] }
 0x5eb   : > { %9619 = vmatprep.mubr.f32.mxu1 %v25535_v3 }
 0x5ed   : > { %20132 = vmatmul.mubr.msk.f32.vlgmr.msra.gmra.mrb[4].mxu0 %vm5051_vm2, %v20128_v52 }
 0x5ee   : > { %9690 = vmatpush1.msra.mxu0 %v9675_v55  ;;  %20136 = vmatmul.mubr.msk.f32.vlgmr.msra.gmra.mrb[4].mxu1 %vm5051_vm2, %v20128_v52  ;;  %v20191_v52 = vld [vmem:[%s25608_s7 + $0x318] sm:$0xff]  ;;  %s25664_s7 = smov 40  }
 0x5ef   : > { %9779 = vmatpush1.msra.mxu1 %v9673_v56  ;;  %9912 = vmatprep.subr.mxu0 %v9897_v57 }
 0x5f0   : > { %10001 = vmatprep.subr.mxu1 %v9899_v59  ;;  %9536 = vmatprep.mubr.f32.mxu0 %v25535_v3 }
 0x5f1   : > { %20133 = vmatmul.mubr.msk.f32.gmra.mrb[6].mxu0 %vm5051_vm2, %v20129_v58  ;;  %9625 = vmatprep.mubr.f32.mxu1 %v25535_v3 }
 0x5f2   : > { %20137 = vmatmul.mubr.msk.f32.gmra.mrb[6].mxu1 %vm5051_vm2, %v20129_v58  ;;  %9542 = vmatprep.mubr.f32.mxu0 %v25535_v3 }
 0x5f3   : > { %9631 = vmatprep.mubr.f32.mxu1 %v25535_v3 }
 0x5f5   : > { %20134 = vmatmul.mubr.msk.f32.gmra.mrb[8].mxu0 %vm5051_vm2, %v20130_v60 }
 0x5f6   : > { %20138 = vmatmul.mubr.msk.f32.gmra.mrb[8].mxu1 %vm5051_vm2, %v20130_v60  ;;  %9548 = vmatprep.mubr.f32.mxu0 %v25535_v3 }
 0x5f7   : > { %9637 = vmatprep.mubr.f32.mxu1 %v25535_v3 }
 0x5f9   : > { %20135 = vmatmul.mubr.msk.f32.gmra.mrb[10].mxu0 %vm5051_vm2, %v20131_v63 }
 0x5fa   : > { %20139 = vmatmul.mubr.msk.f32.gmra.mrb[10].mxu1 %vm5051_vm2, %v20131_v63  ;;  %9753 = vmatprep.mubr.f32.mxu0 %v25535_v3  ;;  %v10787_v63 = vpop.permute.xlu1 %10786 }
 0x5fb   : > { %9842 = vmatprep.mubr.f32.mxu1 %v25535_v3 }
 0x5fd   : > { %20144 = vmatmul.mubr.msk.f32.vlgmr.msra.gmra.mrb[4].mxu0 %vm5051_vm2, %v20140_v0 }
 0x5fe   : > { %9913 = vmatpush1.msra.mxu0 %v9898_v8  ;;  %20148 = vmatmul.mubr.msk.f32.vlgmr.msra.gmra.mrb[4].mxu1 %vm5051_vm2, %v20140_v0 }
 0x5ff   : > { %10002 = vmatpush1.msra.mxu1 %v9896_v14  ;;  %10135 = vmatprep.subr.mxu0 %v10120_v15 }
 0x600   : > { %10224 = vmatprep.subr.mxu1 %v10122_v17  ;;  %9759 = vmatprep.mubr.f32.mxu0 %v25535_v3 }
 0x601   : > { %20145 = vmatmul.mubr.msk.f32.gmra.mrb[6].mxu0 %vm5051_vm2, %v20141_v16  ;;  %9848 = vmatprep.mubr.f32.mxu1 %v25535_v3 }
 0x602   : > { %20149 = vmatmul.mubr.msk.f32.gmra.mrb[6].mxu1 %vm5051_vm2, %v20141_v16  ;;  %9765 = vmatprep.mubr.f32.mxu0 %v25535_v3 }
 0x603   : > { %9854 = vmatprep.mubr.f32.mxu1 %v25535_v3 }
 0x605   : > { %20146 = vmatmul.mubr.msk.f32.gmra.mrb[8].mxu0 %vm5051_vm2, %v20142_v18 }
 0x606   : > { %20150 = vmatmul.mubr.msk.f32.gmra.mrb[8].mxu1 %vm5051_vm2, %v20142_v18  ;;  %9771 = vmatprep.mubr.f32.mxu0 %v25535_v3 }
 0x607   : > { %9860 = vmatprep.mubr.f32.mxu1 %v25535_v3 }
 0x609   : > { %20147 = vmatmul.mubr.msk.f32.gmra.mrb[10].mxu0 %vm5051_vm2, %v20143_v25 }
 0x60a   : > { %20151 = vmatmul.mubr.msk.f32.gmra.mrb[10].mxu1 %vm5051_vm2, %v20143_v25  ;;  %9976 = vmatprep.mubr.f32.mxu0 %v25535_v3 }
 0x60b   : > { %10065 = vmatprep.mubr.f32.mxu1 %v25535_v3 }
 0x60d   : > { %20156 = vmatmul.mubr.msk.f32.vlgmr.msra.gmra.mrb[4].mxu0 %vm5051_vm2, %v20152_v21 }
 0x60e   : > { %10136 = vmatpush1.msra.mxu0 %v10121_v27  ;;  %20160 = vmatmul.mubr.msk.f32.vlgmr.msra.gmra.mrb[4].mxu1 %vm5051_vm2, %v20152_v21  ;;  %v10792_v27 = vpop.permute.xlu0 %10791 }
 0x60f   : > { %10225 = vmatpush1.msra.mxu1 %v10119_v28  ;;  %10358 = vmatprep.subr.mxu0 %v10343_v7 }
 0x610   : > { %10447 = vmatprep.subr.mxu1 %v10345_v30  ;;  %9982 = vmatprep.mubr.f32.mxu0 %v25535_v3 }
 0x611   : > { %20157 = vmatmul.mubr.msk.f32.gmra.mrb[6].mxu0 %vm5051_vm2, %v20153_v29  ;;  %10071 = vmatprep.mubr.f32.mxu1 %v25535_v3 }
 0x612   : > { %20161 = vmatmul.mubr.msk.f32.gmra.mrb[6].mxu1 %vm5051_vm2, %v20153_v29  ;;  %9988 = vmatprep.mubr.f32.mxu0 %v25535_v3 }
 0x613   : > { %10077 = vmatprep.mubr.f32.mxu1 %v25535_v3 }
 0x615   : > { %20158 = vmatmul.mubr.msk.f32.gmra.mrb[8].mxu0 %vm5051_vm2, %v20154_v6 }
 0x616   : > { %20162 = vmatmul.mubr.msk.f32.gmra.mrb[8].mxu1 %vm5051_vm2, %v20154_v6  ;;  %9994 = vmatprep.mubr.f32.mxu0 %v25535_v3 }
 0x617   : > { %10083 = vmatprep.mubr.f32.mxu1 %v25535_v3 }
 0x619   : > { %20159 = vmatmul.mubr.msk.f32.gmra.mrb[10].mxu0 %vm5051_vm2, %v20155_v33 }
 0x61a   : > { %20163 = vmatmul.mubr.msk.f32.gmra.mrb[10].mxu1 %vm5051_vm2, %v20155_v33  ;;  %10199 = vmatprep.mubr.f32.mxu0 %v25535_v3 }
 0x61b   : > { %10288 = vmatprep.mubr.f32.mxu1 %v25535_v3 }
 0x61d   : > { %20168 = vmatmul.mubr.msk.f32.vlgmr.msra.gmra.mrb[4].mxu0 %vm5051_vm2, %v20164_v34 }
 0x61e   : > { %10359 = vmatpush1.msra.mxu0 %v10344_v37  ;;  %20172 = vmatmul.mubr.msk.f32.vlgmr.msra.gmra.mrb[4].mxu1 %vm5051_vm2, %v20164_v34 }
 0x61f   : > { %10448 = vmatpush1.msra.mxu1 %v10342_v4  ;;  %10581 = vmatprep.subr.mxu0 %v10566_v38 }
 0x620   : > { %10670 = vmatprep.subr.mxu1 %v10568_v40  ;;  %10205 = vmatprep.mubr.f32.mxu0 %v25535_v3 }
 0x621   : > { %20169 = vmatmul.mubr.msk.f32.gmra.mrb[6].mxu0 %vm5051_vm2, %v20165_v39  ;;  %10294 = vmatprep.mubr.f32.mxu1 %v25535_v3 }
 0x622   : > { %20173 = vmatmul.mubr.msk.f32.gmra.mrb[6].mxu1 %vm5051_vm2, %v20165_v39  ;;  %10211 = vmatprep.mubr.f32.mxu0 %v25535_v3 }
 0x623   : > { %10300 = vmatprep.mubr.f32.mxu1 %v25535_v3 }
 0x625   : > { %20170 = vmatmul.mubr.msk.f32.gmra.mrb[8].mxu0 %vm5051_vm2, %v20166_v41 }
 0x626   : > { %20174 = vmatmul.mubr.msk.f32.gmra.mrb[8].mxu1 %vm5051_vm2, %v20166_v41  ;;  %10217 = vmatprep.mubr.f32.mxu0 %v25535_v3 }
 0x627   : > { %10306 = vmatprep.mubr.f32.mxu1 %v25535_v3 }
 0x629   : > { %20171 = vmatmul.mubr.msk.f32.gmra.mrb[10].mxu0 %vm5051_vm2, %v20167_v42 }
 0x62a   : > { %20175 = vmatmul.mubr.msk.f32.gmra.mrb[10].mxu1 %vm5051_vm2, %v20167_v42  ;;  %10422 = vmatprep.mubr.f32.mxu0 %v25535_v3 }
 0x62b   : > { %10511 = vmatprep.mubr.f32.mxu1 %v25535_v3 }
 0x62d   : > { %20180 = vmatmul.mubr.msk.f32.vlgmr.msra.gmra.mrb[4].mxu0 %vm5051_vm2, %v20176_v43 }
 0x62e   : > { %10582 = vmatpush1.msra.mxu0 %v10567_v44  ;;  %20184 = vmatmul.mubr.msk.f32.vlgmr.msra.gmra.mrb[4].mxu1 %vm5051_vm2, %v20176_v43  ;;  %v10797_v44 = vpop.permute.xlu1 %10796 }
 0x62f   : > { %10671 = vmatpush1.msra.mxu1 %v10565_v45  ;;  %10428 = vmatprep.mubr.f32.mxu0 %v25535_v3 }
 0x630   : > { %10517 = vmatprep.mubr.f32.mxu1 %v25535_v3 }
 0x631   : > { %20181 = vmatmul.mubr.msk.f32.gmra.mrb[6].mxu0 %vm5051_vm2, %v20177_v46 }
 0x632   : > { %20185 = vmatmul.mubr.msk.f32.gmra.mrb[6].mxu1 %vm5051_vm2, %v20177_v46  ;;  %10434 = vmatprep.mubr.f32.mxu0 %v25535_v3 }
 0x633   : > { %10523 = vmatprep.mubr.f32.mxu1 %v25535_v3 }
 0x635   : > { %20182 = vmatmul.mubr.msk.f32.gmra.mrb[8].mxu0 %vm5051_vm2, %v20178_v47 }
 0x636   : > { %20186 = vmatmul.mubr.msk.f32.gmra.mrb[8].mxu1 %vm5051_vm2, %v20178_v47  ;;  %10440 = vmatprep.mubr.f32.mxu0 %v25535_v3 }
 0x637   : > { %10529 = vmatprep.mubr.f32.mxu1 %v25535_v3 }
 0x639   : > { %20183 = vmatmul.mubr.msk.f32.gmra.mrb[10].mxu0 %vm5051_vm2, %v20179_v48 }
 0x63a   : > { %20187 = vmatmul.mubr.msk.f32.gmra.mrb[10].mxu1 %vm5051_vm2, %v20179_v48  ;;  %10645 = vmatprep.mubr.f32.mxu0 %v25535_v3 }
 0x63b   : > { %10734 = vmatprep.mubr.f32.mxu1 %v25535_v3 }
 0x63d   : > { %20192 = vmatmul.mubr.msk.f32.vlgmr.msra.gmra.mrb[4].mxu0 %vm5051_vm2, %v20188_v49 }
 0x63e   : > { %20196 = vmatmul.mubr.msk.f32.vlgmr.msra.gmra.mrb[4].mxu1 %vm5051_vm2, %v20188_v49  ;;  %10651 = vmatprep.mubr.f32.mxu0 %v25535_v3 }
 0x63f   : > { %10740 = vmatprep.mubr.f32.mxu1 %v25535_v3 }
 0x641   : > { %20193 = vmatmul.mubr.msk.f32.gmra.mrb[6].mxu0 %vm5051_vm2, %v20189_v50 }
 0x642   : > { %20197 = vmatmul.mubr.msk.f32.gmra.mrb[6].mxu1 %vm5051_vm2, %v20189_v50  ;;  %10657 = vmatprep.mubr.f32.mxu0 %v25535_v3 }
 0x643   : > { %10746 = vmatprep.mubr.f32.mxu1 %v25535_v3 }
 0x645   : > { %20194 = vmatmul.mubr.msk.f32.gmra.mrb[8].mxu0 %vm5051_vm2, %v20190_v51 }
 0x646   : > { %20198 = vmatmul.mubr.msk.f32.gmra.mrb[8].mxu1 %vm5051_vm2, %v20190_v51  ;;  %10663 = vmatprep.mubr.f32.mxu0 %v25535_v3 }
 0x647   : > { %10752 = vmatprep.mubr.f32.mxu1 %v25535_v3 }
 0x649   : > { %20195 = vmatmul.mubr.msk.f32.gmra.mrb[10].mxu0 %vm5051_vm2, %v20191_v52 }
 0x64a   : > { %20199 = vmatmul.mubr.msk.f32.gmra.mrb[10].mxu1 %vm5051_vm2, %v20191_v52 }
 0x710   : > { %v10647_v54 = vpop.f32.mrb[4].mxu0 }
 0x711   : > { %v10799_v55 = vadd.f32 %v10782_v53, %v10647_v54  ;;  %v10649_v56 = vpop.f32.mrb[5].mxu0  ;;  %v10736_v57 = vpop.f32.mrb[4].mxu1 }
 0x712   : > { %v10800_v58 = vadd.f32 %v10782_v53, %v10649_v56  ;;  %v10801_v59 = vadd.f32 %v10782_v53, %v10736_v57  ;;  %v10738_v60 = vpop.f32.mrb[5].mxu1 }
 0x713   : > { %v23406_v61 = vmul.f32 %v10799_v55, %v22256_v19  ;;  %v10802_v62 = vadd.f32 %v10782_v53, %v10738_v60 }
 0x714   : > { %v23409_v0 = vmul.f32 %v10800_v58, %v22260_v22  ;;  %v10653_v24 = vpop.f32.mrb[6].mxu0  ;;  %v23414_v8 = vmul.f32 %v10801_v59, %v22264_v12 }
 0x715   : > { %v10851_v11 = vmul.f32 %v23406_v61, %v23406_v61  ;;  %v23417_v14 = vmul.f32 %v10802_v62, %v22268_v26  ;;  %v10803_v15 = vadd.f32 %v10787_v63, %v10653_v24  ;;  %v10655_v16 = vpop.f32.mrb[7].mxu0  ;;  %v10742_v17 = vpop.f32.mrb[6].mxu1 }
 0x716   : > { %v10831_v18 = vadd.f32 %v23409_v0, %v23406_v61  ;;  %v10852_v20 = vmul.f32 %v23409_v0, %v23409_v0  ;;  %v10804_v10 = vadd.f32 %v10787_v63, %v10655_v16  ;;  %v10744_v25 = vpop.f32.mrb[7].mxu1  ;;  %v10805_v23 = vadd.f32 %v10787_v63, %v10742_v17 }
 0x717   : > { %v23424_v21 = vmul.f32 %v10803_v15, %v22256_v19  ;;  %v10806_v9 = vadd.f32 %v10787_v63, %v10744_v25  ;;  %v10853_v6 = vmul.f32 %v23414_v8, %v23414_v8  ;;  %v10854_v35 = vmul.f32 %v23417_v14, %v23417_v14 }
 0x718   : > { %v23427_v28 = vmul.f32 %v10804_v10, %v22260_v22  ;;  %v10659_v7 = vpop.f32.mrb[8].mxu0  ;;  %v10832_v29 = vadd.f32 %v10831_v18, %v23414_v8  ;;  %v10867_v30 = vadd.f32 %v10852_v20, %v10851_v11  ;;  %v23433_v31 = vmul.f32 %v10805_v23, %v22264_v12 }
 0x719   : > { %v10807_v32 = vadd.f32 %v10792_v27, %v10659_v7  ;;  %v10661_v33 = vpop.f32.mrb[9].mxu0  ;;  %v10748_v34 = vpop.f32.mrb[8].mxu1  ;;  %v10855_v36 = vmul.f32 %v23424_v21, %v23424_v21  ;;  %v23442_v40 = vmul.f32 %v10806_v9, %v22268_v26 }
 0x71a   : > { %v10836_v37 = vadd.f32 %v23427_v28, %v23424_v21  ;;  %v10808_v4 = vadd.f32 %v10792_v27, %v10661_v33  ;;  %v10809_v38 = vadd.f32 %v10792_v27, %v10748_v34  ;;  %v10750_v39 = vpop.f32.mrb[9].mxu1  ;;  %v10833_v43 = vadd.f32 %v10832_v29, %v23417_v14 }
 0x71b   : > { %v23445_v41 = vmul.f32 %v10807_v32, %v22256_v19  ;;  %v10810_v42 = vadd.f32 %v10792_v27, %v10750_v39  ;;  %v10856_v45 = vmul.f32 %v23427_v28, %v23427_v28  ;;  %v10868_v48 = vadd.f32 %v10867_v30, %v10853_v6 }
 0x71c   : > { %v23451_v46 = vmul.f32 %v10808_v4, %v22260_v22  ;;  %v10665_v47 = vpop.f32.mrb[10].mxu0  ;;  %v10837_v49 = vadd.f32 %v10836_v37, %v23433_v31  ;;  %v10857_v50 = vmul.f32 %v23433_v31, %v23433_v31  ;;  %v23459_v52 = vmul.f32 %v10809_v38, %v22264_v12  ;;  %10834 = vadd.xlane.f32.xlu0 %v10833_v43 }
 0x71d   : > { %v10859_v51 = vmul.f32 %v23445_v41, %v23445_v41  ;;  %v10811_v53 = vadd.f32 %v10797_v44, %v10665_v47  ;;  %v10667_v54 = vpop.f32.mrb[11].mxu0  ;;  %v10754_v55 = vpop.f32.mrb[10].mxu1  ;;  %v23466_v58 = vmul.f32 %v10810_v42, %v22268_v26  ;;  %v10869_v11 = vadd.f32 %v10868_v48, %v10854_v35  ;;  %v10887_v47 = vld [vmem:[%s25659_s11] sm:$0xff]  ;;  %v11165_v48 = vld [vmem:[%s25657_s9 + $0x18] sm:$0xff] }
 0x71e   : > { %v10841_v56 = vadd.f32 %v23451_v46, %v23445_v41  ;;  %v10860_v57 = vmul.f32 %v23451_v46, %v23451_v46  ;;  %v10812_v59 = vadd.f32 %v10797_v44, %v10667_v54  ;;  %v10756_v60 = vpop.f32.mrb[11].mxu1  ;;  %v10813_v63 = vadd.f32 %v10797_v44, %v10754_v55  ;;  %20402 = vmatprep.mubr.msk.f32.mxu0 %vm10891_vm12, %v10887_v47 }
 0x71f   : > { %v23469_v62 = vmul.f32 %v10811_v53, %v22256_v19  ;;  %v10814_v24 = vadd.f32 %v10797_v44, %v10756_v60  ;;  %v10838_v16 = vadd.f32 %v10837_v49, %v23442_v40  ;;  %v10872_v17 = vadd.f32 %v10856_v45, %v10855_v36  ;;  %v11163_v44 = vld [vmem:[%s25657_s9 + $0x8] sm:$0xff]  ;;  %20416 = vmatprep.mubr.msk.f32.mxu1 %vm10891_vm12, %v10887_v47  ;;  %v11162_v49 = vld [vmem:[%s25657_s9] sm:$0xff] }
 0x720   : > { %v23472_v15 = vmul.f32 %v10812_v59, %v22260_v22  ;;  %v10842_v18 = vadd.f32 %v10841_v56, %v23459_v52  ;;  %v23479_v10 = vmul.f32 %v10813_v63, %v22264_v12  ;;  %10870 = vadd.xlane.f32.xlu0 %v10869_v11  ;;  %v10858_v25 = vmul.f32 %v23442_v40, %v23442_v40  ;;  %v11203_v45 = vld [vmem:[%s25658_s10 + $0x8] sm:$0xff] }
 0x721   : > { %v10863_v20 = vmul.f32 %v23469_v62, %v23469_v62  ;;  %10839 = vadd.xlane.f32.xlu1 %v10838_v16  ;;  %v10873_v27 = vadd.f32 %v10872_v17, %v10857_v50  ;;  %v10861_v29 = vmul.f32 %v23459_v52, %v23459_v52  ;;  %v10877_v30 = vadd.f32 %v10860_v57, %v10859_v51  ;;  %v11202_v50 = vld [vmem:[%s25658_s10] sm:$0xff]  ;;  %v11164_v51 = vld [vmem:[%s25657_s9 + $0x10] sm:$0xff]  ;;  %v10888_v17 = vld [vmem:[%s25659_s11 + $0x8] sm:$0xff] }
 0x722   : > { %v10846_v23 = vadd.f32 %v23472_v15, %v23469_v62  ;;  %v10864_v9 = vmul.f32 %v23472_v15, %v23472_v15  ;;  %v10843_v7 = vadd.f32 %v10842_v18, %v23466_v58  ;;  %v23491_v6 = vmul.f32 %v10814_v24, %v22268_v26 }
 0x723   : > { %v10874_v32 = vadd.f32 %v10873_v27, %v10858_v25  ;;  %v10878_v35 = vadd.f32 %v10877_v30, %v10861_v29  ;;  %v10865_v36 = vmul.f32 %v23479_v10, %v23479_v10  ;;  %v10862_v37 = vmul.f32 %v23466_v58, %v23466_v58  ;;  %v10890_v25 = vld [vmem:[%s25659_s11 + $0x18] sm:$0xff] }
 0x724   : > { %v10847_v33 = vadd.f32 %v10846_v23, %v23479_v10  ;;  %v10882_v34 = vadd.f32 %v10864_v9, %v10863_v20  ;;  %v10866_v42 = vmul.f32 %v23491_v6, %v23491_v6  ;;  %v10889_v20 = vld [vmem:[%s25659_s11 + $0x10] sm:$0xff] }
 0x725   : > { %10875 = vadd.xlane.f32.xlu0 %v10874_v32  ;;  %10844 = vadd.xlane.f32.xlu1 %v10843_v7  ;;  %v10879_v38 = vadd.f32 %v10878_v35, %v10862_v37 }
 0x726   : > { %v10848_v4 = vadd.f32 %v10847_v33, %v23491_v6  ;;  %v10883_v39 = vadd.f32 %v10882_v34, %v10865_v36 }
 0x728   : > { %v10884_v43 = vadd.f32 %v10883_v39, %v10866_v42 }
 0x729   : > { %10880 = vadd.xlane.f32.xlu1 %v10879_v38  ;;  %10849 = vadd.xlane.f32.xlu0 %v10848_v4 }
 0x72d   : > { %10885 = vadd.xlane.f32.xlu0 %v10884_v43 }
 0x73a   : > { %11173 = vperm.xlu1 %21365, %v11163_v44  }
 0x73e   : > { %11213 = vperm.xlu1 %21365, %v11203_v45  }
 0x742   : > { %11183 = vperm.xlu1 %21365, %v11165_v48  }
 0x743   : > { %11168 = vperm.xlu0 %21364, %v11162_v49  }
 0x747   : > { %11208 = vperm.xlu0 %21364, %v11202_v50  }
 0x74b   : > { %11178 = vperm.xlu0 %21364, %v11164_v51  }
 0x7a9   : > { %v10835_v53 = vpop.xlane.xlu0 %10834 }
 0x7ad   : > { %v10871_v54 = vpop.xlane.xlu0 %10870 }
 0x7ae   : > { %v10840_v55 = vpop.xlane.xlu1 %10839 }
 0x7af   : > { %v20432_v56 = vpack.c.bf16 %v10840_v55, %v10835_v53  ;;  %v11204_v53 = vld [vmem:[%s25658_s10 + $0x10] sm:$0xff]  ;;  %v15336_v55 = vld [vmem:[%s25660_s13] sm:$0xff]  ;;  %s25764_s13 = sld [smem:[#allocation48_spill]] }
 0x7b1   : > { %20433 = vmatprep.subr.bf16.mxu0 %v20432_v56 }
 0x7b2   : > { %v10876_v57 = vpop.xlane.xlu0 %10875  ;;  %20435 = vmatpush3.bf16.msra.mxu0 %v20432_v56  ;;  %v10845_v60 = vpop.xlane.xlu1 %10844 }
 0x7b3   : > { %v20440_v59 = vpack.c.bf16 %v10876_v57, %v10871_v54  ;;  %v11205_v54 = vld [vmem:[%s25658_s10 + $0x18] sm:$0xff] }
 0x7b5   : > { %20441 = vmatprep.subr.bf16.mxu1 %v20440_v59 }
 0x7b6   : > { %20443 = vmatpush3.bf16.msra.mxu1 %v20440_v59  ;;  %v10850_v63 = vpop.xlane.xlu0 %10849  ;;  %v10881_v11 = vpop.xlane.xlu1 %10880 }
 0x7b7   : > { %v20436_v24 = vpack.c.bf16 %v10850_v63, %v10845_v60 }
 0x7b9   : > { %20437 = vmatprep.subr.bf16.mxu0 %v20436_v24 }
 0x7ba   : > { %20439 = vmatpush3.bf16.msra.mxu0 %v20436_v24  ;;  %v10886_v16 = vpop.xlane.xlu0 %10885  ;;  %v11174_v56 = vpop.permute.xlu1 %11173 }
 0x7bb   : > { %v20444_v18 = vpack.c.bf16 %v10886_v16, %v10881_v11 }
 0x7bd   : > { %20403 = vmatmul.mubr.msk.f32.vlgmr.msra.gmra.mrb[12].mxu0 %vm10891_vm12, %v10888_v17  ;;  %20445 = vmatprep.subr.bf16.mxu1 %v20444_v18 }
 0x7be   : > { %20447 = vmatpush3.bf16.msra.mxu1 %v20444_v18  ;;  %20405 = vmatprep.mubr.msk.f32.mxu0 %vm10891_vm12, %v10889_v20  ;;  %v11214_v59 = vpop.permute.xlu1 %11213 }
 0x7c1   : > { %20406 = vmatmul.mubr.msk.f32.gmra.mrb[14].mxu0 %vm10891_vm12, %v10890_v25  ;;  %20417 = vmatmul.mubr.msk.f32.vlgmr.msra.gmra.mrb[12].mxu1 %vm10891_vm12, %v10888_v17 }
 0x7c2   : > { %20419 = vmatprep.mubr.msk.f32.mxu1 %vm10891_vm12, %v10889_v20  ;;  %11342 = vmatprep.mubr.f32.mxu0 %v25535_v3  ;;  %v11169_v57 = vpop.permute.xlu0 %11168  ;;  %v23550_v63 = vpop.permute.xlu1 %11183 }
 0x7c5   : > { %20420 = vmatmul.mubr.msk.f32.gmra.mrb[14].mxu1 %vm10891_vm12, %v10890_v25 }
 0x7c6   : > { %11413 = vmatprep.mubr.f32.mxu1 %v25535_v3  ;;  %v11209_v60 = vpop.permute.xlu0 %11208 }
 0x7ca   : > { %v23552_v11 = vpop.permute.xlu0 %11178 }
 0x890   : > { %v20404_v23 = vpop.f32.mrb[12].mxu0 }
 0x891   : > { %v11075_v9 = vmul.f32 %v20404_v23, %v20404_v23  ;;  %11089 = vperm.xlu0 %21364, %v20404_v23   ;;  %v10970_v27 = vpop.f32.mrb[13].mxu0 }
 0x892   : > { %v11074_v7 = vmul.f32 %v10970_v27, %v10970_v27  ;;  %11084 = vperm.xlu1 %21365, %v10970_v27  }
 0x894   : > { %v20407_v29 = vpop.f32.mrb[14].mxu0  ;;  %v20418_v30 = vpop.f32.mrb[12].mxu1 }
 0x895   : > { %v11077_v32 = vmul.f32 %v20407_v29, %v20407_v29  ;;  %v11079_v33 = vsub.f32 %v20418_v30, %v11075_v9  ;;  %v10980_v34 = vpop.f32.mrb[15].mxu0  ;;  %v11055_v35 = vpop.f32.mrb[13].mxu1 }
 0x896   : > { %v11076_v36 = vmul.f32 %v10980_v34, %v10980_v34  ;;  %11099 = vperm.xlu1 %21365, %v20407_v29   ;;  %11094 = vperm.xlu0 %21364, %v10980_v34   ;;  %v11078_v37 = vsub.f32 %v11055_v35, %v11074_v7 }
 0x897   : > { %v11119_v4 = vadd.f32 1e-05, %v11079_v33 }
 0x898   : > { %v20421_v38 = vpop.f32.mrb[14].mxu1  ;;  %v11118_v39 = vadd.f32 1e-05, %v11078_v37 }
 0x899   : > { %21368 = vrsqrt.f32 %v11119_v4  ;;  %v11081_v42 = vsub.f32 %v20421_v38, %v11077_v32  ;;  %v11065_v43 = vpop.f32.mrb[15].mxu1 }
 0x89a   : > { %v11080_v44 = vsub.f32 %v11065_v43, %v11076_v36  ;;  %21370 = vrsqrt.f32 %v11118_v39 }
 0x89b   : > { %v11121_v45 = vadd.f32 1e-05, %v11081_v42 }
 0x89c   : > { %v11120_v47 = vadd.f32 1e-05, %v11080_v44 }
 0x89e   : > { %21372 = vrsqrt.f32 %v11120_v47 }
 0x89f   : > { %21374 = vrsqrt.f32 %v11121_v45 }
 0x8a3   : > { %v21369_v48 = vpop.eup %21368 }
 0x8a4   : > { %11133 = vperm.xlu1 %21365, %v21369_v48   ;;  %v21371_v49 = vpop.eup %21370 }
 0x8a8   : > { %v21373_v50 = vpop.eup %21372  ;;  %11128 = vperm.xlu1 %21365, %v21371_v49  }
 0x8a9   : > { %v21375_v51 = vpop.eup %21374  ;;  %11138 = vperm.xlu0 %21364, %v21373_v50  }
 0x8ac   : > { %11143 = vperm.xlu1 %21365, %v21375_v51  }
 0x8ad   : > { %11218 = vperm.xlu0 %21364, %v11204_v53  }
 0x8b0   : > { %11223 = vperm.xlu1 %21365, %v11205_v54  }
 0x8b4   : > { %15339 = vperm.xlu1 %21365, %v15336_v55  }
 0x910   : > { %v11090_v16 = vpop.permute.xlu0 %11089 }
 0x911   : > { %v11085_v24 = vpop.permute.xlu1 %11084  ;;  %v11106_v18 = vsub.f32 %v23424_v21, %v11090_v16  ;;  %v11107_v20 = vsub.f32 %v23427_v28, %v11090_v16  ;;  %v11108_v25 = vsub.f32 %v23433_v31, %v11090_v16  ;;  %v11109_v23 = vsub.f32 %v23442_v40, %v11090_v16 }
 0x912   : > { %v11102_v9 = vsub.f32 %v23406_v61, %v11085_v24  ;;  %v11103_v27 = vsub.f32 %v23409_v0, %v11085_v24  ;;  %v11104_v7 = vsub.f32 %v23414_v8, %v11085_v24  ;;  %v11105_v29 = vsub.f32 %v23417_v14, %v11085_v24 }
 0x915   : > { %v23554_v17 = vpop.permute.xlu1 %11099  ;;  %v11095_v32 = vpop.permute.xlu0 %11094 }
 0x916   : > { %v11114_v28 = vsub.f32 %v23469_v62, %v23554_v17  ;;  %v11115_v31 = vsub.f32 %v23472_v15, %v23554_v17  ;;  %v11116_v61 = vsub.f32 %v23479_v10, %v23554_v17  ;;  %v11117_v0 = vsub.f32 %v23491_v6, %v23554_v17 }
 0x917   : > { %v11110_v37 = vsub.f32 %v23445_v41, %v11095_v32  ;;  %v11111_v4 = vsub.f32 %v23451_v46, %v11095_v32  ;;  %v11112_v38 = vsub.f32 %v23459_v52, %v11095_v32  ;;  %v11113_v62 = vsub.f32 %v23466_v58, %v11095_v32 }
 0x923   : > { %v11134_v30 = vpop.permute.xlu1 %11133 }
 0x924   : > { %v11150_v33 = vmul.f32 %v11134_v30, %v11106_v18  ;;  %v11151_v34 = vmul.f32 %v11134_v30, %v11107_v20  ;;  %v11152_v35 = vmul.f32 %v11134_v30, %v11108_v25  ;;  %v11153_v21 = vmul.f32 %v11134_v30, %v11109_v23 }
 0x926   : > { %v11190_v8 = vmul.f32 %v11174_v56, %v11150_v33  ;;  %v11191_v14 = vmul.f32 %v11174_v56, %v11151_v34  ;;  %v11192_v40 = vmul.f32 %v11174_v56, %v11152_v35  ;;  %v11193_v36 = vmul.f32 %v11174_v56, %v11153_v21 }
 0x927   : > { %v11129_v39 = vpop.permute.xlu1 %11128 }
 0x928   : > { %v11230_v15 = vadd.f32 %v11214_v59, %v11190_v8  ;;  %v11231_v42 = vadd.f32 %v11214_v59, %v11191_v14  ;;  %v11232_v43 = vadd.f32 %v11214_v59, %v11192_v40  ;;  %v11233_v10 = vadd.f32 %v11214_v59, %v11193_v36  ;;  %v11139_v52 = vpop.permute.xlu0 %11138 }
 0x929   : > { %v11146_v44 = vmul.f32 %v11129_v39, %v11102_v9  ;;  %v11147_v45 = vmul.f32 %v11129_v39, %v11103_v27  ;;  %v11148_v6 = vmul.f32 %v11129_v39, %v11104_v7  ;;  %v11149_v47 = vmul.f32 %v11129_v39, %v11105_v29 }
 0x92a   : > { %v11246_v48 = vmax.f32 %v11230_v15, 0.0  ;;  %v11247_v49 = vmax.f32 %v11231_v42, 0.0  ;;  %v11248_v50 = vmax.f32 %v11232_v43, 0.0  ;;  %v11249_v51 = vmax.f32 %v11233_v10, 0.0 }
 0x92b   : > { %v11186_v41 = vmul.f32 %v11169_v57, %v11146_v44  ;;  %v11187_v53 = vmul.f32 %v11169_v57, %v11147_v45  ;;  %v11188_v46 = vmul.f32 %v11169_v57, %v11148_v6  ;;  %v11189_v54 = vmul.f32 %v11169_v57, %v11149_v47  ;;  %v11144_v20 = vpop.permute.xlu1 %11143 }
 0x92c   : > { %v11262_v58 = vmul.f32 %v11246_v48, %v22256_v19  ;;  %v11263_v55 = vmul.f32 %v11247_v49, %v22260_v22  ;;  %v11264_v56 = vmul.f32 %v11248_v50, %v22264_v12  ;;  %v11265_v59 = vmul.f32 %v11249_v51, %v22268_v26  ;;  %v11219_v40 = vpop.permute.xlu0 %11218 }
 0x92d   : > { %v11226_v24 = vadd.f32 %v11209_v60, %v11186_v41  ;;  %v11227_v16 = vadd.f32 %v11209_v60, %v11187_v53  ;;  %v11228_v17 = vadd.f32 %v11209_v60, %v11188_v46  ;;  %v11229_v18 = vadd.f32 %v11209_v60, %v11189_v54 }
 0x92e   : > { %v11154_v25 = vmul.f32 %v11139_v52, %v11110_v37  ;;  %v11155_v23 = vmul.f32 %v11139_v52, %v11111_v4  ;;  %v11156_v9 = vmul.f32 %v11139_v52, %v11112_v38  ;;  %v11157_v27 = vmul.f32 %v11139_v52, %v11113_v62 }
 0x92f   : > { %v11242_v7 = vmax.f32 %v11226_v24, 0.0  ;;  %v11243_v57 = vmax.f32 %v11227_v16, 0.0  ;;  %v11244_v29 = vmax.f32 %v11228_v17, 0.0  ;;  %v11245_v30 = vmax.f32 %v11229_v18, 0.0  ;;  %v11224_v43 = vpop.permute.xlu1 %11223 }
 0x930   : > { %v11158_v32 = vmul.f32 %v11144_v20, %v11114_v28  ;;  %v11159_v33 = vmul.f32 %v11144_v20, %v11115_v31  ;;  %v11160_v34 = vmul.f32 %v11144_v20, %v11116_v61  ;;  %v11161_v35 = vmul.f32 %v11144_v20, %v11117_v0 }
 0x931   : > { %v11258_v21 = vmul.f32 %v11242_v7, %v22256_v19  ;;  %v11259_v8 = vmul.f32 %v11243_v57, %v22260_v22  ;;  %v11260_v14 = vmul.f32 %v11244_v29, %v22264_v12  ;;  %v11261_v60 = vmul.f32 %v11245_v30, %v22268_v26  ;;  %v20210_v7 = vld [vmem:[%s25661_s12 + $0x8] sm:$0xff]  ;;  %v20213_v57 = vld [vmem:[%s25661_s12 + $0x10] sm:$0xff]  ;;  %v20216_v29 = vld [vmem:[%s25661_s12 + $0x18] sm:$0xff] }
 0x932   : > { %v11194_v36 = vmul.f32 %v23552_v11, %v11154_v25  ;;  %v11195_v37 = vmul.f32 %v23552_v11, %v11155_v23  ;;  %v11196_v4 = vmul.f32 %v23552_v11, %v11156_v9  ;;  %v11197_v28 = vmul.f32 %v23552_v11, %v11157_v27  ;;  %v11274_v27 = vld [vmem:[%s25661_s12] sm:$0xff] }
 0x933   : > { %v23588_v31 = vpack.c.bf16 %v11263_v55, %v11259_v8  ;;  %v23590_v61 = vpack.c.bf16 %v11262_v58, %v11258_v21  ;;  %v23592_v0 = vpack.c.bf16 %v11265_v59, %v11261_v60  ;;  %v23594_v38 = vpack.c.bf16 %v11264_v56, %v11260_v14  ;;  %v20219_v30 = vld [vmem:[%s25661_s12 + $0x20] sm:$0xff]  ;;  %v20234_v21 = vld [vmem:[%s25661_s12 + $0x48] sm:$0xff]  ;;  %v20237_v8 = vld [vmem:[%s25661_s12 + $0x50] sm:$0xff] }
 0x934   : > { %v11234_v62 = vadd.f32 %v11219_v40, %v11194_v36  ;;  %v11235_v39 = vadd.f32 %v11219_v40, %v11195_v37  ;;  %v11236_v15 = vadd.f32 %v11219_v40, %v11196_v4  ;;  %v11237_v42 = vadd.f32 %v11219_v40, %v11197_v28  ;;  %v20240_v14 = vld [vmem:[%s25661_s12 + $0x58] sm:$0xff]  ;;  %v20243_v60 = vld [vmem:[%s25661_s12 + $0x60] sm:$0xff]  ;;  %v20246_v40 = vld [vmem:[%s25661_s12 + $0x68] sm:$0xff] }
 0x935   : > { %v11198_v10 = vmul.f32 %v23550_v63, %v11158_v32  ;;  %v11199_v44 = vmul.f32 %v23550_v63, %v11159_v33  ;;  %v11200_v45 = vmul.f32 %v23550_v63, %v11160_v34  ;;  %v11201_v11 = vmul.f32 %v23550_v63, %v11161_v35  ;;  %20449 = vmatprep.subr.bf16.mxu0 %v23588_v31  ;;  %v20222_v32 = vld [vmem:[%s25661_s12 + $0x28] sm:$0xff]  ;;  %v20225_v33 = vld [vmem:[%s25661_s12 + $0x30] sm:$0xff]  ;;  %v20228_v34 = vld [vmem:[%s25661_s12 + $0x38] sm:$0xff] }
 0x936   : > { %v11250_v6 = vmax.f32 %v11234_v62, 0.0  ;;  %v11251_v47 = vmax.f32 %v11235_v39, 0.0  ;;  %v11252_v48 = vmax.f32 %v11236_v15, 0.0  ;;  %v11253_v49 = vmax.f32 %v11237_v42, 0.0  ;;  %20457 = vmatprep.subr.bf16.mxu1 %v23592_v0  ;;  %20451 = vmatpush1.bf16.msra.mxu0 %v23590_v61  ;;  %v20231_v35 = vld [vmem:[%s25661_s12 + $0x40] sm:$0xff]  ;;  %v20249_v36 = vld [vmem:[%s25661_s12 + $0x70] sm:$0xff] }
 0x937   : > { %v11238_v50 = vadd.f32 %v11224_v43, %v11198_v10  ;;  %v11239_v51 = vadd.f32 %v11224_v43, %v11199_v44  ;;  %v11240_v41 = vadd.f32 %v11224_v43, %v11200_v45  ;;  %v11241_v53 = vadd.f32 %v11224_v43, %v11201_v11  ;;  %20459 = vmatpush1.bf16.msra.mxu1 %v23594_v38  ;;  %v20252_v37 = vld [vmem:[%s25661_s12 + $0x78] sm:$0xff]  ;;  %v20255_v4 = vld [vmem:[%s25661_s12 + $0x80] sm:$0xff]  ;;  %v20258_v28 = vld [vmem:[%s25661_s12 + $0x88] sm:$0xff] }
 0x938   : > { %v11266_v58 = vmul.f32 %v11250_v6, %v22256_v19  ;;  %v11267_v55 = vmul.f32 %v11251_v47, %v22260_v22  ;;  %v11268_v56 = vmul.f32 %v11252_v48, %v22264_v12  ;;  %v11269_v59 = vmul.f32 %v11253_v49, %v22268_v26  ;;  %v20261_v62 = vld [vmem:[%s25661_s12 + $0x90] sm:$0xff]  ;;  %v20264_v39 = vld [vmem:[%s25661_s12 + $0x98] sm:$0xff]  ;;  %v20267_v15 = vld [vmem:[%s25661_s12 + $0xa0] sm:$0xff] }
 0x939   : > { %v11254_v46 = vmax.f32 %v11238_v50, 0.0  ;;  %v11255_v54 = vmax.f32 %v11239_v51, 0.0  ;;  %v11256_v52 = vmax.f32 %v11240_v41, 0.0  ;;  %v11257_v63 = vmax.f32 %v11241_v53, 0.0  ;;  %v20270_v42 = vld [vmem:[%s25661_s12 + $0xa8] sm:$0xff]  ;;  %v20273_v43 = vld [vmem:[%s25661_s12 + $0xb0] sm:$0xff] }
 0x93a   : > { %v20276_v10 = vld [vmem:[%s25661_s12 + $0xb8] sm:$0xff] }
 0x93b   : > { %v11270_v24 = vmul.f32 %v11254_v46, %v22256_v19  ;;  %v11271_v16 = vmul.f32 %v11255_v54, %v22260_v22  ;;  %v11272_v17 = vmul.f32 %v11256_v52, %v22264_v12  ;;  %v11273_v18 = vmul.f32 %v11257_v63, %v22268_v26 }
 0x93d   : > { %v23612_v20 = vpack.c.bf16 %v11271_v16, %v11267_v55  ;;  %v23614_v25 = vpack.c.bf16 %v11270_v24, %v11266_v58  ;;  %v23616_v23 = vpack.c.bf16 %v11273_v18, %v11269_v59  ;;  %v23618_v9 = vpack.c.bf16 %v11272_v17, %v11268_v56 }
 0x93f   : > { %20453 = vmatprep.subr.bf16.mxu0 %v23612_v20  ;;  %20461 = vmatprep.subr.bf16.mxu1 %v23616_v23 }
 0x940   : > { %20455 = vmatpush1.bf16.msra.mxu0 %v23614_v25  ;;  %20463 = vmatpush1.bf16.msra.mxu1 %v23618_v9 }
 0x941   : > { %20465 = vmatprep.subr.bf16.mxu0 %v23588_v31  ;;  %20473 = vmatprep.subr.bf16.mxu1 %v23592_v0 }
 0x943   : > { %20208 = vmatmul.mubr.msk.f32.vlgmr.msra.gmra.mrb[16].mxu0 %vm10891_vm12, %v11274_v27  ;;  %20209 = vmatmul.mubr.msk.f32.vlgmr.msra.gmra.mrb[16].mxu1 %vm10891_vm12, %v11274_v27 }
 0x944   : > { %20467 = vmatpush1.bf16.msra.mxu0 %v23590_v61  ;;  %20475 = vmatpush1.bf16.msra.mxu1 %v23594_v38 }
 0x945   : > { %20469 = vmatprep.subr.bf16.mxu0 %v23612_v20  ;;  %20477 = vmatprep.subr.bf16.mxu1 %v23616_v23 }
 0x946   : > { %11505 = vmatprep.mubr.f32.mxu0 %v25535_v3  ;;  %11576 = vmatprep.mubr.f32.mxu1 %v25535_v3 }
 0x948   : > { %20471 = vmatpush1.bf16.msra.mxu0 %v23614_v25  ;;  %20479 = vmatpush1.bf16.msra.mxu1 %v23618_v9 }
 0x949   : > { %20481 = vmatprep.subr.bf16.mxu0 %v23588_v31  ;;  %20489 = vmatprep.subr.bf16.mxu1 %v23592_v0 }
 0x94b   : > { %20211 = vmatmul.mubr.msk.f32.vlgmr.msra.gmra.mrb[18].mxu0 %vm10891_vm12, %v20210_v7  ;;  %20212 = vmatmul.mubr.msk.f32.vlgmr.msra.gmra.mrb[18].mxu1 %vm10891_vm12, %v20210_v7 }
 0x94c   : > { %20483 = vmatpush1.bf16.msra.mxu0 %v23590_v61  ;;  %20491 = vmatpush1.bf16.msra.mxu1 %v23594_v38 }
 0x94d   : > { %20485 = vmatprep.subr.bf16.mxu0 %v23612_v20  ;;  %20493 = vmatprep.subr.bf16.mxu1 %v23616_v23 }
 0x94e   : > { %11668 = vmatprep.mubr.f32.mxu0 %v25535_v3  ;;  %11739 = vmatprep.mubr.f32.mxu1 %v25535_v3 }
 0x950   : > { %20487 = vmatpush1.bf16.msra.mxu0 %v23614_v25  ;;  %20495 = vmatpush1.bf16.msra.mxu1 %v23618_v9 }
 0x951   : > { %20497 = vmatprep.subr.bf16.mxu0 %v23588_v31  ;;  %20505 = vmatprep.subr.bf16.mxu1 %v23592_v0 }
 0x953   : > { %20214 = vmatmul.mubr.msk.f32.vlgmr.msra.gmra.mrb[20].mxu0 %vm10891_vm12, %v20213_v57  ;;  %20215 = vmatmul.mubr.msk.f32.vlgmr.msra.gmra.mrb[20].mxu1 %vm10891_vm12, %v20213_v57 }
 0x954   : > { %20499 = vmatpush1.bf16.msra.mxu0 %v23590_v61  ;;  %20507 = vmatpush1.bf16.msra.mxu1 %v23594_v38 }
 0x955   : > { %20501 = vmatprep.subr.bf16.mxu0 %v23612_v20  ;;  %20509 = vmatprep.subr.bf16.mxu1 %v23616_v23 }
 0x956   : > { %11831 = vmatprep.mubr.f32.mxu0 %v25535_v3  ;;  %11902 = vmatprep.mubr.f32.mxu1 %v25535_v3 }
 0x958   : > { %20503 = vmatpush1.bf16.msra.mxu0 %v23614_v25  ;;  %20511 = vmatpush1.bf16.msra.mxu1 %v23618_v9 }
 0x959   : > { %20513 = vmatprep.subr.bf16.mxu0 %v23588_v31  ;;  %20521 = vmatprep.subr.bf16.mxu1 %v23592_v0 }
 0x95b   : > { %20217 = vmatmul.mubr.msk.f32.vlgmr.msra.gmra.mrb[22].mxu0 %vm10891_vm12, %v20216_v29  ;;  %20218 = vmatmul.mubr.msk.f32.vlgmr.msra.gmra.mrb[22].mxu1 %vm10891_vm12, %v20216_v29 }
 0x95c   : > { %20515 = vmatpush1.bf16.msra.mxu0 %v23590_v61  ;;  %20523 = vmatpush1.bf16.msra.mxu1 %v23594_v38 }
 0x95d   : > { %20517 = vmatprep.subr.bf16.mxu0 %v23612_v20  ;;  %20525 = vmatprep.subr.bf16.mxu1 %v23616_v23 }
 0x95e   : > { %11994 = vmatprep.mubr.f32.mxu0 %v25535_v3  ;;  %12065 = vmatprep.mubr.f32.mxu1 %v25535_v3 }
 0x960   : > { %20519 = vmatpush1.bf16.msra.mxu0 %v23614_v25  ;;  %20527 = vmatpush1.bf16.msra.mxu1 %v23618_v9 }
 0x961   : > { %20529 = vmatprep.subr.bf16.mxu0 %v23588_v31  ;;  %20537 = vmatprep.subr.bf16.mxu1 %v23592_v0 }
 0x963   : > { %20220 = vmatmul.mubr.msk.f32.vlgmr.msra.gmra.mrb[24].mxu0 %vm10891_vm12, %v20219_v30  ;;  %20221 = vmatmul.mubr.msk.f32.vlgmr.msra.gmra.mrb[24].mxu1 %vm10891_vm12, %v20219_v30 }
 0x964   : > { %20531 = vmatpush1.bf16.msra.mxu0 %v23590_v61  ;;  %20539 = vmatpush1.bf16.msra.mxu1 %v23594_v38 }
 0x965   : > { %20533 = vmatprep.subr.bf16.mxu0 %v23612_v20  ;;  %20541 = vmatprep.subr.bf16.mxu1 %v23616_v23 }
 0x966   : > { %12157 = vmatprep.mubr.f32.mxu0 %v25535_v3  ;;  %12228 = vmatprep.mubr.f32.mxu1 %v25535_v3 }
 0x968   : > { %20535 = vmatpush1.bf16.msra.mxu0 %v23614_v25  ;;  %20543 = vmatpush1.bf16.msra.mxu1 %v23618_v9 }
 0x969   : > { %20545 = vmatprep.subr.bf16.mxu0 %v23588_v31  ;;  %20553 = vmatprep.subr.bf16.mxu1 %v23592_v0 }
 0x96b   : > { %20223 = vmatmul.mubr.msk.f32.vlgmr.msra.gmra.mrb[26].mxu0 %vm10891_vm12, %v20222_v32  ;;  %20224 = vmatmul.mubr.msk.f32.vlgmr.msra.gmra.mrb[26].mxu1 %vm10891_vm12, %v20222_v32 }
 0x96c   : > { %20547 = vmatpush1.bf16.msra.mxu0 %v23590_v61  ;;  %20555 = vmatpush1.bf16.msra.mxu1 %v23594_v38 }
 0x96d   : > { %20549 = vmatprep.subr.bf16.mxu0 %v23612_v20  ;;  %20557 = vmatprep.subr.bf16.mxu1 %v23616_v23 }
 0x96e   : > { %12320 = vmatprep.mubr.f32.mxu0 %v25535_v3  ;;  %12391 = vmatprep.mubr.f32.mxu1 %v25535_v3 }
 0x970   : > { %20551 = vmatpush1.bf16.msra.mxu0 %v23614_v25  ;;  %20559 = vmatpush1.bf16.msra.mxu1 %v23618_v9 }
 0x971   : > { %20561 = vmatprep.subr.bf16.mxu0 %v23588_v31  ;;  %20569 = vmatprep.subr.bf16.mxu1 %v23592_v0 }
 0x973   : > { %20226 = vmatmul.mubr.msk.f32.vlgmr.msra.gmra.mrb[28].mxu0 %vm10891_vm12, %v20225_v33  ;;  %20227 = vmatmul.mubr.msk.f32.vlgmr.msra.gmra.mrb[28].mxu1 %vm10891_vm12, %v20225_v33 }
 0x974   : > { %20563 = vmatpush1.bf16.msra.mxu0 %v23590_v61  ;;  %20571 = vmatpush1.bf16.msra.mxu1 %v23594_v38 }
 0x975   : > { %20565 = vmatprep.subr.bf16.mxu0 %v23612_v20  ;;  %20573 = vmatprep.subr.bf16.mxu1 %v23616_v23 }
 0x976   : > { %12483 = vmatprep.mubr.f32.mxu0 %v25535_v3  ;;  %12554 = vmatprep.mubr.f32.mxu1 %v25535_v3 }
 0x978   : > { %20567 = vmatpush1.bf16.msra.mxu0 %v23614_v25  ;;  %20575 = vmatpush1.bf16.msra.mxu1 %v23618_v9 }
 0x979   : > { %20577 = vmatprep.subr.bf16.mxu0 %v23588_v31  ;;  %20585 = vmatprep.subr.bf16.mxu1 %v23592_v0 }
 0x97b   : > { %20229 = vmatmul.mubr.msk.f32.vlgmr.msra.gmra.mrb[30].mxu0 %vm10891_vm12, %v20228_v34  ;;  %20230 = vmatmul.mubr.msk.f32.vlgmr.msra.gmra.mrb[30].mxu1 %vm10891_vm12, %v20228_v34 }
 0x97c   : > { %20579 = vmatpush1.bf16.msra.mxu0 %v23590_v61  ;;  %20587 = vmatpush1.bf16.msra.mxu1 %v23594_v38 }
 0x97d   : > { %20581 = vmatprep.subr.bf16.mxu0 %v23612_v20  ;;  %20589 = vmatprep.subr.bf16.mxu1 %v23616_v23 }
 0x97e   : > { %12646 = vmatprep.mubr.f32.mxu0 %v25535_v3  ;;  %12717 = vmatprep.mubr.f32.mxu1 %v25535_v3 }
 0x980   : > { %20583 = vmatpush1.bf16.msra.mxu0 %v23614_v25  ;;  %20591 = vmatpush1.bf16.msra.mxu1 %v23618_v9 }
 0x981   : > { %20593 = vmatprep.subr.bf16.mxu0 %v23588_v31  ;;  %20601 = vmatprep.subr.bf16.mxu1 %v23592_v0 }
 0x983   : > { %20232 = vmatmul.mubr.msk.f32.vlgmr.msra.gmra.mrb[32].mxu0 %vm10891_vm12, %v20231_v35  ;;  %20233 = vmatmul.mubr.msk.f32.vlgmr.msra.gmra.mrb[32].mxu1 %vm10891_vm12, %v20231_v35 }
 0x984   : > { %20595 = vmatpush1.bf16.msra.mxu0 %v23590_v61  ;;  %20603 = vmatpush1.bf16.msra.mxu1 %v23594_v38 }
 0x985   : > { %20597 = vmatprep.subr.bf16.mxu0 %v23612_v20  ;;  %20605 = vmatprep.subr.bf16.mxu1 %v23616_v23 }
 0x986   : > { %12809 = vmatprep.mubr.f32.mxu0 %v25535_v3  ;;  %12880 = vmatprep.mubr.f32.mxu1 %v25535_v3 }
 0x988   : > { %20599 = vmatpush1.bf16.msra.mxu0 %v23614_v25  ;;  %20607 = vmatpush1.bf16.msra.mxu1 %v23618_v9 }
 0x989   : > { %20609 = vmatprep.subr.bf16.mxu0 %v23588_v31  ;;  %20617 = vmatprep.subr.bf16.mxu1 %v23592_v0 }
 0x98b   : > { %20235 = vmatmul.mubr.msk.f32.vlgmr.msra.gmra.mrb[34].mxu0 %vm10891_vm12, %v20234_v21  ;;  %20236 = vmatmul.mubr.msk.f32.vlgmr.msra.gmra.mrb[34].mxu1 %vm10891_vm12, %v20234_v21 }
 0x98c   : > { %20611 = vmatpush1.bf16.msra.mxu0 %v23590_v61  ;;  %20619 = vmatpush1.bf16.msra.mxu1 %v23594_v38 }
 0x98d   : > { %20613 = vmatprep.subr.bf16.mxu0 %v23612_v20  ;;  %20621 = vmatprep.subr.bf16.mxu1 %v23616_v23 }
 0x98e   : > { %12972 = vmatprep.mubr.f32.mxu0 %v25535_v3  ;;  %13043 = vmatprep.mubr.f32.mxu1 %v25535_v3 }
 0x990   : > { %20615 = vmatpush1.bf16.msra.mxu0 %v23614_v25  ;;  %20623 = vmatpush1.bf16.msra.mxu1 %v23618_v9 }
 0x991   : > { %20625 = vmatprep.subr.bf16.mxu0 %v23588_v31  ;;  %20633 = vmatprep.subr.bf16.mxu1 %v23592_v0 }
 0x993   : > { %20238 = vmatmul.mubr.msk.f32.vlgmr.msra.gmra.mrb[36].mxu0 %vm10891_vm12, %v20237_v8  ;;  %20239 = vmatmul.mubr.msk.f32.vlgmr.msra.gmra.mrb[36].mxu1 %vm10891_vm12, %v20237_v8 }
 0x994   : > { %20627 = vmatpush1.bf16.msra.mxu0 %v23590_v61  ;;  %20635 = vmatpush1.bf16.msra.mxu1 %v23594_v38 }
 0x995   : > { %20629 = vmatprep.subr.bf16.mxu0 %v23612_v20  ;;  %20637 = vmatprep.subr.bf16.mxu1 %v23616_v23 }
 0x996   : > { %13135 = vmatprep.mubr.f32.mxu0 %v25535_v3  ;;  %13206 = vmatprep.mubr.f32.mxu1 %v25535_v3 }
 0x998   : > { %20631 = vmatpush1.bf16.msra.mxu0 %v23614_v25  ;;  %20639 = vmatpush1.bf16.msra.mxu1 %v23618_v9 }
 0x999   : > { %20641 = vmatprep.subr.bf16.mxu0 %v23588_v31  ;;  %20649 = vmatprep.subr.bf16.mxu1 %v23592_v0 }
 0x99b   : > { %20241 = vmatmul.mubr.msk.f32.vlgmr.msra.gmra.mrb[38].mxu0 %vm10891_vm12, %v20240_v14  ;;  %20242 = vmatmul.mubr.msk.f32.vlgmr.msra.gmra.mrb[38].mxu1 %vm10891_vm12, %v20240_v14 }
 0x99c   : > { %20643 = vmatpush1.bf16.msra.mxu0 %v23590_v61  ;;  %20651 = vmatpush1.bf16.msra.mxu1 %v23594_v38 }
 0x99d   : > { %20645 = vmatprep.subr.bf16.mxu0 %v23612_v20  ;;  %20653 = vmatprep.subr.bf16.mxu1 %v23616_v23 }
 0x99e   : > { %13298 = vmatprep.mubr.f32.mxu0 %v25535_v3  ;;  %13369 = vmatprep.mubr.f32.mxu1 %v25535_v3 }
 0x9a0   : > { %20647 = vmatpush1.bf16.msra.mxu0 %v23614_v25  ;;  %20655 = vmatpush1.bf16.msra.mxu1 %v23618_v9 }
 0x9a1   : > { %20657 = vmatprep.subr.bf16.mxu0 %v23588_v31  ;;  %20665 = vmatprep.subr.bf16.mxu1 %v23592_v0 }
 0x9a3   : > { %20244 = vmatmul.mubr.msk.f32.vlgmr.msra.gmra.mrb[40].mxu0 %vm10891_vm12, %v20243_v60  ;;  %20245 = vmatmul.mubr.msk.f32.vlgmr.msra.gmra.mrb[40].mxu1 %vm10891_vm12, %v20243_v60 }
 0x9a4   : > { %20659 = vmatpush1.bf16.msra.mxu0 %v23590_v61  ;;  %20667 = vmatpush1.bf16.msra.mxu1 %v23594_v38 }
 0x9a5   : > { %20661 = vmatprep.subr.bf16.mxu0 %v23612_v20  ;;  %20669 = vmatprep.subr.bf16.mxu1 %v23616_v23 }
 0x9a6   : > { %13449 = vmatprep.mubr.f32.mxu0 %v25535_v3  ;;  %13520 = vmatprep.mubr.f32.mxu1 %v25535_v3 }
 0x9a8   : > { %20663 = vmatpush1.bf16.msra.mxu0 %v23614_v25  ;;  %20671 = vmatpush1.bf16.msra.mxu1 %v23618_v9 }
 0x9a9   : > { %20673 = vmatprep.subr.bf16.mxu0 %v23588_v31  ;;  %20681 = vmatprep.subr.bf16.mxu1 %v23592_v0 }
 0x9ab   : > { %20247 = vmatmul.mubr.msk.f32.vlgmr.msra.gmra.mrb[42].mxu0 %vm10891_vm12, %v20246_v40  ;;  %20248 = vmatmul.mubr.msk.f32.vlgmr.msra.gmra.mrb[42].mxu1 %vm10891_vm12, %v20246_v40 }
 0x9ac   : > { %20675 = vmatpush1.bf16.msra.mxu0 %v23590_v61  ;;  %20683 = vmatpush1.bf16.msra.mxu1 %v23594_v38 }
 0x9ad   : > { %20677 = vmatprep.subr.bf16.mxu0 %v23612_v20  ;;  %20685 = vmatprep.subr.bf16.mxu1 %v23616_v23 }
 0x9ae   : > { %13612 = vmatprep.mubr.f32.mxu0 %v25535_v3  ;;  %13683 = vmatprep.mubr.f32.mxu1 %v25535_v3 }
 0x9b0   : > { %20679 = vmatpush1.bf16.msra.mxu0 %v23614_v25  ;;  %20687 = vmatpush1.bf16.msra.mxu1 %v23618_v9 }
 0x9b1   : > { %20689 = vmatprep.subr.bf16.mxu0 %v23588_v31  ;;  %20697 = vmatprep.subr.bf16.mxu1 %v23592_v0 }
 0x9b3   : > { %20250 = vmatmul.mubr.msk.f32.vlgmr.msra.gmra.mrb[44].mxu0 %vm10891_vm12, %v20249_v36  ;;  %20251 = vmatmul.mubr.msk.f32.vlgmr.msra.gmra.mrb[44].mxu1 %vm10891_vm12, %v20249_v36 }
 0x9b4   : > { %20691 = vmatpush1.bf16.msra.mxu0 %v23590_v61  ;;  %20699 = vmatpush1.bf16.msra.mxu1 %v23594_v38 }
 0x9b5   : > { %20693 = vmatprep.subr.bf16.mxu0 %v23612_v20  ;;  %20701 = vmatprep.subr.bf16.mxu1 %v23616_v23 }
 0x9b6   : > { %13775 = vmatprep.mubr.f32.mxu0 %v25535_v3  ;;  %13846 = vmatprep.mubr.f32.mxu1 %v25535_v3 }
 0x9b8   : > { %20695 = vmatpush1.bf16.msra.mxu0 %v23614_v25  ;;  %20703 = vmatpush1.bf16.msra.mxu1 %v23618_v9 }
 0x9b9   : > { %20705 = vmatprep.subr.bf16.mxu0 %v23588_v31  ;;  %20713 = vmatprep.subr.bf16.mxu1 %v23592_v0 }
 0x9bb   : > { %20253 = vmatmul.mubr.msk.f32.vlgmr.msra.gmra.mrb[46].mxu0 %vm10891_vm12, %v20252_v37  ;;  %20254 = vmatmul.mubr.msk.f32.vlgmr.msra.gmra.mrb[46].mxu1 %vm10891_vm12, %v20252_v37 }
 0x9bc   : > { %20707 = vmatpush1.bf16.msra.mxu0 %v23590_v61  ;;  %20715 = vmatpush1.bf16.msra.mxu1 %v23594_v38 }
 0x9bd   : > { %20709 = vmatprep.subr.bf16.mxu0 %v23612_v20  ;;  %20717 = vmatprep.subr.bf16.mxu1 %v23616_v23 }
 0x9be   : > { %13938 = vmatprep.mubr.f32.mxu0 %v25535_v3  ;;  %14009 = vmatprep.mubr.f32.mxu1 %v25535_v3 }
 0x9c0   : > { %20711 = vmatpush1.bf16.msra.mxu0 %v23614_v25  ;;  %20719 = vmatpush1.bf16.msra.mxu1 %v23618_v9 }
 0x9c1   : > { %20721 = vmatprep.subr.bf16.mxu0 %v23588_v31  ;;  %20729 = vmatprep.subr.bf16.mxu1 %v23592_v0 }
 0x9c3   : > { %20256 = vmatmul.mubr.msk.f32.vlgmr.msra.gmra.mrb[48].mxu0 %vm10891_vm12, %v20255_v4  ;;  %20257 = vmatmul.mubr.msk.f32.vlgmr.msra.gmra.mrb[48].mxu1 %vm10891_vm12, %v20255_v4 }
 0x9c4   : > { %20723 = vmatpush1.bf16.msra.mxu0 %v23590_v61  ;;  %20731 = vmatpush1.bf16.msra.mxu1 %v23594_v38 }
 0x9c5   : > { %20725 = vmatprep.subr.bf16.mxu0 %v23612_v20  ;;  %20733 = vmatprep.subr.bf16.mxu1 %v23616_v23 }
 0x9c6   : > { %14101 = vmatprep.mubr.f32.mxu0 %v25535_v3  ;;  %14172 = vmatprep.mubr.f32.mxu1 %v25535_v3 }
 0x9c8   : > { %20727 = vmatpush1.bf16.msra.mxu0 %v23614_v25  ;;  %20735 = vmatpush1.bf16.msra.mxu1 %v23618_v9 }
 0x9c9   : > { %20737 = vmatprep.subr.bf16.mxu0 %v23588_v31  ;;  %20745 = vmatprep.subr.bf16.mxu1 %v23592_v0 }
 0x9cb   : > { %20259 = vmatmul.mubr.msk.f32.vlgmr.msra.gmra.mrb[50].mxu0 %vm10891_vm12, %v20258_v28  ;;  %20260 = vmatmul.mubr.msk.f32.vlgmr.msra.gmra.mrb[50].mxu1 %vm10891_vm12, %v20258_v28 }
 0x9cc   : > { %20739 = vmatpush1.bf16.msra.mxu0 %v23590_v61  ;;  %20747 = vmatpush1.bf16.msra.mxu1 %v23594_v38 }
 0x9cd   : > { %20741 = vmatprep.subr.bf16.mxu0 %v23612_v20  ;;  %20749 = vmatprep.subr.bf16.mxu1 %v23616_v23 }
 0x9ce   : > { %14264 = vmatprep.mubr.f32.mxu0 %v25535_v3  ;;  %14335 = vmatprep.mubr.f32.mxu1 %v25535_v3 }
 0x9d0   : > { %20743 = vmatpush1.bf16.msra.mxu0 %v23614_v25  ;;  %20751 = vmatpush1.bf16.msra.mxu1 %v23618_v9 }
 0x9d1   : > { %20753 = vmatprep.subr.bf16.mxu0 %v23588_v31  ;;  %20761 = vmatprep.subr.bf16.mxu1 %v23592_v0 }
 0x9d3   : > { %20262 = vmatmul.mubr.msk.f32.vlgmr.msra.gmra.mrb[52].mxu0 %vm10891_vm12, %v20261_v62  ;;  %20263 = vmatmul.mubr.msk.f32.vlgmr.msra.gmra.mrb[52].mxu1 %vm10891_vm12, %v20261_v62 }
 0x9d4   : > { %20755 = vmatpush1.bf16.msra.mxu0 %v23590_v61  ;;  %20763 = vmatpush1.bf16.msra.mxu1 %v23594_v38 }
 0x9d5   : > { %20757 = vmatprep.subr.bf16.mxu0 %v23612_v20  ;;  %20765 = vmatprep.subr.bf16.mxu1 %v23616_v23 }
 0x9d6   : > { %14427 = vmatprep.mubr.f32.mxu0 %v25535_v3  ;;  %14498 = vmatprep.mubr.f32.mxu1 %v25535_v3 }
 0x9d8   : > { %20759 = vmatpush1.bf16.msra.mxu0 %v23614_v25  ;;  %20767 = vmatpush1.bf16.msra.mxu1 %v23618_v9 }
 0x9d9   : > { %20769 = vmatprep.subr.bf16.mxu0 %v23588_v31  ;;  %20777 = vmatprep.subr.bf16.mxu1 %v23592_v0 }
 0x9db   : > { %20265 = vmatmul.mubr.msk.f32.vlgmr.msra.gmra.mrb[54].mxu0 %vm10891_vm12, %v20264_v39  ;;  %20266 = vmatmul.mubr.msk.f32.vlgmr.msra.gmra.mrb[54].mxu1 %vm10891_vm12, %v20264_v39 }
 0x9dc   : > { %20771 = vmatpush1.bf16.msra.mxu0 %v23590_v61  ;;  %20779 = vmatpush1.bf16.msra.mxu1 %v23594_v38 }
 0x9dd   : > { %20773 = vmatprep.subr.bf16.mxu0 %v23612_v20  ;;  %20781 = vmatprep.subr.bf16.mxu1 %v23616_v23 }
 0x9de   : > { %14590 = vmatprep.mubr.f32.mxu0 %v25535_v3  ;;  %14661 = vmatprep.mubr.f32.mxu1 %v25535_v3 }
 0x9e0   : > { %20775 = vmatpush1.bf16.msra.mxu0 %v23614_v25  ;;  %20783 = vmatpush1.bf16.msra.mxu1 %v23618_v9 }
 0x9e1   : > { %20785 = vmatprep.subr.bf16.mxu0 %v23588_v31  ;;  %20793 = vmatprep.subr.bf16.mxu1 %v23592_v0 }
 0x9e3   : > { %20268 = vmatmul.mubr.msk.f32.vlgmr.msra.gmra.mrb[56].mxu0 %vm10891_vm12, %v20267_v15  ;;  %20269 = vmatmul.mubr.msk.f32.vlgmr.msra.gmra.mrb[56].mxu1 %vm10891_vm12, %v20267_v15 }
 0x9e4   : > { %20787 = vmatpush1.bf16.msra.mxu0 %v23590_v61  ;;  %20795 = vmatpush1.bf16.msra.mxu1 %v23594_v38 }
 0x9e5   : > { %20789 = vmatprep.subr.bf16.mxu0 %v23612_v20  ;;  %20797 = vmatprep.subr.bf16.mxu1 %v23616_v23 }
 0x9e6   : > { %14753 = vmatprep.mubr.f32.mxu0 %v25535_v3  ;;  %14824 = vmatprep.mubr.f32.mxu1 %v25535_v3 }
 0x9e8   : > { %20791 = vmatpush1.bf16.msra.mxu0 %v23614_v25  ;;  %20799 = vmatpush1.bf16.msra.mxu1 %v23618_v9 }
 0x9e9   : > { %20801 = vmatprep.subr.bf16.mxu0 %v23588_v31  ;;  %20809 = vmatprep.subr.bf16.mxu1 %v23592_v0 }
 0x9eb   : > { %20271 = vmatmul.mubr.msk.f32.vlgmr.msra.gmra.mrb[58].mxu0 %vm10891_vm12, %v20270_v42  ;;  %20272 = vmatmul.mubr.msk.f32.vlgmr.msra.gmra.mrb[58].mxu1 %vm10891_vm12, %v20270_v42 }
 0x9ec   : > { %20803 = vmatpush1.bf16.msra.mxu0 %v23590_v61  ;;  %20811 = vmatpush1.bf16.msra.mxu1 %v23594_v38 }
 0x9ed   : > { %20805 = vmatprep.subr.bf16.mxu0 %v23612_v20  ;;  %20813 = vmatprep.subr.bf16.mxu1 %v23616_v23 }
 0x9ee   : > { %14916 = vmatprep.mubr.f32.mxu0 %v25535_v3  ;;  %14987 = vmatprep.mubr.f32.mxu1 %v25535_v3 }
 0x9f0   : > { %20807 = vmatpush1.bf16.msra.mxu0 %v23614_v25  ;;  %20815 = vmatpush1.bf16.msra.mxu1 %v23618_v9 }
 0x9f1   : > { %20817 = vmatprep.subr.bf16.mxu0 %v23588_v31  ;;  %20825 = vmatprep.subr.bf16.mxu1 %v23592_v0 }
 0x9f3   : > { %20274 = vmatmul.mubr.msk.f32.vlgmr.msra.gmra.mrb[60].mxu0 %vm10891_vm12, %v20273_v43  ;;  %20275 = vmatmul.mubr.msk.f32.vlgmr.msra.gmra.mrb[60].mxu1 %vm10891_vm12, %v20273_v43 }
 0x9f4   : > { %20819 = vmatpush1.bf16.msra.mxu0 %v23590_v61  ;;  %20827 = vmatpush1.bf16.msra.mxu1 %v23594_v38 }
 0x9f5   : > { %20821 = vmatprep.subr.bf16.mxu0 %v23612_v20  ;;  %20829 = vmatprep.subr.bf16.mxu1 %v23616_v23 }
 0x9f6   : > { %15079 = vmatprep.mubr.f32.mxu0 %v25535_v3  ;;  %15150 = vmatprep.mubr.f32.mxu1 %v25535_v3 }
 0x9f8   : > { %20823 = vmatpush1.bf16.msra.mxu0 %v23614_v25  ;;  %20831 = vmatpush1.bf16.msra.mxu1 %v23618_v9 }
 0x9f9   : > { %20833 = vmatprep.subr.bf16.mxu0 %v23588_v31  ;;  %20841 = vmatprep.subr.bf16.mxu1 %v23592_v0  ;;  %v20279_v31 = vld [vmem:[%s25661_s12 + $0xc0] sm:$0xff]  ;;  %s25765_s12 = sld [smem:[#allocation50_spill]] }
 0x9fb   : > { %20277 = vmatmul.mubr.msk.f32.vlgmr.msra.gmra.mrb[62].mxu0 %vm10891_vm12, %v20276_v10  ;;  %20278 = vmatmul.mubr.msk.f32.vlgmr.msra.gmra.mrb[62].mxu1 %vm10891_vm12, %v20276_v10 }
 0x9fc   : > { %20835 = vmatpush1.bf16.msra.mxu0 %v23590_v61  ;;  %20843 = vmatpush1.bf16.msra.mxu1 %v23594_v38 }
 0x9fd   : > { %20837 = vmatprep.subr.bf16.mxu0 %v23612_v20  ;;  %20845 = vmatprep.subr.bf16.mxu1 %v23616_v23 }
 0x9fe   : > { %15242 = vmatprep.mubr.f32.mxu0 %v25535_v3  ;;  %15313 = vmatprep.mubr.f32.mxu1 %v25535_v3 }
 0xa00   : > { %20839 = vmatpush1.bf16.msra.mxu0 %v23614_v25  ;;  %20847 = vmatpush1.bf16.msra.mxu1 %v23618_v9 }
 0xa01   : > { %20422 = vmatprep.subr.mxu0 %v25535_v3  ;;  %20427 = vmatprep.subr.mxu1 %v25535_v3 }
 0xa03   : > { %20280 = vmatmul.mubr.msk.f32.vlgmr.msra.gmra.mrb[64].mxu0 %vm10891_vm12, %v20279_v31  ;;  %20281 = vmatmul.mubr.msk.f32.vlgmr.msra.gmra.mrb[64].mxu1 %vm10891_vm12, %v20279_v31 }
 0xa04   : > { %20424 = vmatprep.mubr.msk.f32.mxu0 %vm21412_vm1, %v25535_v3  ;;  %20429 = vmatprep.mubr.msk.f32.mxu1 %vm21412_vm1, %v25535_v3  ;;  %vm25692_vm1 = vcmp.lt.s32.totalorder %v21676_v13, 19 }
 0xa05   : > { %vm25693_vm13 = vmmov %vm25692_vm1 }
 0xa06   : > { %vm25696_vm12 = vmmov %vm25692_vm1 }
 0xa16   : > { %v11344_v61 = vpop.f32.mrb[16].mxu0  ;;  %v11415_v0 = vpop.f32.mrb[16].mxu1 }
 0xa17   : > { %11420 = vrot.lane.b32.xlu0 %v11344_v61, %s25662_s14  ;;  %v11346_v38 = vpop.f32.mrb[17].mxu0  ;;  %v11417_v44 = vpop.f32.mrb[17].mxu1 }
 0xa18   : > { %11422 = vrot.lane.b32.xlu1 %v11346_v38, %s25662_s14 }
 0xa1b   : > { %11424 = vrot.lane.b32.xlu0 %v11415_v0, %s25662_s14 }
 0xa1e   : > { %v11507_v45 = vpop.f32.mrb[18].mxu0  ;;  %v11578_v11 = vpop.f32.mrb[18].mxu1 }
 0xa1f   : > { %11426 = vrot.lane.b32.xlu0 %v11417_v44, %s25662_s14  ;;  %11583 = vrot.lane.b32.xlu1 %v11507_v45, %s25663_s21  ;;  %v11509_v6 = vpop.f32.mrb[19].mxu0  ;;  %v11580_v47 = vpop.f32.mrb[19].mxu1 }
 0xa23   : > { %11587 = vrot.lane.b32.xlu1 %v11578_v11, %s25663_s21  ;;  %11585 = vrot.lane.b32.xlu0 %v11509_v6, %s25663_s21  ;;  %v24057_v11 = vpop.permute.xlu1 %15339 }
 0xa24   : > { %25672 = vst [vmem:[#allocation14_spill] sm:$0xff] %v24057_v11 }
 0xa26   : > { %v11670_v48 = vpop.f32.mrb[20].mxu0  ;;  %v11741_v49 = vpop.f32.mrb[20].mxu1 }
 0xa27   : > { %11589 = vrot.lane.b32.xlu1 %v11580_v47, %s25663_s21  ;;  %11746 = vrot.lane.b32.xlu0 %v11670_v48, %s25664_s7  ;;  %v11743_v50 = vpop.f32.mrb[21].mxu1  ;;  %v11672_v51 = vpop.f32.mrb[21].mxu0 }
 0xa2b   : > { %11750 = vrot.lane.b32.xlu1 %v11741_v49, %s25664_s7  ;;  %11752 = vrot.lane.b32.xlu0 %v11743_v50, %s25664_s7 }
 0xa2e   : > { %v11833_v41 = vpop.f32.mrb[22].mxu0  ;;  %v11904_v53 = vpop.f32.mrb[22].mxu1 }
 0xa2f   : > { %11748 = vrot.lane.b32.xlu1 %v11672_v51, %s25664_s7  ;;  %11909 = vrot.lane.b32.xlu0 %v11833_v41, %s25665_s8  ;;  %v11906_v46 = vpop.f32.mrb[23].mxu1  ;;  %v11835_v54 = vpop.f32.mrb[23].mxu0 }
 0xa33   : > { %11913 = vrot.lane.b32.xlu1 %v11904_v53, %s25665_s8  ;;  %11915 = vrot.lane.b32.xlu0 %v11906_v46, %s25665_s8 }
 0xa36   : > { %v11996_v52 = vpop.f32.mrb[24].mxu0  ;;  %v12067_v63 = vpop.f32.mrb[24].mxu1 }
 0xa37   : > { %11911 = vrot.lane.b32.xlu1 %v11835_v54, %s25665_s8  ;;  %12072 = vrot.lane.b32.xlu0 %v11996_v52, %s25666_s15  ;;  %v12069_v58 = vpop.f32.mrb[25].mxu1  ;;  %v11998_v55 = vpop.f32.mrb[25].mxu0 }
 0xa3b   : > { %12076 = vrot.lane.b32.xlu1 %v12067_v63, %s25666_s15  ;;  %12078 = vrot.lane.b32.xlu0 %v12069_v58, %s25666_s15 }
 0xa3e   : > { %v12159_v56 = vpop.f32.mrb[26].mxu0  ;;  %v12230_v59 = vpop.f32.mrb[26].mxu1 }
 0xa3f   : > { %12074 = vrot.lane.b32.xlu1 %v11998_v55, %s25666_s15  ;;  %12235 = vrot.lane.b32.xlu0 %v12159_v56, %s25667_s6  ;;  %v12232_v24 = vpop.f32.mrb[27].mxu1  ;;  %v12161_v16 = vpop.f32.mrb[27].mxu0 }
 0xa43   : > { %12239 = vrot.lane.b32.xlu1 %v12230_v59, %s25667_s6  ;;  %12241 = vrot.lane.b32.xlu0 %v12232_v24, %s25667_s6 }
 0xa46   : > { %v12322_v17 = vpop.f32.mrb[28].mxu0  ;;  %v12393_v18 = vpop.f32.mrb[28].mxu1 }
 0xa47   : > { %12237 = vrot.lane.b32.xlu1 %v12161_v16, %s25667_s6  ;;  %12398 = vrot.lane.b32.xlu0 %v12322_v17, %s25668_s17  ;;  %v12395_v20 = vpop.f32.mrb[29].mxu1  ;;  %v12324_v25 = vpop.f32.mrb[29].mxu0 }
 0xa4b   : > { %12402 = vrot.lane.b32.xlu1 %v12393_v18, %s25668_s17  ;;  %12404 = vrot.lane.b32.xlu0 %v12395_v20, %s25668_s17 }
 0xa4e   : > { %v12485_v23 = vpop.f32.mrb[30].mxu0  ;;  %v12556_v9 = vpop.f32.mrb[30].mxu1 }
 0xa4f   : > { %12400 = vrot.lane.b32.xlu1 %v12324_v25, %s25668_s17  ;;  %12561 = vrot.lane.b32.xlu0 %v12485_v23, %s25600_s23  ;;  %v12558_v27 = vpop.f32.mrb[31].mxu1  ;;  %v12487_v7 = vpop.f32.mrb[31].mxu0 }
 0xa53   : > { %12565 = vrot.lane.b32.xlu1 %v12556_v9, %s25600_s23  ;;  %12567 = vrot.lane.b32.xlu0 %v12558_v27, %s25600_s23 }
 0xa56   : > { %v12648_v57 = vpop.f32.mrb[32].mxu0  ;;  %v12719_v29 = vpop.f32.mrb[32].mxu1 }
 0xa57   : > { %12563 = vrot.lane.b32.xlu1 %v12487_v7, %s25600_s23  ;;  %12724 = vrot.lane.b32.xlu0 %v12648_v57, %s25601_s0  ;;  %v12721_v30 = vpop.f32.mrb[33].mxu1  ;;  %v12650_v32 = vpop.f32.mrb[33].mxu0 }
 0xa5b   : > { %12728 = vrot.lane.b32.xlu1 %v12719_v29, %s25601_s0  ;;  %12730 = vrot.lane.b32.xlu0 %v12721_v30, %s25601_s0 }
 0xa5e   : > { %v12811_v33 = vpop.f32.mrb[34].mxu0  ;;  %v12882_v34 = vpop.f32.mrb[34].mxu1 }
 0xa5f   : > { %12726 = vrot.lane.b32.xlu1 %v12650_v32, %s25601_s0  ;;  %12887 = vrot.lane.b32.xlu0 %v12811_v33, %s25602_s30  ;;  %v12884_v35 = vpop.f32.mrb[35].mxu1  ;;  %v12813_v21 = vpop.f32.mrb[35].mxu0 }
 0xa63   : > { %12891 = vrot.lane.b32.xlu1 %v12882_v34, %s25602_s30  ;;  %12893 = vrot.lane.b32.xlu0 %v12884_v35, %s25602_s30 }
 0xa66   : > { %v12974_v8 = vpop.f32.mrb[36].mxu0  ;;  %v13045_v14 = vpop.f32.mrb[36].mxu1 }
 0xa67   : > { %12889 = vrot.lane.b32.xlu1 %v12813_v21, %s25602_s30  ;;  %13050 = vrot.lane.b32.xlu0 %v12974_v8, %s25603_s1  ;;  %v13047_v60 = vpop.f32.mrb[37].mxu1  ;;  %v12976_v40 = vpop.f32.mrb[37].mxu0 }
 0xa6b   : > { %13054 = vrot.lane.b32.xlu1 %v13045_v14, %s25603_s1  ;;  %13056 = vrot.lane.b32.xlu0 %v13047_v60, %s25603_s1 }
 0xa6e   : > { %v13137_v36 = vpop.f32.mrb[38].mxu0  ;;  %v13208_v37 = vpop.f32.mrb[38].mxu1 }
 0xa6f   : > { %13052 = vrot.lane.b32.xlu1 %v12976_v40, %s25603_s1  ;;  %13213 = vrot.lane.b32.xlu0 %v13137_v36, %s25604_s2  ;;  %v13210_v4 = vpop.f32.mrb[39].mxu1  ;;  %v13139_v28 = vpop.f32.mrb[39].mxu0 }
 0xa73   : > { %13217 = vrot.lane.b32.xlu1 %v13208_v37, %s25604_s2  ;;  %13219 = vrot.lane.b32.xlu0 %v13210_v4, %s25604_s2 }
 0xa76   : > { %v24042_v62 = vpop.f32.mrb[40].mxu0  ;;  %v24044_v39 = vpop.f32.mrb[40].mxu1 }
 0xa77   : > { %25669 = vst [vmem:[#allocation11_spill] sm:$0xff] %v24044_v39  ;;  %13215 = vrot.lane.b32.xlu1 %v13139_v28, %s25604_s2  ;;  %v24047_v15 = vpop.f32.mrb[41].mxu0  ;;  %v24049_v42 = vpop.f32.mrb[41].mxu1 }
 0xa78   : > { %25670 = vst [vmem:[#allocation12_spill] sm:$0xff] %v24047_v15  ;;  %25671 = vst [vmem:[#allocation13_spill] sm:$0xff] %v24049_v42 }
 0xa7e   : > { %v13451_v43 = vpop.f32.mrb[42].mxu0  ;;  %v13522_v10 = vpop.f32.mrb[42].mxu1 }
 0xa7f   : > { %13527 = vrot.lane.b32.xlu0 %v13451_v43, %s25605_s29  ;;  %v13453_v31 = vpop.f32.mrb[43].mxu0  ;;  %v13524_v61 = vpop.f32.mrb[43].mxu1 }
 0xa80   : > { %13529 = vrot.lane.b32.xlu1 %v13453_v31, %s25605_s29 }
 0xa83   : > { %13531 = vrot.lane.b32.xlu0 %v13522_v10, %s25605_s29 }
 0xa84   : > { %13533 = vrot.lane.b32.xlu1 %v13524_v61, %s25605_s29 }
 0xa86   : > { %v13614_v0 = vpop.f32.mrb[44].mxu0  ;;  %v13685_v38 = vpop.f32.mrb[44].mxu1 }
 0xa87   : > { %13690 = vrot.lane.b32.xlu0 %v13614_v0, %s25606_s28  ;;  %v13616_v44 = vpop.f32.mrb[45].mxu0  ;;  %v13687_v45 = vpop.f32.mrb[45].mxu1 }
 0xa88   : > { %13692 = vrot.lane.b32.xlu1 %v13616_v44, %s25606_s28 }
 0xa89   : > { %v24059_v6 = vpop.permute.xlu0 %11420 }
 0xa8a   : > { %v24065_v48 = vpop.permute.xlu1 %11422 }
 0xa8b   : > { %13694 = vrot.lane.b32.xlu0 %v13685_v38, %s25606_s28 }
 0xa8c   : > { %13696 = vrot.lane.b32.xlu1 %v13687_v45, %s25606_s28 }
 0xa8d   : > { %v24063_v47 = vpop.permute.xlu0 %11424 }
 0xa8e   : > { %v13777_v49 = vpop.f32.mrb[46].mxu0  ;;  %v13848_v50 = vpop.f32.mrb[46].mxu1 }
 0xa8f   : > { %13853 = vrot.lane.b32.xlu0 %v13777_v49, %s25607_s27  ;;  %v13779_v51 = vpop.f32.mrb[47].mxu0  ;;  %v13850_v41 = vpop.f32.mrb[47].mxu1 }
 0xa90   : > { %13855 = vrot.lane.b32.xlu1 %v13779_v51, %s25607_s27 }
 0xa91   : > { %v24069_v53 = vpop.permute.xlu0 %11426  ;;  %v24071_v46 = vpop.permute.xlu1 %11583 }
 0xa93   : > { %13857 = vrot.lane.b32.xlu0 %v13848_v50, %s25607_s27 }
 0xa94   : > { %13859 = vrot.lane.b32.xlu1 %v13850_v41, %s25607_s27 }
 0xa95   : > { %v24075_v54 = vpop.permute.xlu1 %11587  ;;  %v24077_v52 = vpop.permute.xlu0 %11585 }
 0xa96   : > { %v13940_v63 = vpop.f32.mrb[48].mxu0  ;;  %v14011_v58 = vpop.f32.mrb[48].mxu1 }
 0xa97   : > { %14016 = vrot.lane.b32.xlu0 %v13940_v63, %s25609_s24  ;;  %v13942_v55 = vpop.f32.mrb[49].mxu0  ;;  %v14013_v56 = vpop.f32.mrb[49].mxu1 }
 0xa98   : > { %14018 = vrot.lane.b32.xlu1 %v13942_v55, %s25609_s24 }
 0xa99   : > { %v24081_v59 = vpop.permute.xlu1 %11589  ;;  %v24083_v24 = vpop.permute.xlu0 %11746 }
 0xa9b   : > { %14020 = vrot.lane.b32.xlu0 %v14011_v58, %s25609_s24 }
 0xa9c   : > { %14022 = vrot.lane.b32.xlu1 %v14013_v56, %s25609_s24 }
 0xa9d   : > { %v24087_v16 = vpop.permute.xlu1 %11750  ;;  %v24089_v17 = vpop.permute.xlu0 %11752 }
 0xa9e   : > { %v14103_v18 = vpop.f32.mrb[50].mxu0  ;;  %v14174_v20 = vpop.f32.mrb[50].mxu1 }
 0xa9f   : > { %14179 = vrot.lane.b32.xlu0 %v14103_v18, %s25610_s25  ;;  %v14105_v25 = vpop.f32.mrb[51].mxu0  ;;  %v14176_v23 = vpop.f32.mrb[51].mxu1 }
 0xaa0   : > { %14181 = vrot.lane.b32.xlu1 %v14105_v25, %s25610_s25 }
 0xaa1   : > { %v24093_v9 = vpop.permute.xlu1 %11748  ;;  %v24095_v27 = vpop.permute.xlu0 %11909 }
 0xaa3   : > { %14183 = vrot.lane.b32.xlu0 %v14174_v20, %s25610_s25 }
 0xaa4   : > { %14185 = vrot.lane.b32.xlu1 %v14176_v23, %s25610_s25 }
 0xaa5   : > { %v24099_v7 = vpop.permute.xlu1 %11913  ;;  %v24101_v57 = vpop.permute.xlu0 %11915 }
 0xaa6   : > { %v14266_v29 = vpop.f32.mrb[52].mxu0  ;;  %v14337_v30 = vpop.f32.mrb[52].mxu1 }
 0xaa7   : > { %14342 = vrot.lane.b32.xlu0 %v14266_v29, %s25611_s18  ;;  %v14268_v32 = vpop.f32.mrb[53].mxu0  ;;  %v14339_v33 = vpop.f32.mrb[53].mxu1 }
 0xaa8   : > { %14344 = vrot.lane.b32.xlu1 %v14268_v32, %s25611_s18 }
 0xaa9   : > { %v24105_v34 = vpop.permute.xlu1 %11911  ;;  %v24107_v35 = vpop.permute.xlu0 %12072 }
 0xaab   : > { %14346 = vrot.lane.b32.xlu0 %v14337_v30, %s25611_s18 }
 0xaac   : > { %14348 = vrot.lane.b32.xlu1 %v14339_v33, %s25611_s18 }
 0xaad   : > { %v24111_v21 = vpop.permute.xlu1 %12076  ;;  %v24113_v8 = vpop.permute.xlu0 %12078 }
 0xaae   : > { %v14429_v14 = vpop.f32.mrb[54].mxu0  ;;  %v14500_v60 = vpop.f32.mrb[54].mxu1 }
 0xaaf   : > { %14505 = vrot.lane.b32.xlu0 %v14429_v14, %s25612_s4  ;;  %v14431_v40 = vpop.f32.mrb[55].mxu0  ;;  %v14502_v36 = vpop.f32.mrb[55].mxu1 }
 0xab0   : > { %14507 = vrot.lane.b32.xlu1 %v14431_v40, %s25612_s4 }
 0xab1   : > { %v24117_v37 = vpop.permute.xlu1 %12074  ;;  %v24119_v4 = vpop.permute.xlu0 %12235 }
 0xab3   : > { %14509 = vrot.lane.b32.xlu0 %v14500_v60, %s25612_s4 }
 0xab4   : > { %14511 = vrot.lane.b32.xlu1 %v14502_v36, %s25612_s4 }
 0xab5   : > { %v24123_v28 = vpop.permute.xlu1 %12239  ;;  %v24125_v43 = vpop.permute.xlu0 %12241 }
 0xab6   : > { %v14592_v10 = vpop.f32.mrb[56].mxu0  ;;  %v14663_v31 = vpop.f32.mrb[56].mxu1 }
 0xab7   : > { %14668 = vrot.lane.b32.xlu0 %v14592_v10, %s25613_s5  ;;  %v14594_v61 = vpop.f32.mrb[57].mxu0  ;;  %v14665_v0 = vpop.f32.mrb[57].mxu1 }
 0xab8   : > { %14670 = vrot.lane.b32.xlu1 %v14594_v61, %s25613_s5 }
 0xab9   : > { %v24129_v38 = vpop.permute.xlu1 %12237  ;;  %v24131_v44 = vpop.permute.xlu0 %12398 }
 0xabb   : > { %14672 = vrot.lane.b32.xlu0 %v14663_v31, %s25613_s5 }
 0xabc   : > { %14674 = vrot.lane.b32.xlu1 %v14665_v0, %s25613_s5 }
 0xabd   : > { %v24135_v45 = vpop.permute.xlu1 %12402  ;;  %v24137_v49 = vpop.permute.xlu0 %12404 }
 0xabe   : > { %v14755_v50 = vpop.f32.mrb[58].mxu0  ;;  %v14826_v51 = vpop.f32.mrb[58].mxu1 }
 0xabf   : > { %14831 = vrot.lane.b32.xlu0 %v14755_v50, %s25614_s3  ;;  %v14757_v41 = vpop.f32.mrb[59].mxu0  ;;  %v14828_v63 = vpop.f32.mrb[59].mxu1 }
 0xac0   : > { %14833 = vrot.lane.b32.xlu1 %v14757_v41, %s25614_s3 }
 0xac1   : > { %v24141_v58 = vpop.permute.xlu1 %12400  ;;  %v24143_v55 = vpop.permute.xlu0 %12561 }
 0xac3   : > { %14835 = vrot.lane.b32.xlu0 %v14826_v51, %s25614_s3 }
 0xac4   : > { %14837 = vrot.lane.b32.xlu1 %v14828_v63, %s25614_s3 }
 0xac5   : > { %v24147_v56 = vpop.permute.xlu1 %12565  ;;  %v24149_v18 = vpop.permute.xlu0 %12567 }
 0xac6   : > { %v14918_v20 = vpop.f32.mrb[60].mxu0  ;;  %v14989_v25 = vpop.f32.mrb[60].mxu1 }
 0xac7   : > { %14994 = vrot.lane.b32.xlu0 %v14918_v20, %s25615_s20  ;;  %v14920_v23 = vpop.f32.mrb[61].mxu0  ;;  %v14991_v29 = vpop.f32.mrb[61].mxu1 }
 0xac8   : > { %14996 = vrot.lane.b32.xlu1 %v14920_v23, %s25615_s20 }
 0xac9   : > { %v24153_v30 = vpop.permute.xlu1 %12563  ;;  %v24155_v32 = vpop.permute.xlu0 %12724 }
 0xacb   : > { %14998 = vrot.lane.b32.xlu0 %v14989_v25, %s25615_s20 }
 0xacd   : > { %v24158_v33 = vpop.permute.xlu1 %12728  ;;  %v24160_v14 = vpop.permute.xlu0 %12730 }
 0xace   : > { %v15081_v60 = vpop.f32.mrb[62].mxu0  ;;  %v15152_v40 = vpop.f32.mrb[62].mxu1 }
 0xacf   : > { %15000 = vrot.lane.b32.xlu0 %v14991_v29, %s25615_s20  ;;  %15157 = vrot.lane.b32.xlu1 %v15081_v60, %s25616_s26  ;;  %v15083_v36 = vpop.f32.mrb[63].mxu0  ;;  %v15154_v10 = vpop.f32.mrb[63].mxu1 }
 0xad1   : > { %v24164_v31 = vpop.permute.xlu1 %12726  ;;  %v24166_v61 = vpop.permute.xlu0 %12887 }
 0xad3   : > { %15161 = vrot.lane.b32.xlu1 %v15152_v40, %s25616_s26  ;;  %15159 = vrot.lane.b32.xlu0 %v15083_v36, %s25616_s26 }
 0xad5   : > { %v24170_v0 = vpop.permute.xlu1 %12891  ;;  %v24172_v50 = vpop.permute.xlu0 %12893 }
 0xad6   : > { %v15244_v51 = vpop.f32.mrb[64].mxu0  ;;  %v15315_v41 = vpop.f32.mrb[64].mxu1 }
 0xad7   : > { %15163 = vrot.lane.b32.xlu0 %v15154_v10, %s25616_s26  ;;  %15320 = vrot.lane.b32.xlu1 %v15244_v51, %s25617_s19  ;;  %v15246_v63 = vpop.f32.mrb[65].mxu0  ;;  %v15317_v20 = vpop.f32.mrb[65].mxu1 }
 0xad9   : > { %v24176_v25 = vpop.permute.xlu1 %12889  ;;  %v24178_v23 = vpop.permute.xlu0 %13050 }
 0xadb   : > { %15324 = vrot.lane.b32.xlu1 %v15315_v41, %s25617_s19  ;;  %15322 = vrot.lane.b32.xlu0 %v15246_v63, %s25617_s19 }
 0xadd   : > { %v24182_v29 = vpop.permute.xlu1 %13054  ;;  %v24185_v60 = vpop.permute.xlu0 %13056 }
 0xadf   : > { %15326 = vrot.lane.b32.xlu0 %v15317_v20, %s25617_s19 }
 0xae1   : > { %v24187_v40 = vpop.permute.xlu1 %13052  ;;  %v24189_v36 = vpop.permute.xlu0 %13213 }
 0xae5   : > { %v24191_v10 = vpop.permute.xlu1 %13217  ;;  %v24193_v51 = vpop.permute.xlu0 %13219 }
 0xae9   : > { %v24195_v1 = vpop.permute.xlu1 %13215 }
 0xaf1   : > { %v24197_v3 = vpop.permute.xlu0 %13527 }
 0xaf2   : > { %v24199_v41 = vpop.permute.xlu1 %13529 }
 0xaf5   : > { %v24201_v63 = vpop.permute.xlu0 %13531 }
 0xaf6   : > { %v24203_v2 = vpop.permute.xlu1 %13533 }
 0xaf7   : > { %25673 = vst [vmem:[#allocation15_spill] sm:$0xff] %v24203_v2 }
 0xaf9   : > { %v24205_v20 = vpop.permute.xlu0 %13690 }
 0xafa   : > { %25674 = vst [vmem:[#allocation16_spill] sm:$0xff] %v24205_v20  ;;  %v24207_v5 = vpop.permute.xlu1 %13692 }
 0xafb   : > { %25675 = vst [vmem:[#allocation17_spill] sm:$0xff] %v24207_v5 }
 0xafd   : > { %v24209_v26 = vpop.permute.xlu0 %13694 }
 0xafe   : > { %25676 = vst [vmem:[#allocation18_spill] sm:$0xff] %v24209_v26  ;;  %v24211_v12 = vpop.permute.xlu1 %13696 }
 0xaff   : > { %25677 = vst [vmem:[#allocation19_spill] sm:$0xff] %v24211_v12 }
 0xb01   : > { %v24213_v22 = vpop.permute.xlu0 %13853 }
 0xb02   : > { %25678 = vst [vmem:[#allocation20_spill] sm:$0xff] %v24213_v22  ;;  %v24215_v19 = vpop.permute.xlu1 %13855 }
 0xb03   : > { %25679 = vst [vmem:[#allocation21_spill] sm:$0xff] %v24215_v19 }
 0xb05   : > { %v24217_v11 = vpop.permute.xlu0 %13857 }
 0xb06   : > { %25680 = vst [vmem:[#allocation22_spill] sm:$0xff] %v24217_v11  ;;  %v24219_v42 = vpop.permute.xlu1 %13859 }
 0xb07   : > { %25681 = vst [vmem:[#allocation23_spill] sm:$0xff] %v24219_v42  ;;  %v11593_v42 = vsel %vm649_vm0, %v24071_v46, %v24077_v52 }
 0xb09   : > { %v24221_v39 = vpop.permute.xlu0 %14016 }
 0xb0a   : > { %25682 = vst [vmem:[#allocation24_spill] sm:$0xff] %v24221_v39  ;;  %v24223_v15 = vpop.permute.xlu1 %14018  ;;  %v11920_v39 = vsel %vm1156_vm5, %v24101_v57, %v24095_v27 }
 0xb0d   : > { %v24225_v2 = vpop.permute.xlu0 %14020 }
 0xb0e   : > { %25683 = vst [vmem:[#allocation25_spill] sm:$0xff] %v24225_v2  ;;  %v24227_v20 = vpop.permute.xlu1 %14022  ;;  %v11592_v2 = vsel %vm649_vm0, %v24077_v52, %v24075_v54 }
 0xb0f   : > { %25684 = vst [vmem:[#allocation26_spill] sm:$0xff] %v24227_v20  ;;  %v11594_v20 = vsel %vm649_vm0, %v24081_v59, %v24071_v46  ;;  %v11756_v46 = vsel %vm980_vm4, %v24083_v24, %v24093_v9 }
 0xb11   : > { %v24229_v5 = vpop.permute.xlu0 %14179 }
 0xb12   : > { %25685 = vst [vmem:[#allocation27_spill] sm:$0xff] %v24229_v5  ;;  %v24231_v26 = vpop.permute.xlu1 %14181 }
 0xb13   : > { %25686 = vst [vmem:[#allocation28_spill] sm:$0xff] %v24231_v26 }
 0xb15   : > { %v24233_v12 = vpop.permute.xlu0 %14183 }
 0xb16   : > { %25687 = vst [vmem:[#allocation29_spill] sm:$0xff] %v24233_v12  ;;  %v24235_v22 = vpop.permute.xlu1 %14185 }
 0xb17   : > { %25688 = vst [vmem:[#allocation30_spill] sm:$0xff] %v24235_v22  ;;  %v11430_v22 = vsel %vm634_vm3, %v24059_v6, %v24065_v48 }
 0xb18   : > { %v11596_v12 = vadd.f32 %v11593_v42, %v11430_v22  ;;  %v11429_v22 = vsel %vm634_vm3, %v24065_v48, %v24063_v47  ;;  %v11428_v42 = vsel %vm634_vm3, %v24063_v47, %v24069_v53  ;;  %v12083_v48 = vsel %vm1332_vm6, %v24113_v8, %v24107_v35 }
 0xb19   : > { %v24237_v19 = vpop.permute.xlu0 %14342 }
 0xb1a   : > { %25689 = vst [vmem:[#allocation31_spill] sm:$0xff] %v24237_v19  ;;  %v24239_v11 = vpop.permute.xlu1 %14344  ;;  %v11431_v19 = vsel %vm634_vm3, %v24069_v53, %v24059_v6  ;;  %v11591_v6 = vsel %vm649_vm0, %v24075_v54, %v24081_v59  ;;  %v11759_v52 = vadd.f32 %v11756_v46, %v11596_v12  ;;  %v12082_v12 = vsel %vm1332_vm6, %v24107_v35, %v24117_v37 }
 0xb1b   : > { %25690 = vst [vmem:[#allocation32_spill] sm:$0xff] %v24239_v11  ;;  %v11757_v11 = vsel %vm980_vm4, %v24089_v17, %v24083_v24  ;;  %v11595_v26 = vadd.f32 %v11594_v20, %v11431_v19  ;;  %v11919_v19 = vsel %vm1156_vm5, %v24095_v27, %v24105_v34  ;;  %v11754_v24 = vsel %vm980_vm4, %v24087_v16, %v24089_v17 }
 0xb1c   : > { %v11755_v27 = vsel %vm980_vm4, %v24093_v9, %v24087_v16  ;;  %v11598_v47 = vadd.f32 %v11591_v6, %v11428_v42  ;;  %v11922_v17 = vadd.f32 %v11919_v19, %v11759_v52  ;;  %v11917_v16 = vsel %vm1156_vm5, %v24099_v7, %v24101_v57 }
 0xb1d   : > { %v24249_v5 = vpop.permute.xlu0 %14346  ;;  %v11758_v54 = vadd.f32 %v11757_v11, %v11595_v26  ;;  %v11597_v11 = vadd.f32 %v11592_v2, %v11429_v22  ;;  %v11918_v9 = vsel %vm1156_vm5, %v24105_v34, %v24099_v7  ;;  %v12246_v35 = vsel %vm1508_vm7, %v24125_v43, %v24119_v4 }
 0xb1e   : > { %25691 = vst [vmem:[#allocation33_spill] sm:$0xff] %v24249_v5  ;;  %v24267_v5 = vpop.permute.xlu1 %14348  ;;  %v12245_v2 = vsel %vm1508_vm7, %v24119_v4, %v24129_v38  ;;  %v12085_v6 = vadd.f32 %v12082_v12, %v11922_v17  ;;  %v12080_v7 = vsel %vm1332_vm6, %v24111_v21, %v24113_v8  ;;  %v12081_v34 = vsel %vm1332_vm6, %v24117_v37, %v24111_v21 }
 0xb1f   : > { %v11921_v53 = vadd.f32 %v11920_v39, %v11758_v54  ;;  %v11761_v39 = vadd.f32 %v11754_v24, %v11598_v47  ;;  %v11760_v20 = vadd.f32 %v11755_v27, %v11597_v11  ;;  %v12409_v4 = vsel %vm1684_vm8, %v24137_v49, %v24131_v44 }
 0xb20   : > { %v12408_v19 = vsel %vm1684_vm8, %v24131_v44, %v24141_v58  ;;  %v12248_v52 = vadd.f32 %v12245_v2, %v12085_v6  ;;  %v12243_v21 = vsel %vm1508_vm7, %v24123_v28, %v24125_v43  ;;  %v12244_v37 = vsel %vm1508_vm7, %v24129_v38, %v24123_v28 }
 0xb21   : > { %v24293_v59 = vpop.permute.xlu0 %14505  ;;  %v12084_v46 = vadd.f32 %v12083_v48, %v11921_v53  ;;  %v11924_v42 = vadd.f32 %v11917_v16, %v11761_v39  ;;  %v11923_v54 = vadd.f32 %v11918_v9, %v11760_v20  ;;  %v12572_v44 = vsel %vm1860_vm9, %v24149_v18, %v24143_v55 }
 0xb22   : > { %v24311_v26 = vpop.permute.xlu1 %14507  ;;  %v12571_v24 = vsel %vm1860_vm9, %v24143_v55, %v24153_v30  ;;  %v12411_v11 = vadd.f32 %v12408_v19, %v12248_v52  ;;  %v12406_v28 = vsel %vm1684_vm8, %v24135_v45, %v24137_v49  ;;  %v12407_v38 = vsel %vm1684_vm8, %v24141_v58, %v24135_v45 }
 0xb23   : > { %v12247_v8 = vadd.f32 %v12246_v35, %v12084_v46  ;;  %v12087_v27 = vadd.f32 %v12080_v7, %v11924_v42  ;;  %v12086_v48 = vadd.f32 %v12081_v34, %v11923_v54  ;;  %v12735_v55 = vsel %vm25692_vm1, %v24160_v14, %v24155_v32 }
 0xb24   : > { %v12734_v47 = vsel %vm25693_vm13, %v24155_v32, %v24164_v31  ;;  %v12574_v9 = vadd.f32 %v12571_v24, %v12411_v11  ;;  %v12569_v45 = vsel %vm1860_vm9, %v24147_v56, %v24149_v18  ;;  %v12570_v58 = vsel %vm1860_vm9, %v24153_v30, %v24147_v56 }
 0xb25   : > { %v24329_v57 = vpop.permute.xlu0 %14509  ;;  %v12410_v12 = vadd.f32 %v12409_v4, %v12247_v8  ;;  %v12250_v17 = vadd.f32 %v12243_v21, %v12087_v27  ;;  %v12249_v16 = vadd.f32 %v12244_v37, %v12086_v48  ;;  %v12898_v32 = vsel %vm25694_vm10, %v24172_v50, %v24166_v61 }
 0xb26   : > { %v24347_v22 = vpop.permute.xlu1 %14511  ;;  %v12897_v35 = vsel %vm25695_vm11, %v24166_v61, %v24176_v25  ;;  %v12737_v46 = vadd.f32 %v12734_v47, %v12574_v9  ;;  %v12732_v56 = vsel %vm25696_vm12, %v24158_v33, %v24160_v14  ;;  %v12733_v30 = vsel %vm25692_vm1, %v24164_v31, %v24158_v33  ;;  %vm25699_vm12 = vmmov %vm25695_vm11  ;;  %v25706_v47 = vld [vmem:[#allocation12_spill] sm:$0xff]  ;;  %v25710_v9 = vld [vmem:[#allocation18_spill] sm:$0xff] }
 0xb27   : > { %v12573_v49 = vadd.f32 %v12572_v44, %v12410_v12  ;;  %v12413_v2 = vadd.f32 %v12406_v28, %v12250_v17  ;;  %v12412_v39 = vadd.f32 %v12407_v38, %v12249_v16  ;;  %vm25697_vm13 = vcmp.lt.s32.totalorder %v21676_v13, 2  ;;  %v25707_v17 = vld [vmem:[#allocation17_spill] sm:$0xff]  ;;  %v25708_v16 = vld [vmem:[#allocation16_spill] sm:$0xff] }
 0xb28   : > { %v13061_v61 = vsel %vm25697_vm13, %v24185_v60, %v24178_v23  ;;  %vm25698_vm10 = vmmov %vm25697_vm13  ;;  %v12900_v19 = vadd.f32 %v12897_v35, %v12737_v46  ;;  %v12895_v33 = vsel %vm25695_vm11, %v24170_v0, %v24172_v50  ;;  %v12896_v31 = vsel %vm25699_vm12, %v24176_v25, %v24170_v0  ;;  %v25712_v35 = vld [vmem:[#allocation15_spill] sm:$0xff] }
 0xb29   : > { %v24365_v43 = vpop.permute.xlu0 %14668  ;;  %v12736_v20 = vadd.f32 %v12735_v55, %v12573_v49  ;;  %v13060_v6 = vsel %vm25698_vm10, %v24178_v23, %v24187_v40  ;;  %v12576_v34 = vadd.f32 %v12569_v45, %v12413_v2  ;;  %v12575_v4 = vadd.f32 %v12570_v58, %v12412_v39  ;;  %vm25702_vm11 = vmmov %vm25698_vm10  ;;  %v25715_v39 = vld [vmem:[#allocation21_spill] sm:$0xff] }
 0xb2a   : > { %v24383_v53 = vpop.permute.xlu1 %14670  ;;  %vm25700_vm1 = vcmp.lt.s32.totalorder %v21676_v13, 1  ;;  %v13063_v21 = vadd.f32 %v13060_v6, %v12900_v19  ;;  %v13058_v0 = vsel %vm25698_vm10, %v24182_v29, %v24185_v60  ;;  %v13059_v25 = vsel %vm25702_vm11, %v24187_v40, %v24182_v29  ;;  %v25722_v19 = vld [vmem:[#allocation19_spill] sm:$0xff] }
 0xb2b   : > { %v12899_v14 = vadd.f32 %v12898_v32, %v12736_v20  ;;  %v13224_v23 = vsel %vm25700_vm1, %v24193_v51, %v24189_v36  ;;  %vm25701_vm13 = vmmov %vm25700_vm1  ;;  %v12739_v54 = vadd.f32 %v12732_v56, %v12576_v34  ;;  %v12738_v8 = vadd.f32 %v12733_v30, %v12575_v4  ;;  %v25716_v20 = vld [vmem:[#allocation20_spill] sm:$0xff]  ;;  %v25718_v56 = vld [vmem:[#allocation22_spill] sm:$0xff] }
 0xb2c   : > { %v13223_v42 = vsel %vm25701_vm13, %v24189_v36, %v24195_v1  ;;  %vm25703_vm12 = vmmov %vm25700_vm1  ;;  %v13222_v60 = vsel %vm25700_vm1, %v24195_v1, %v24191_v10  ;;  %vm25704_vm13 = vcmp.lt.s32.totalorder %v21676_v13, 127  ;;  %vm25709_vm11 = vcmp.lt.s32.totalorder %v21676_v13, 126  ;;  %v25721_v34 = vld [vmem:[#allocation13_spill] sm:$0xff] }
 0xb2d   : > { %v24401_v18 = vpop.permute.xlu0 %14672  ;;  %v13062_v52 = vadd.f32 %v13061_v61, %v12899_v14  ;;  %v12902_v44 = vadd.f32 %v12895_v33, %v12739_v54  ;;  %v12901_v36 = vadd.f32 %v12896_v31, %v12738_v8  ;;  %v13226_v27 = vadd.f32 %v13223_v42, %v13063_v21  ;;  %vm25705_vm10 = vmmov %vm25704_vm13  ;;  %v25720_v61 = vld [vmem:[#allocation11_spill] sm:$0xff]  ;;  %v25724_v31 = vld [vmem:[#allocation24_spill] sm:$0xff] }
 0xb2e   : > { %v24419_v7 = vpop.permute.xlu1 %14674  ;;  %v13221_v48 = vsel %vm25703_vm12, %v24191_v10, %v24193_v51  ;;  %v13537_v29 = vsel %vm25704_vm13, %v24197_v3, %v24199_v41  ;;  %v13536_v40 = vsel %vm25705_vm10, %v24199_v41, %v24201_v63  ;;  %v13700_v49 = vsel %vm25709_vm11, %v25708_v16, %v25707_v17  ;;  %vm25711_vm12 = vmmov %vm25709_vm11  ;;  %v25726_v42 = vld [vmem:[#allocation25_spill] sm:$0xff] }
 0xb2f   : > { %v13225_v24 = vadd.f32 %v13224_v23, %v13062_v52  ;;  %v13065_v12 = vadd.f32 %v13058_v0, %v12902_v44  ;;  %v13064_v11 = vadd.f32 %v13059_v25, %v12901_v36  ;;  %v13377_v1 = vadd.f32 %v25706_v47, %v13226_v27  ;;  %vm25713_vm1 = vmmov %vm25705_vm10  ;;  %v25728_v36 = vld [vmem:[#allocation23_spill] sm:$0xff] }
 0xb30   : > { %v13699_v45 = vsel %vm25711_vm12, %v25707_v17, %v25710_v9  ;;  %vm25714_vm13 = vmmov %vm25713_vm1  ;;  %vm25717_vm10 = vcmp.lt.s32.totalorder %v21676_v13, 110  ;;  %v25737_v17 = vld [vmem:[#allocation32_spill] sm:$0xff] }
 0xb31   : > { %v24437_v50 = vpop.permute.xlu0 %14831  ;;  %v13228_v51 = vadd.f32 %v13221_v48, %v13065_v12  ;;  %v13227_v38 = vadd.f32 %v13222_v60, %v13064_v11  ;;  %v13376_v55 = vadd.f32 %v24042_v62, %v13225_v24  ;;  %v13540_v41 = vadd.f32 %v13536_v40, %v13377_v1  ;;  %vm25719_vm11 = vmmov %vm25717_vm10  ;;  %v25730_v48 = vld [vmem:[#allocation28_spill] sm:$0xff]  ;;  %v25731_v60 = vld [vmem:[#allocation27_spill] sm:$0xff] }
 0xb32   : > { %v24447_v37 = vpop.permute.xlu1 %14833  ;;  %v13535_v62 = vsel %vm25713_vm1, %v24201_v63, %v25712_v35  ;;  %v13538_v2 = vsel %vm25714_vm13, %v25712_v35, %v24197_v3  ;;  %v13863_v46 = vsel %vm25717_vm10, %v25716_v20, %v25715_v39  ;;  %v13862_v30 = vsel %vm25719_vm11, %v25715_v39, %v25718_v56  ;;  %vm25723_vm1 = vmmov %vm25711_vm12  ;;  %v25733_v12 = vld [vmem:[#allocation29_spill] sm:$0xff] }
 0xb33   : > { %v13539_v58 = vadd.f32 %v13537_v29, %v13376_v55  ;;  %v13378_v6 = vadd.f32 %v25720_v61, %v13227_v38  ;;  %v13379_v4 = vadd.f32 %v25721_v34, %v13228_v51  ;;  %v13703_v14 = vadd.f32 %v13699_v45, %v13540_v41  ;;  %v25735_v55 = vld [vmem:[#allocation26_spill] sm:$0xff] }
 0xb34   : > { %v13698_v3 = vsel %vm25711_vm12, %v25710_v9, %v25722_v19  ;;  %v13701_v33 = vsel %vm25723_vm1, %v25722_v19, %v25708_v16  ;;  %vm25725_vm13 = vcmp.lt.s32.totalorder %v21676_v13, 109  ;;  %v13861_v24 = vsel %vm25719_vm11, %v25718_v56, %v25728_v36  ;;  %vm25729_vm12 = vmmov %vm25719_vm11  ;;  %v25738_v16 = vld [vmem:[#allocation31_spill] sm:$0xff]  ;;  %v25740_v9 = vld [vmem:[#allocation33_spill] sm:$0xff] }
 0xb35   : > { %v24457_v28 = vpop.permute.xlu0 %14835  ;;  %v13702_v63 = vadd.f32 %v13700_v49, %v13539_v58  ;;  %v14026_v23 = vsel %vm25725_vm13, %v25724_v31, %v24223_v15  ;;  %vm25727_vm10 = vmmov %vm25725_vm13  ;;  %v13541_v8 = vadd.f32 %v13535_v62, %v13378_v6  ;;  %v13542_v52 = vadd.f32 %v13538_v2, %v13379_v4 }
 0xb36   : > { %v24469_v10 = vpop.permute.xlu1 %14837  ;;  %v14025_v54 = vsel %vm25727_vm10, %v24223_v15, %v25726_v42  ;;  %v13866_v0 = vadd.f32 %v13862_v30, %v13703_v14  ;;  %v13864_v27 = vsel %vm25729_vm12, %v25728_v36, %v25716_v20  ;;  %vm25732_vm1 = vcmp.lt.s32.totalorder %v21676_v13, 108  ;;  %vm25736_vm11 = vmmov %vm25727_vm10  ;;  %v25742_v20 = vld [vmem:[#allocation30_spill] sm:$0xff] }
 0xb37   : > { %v13865_v21 = vadd.f32 %v13863_v46, %v13702_v63  ;;  %v14189_v15 = vsel %vm25732_vm1, %v25731_v60, %v25730_v48  ;;  %vm25734_vm13 = vmmov %vm25732_vm1  ;;  %v13704_v29 = vadd.f32 %v13698_v3, %v13541_v8  ;;  %v13705_v40 = vadd.f32 %v13701_v33, %v13542_v52 }
 0xb38   : > { %v14188_v11 = vsel %vm25734_vm13, %v25730_v48, %v25733_v12  ;;  %v14029_v38 = vadd.f32 %v14025_v54, %v13866_v0  ;;  %v14024_v47 = vsel %vm25727_vm10, %v25726_v42, %v25735_v55  ;;  %v14027_v1 = vsel %vm25736_vm11, %v25735_v55, %v25724_v31  ;;  %vm25743_vm10 = vmmov %vm25734_vm13 }
 0xb39   : > { %v24479_v32 = vpop.permute.xlu0 %14994  ;;  %v14028_v51 = vadd.f32 %v14026_v23, %v13865_v21  ;;  %vm25739_vm12 = vcmp.lt.s32.totalorder %v21676_v13, 107  ;;  %v13867_v58 = vadd.f32 %v13861_v24, %v13704_v29  ;;  %v13868_v41 = vadd.f32 %v13864_v27, %v13705_v40 }
 0xb3a   : > { %v14997_v25 = vpop.permute.xlu1 %14996  ;;  %v14352_v49 = vsel %vm25739_vm12, %v25738_v16, %v25737_v17  ;;  %vm25741_vm1 = vmmov %vm25739_vm12  ;;  %v14192_v62 = vadd.f32 %v14188_v11, %v14029_v38  ;;  %v14187_v46 = vsel %vm25734_vm13, %v25733_v12, %v25742_v20  ;;  %v14190_v56 = vsel %vm25743_vm10, %v25742_v20, %v25731_v60 }
 0xb3b   : > { %v14351_v45 = vsel %vm25741_vm1, %v25737_v17, %v25740_v9  ;;  %v14191_v35 = vadd.f32 %v14189_v15, %v14028_v51  ;;  %vm25744_vm11 = vcmp.lt.s32.totalorder %v21676_v13, 106  ;;  %v14030_v6 = vadd.f32 %v14024_v47, %v13867_v58  ;;  %vm25746_vm13 = vmmov %vm25741_vm1 }
 0xb3c   : > { %v14515_v30 = vsel %vm25744_vm11, %v24293_v59, %v24311_v26  ;;  %vm25745_vm12 = vmmov %vm25744_vm11  ;;  %v14031_v34 = vadd.f32 %v14027_v1, %v13868_v41  ;;  %v14355_v63 = vadd.f32 %v14351_v45, %v14192_v62  ;;  %v14350_v14 = vsel %vm25741_vm1, %v25740_v9, %v24267_v5 }
 0xb3d   : > { %v24515_v44 = vpop.permute.xlu0 %14998  ;;  %v14514_v61 = vsel %vm25745_vm12, %v24311_v26, %v24329_v57  ;;  %v14354_v4 = vadd.f32 %v14352_v49, %v14191_v35  ;;  %v14353_v19 = vsel %vm25746_vm13, %v24267_v5, %v25738_v16  ;;  %vm25747_vm10 = vcmp.lt.s32.totalorder %v21676_v13, 90  ;;  %vm25749_vm1 = vmmov %vm25745_vm12 }
 0xb3e   : > { %v14678_v3 = vsel %vm25747_vm10, %v24365_v43, %v24383_v53  ;;  %vm25748_vm11 = vmmov %vm25747_vm10  ;;  %v14193_v33 = vadd.f32 %v14187_v46, %v14030_v6  ;;  %v14194_v31 = vadd.f32 %v14190_v56, %v14031_v34  ;;  %v14518_v42 = vadd.f32 %v14514_v61, %v14355_v63  ;;  %v25757_v46 = vld [vmem:[#allocation14_spill] sm:$0xff]  ;;  %v25758_v34 = vld [vmem:[#allocation7_spill] sm:$0xff] }
 0xb3f   : > { %v14677_v26 = vsel %vm25748_vm11, %v24383_v53, %v24401_v18  ;;  %v14517_v23 = vadd.f32 %v14515_v30, %v14354_v4  ;;  %v14513_v5 = vsel %vm25745_vm12, %v24329_v57, %v24347_v22  ;;  %v14516_v52 = vsel %vm25749_vm1, %v24347_v22, %v24293_v59  ;;  %vm25752_vm12 = vmmov %vm25748_vm11  ;;  %v25759_v63 = vld [vmem:[#allocation8_spill] sm:$0xff] }
 0xb40   : > { %vm25750_vm13 = vcmp.lt.s32.totalorder %v21676_v13, 89  ;;  %v14356_v0 = vadd.f32 %v14350_v14, %v14193_v33  ;;  %v14357_v36 = vadd.f32 %v14353_v19, %v14194_v31  ;;  %v14681_v27 = vadd.f32 %v14677_v26, %v14518_v42  ;;  %v25760_v42 = vld [vmem:[#allocation9_spill] sm:$0xff] }
 0xb41   : > { %v15001_v2 = vpop.permute.xlu0 %15000  ;;  %v15158_v39 = vpop.permute.xlu1 %15157  ;;  %v14841_v53 = vsel %vm25750_vm13, %v24437_v50, %v24447_v37  ;;  %vm25751_vm10 = vmmov %vm25750_vm13  ;;  %v14680_v24 = vadd.f32 %v14678_v3, %v14517_v23  ;;  %v14676_v57 = vsel %vm25748_vm11, %v24401_v18, %v24419_v7  ;;  %v14679_v59 = vsel %vm25752_vm12, %v24419_v7, %v24365_v43 }
 0xb42   : > { %v14840_v21 = vsel %vm25751_vm10, %v24447_v37, %v24457_v28  ;;  %vm25753_vm1 = vcmp.lt.s32.totalorder %v21676_v13, 88  ;;  %v14519_v48 = vadd.f32 %v14513_v5, %v14356_v0  ;;  %v14520_v60 = vadd.f32 %v14516_v52, %v14357_v36  ;;  %vm25755_vm11 = vmmov %vm25751_vm10 }
 0xb43   : > { %v15004_v22 = vsel %vm25753_vm1, %v24479_v32, %v14997_v25  ;;  %vm25754_vm13 = vmmov %vm25753_vm1  ;;  %v14843_v15 = vadd.f32 %v14841_v53, %v14680_v24  ;;  %v14844_v12 = vadd.f32 %v14840_v21, %v14681_v27  ;;  %v14839_v18 = vsel %vm25751_vm10, %v24457_v28, %v24469_v10 }
 0xb44   : > { %v15003_v37 = vsel %vm25754_vm13, %v14997_v25, %v24515_v44  ;;  %v14842_v43 = vsel %vm25755_vm11, %v24469_v10, %v24437_v50  ;;  %v14682_v40 = vadd.f32 %v14676_v57, %v14519_v48  ;;  %v14683_v51 = vadd.f32 %v14679_v59, %v14520_v60  ;;  %vm25756_vm12 = vmmov %vm25753_vm1  ;;  %v15364_v59 = vld [vmem:[%s25462_s16] sm:$0xff] }
 0xb45   : > { %v15162_v54 = vpop.permute.xlu1 %15161  ;;  %v15160_v8 = vpop.permute.xlu0 %15159  ;;  %v15006_v38 = vadd.f32 %v15004_v22, %v14843_v15  ;;  %v15007_v55 = vadd.f32 %v15003_v37, %v14844_v12  ;;  %v15002_v47 = vsel %vm25756_vm12, %v24515_v44, %v15001_v2  ;;  %v15005_v28 = vsel %vm25753_vm1, %v15001_v2, %v24479_v32 }
 0xb46   : > { %v15166_v7 = vsel %vm4659_vm14, %v15160_v8, %v15162_v54  ;;  %v15167_v25 = vsel %vm4659_vm14, %v15158_v39, %v15160_v8  ;;  %v14845_v1 = vadd.f32 %v14839_v18, %v14682_v40  ;;  %v14846_v50 = vadd.f32 %v14842_v43, %v14683_v51  ;;  %v25761_v8 = vld [vmem:[#allocation10_spill] sm:$0xff]  ;;  %v15530_v40 = vld [vmem:[%s25764_s13] sm:$0xff] }
 0xb47   : > { %v15169_v10 = vadd.f32 %v15167_v25, %v15006_v38  ;;  %v15170_v17 = vadd.f32 %v15166_v7, %v15007_v55  ;;  %v25762_v48 = vmov 0.0   ;;  %v19620_v51 = vld [vmem:[#allocation2] sm:$0x1]  ;;  %vm25778_vm12 = vcmp.lt.s32.totalorder %v21676_v13, 1 }
 0xb48   : > { %v15008_v41 = vadd.f32 %v15002_v47, %v14845_v1  ;;  %v15009_v32 = vadd.f32 %v15005_v28, %v14846_v50  ;;  %vm25779_vm1 = vmmov %vm25778_vm12 }
 0xb49   : > { %v15164_v11 = vpop.permute.xlu0 %15163  ;;  %v15321_v29 = vpop.permute.xlu1 %15320 }
 0xb4a   : > { %v15165_v9 = vsel %vm4659_vm14, %v15162_v54, %v15164_v11  ;;  %v15168_v45 = vsel %vm4659_vm14, %v15164_v11, %v15158_v39 }
 0xb4b   : > { %v15171_v2 = vadd.f32 %v15165_v9, %v15008_v41  ;;  %v15172_v20 = vadd.f32 %v15168_v45, %v15009_v32 }
 0xb4d   : > { %v15325_v16 = vpop.permute.xlu1 %15324  ;;  %v15323_v49 = vpop.permute.xlu0 %15322 }
 0xb4e   : > { %v15329_v58 = vsel %vm4835_vm15, %v15323_v49, %v15325_v16  ;;  %v15330_v44 = vsel %vm4835_vm15, %v15321_v29, %v15323_v49 }
 0xb4f   : > { %v15332_v35 = vadd.f32 %v15330_v44, %v15169_v10  ;;  %v15333_v62 = vadd.f32 %v15329_v58, %v15170_v17 }
 0xb51   : > { %v15342_v56 = vadd.f32 %v25757_v46, %v15332_v35  ;;  %v15343_v30 = vadd.f32 %v25757_v46, %v15333_v62  ;;  %v15327_v61 = vpop.permute.xlu0 %15326 }
 0xb52   : > { %v15328_v39 = vsel %vm4835_vm15, %v15325_v16, %v15327_v61  ;;  %v15331_v6 = vsel %vm4835_vm15, %v15327_v61, %v15321_v29  ;;  %v15540_v29 = vld [vmem:[%s25763_s22] sm:$0xff] }
 0xb53   : > { %v15346_v4 = vmul.f32 %v15342_v56, %v25758_v34  ;;  %v15347_v14 = vmul.f32 %v15343_v30, %v25759_v63  ;;  %v15334_v19 = vadd.f32 %v15328_v39, %v15171_v2  ;;  %v15335_v3 = vadd.f32 %v15331_v6, %v15172_v20 }
 0xb55   : > { %v15344_v26 = vadd.f32 %v25757_v46, %v15334_v19  ;;  %v15345_v33 = vadd.f32 %v25757_v46, %v15335_v3  ;;  %v15355_v31 = vmul.f32 %v15346_v4, %v15346_v4  ;;  %v15356_v23 = vmul.f32 %v15347_v14, %v15347_v14  ;;  %v15558_v19 = vld [vmem:[%s25765_s12] sm:$0x1]  ;;  %v20292_v3 = vld [vmem:[%s25765_s12 + $0x3] sm:$0x1] }
 0xb56   : > { %v15350_v52 = vadd.f32 %v15347_v14, %v15346_v4 }
 0xb57   : > { %v15348_v54 = vmul.f32 %v15344_v26, %v25760_v42  ;;  %v15349_v5 = vmul.f32 %v15345_v33, %v25761_v8  ;;  %v15359_v0 = vadd.f32 %v15356_v23, %v15355_v31  ;;  %v20295_v26 = vld [vmem:[%s25765_s12 + $0x4] sm:$0x1]  ;;  %v20298_v33 = vld [vmem:[%s25765_s12 + $0x5] sm:$0x1]  ;;  %v20301_v31 = vld [vmem:[%s25765_s12 + $0x6] sm:$0x1] }
 0xb58   : > { %v20304_v23 = vld [vmem:[%s25765_s12 + $0x7] sm:$0x1] }
 0xb59   : > { %v15351_v53 = vadd.f32 %v15350_v52, %v15348_v54  ;;  %v15357_v21 = vmul.f32 %v15348_v54, %v15348_v54  ;;  %v15358_v24 = vmul.f32 %v15349_v5, %v15349_v5  ;;  %v20319_v52 = vld [vmem:[%s25765_s12 + $0xc] sm:$0x1] }
 0xb5b   : > { %v15352_v36 = vadd.f32 %v15351_v53, %v15349_v5  ;;  %v15360_v27 = vadd.f32 %v15359_v0, %v15357_v21  ;;  %v20322_v53 = vld [vmem:[%s25765_s12 + $0xd] sm:$0x1]  ;;  %v20325_v21 = vld [vmem:[%s25765_s12 + $0xe] sm:$0x1]  ;;  %v20328_v0 = vld [vmem:[%s25765_s12 + $0xf] sm:$0x1] }
 0xb5d   : > { %15353 = vadd.xlane.f32.xlu1 %v15352_v36  ;;  %v15361_v57 = vadd.f32 %v15360_v27, %v15358_v24  ;;  %v20331_v36 = vld [vmem:[%s25765_s12 + $0x10] sm:$0x1]  ;;  %v20334_v24 = vld [vmem:[%s25765_s12 + $0x11] sm:$0x1]  ;;  %v20337_v27 = vld [vmem:[%s25765_s12 + $0x12] sm:$0x1] }
 0xb5f   : > { %15362 = vadd.xlane.f32.xlu0 %v15361_v57  ;;  %v20340_v57 = vld [vmem:[%s25765_s12 + $0x13] sm:$0x1] }
 0xbea   : > { %v15354_v22 = vpop.xlane.xlu1 %15353 }
 0xbeb   : > { %20423 = vmatpush3.msra.mxu0 %v15354_v22  ;;  %v20346_v22 = vld [vmem:[%s25765_s12 + $0x15] sm:$0x1] }
 0xbec   : > { %v15363_v37 = vpop.xlane.xlu0 %15362  ;;  %20425 = vmatmul.mubr.msk.f32.vlgmr.msra.gmra.mrb[66].mxu0 %vm5051_vm2, %v15364_v59 }
 0xbed   : > { %20428 = vmatpush3.msra.mxu1 %v15363_v37  ;;  %15626 = vmatprep.mubr.f32.mxu0 %v25762_v48  ;;  %v20349_v37 = vld [vmem:[%s25765_s12 + $0x16] sm:$0x1] }
 0xbee   : > { %20430 = vmatmul.mubr.msk.f32.vlgmr.msra.gmra.mrb[66].mxu1 %vm5051_vm2, %v15364_v59  ;;  %v20343_v59 = vld [vmem:[%s25765_s12 + $0x14] sm:$0x1] }
 0xbef   : > { %15697 = vmatprep.mubr.f32.mxu1 %v25762_v48 }
 0xcbf   : > { %v15434_v60 = vpop.f32.mrb[66].mxu0 }
 0xcc0   : > { %v15508_v15 = vmul.f32 %v15434_v60, %v15434_v60  ;;  %15512 = vperm.xlu0 %21364, %v15434_v60   ;;  %v20426_v12 = vpop.f32.mrb[67].mxu0  ;;  %v20352_v60 = vld [vmem:[%s25765_s12 + $0x17] sm:$0x1] }
 0xcc1   : > { %v15504_v11 = vpop.f32.mrb[66].mxu1 }
 0xcc2   : > { %v15509_v18 = vsub.f32 %v15504_v11, %v15508_v15  ;;  %v20431_v43 = vpop.f32.mrb[67].mxu1  ;;  %v20355_v15 = vld [vmem:[%s25765_s12 + $0x18] sm:$0x1] }
 0xcc4   : > { %v15519_v7 = vadd.f32 1e-05, %v15509_v18  ;;  %15543 = vperm.xlu0 %21364, %v15540_v29  }
 0xcc6   : > { %21376 = vrsqrt.f32 %v15519_v7 }
 0xcd0   : > { %v21377_v25 = vpop.eup %21376 }
 0xcd1   : > { %15523 = vperm.xlu1 %21365, %v21377_v25  }
 0xcd5   : > { %15533 = vperm.xlu1 %21365, %v15530_v40  }
 0xcd9   : > { %19623 = vperm.xlu1 %21365, %v19620_v51  }
 0xd3f   : > { %v15513_v38 = vpop.permute.xlu0 %15512 }
 0xd40   : > { %v15515_v47 = vsub.f32 %v15346_v4, %v15513_v38  ;;  %v15516_v28 = vsub.f32 %v15347_v14, %v15513_v38  ;;  %v15517_v1 = vsub.f32 %v15348_v54, %v15513_v38  ;;  %v15518_v50 = vsub.f32 %v15349_v5, %v15513_v38  ;;  %v20310_v54 = vld [vmem:[%s25765_s12 + $0x9] sm:$0x1]  ;;  %v20316_v5 = vld [vmem:[%s25765_s12 + $0xb] sm:$0x1] }
 0xd43   : > { %v15544_v32 = vpop.permute.xlu0 %15543 }
 0xd50   : > { %v15524_v55 = vpop.permute.xlu1 %15523 }
 0xd51   : > { %v15526_v10 = vmul.f32 %v15524_v55, %v15515_v47  ;;  %v15527_v17 = vmul.f32 %v15524_v55, %v15516_v28  ;;  %v15528_v16 = vmul.f32 %v15524_v55, %v15517_v1  ;;  %v15529_v49 = vmul.f32 %v15524_v55, %v15518_v50 }
 0xd54   : > { %v15534_v9 = vpop.permute.xlu1 %15533 }
 0xd55   : > { %v15536_v45 = vmul.f32 %v15534_v9, %v15526_v10  ;;  %v15537_v58 = vmul.f32 %v15534_v9, %v15527_v17  ;;  %v15538_v44 = vmul.f32 %v15534_v9, %v15528_v16  ;;  %v15539_v41 = vmul.f32 %v15534_v9, %v15529_v49 }
 0xd57   : > { %v15546_v35 = vadd.f32 %v15544_v32, %v15536_v45  ;;  %v15547_v62 = vadd.f32 %v15544_v32, %v15537_v58  ;;  %v15548_v2 = vadd.f32 %v15544_v32, %v15538_v44  ;;  %v15549_v20 = vadd.f32 %v15544_v32, %v15539_v41 }
 0xd59   : > { %v15550_v46 = vmax.f32 %v15546_v35, 0.0  ;;  %v15551_v56 = vmax.f32 %v15547_v62, 0.0  ;;  %v15552_v30 = vmax.f32 %v15548_v2, 0.0  ;;  %v15553_v61 = vmax.f32 %v15549_v20, 0.0 }
 0xd5b   : > { %v24663_v39 = vmul.f32 %v15550_v46, %v25758_v34  ;;  %v24666_v6 = vmul.f32 %v15551_v56, %v25759_v63  ;;  %v24669_v4 = vmul.f32 %v15552_v30, %v25760_v42  ;;  %v24672_v14 = vmul.f32 %v15553_v61, %v25761_v8  ;;  %v20286_v34 = vld [vmem:[%s25765_s12 + $0x1] sm:$0x1]  ;;  %v20289_v63 = vld [vmem:[%s25765_s12 + $0x2] sm:$0x1]  ;;  %v20307_v42 = vld [vmem:[%s25765_s12 + $0x8] sm:$0x1] }
 0xd5c   : > { %v20313_v8 = vld [vmem:[%s25765_s12 + $0xa] sm:$0x1] }
 0xd5d   : > { %15562 = vmatprep.subr.mxu0 %v24666_v6  ;;  %15633 = vmatprep.subr.mxu1 %v24672_v14 }
 0xd5e   : > { %15563 = vmatpush1.msra.mxu0 %v24663_v39  ;;  %15634 = vmatpush1.msra.mxu1 %v24669_v4 }
 0xd5f   : > { %20284 = vmatmul.mubr.msk.f32.vlgmr.msra.gmra.mrb[68].mxu0 %vm5051_vm2, %v15558_v19  ;;  %20285 = vmatmul.mubr.msk.f32.vlgmr.msra.gmra.mrb[68].mxu1 %vm5051_vm2, %v15558_v19 }
 0xd60   : > { %15725 = vmatprep.subr.mxu0 %v24666_v6  ;;  %15796 = vmatprep.subr.mxu1 %v24672_v14 }
 0xd61   : > { %15726 = vmatpush1.msra.mxu0 %v24663_v39  ;;  %15797 = vmatpush1.msra.mxu1 %v24669_v4 }
 0xd62   : > { %15888 = vmatprep.subr.mxu0 %v24666_v6  ;;  %15959 = vmatprep.subr.mxu1 %v24672_v14 }
 0xd63   : > { %15789 = vmatprep.mubr.f32.mxu0 %v25762_v48  ;;  %15860 = vmatprep.mubr.f32.mxu1 %v25762_v48 }
 0xd64   : > { %20287 = vmatmul.mubr.msk.f32.vlgmr.msra.gmra.mrb[70].mxu0 %vm5051_vm2, %v20286_v34  ;;  %20288 = vmatmul.mubr.msk.f32.vlgmr.msra.gmra.mrb[70].mxu1 %vm5051_vm2, %v20286_v34 }
 0xd65   : > { %15889 = vmatpush1.msra.mxu0 %v24663_v39  ;;  %15960 = vmatpush1.msra.mxu1 %v24669_v4 }
 0xd66   : > { %16051 = vmatprep.subr.mxu0 %v24666_v6  ;;  %16122 = vmatprep.subr.mxu1 %v24672_v14 }
 0xd67   : > { %15952 = vmatprep.mubr.f32.mxu0 %v25762_v48  ;;  %16023 = vmatprep.mubr.f32.mxu1 %v25762_v48 }
 0xd68   : > { %20290 = vmatmul.mubr.msk.f32.vlgmr.msra.gmra.mrb[72].mxu0 %vm5051_vm2, %v20289_v63  ;;  %20291 = vmatmul.mubr.msk.f32.vlgmr.msra.gmra.mrb[72].mxu1 %vm5051_vm2, %v20289_v63 }
 0xd69   : > { %16052 = vmatpush1.msra.mxu0 %v24663_v39  ;;  %16123 = vmatpush1.msra.mxu1 %v24669_v4 }
 0xd6a   : > { %16214 = vmatprep.subr.mxu0 %v24666_v6  ;;  %16285 = vmatprep.subr.mxu1 %v24672_v14 }
 0xd6b   : > { %16115 = vmatprep.mubr.f32.mxu0 %v25762_v48  ;;  %16186 = vmatprep.mubr.f32.mxu1 %v25762_v48 }
 0xd6c   : > { %20293 = vmatmul.mubr.msk.f32.vlgmr.msra.gmra.mrb[74].mxu0 %vm5051_vm2, %v20292_v3  ;;  %20294 = vmatmul.mubr.msk.f32.vlgmr.msra.gmra.mrb[74].mxu1 %vm5051_vm2, %v20292_v3 }
 0xd6d   : > { %16215 = vmatpush1.msra.mxu0 %v24663_v39  ;;  %16286 = vmatpush1.msra.mxu1 %v24669_v4 }
 0xd6e   : > { %16377 = vmatprep.subr.mxu0 %v24666_v6  ;;  %16448 = vmatprep.subr.mxu1 %v24672_v14 }
 0xd6f   : > { %16278 = vmatprep.mubr.f32.mxu0 %v25762_v48  ;;  %16349 = vmatprep.mubr.f32.mxu1 %v25762_v48 }
 0xd70   : > { %20296 = vmatmul.mubr.msk.f32.vlgmr.msra.gmra.mrb[76].mxu0 %vm5051_vm2, %v20295_v26  ;;  %20297 = vmatmul.mubr.msk.f32.vlgmr.msra.gmra.mrb[76].mxu1 %vm5051_vm2, %v20295_v26 }
 0xd71   : > { %16378 = vmatpush1.msra.mxu0 %v24663_v39  ;;  %16449 = vmatpush1.msra.mxu1 %v24669_v4 }
 0xd72   : > { %16540 = vmatprep.subr.mxu0 %v24666_v6  ;;  %16611 = vmatprep.subr.mxu1 %v24672_v14 }
 0xd73   : > { %16441 = vmatprep.mubr.f32.mxu0 %v25762_v48  ;;  %16512 = vmatprep.mubr.f32.mxu1 %v25762_v48 }
 0xd74   : > { %20299 = vmatmul.mubr.msk.f32.vlgmr.msra.gmra.mrb[78].mxu0 %vm5051_vm2, %v20298_v33  ;;  %20300 = vmatmul.mubr.msk.f32.vlgmr.msra.gmra.mrb[78].mxu1 %vm5051_vm2, %v20298_v33 }
 0xd75   : > { %16541 = vmatpush1.msra.mxu0 %v24663_v39  ;;  %16612 = vmatpush1.msra.mxu1 %v24669_v4 }
 0xd76   : > { %16703 = vmatprep.subr.mxu0 %v24666_v6  ;;  %16774 = vmatprep.subr.mxu1 %v24672_v14 }
 0xd77   : > { %16604 = vmatprep.mubr.f32.mxu0 %v25762_v48  ;;  %16675 = vmatprep.mubr.f32.mxu1 %v25762_v48 }
 0xd78   : > { %20302 = vmatmul.mubr.msk.f32.vlgmr.msra.gmra.mrb[80].mxu0 %vm5051_vm2, %v20301_v31  ;;  %20303 = vmatmul.mubr.msk.f32.vlgmr.msra.gmra.mrb[80].mxu1 %vm5051_vm2, %v20301_v31 }
 0xd79   : > { %16704 = vmatpush1.msra.mxu0 %v24663_v39  ;;  %16775 = vmatpush1.msra.mxu1 %v24669_v4 }
 0xd7a   : > { %16866 = vmatprep.subr.mxu0 %v24666_v6  ;;  %16937 = vmatprep.subr.mxu1 %v24672_v14 }
 0xd7b   : > { %16767 = vmatprep.mubr.f32.mxu0 %v25762_v48  ;;  %16838 = vmatprep.mubr.f32.mxu1 %v25762_v48 }
 0xd7c   : > { %20305 = vmatmul.mubr.msk.f32.vlgmr.msra.gmra.mrb[82].mxu0 %vm5051_vm2, %v20304_v23  ;;  %20306 = vmatmul.mubr.msk.f32.vlgmr.msra.gmra.mrb[82].mxu1 %vm5051_vm2, %v20304_v23 }
 0xd7d   : > { %16867 = vmatpush1.msra.mxu0 %v24663_v39  ;;  %16938 = vmatpush1.msra.mxu1 %v24669_v4 }
 0xd7e   : > { %17029 = vmatprep.subr.mxu0 %v24666_v6  ;;  %17100 = vmatprep.subr.mxu1 %v24672_v14 }
 0xd7f   : > { %16930 = vmatprep.mubr.f32.mxu0 %v25762_v48  ;;  %17001 = vmatprep.mubr.f32.mxu1 %v25762_v48 }
 0xd80   : > { %20308 = vmatmul.mubr.msk.f32.vlgmr.msra.gmra.mrb[84].mxu0 %vm5051_vm2, %v20307_v42  ;;  %20309 = vmatmul.mubr.msk.f32.vlgmr.msra.gmra.mrb[84].mxu1 %vm5051_vm2, %v20307_v42 }
 0xd81   : > { %17030 = vmatpush1.msra.mxu0 %v24663_v39  ;;  %17101 = vmatpush1.msra.mxu1 %v24669_v4 }
 0xd82   : > { %17192 = vmatprep.subr.mxu0 %v24666_v6  ;;  %17263 = vmatprep.subr.mxu1 %v24672_v14 }
 0xd83   : > { %17093 = vmatprep.mubr.f32.mxu0 %v25762_v48  ;;  %17164 = vmatprep.mubr.f32.mxu1 %v25762_v48 }
 0xd84   : > { %20311 = vmatmul.mubr.msk.f32.vlgmr.msra.gmra.mrb[86].mxu0 %vm5051_vm2, %v20310_v54  ;;  %20312 = vmatmul.mubr.msk.f32.vlgmr.msra.gmra.mrb[86].mxu1 %vm5051_vm2, %v20310_v54 }
 0xd85   : > { %17193 = vmatpush1.msra.mxu0 %v24663_v39  ;;  %17264 = vmatpush1.msra.mxu1 %v24669_v4 }
 0xd86   : > { %17355 = vmatprep.subr.mxu0 %v24666_v6  ;;  %17426 = vmatprep.subr.mxu1 %v24672_v14 }
 0xd87   : > { %17256 = vmatprep.mubr.f32.mxu0 %v25762_v48  ;;  %17327 = vmatprep.mubr.f32.mxu1 %v25762_v48 }
 0xd88   : > { %20314 = vmatmul.mubr.msk.f32.vlgmr.msra.gmra.mrb[88].mxu0 %vm5051_vm2, %v20313_v8  ;;  %20315 = vmatmul.mubr.msk.f32.vlgmr.msra.gmra.mrb[88].mxu1 %vm5051_vm2, %v20313_v8 }
 0xd89   : > { %17356 = vmatpush1.msra.mxu0 %v24663_v39  ;;  %17427 = vmatpush1.msra.mxu1 %v24669_v4 }
 0xd8a   : > { %17518 = vmatprep.subr.mxu0 %v24666_v6  ;;  %17589 = vmatprep.subr.mxu1 %v24672_v14 }
 0xd8b   : > { %17419 = vmatprep.mubr.f32.mxu0 %v25762_v48  ;;  %17490 = vmatprep.mubr.f32.mxu1 %v25762_v48 }
 0xd8c   : > { %20317 = vmatmul.mubr.msk.f32.vlgmr.msra.gmra.mrb[90].mxu0 %vm5051_vm2, %v20316_v5  ;;  %20318 = vmatmul.mubr.msk.f32.vlgmr.msra.gmra.mrb[90].mxu1 %vm5051_vm2, %v20316_v5 }
 0xd8d   : > { %17519 = vmatpush1.msra.mxu0 %v24663_v39  ;;  %17590 = vmatpush1.msra.mxu1 %v24669_v4 }
 0xd8e   : > { %17669 = vmatprep.subr.mxu0 %v24666_v6  ;;  %17740 = vmatprep.subr.mxu1 %v24672_v14 }
 0xd8f   : > { %17582 = vmatprep.mubr.f32.mxu0 %v25762_v48  ;;  %17653 = vmatprep.mubr.f32.mxu1 %v25762_v48 }
 0xd90   : > { %20320 = vmatmul.mubr.msk.f32.vlgmr.msra.gmra.mrb[92].mxu0 %vm5051_vm2, %v20319_v52  ;;  %20321 = vmatmul.mubr.msk.f32.vlgmr.msra.gmra.mrb[92].mxu1 %vm5051_vm2, %v20319_v52 }
 0xd91   : > { %17670 = vmatpush1.msra.mxu0 %v24663_v39  ;;  %17741 = vmatpush1.msra.mxu1 %v24669_v4 }
 0xd92   : > { %17832 = vmatprep.subr.mxu0 %v24666_v6  ;;  %17903 = vmatprep.subr.mxu1 %v24672_v14 }
 0xd93   : > { %17733 = vmatprep.mubr.f32.mxu0 %v25762_v48  ;;  %17804 = vmatprep.mubr.f32.mxu1 %v25762_v48 }
 0xd94   : > { %20323 = vmatmul.mubr.msk.f32.vlgmr.msra.gmra.mrb[94].mxu0 %vm5051_vm2, %v20322_v53  ;;  %20324 = vmatmul.mubr.msk.f32.vlgmr.msra.gmra.mrb[94].mxu1 %vm5051_vm2, %v20322_v53 }
 0xd95   : > { %17833 = vmatpush1.msra.mxu0 %v24663_v39  ;;  %17904 = vmatpush1.msra.mxu1 %v24669_v4 }
 0xd96   : > { %17995 = vmatprep.subr.mxu0 %v24666_v6  ;;  %18066 = vmatprep.subr.mxu1 %v24672_v14 }
 0xd97   : > { %17896 = vmatprep.mubr.f32.mxu0 %v25762_v48  ;;  %17967 = vmatprep.mubr.f32.mxu1 %v25762_v48 }
 0xd98   : > { %20326 = vmatmul.mubr.msk.f32.vlgmr.msra.gmra.mrb[96].mxu0 %vm5051_vm2, %v20325_v21  ;;  %20327 = vmatmul.mubr.msk.f32.vlgmr.msra.gmra.mrb[96].mxu1 %vm5051_vm2, %v20325_v21 }
 0xd99   : > { %17996 = vmatpush1.msra.mxu0 %v24663_v39  ;;  %18067 = vmatpush1.msra.mxu1 %v24669_v4 }
 0xd9a   : > { %18158 = vmatprep.subr.mxu0 %v24666_v6  ;;  %18229 = vmatprep.subr.mxu1 %v24672_v14 }
 0xd9b   : > { %18059 = vmatprep.mubr.f32.mxu0 %v25762_v48  ;;  %18130 = vmatprep.mubr.f32.mxu1 %v25762_v48 }
 0xd9c   : > { %20329 = vmatmul.mubr.msk.f32.vlgmr.msra.gmra.mrb[98].mxu0 %vm5051_vm2, %v20328_v0  ;;  %20330 = vmatmul.mubr.msk.f32.vlgmr.msra.gmra.mrb[98].mxu1 %vm5051_vm2, %v20328_v0 }
 0xd9d   : > { %18159 = vmatpush1.msra.mxu0 %v24663_v39  ;;  %18230 = vmatpush1.msra.mxu1 %v24669_v4 }
 0xd9e   : > { %18321 = vmatprep.subr.mxu0 %v24666_v6  ;;  %18392 = vmatprep.subr.mxu1 %v24672_v14 }
 0xd9f   : > { %18222 = vmatprep.mubr.f32.mxu0 %v25762_v48  ;;  %18293 = vmatprep.mubr.f32.mxu1 %v25762_v48 }
 0xda0   : > { %20332 = vmatmul.mubr.msk.f32.vlgmr.msra.gmra.mrb[100].mxu0 %vm5051_vm2, %v20331_v36  ;;  %20333 = vmatmul.mubr.msk.f32.vlgmr.msra.gmra.mrb[100].mxu1 %vm5051_vm2, %v20331_v36 }
 0xda1   : > { %18322 = vmatpush1.msra.mxu0 %v24663_v39  ;;  %18393 = vmatpush1.msra.mxu1 %v24669_v4 }
 0xda2   : > { %18484 = vmatprep.subr.mxu0 %v24666_v6  ;;  %18555 = vmatprep.subr.mxu1 %v24672_v14 }
 0xda3   : > { %18385 = vmatprep.mubr.f32.mxu0 %v25762_v48  ;;  %18456 = vmatprep.mubr.f32.mxu1 %v25762_v48 }
 0xda4   : > { %20335 = vmatmul.mubr.msk.f32.vlgmr.msra.gmra.mrb[102].mxu0 %vm5051_vm2, %v20334_v24  ;;  %20336 = vmatmul.mubr.msk.f32.vlgmr.msra.gmra.mrb[102].mxu1 %vm5051_vm2, %v20334_v24 }
 0xda5   : > { %18485 = vmatpush1.msra.mxu0 %v24663_v39  ;;  %18556 = vmatpush1.msra.mxu1 %v24669_v4 }
 0xda6   : > { %18647 = vmatprep.subr.mxu0 %v24666_v6  ;;  %18718 = vmatprep.subr.mxu1 %v24672_v14 }
 0xda7   : > { %18548 = vmatprep.mubr.f32.mxu0 %v25762_v48  ;;  %18619 = vmatprep.mubr.f32.mxu1 %v25762_v48 }
 0xda8   : > { %20338 = vmatmul.mubr.msk.f32.vlgmr.msra.gmra.mrb[104].mxu0 %vm5051_vm2, %v20337_v27  ;;  %20339 = vmatmul.mubr.msk.f32.vlgmr.msra.gmra.mrb[104].mxu1 %vm5051_vm2, %v20337_v27 }
 0xda9   : > { %18648 = vmatpush1.msra.mxu0 %v24663_v39  ;;  %18719 = vmatpush1.msra.mxu1 %v24669_v4 }
 0xdaa   : > { %18810 = vmatprep.subr.mxu0 %v24666_v6  ;;  %18881 = vmatprep.subr.mxu1 %v24672_v14 }
 0xdab   : > { %18711 = vmatprep.mubr.f32.mxu0 %v25762_v48  ;;  %18782 = vmatprep.mubr.f32.mxu1 %v25762_v48 }
 0xdac   : > { %20341 = vmatmul.mubr.msk.f32.vlgmr.msra.gmra.mrb[106].mxu0 %vm5051_vm2, %v20340_v57  ;;  %20342 = vmatmul.mubr.msk.f32.vlgmr.msra.gmra.mrb[106].mxu1 %vm5051_vm2, %v20340_v57 }
 0xdad   : > { %18811 = vmatpush1.msra.mxu0 %v24663_v39  ;;  %18882 = vmatpush1.msra.mxu1 %v24669_v4 }
 0xdae   : > { %18973 = vmatprep.subr.mxu0 %v24666_v6  ;;  %19044 = vmatprep.subr.mxu1 %v24672_v14 }
 0xdaf   : > { %18874 = vmatprep.mubr.f32.mxu0 %v25762_v48  ;;  %18945 = vmatprep.mubr.f32.mxu1 %v25762_v48 }
 0xdb0   : > { %20344 = vmatmul.mubr.msk.f32.vlgmr.msra.gmra.mrb[108].mxu0 %vm5051_vm2, %v20343_v59  ;;  %20345 = vmatmul.mubr.msk.f32.vlgmr.msra.gmra.mrb[108].mxu1 %vm5051_vm2, %v20343_v59 }
 0xdb1   : > { %18974 = vmatpush1.msra.mxu0 %v24663_v39  ;;  %19045 = vmatpush1.msra.mxu1 %v24669_v4 }
 0xdb2   : > { %19136 = vmatprep.subr.mxu0 %v24666_v6  ;;  %19207 = vmatprep.subr.mxu1 %v24672_v14 }
 0xdb3   : > { %19037 = vmatprep.mubr.f32.mxu0 %v25762_v48  ;;  %19108 = vmatprep.mubr.f32.mxu1 %v25762_v48 }
 0xdb4   : > { %20347 = vmatmul.mubr.msk.f32.vlgmr.msra.gmra.mrb[110].mxu0 %vm5051_vm2, %v20346_v22  ;;  %20348 = vmatmul.mubr.msk.f32.vlgmr.msra.gmra.mrb[110].mxu1 %vm5051_vm2, %v20346_v22 }
 0xdb5   : > { %19137 = vmatpush1.msra.mxu0 %v24663_v39  ;;  %19208 = vmatpush1.msra.mxu1 %v24669_v4 }
 0xdb6   : > { %19299 = vmatprep.subr.mxu0 %v24666_v6  ;;  %19370 = vmatprep.subr.mxu1 %v24672_v14 }
 0xdb7   : > { %19200 = vmatprep.mubr.f32.mxu0 %v25762_v48  ;;  %19271 = vmatprep.mubr.f32.mxu1 %v25762_v48 }
 0xdb8   : > { %20350 = vmatmul.mubr.msk.f32.vlgmr.msra.gmra.mrb[112].mxu0 %vm5051_vm2, %v20349_v37  ;;  %20351 = vmatmul.mubr.msk.f32.vlgmr.msra.gmra.mrb[112].mxu1 %vm5051_vm2, %v20349_v37 }
 0xdb9   : > { %19300 = vmatpush1.msra.mxu0 %v24663_v39  ;;  %19371 = vmatpush1.msra.mxu1 %v24669_v4 }
 0xdba   : > { %19462 = vmatprep.subr.mxu0 %v24666_v6  ;;  %19533 = vmatprep.subr.mxu1 %v24672_v14 }
 0xdbb   : > { %19363 = vmatprep.mubr.f32.mxu0 %v25762_v48  ;;  %19434 = vmatprep.mubr.f32.mxu1 %v25762_v48 }
 0xdbc   : > { %20353 = vmatmul.mubr.msk.f32.vlgmr.msra.gmra.mrb[114].mxu0 %vm5051_vm2, %v20352_v60  ;;  %20354 = vmatmul.mubr.msk.f32.vlgmr.msra.gmra.mrb[114].mxu1 %vm5051_vm2, %v20352_v60 }
 0xdbd   : > { %19463 = vmatpush1.msra.mxu0 %v24663_v39  ;;  %19534 = vmatpush1.msra.mxu1 %v24669_v4 }
 0xdbe   : > { %19526 = vmatprep.mubr.f32.mxu0 %v25762_v48  ;;  %19597 = vmatprep.mubr.f32.mxu1 %v25762_v48 }
 0xdc0   : > { %20356 = vmatmul.mubr.msk.f32.vlgmr.msra.gmra.mrb[116].mxu0 %vm5051_vm2, %v20355_v15  ;;  %20357 = vmatmul.mubr.msk.f32.vlgmr.msra.gmra.mrb[116].mxu1 %vm5051_vm2, %v20355_v15  ;;  %vm25774_vm2 = vcmp.lt.s32.totalorder %v21676_v13, 2 }
 0xdc1   : > { %vm25775_vm13 = vmmov %vm25774_vm2 }
 0xdc2   : > { %vm25776_vm10 = vmmov %vm25774_vm2 }
 0xdc3   : > { %vm25777_vm11 = vmmov %vm25774_vm2 }
 0xe32   : > { %v15628_v12 = vpop.f32.mrb[68].mxu0  ;;  %v15699_v11 = vpop.f32.mrb[68].mxu1 }
 0xe33   : > { %15704 = vrot.lane.b32.xlu1 %v15628_v12, %s25662_s14  ;;  %v15630_v29 = vpop.f32.mrb[69].mxu0  ;;  %v15701_v18 = vpop.f32.mrb[69].mxu1 }
 0xe34   : > { %15706 = vrot.lane.b32.xlu0 %v15630_v29, %s25662_s14 }
 0xe37   : > { %15708 = vrot.lane.b32.xlu1 %v15699_v11, %s25662_s14  ;;  %v15791_v43 = vpop.f32.mrb[70].mxu0  ;;  %v15862_v7 = vpop.f32.mrb[70].mxu1 }
 0xe38   : > { %15710 = vrot.lane.b32.xlu0 %v15701_v18, %s25662_s14  ;;  %v15793_v25 = vpop.f32.mrb[71].mxu0  ;;  %v15864_v48 = vpop.f32.mrb[71].mxu1 }
 0xe3b   : > { %15867 = vrot.lane.b32.xlu1 %v15791_v43, %s25663_s21  ;;  %v15954_v40 = vpop.f32.mrb[72].mxu0  ;;  %v16025_v51 = vpop.f32.mrb[72].mxu1 }
 0xe3c   : > { %15869 = vrot.lane.b32.xlu0 %v15793_v25, %s25663_s21  ;;  %v15956_v38 = vpop.f32.mrb[73].mxu0  ;;  %v16027_v55 = vpop.f32.mrb[73].mxu1 }
 0xe3f   : > { %15871 = vrot.lane.b32.xlu1 %v15862_v7, %s25663_s21  ;;  %v16117_v47 = vpop.f32.mrb[74].mxu0  ;;  %v16188_v28 = vpop.f32.mrb[74].mxu1 }
 0xe40   : > { %15873 = vrot.lane.b32.xlu0 %v15864_v48, %s25663_s21  ;;  %v16119_v1 = vpop.f32.mrb[75].mxu0  ;;  %v16190_v50 = vpop.f32.mrb[75].mxu1 }
 0xe43   : > { %16030 = vrot.lane.b32.xlu1 %v15954_v40, %s25664_s7  ;;  %v16280_v10 = vpop.f32.mrb[76].mxu0  ;;  %v16351_v17 = vpop.f32.mrb[76].mxu1 }
 0xe44   : > { %16032 = vrot.lane.b32.xlu0 %v15956_v38, %s25664_s7  ;;  %v16282_v16 = vpop.f32.mrb[77].mxu0  ;;  %v16353_v49 = vpop.f32.mrb[77].mxu1 }
 0xe47   : > { %16034 = vrot.lane.b32.xlu1 %v16025_v51, %s25664_s7  ;;  %v16443_v9 = vpop.f32.mrb[78].mxu0  ;;  %v16514_v45 = vpop.f32.mrb[78].mxu1 }
 0xe48   : > { %16036 = vrot.lane.b32.xlu0 %v16027_v55, %s25664_s7  ;;  %v16445_v58 = vpop.f32.mrb[79].mxu0  ;;  %v16516_v44 = vpop.f32.mrb[79].mxu1 }
 0xe4b   : > { %16193 = vrot.lane.b32.xlu1 %v16117_v47, %s25665_s8  ;;  %v16606_v41 = vpop.f32.mrb[80].mxu0  ;;  %v16677_v32 = vpop.f32.mrb[80].mxu1 }
 0xe4c   : > { %16195 = vrot.lane.b32.xlu0 %v16119_v1, %s25665_s8  ;;  %v16608_v35 = vpop.f32.mrb[81].mxu0  ;;  %v16679_v62 = vpop.f32.mrb[81].mxu1 }
 0xe4f   : > { %16197 = vrot.lane.b32.xlu1 %v16188_v28, %s25665_s8  ;;  %v16769_v2 = vpop.f32.mrb[82].mxu0  ;;  %v16840_v20 = vpop.f32.mrb[82].mxu1 }
 0xe50   : > { %16199 = vrot.lane.b32.xlu0 %v16190_v50, %s25665_s8  ;;  %v16771_v46 = vpop.f32.mrb[83].mxu0  ;;  %v16842_v56 = vpop.f32.mrb[83].mxu1 }
 0xe53   : > { %16356 = vrot.lane.b32.xlu1 %v16280_v10, %s25666_s15  ;;  %v16932_v30 = vpop.f32.mrb[84].mxu0  ;;  %v17003_v61 = vpop.f32.mrb[84].mxu1 }
 0xe54   : > { %16358 = vrot.lane.b32.xlu0 %v16282_v16, %s25666_s15  ;;  %v16934_v39 = vpop.f32.mrb[85].mxu0  ;;  %v17005_v6 = vpop.f32.mrb[85].mxu1 }
 0xe57   : > { %16360 = vrot.lane.b32.xlu1 %v16351_v17, %s25666_s15  ;;  %v17095_v4 = vpop.f32.mrb[86].mxu0  ;;  %v17166_v14 = vpop.f32.mrb[86].mxu1 }
 0xe58   : > { %16362 = vrot.lane.b32.xlu0 %v16353_v49, %s25666_s15  ;;  %v17097_v19 = vpop.f32.mrb[87].mxu0  ;;  %v17168_v34 = vpop.f32.mrb[87].mxu1 }
 0xe5b   : > { %16519 = vrot.lane.b32.xlu1 %v16443_v9, %s25667_s6  ;;  %v17258_v63 = vpop.f32.mrb[88].mxu0  ;;  %v24968_v3 = vpop.f32.mrb[88].mxu1 }
 0xe5c   : > { %16521 = vrot.lane.b32.xlu0 %v16445_v58, %s25667_s6  ;;  %v17260_v26 = vpop.f32.mrb[89].mxu0  ;;  %v24971_v33 = vpop.f32.mrb[89].mxu1 }
 0xe5f   : > { %16523 = vrot.lane.b32.xlu1 %v16514_v45, %s25667_s6  ;;  %v24974_v31 = vpop.f32.mrb[90].mxu0  ;;  %v24976_v23 = vpop.f32.mrb[90].mxu1 }
 0xe60   : > { %16525 = vrot.lane.b32.xlu0 %v16516_v44, %s25667_s6  ;;  %v24979_v42 = vpop.f32.mrb[91].mxu0  ;;  %v24981_v54 = vpop.f32.mrb[91].mxu1 }
 0xe63   : > { %16682 = vrot.lane.b32.xlu1 %v16606_v41, %s25668_s17  ;;  %v24984_v8 = vpop.f32.mrb[92].mxu0  ;;  %v24986_v5 = vpop.f32.mrb[92].mxu1 }
 0xe64   : > { %16684 = vrot.lane.b32.xlu0 %v16608_v35, %s25668_s17  ;;  %v24989_v52 = vpop.f32.mrb[93].mxu0  ;;  %v24991_v53 = vpop.f32.mrb[93].mxu1 }
 0xe67   : > { %16686 = vrot.lane.b32.xlu1 %v16677_v32, %s25668_s17  ;;  %v24994_v21 = vpop.f32.mrb[94].mxu0  ;;  %v24996_v0 = vpop.f32.mrb[94].mxu1 }
 0xe68   : > { %16688 = vrot.lane.b32.xlu0 %v16679_v62, %s25668_s17  ;;  %v24999_v36 = vpop.f32.mrb[95].mxu0  ;;  %v25001_v24 = vpop.f32.mrb[95].mxu1 }
 0xe6b   : > { %16845 = vrot.lane.b32.xlu1 %v16769_v2, %s25600_s23  ;;  %v25004_v27 = vpop.f32.mrb[96].mxu0  ;;  %v25006_v57 = vpop.f32.mrb[96].mxu1 }
 0xe6c   : > { %16847 = vrot.lane.b32.xlu0 %v16771_v46, %s25600_s23  ;;  %v25009_v59 = vpop.f32.mrb[97].mxu0  ;;  %v25011_v22 = vpop.f32.mrb[97].mxu1 }
 0xe6f   : > { %16849 = vrot.lane.b32.xlu1 %v16840_v20, %s25600_s23  ;;  %v25014_v37 = vpop.f32.mrb[98].mxu0  ;;  %v25016_v60 = vpop.f32.mrb[98].mxu1 }
 0xe70   : > { %16851 = vrot.lane.b32.xlu0 %v16842_v56, %s25600_s23  ;;  %v25019_v15 = vpop.f32.mrb[99].mxu0  ;;  %v25021_v12 = vpop.f32.mrb[99].mxu1 }
 0xe73   : > { %17008 = vrot.lane.b32.xlu1 %v16932_v30, %s25601_s0  ;;  %v25024_v11 = vpop.f32.mrb[100].mxu0  ;;  %v25026_v29 = vpop.f32.mrb[100].mxu1 }
 0xe74   : > { %17010 = vrot.lane.b32.xlu0 %v16934_v39, %s25601_s0  ;;  %v25029_v18 = vpop.f32.mrb[101].mxu0  ;;  %v25031_v43 = vpop.f32.mrb[101].mxu1 }
 0xe77   : > { %17012 = vrot.lane.b32.xlu1 %v17003_v61, %s25601_s0  ;;  %v25034_v7 = vpop.f32.mrb[102].mxu0  ;;  %v25036_v25 = vpop.f32.mrb[102].mxu1 }
 0xe78   : > { %17014 = vrot.lane.b32.xlu0 %v17005_v6, %s25601_s0  ;;  %v25039_v48 = vpop.f32.mrb[103].mxu0  ;;  %v25041_v40 = vpop.f32.mrb[103].mxu1 }
 0xe7b   : > { %17171 = vrot.lane.b32.xlu1 %v17095_v4, %s25602_s30  ;;  %v25044_v51 = vpop.f32.mrb[104].mxu0  ;;  %v25046_v38 = vpop.f32.mrb[104].mxu1 }
 0xe7c   : > { %17173 = vrot.lane.b32.xlu0 %v17097_v19, %s25602_s30  ;;  %v25049_v55 = vpop.f32.mrb[105].mxu0  ;;  %v25051_v47 = vpop.f32.mrb[105].mxu1 }
 0xe7f   : > { %17175 = vrot.lane.b32.xlu1 %v17166_v14, %s25602_s30  ;;  %v25054_v28 = vpop.f32.mrb[106].mxu0  ;;  %v25056_v1 = vpop.f32.mrb[106].mxu1 }
 0xe80   : > { %17177 = vrot.lane.b32.xlu0 %v17168_v34, %s25602_s30  ;;  %v25059_v50 = vpop.f32.mrb[107].mxu0  ;;  %v25061_v10 = vpop.f32.mrb[107].mxu1 }
 0xe81   : > { %v25133_v14 = vpop.permute.xlu1 %19623 }
 0xe83   : > { %17334 = vrot.lane.b32.xlu1 %v17258_v63, %s25603_s1  ;;  %v25064_v17 = vpop.f32.mrb[108].mxu0  ;;  %v25066_v16 = vpop.f32.mrb[108].mxu1 }
 0xe84   : > { %17336 = vrot.lane.b32.xlu0 %v17260_v26, %s25603_s1  ;;  %v25069_v49 = vpop.f32.mrb[109].mxu0  ;;  %v25071_v9 = vpop.f32.mrb[109].mxu1 }
 0xe87   : > { %17338 = vrot.lane.b32.xlu1 %v24968_v3, %s25603_s1  ;;  %v25075_v45 = vpop.f32.mrb[110].mxu0  ;;  %v25077_v58 = vpop.f32.mrb[110].mxu1 }
 0xe88   : > { %17340 = vrot.lane.b32.xlu0 %v24971_v33, %s25603_s1  ;;  %v25081_v44 = vpop.f32.mrb[111].mxu0  ;;  %v25083_v41 = vpop.f32.mrb[111].mxu1 }
 0xe8b   : > { %17497 = vrot.lane.b32.xlu1 %v24974_v31, %s25604_s2  ;;  %v25087_v32 = vpop.f32.mrb[112].mxu0  ;;  %v25089_v35 = vpop.f32.mrb[112].mxu1 }
 0xe8c   : > { %17499 = vrot.lane.b32.xlu0 %v24979_v42, %s25604_s2  ;;  %v25093_v62 = vpop.f32.mrb[113].mxu0  ;;  %v25095_v2 = vpop.f32.mrb[113].mxu1 }
 0xe8f   : > { %17501 = vrot.lane.b32.xlu1 %v24976_v23, %s25604_s2  ;;  %v25099_v20 = vpop.f32.mrb[114].mxu0  ;;  %v25101_v46 = vpop.f32.mrb[114].mxu1 }
 0xe90   : > { %17503 = vrot.lane.b32.xlu0 %v24981_v54, %s25604_s2  ;;  %v25105_v56 = vpop.f32.mrb[115].mxu0  ;;  %v25107_v30 = vpop.f32.mrb[115].mxu1 }
 0xe93   : > { %17811 = vrot.lane.b32.xlu1 %v24994_v21, %s25605_s29  ;;  %v25111_v61 = vpop.f32.mrb[116].mxu0  ;;  %v25113_v39 = vpop.f32.mrb[116].mxu1 }
 0xe94   : > { %17813 = vrot.lane.b32.xlu0 %v24999_v36, %s25605_s29  ;;  %v25117_v6 = vpop.f32.mrb[117].mxu0  ;;  %v25119_v4 = vpop.f32.mrb[117].mxu1 }
 0xe97   : > { %17815 = vrot.lane.b32.xlu1 %v24996_v0, %s25605_s29 }
 0xe98   : > { %17817 = vrot.lane.b32.xlu0 %v25001_v24, %s25605_s29 }
 0xe9b   : > { %17974 = vrot.lane.b32.xlu1 %v25004_v27, %s25606_s28 }
 0xe9c   : > { %17976 = vrot.lane.b32.xlu0 %v25009_v59, %s25606_s28 }
 0xe9f   : > { %17978 = vrot.lane.b32.xlu1 %v25006_v57, %s25606_s28 }
 0xea0   : > { %17980 = vrot.lane.b32.xlu0 %v25011_v22, %s25606_s28  ;;  %s25826_s28 = sld [smem:[#allocation51_spill]] }
 0xea3   : > { %18137 = vrot.lane.b32.xlu1 %v25014_v37, %s25607_s27 }
 0xea4   : > { %18139 = vrot.lane.b32.xlu0 %v25019_v15, %s25607_s27 }
 0xea5   : > { %v15705_v19 = vpop.permute.xlu1 %15704 }
 0xea6   : > { %v15707_v34 = vpop.permute.xlu0 %15706 }
 0xea7   : > { %v15714_v63 = vsel %vm634_vm3, %v15705_v19, %v15707_v34  ;;  %18141 = vrot.lane.b32.xlu1 %v25016_v60, %s25607_s27 }
 0xea8   : > { %18143 = vrot.lane.b32.xlu0 %v25021_v12, %s25607_s27 }
 0xea9   : > { %v15709_v3 = vpop.permute.xlu1 %15708 }
 0xeaa   : > { %v15713_v26 = vsel %vm634_vm3, %v15707_v34, %v15709_v3  ;;  %v15711_v33 = vpop.permute.xlu0 %15710 }
 0xeab   : > { %v15712_v31 = vsel %vm634_vm3, %v15709_v3, %v15711_v33  ;;  %v15715_v23 = vsel %vm634_vm3, %v15711_v33, %v15705_v19  ;;  %18300 = vrot.lane.b32.xlu1 %v25024_v11, %s25609_s24 }
 0xeac   : > { %18302 = vrot.lane.b32.xlu0 %v25029_v18, %s25609_s24 }
 0xead   : > { %v15868_v42 = vpop.permute.xlu1 %15867 }
 0xeae   : > { %v15870_v54 = vpop.permute.xlu0 %15869 }
 0xeaf   : > { %v15877_v21 = vsel %vm649_vm0, %v15868_v42, %v15870_v54  ;;  %18304 = vrot.lane.b32.xlu1 %v25026_v29, %s25609_s24 }
 0xeb0   : > { %v15880_v0 = vadd.f32 %v15877_v21, %v15714_v63  ;;  %18306 = vrot.lane.b32.xlu0 %v25031_v43, %s25609_s24 }
 0xeb1   : > { %v15872_v36 = vpop.permute.xlu1 %15871 }
 0xeb2   : > { %v15876_v24 = vsel %vm649_vm0, %v15870_v54, %v15872_v36  ;;  %v15874_v27 = vpop.permute.xlu0 %15873 }
 0xeb3   : > { %v15881_v57 = vadd.f32 %v15876_v24, %v15713_v26  ;;  %v15875_v59 = vsel %vm649_vm0, %v15872_v36, %v15874_v27  ;;  %v15878_v22 = vsel %vm649_vm0, %v15874_v27, %v15868_v42  ;;  %18463 = vrot.lane.b32.xlu1 %v25034_v7, %s25610_s25  ;;  %vm25766_vm0 = vcmp.lt.s32.totalorder %v21676_v13, 19 }
 0xeb4   : > { %v15879_v37 = vadd.f32 %v15878_v22, %v15715_v23  ;;  %v15882_v60 = vadd.f32 %v15875_v59, %v15712_v31  ;;  %18465 = vrot.lane.b32.xlu0 %v25039_v48, %s25610_s25  ;;  %vm25767_vm3 = vmmov %vm25766_vm0 }
 0xeb5   : > { %v16031_v15 = vpop.permute.xlu1 %16030 }
 0xeb6   : > { %v16033_v12 = vpop.permute.xlu0 %16032 }
 0xeb7   : > { %v16040_v11 = vsel %vm980_vm4, %v16031_v15, %v16033_v12  ;;  %18467 = vrot.lane.b32.xlu1 %v25036_v25, %s25610_s25 }
 0xeb8   : > { %v16043_v29 = vadd.f32 %v16040_v11, %v15880_v0  ;;  %18469 = vrot.lane.b32.xlu0 %v25041_v40, %s25610_s25 }
 0xeb9   : > { %v16035_v18 = vpop.permute.xlu1 %16034 }
 0xeba   : > { %v16039_v43 = vsel %vm980_vm4, %v16033_v12, %v16035_v18  ;;  %v16037_v7 = vpop.permute.xlu0 %16036 }
 0xebb   : > { %v16044_v19 = vadd.f32 %v16039_v43, %v15881_v57  ;;  %v16038_v48 = vsel %vm980_vm4, %v16035_v18, %v16037_v7  ;;  %v16041_v34 = vsel %vm980_vm4, %v16037_v7, %v16031_v15  ;;  %18626 = vrot.lane.b32.xlu1 %v25044_v51, %s25611_s18  ;;  %vm25768_vm4 = vmmov %vm25766_vm0 }
 0xebc   : > { %v16042_v25 = vadd.f32 %v16041_v34, %v15879_v37  ;;  %v16045_v63 = vadd.f32 %v16038_v48, %v15882_v60  ;;  %18628 = vrot.lane.b32.xlu0 %v25049_v55, %s25611_s18 }
 0xebd   : > { %v16194_v40 = vpop.permute.xlu1 %16193 }
 0xebe   : > { %v16196_v3 = vpop.permute.xlu0 %16195 }
 0xebf   : > { %v16203_v26 = vsel %vm1156_vm5, %v16194_v40, %v16196_v3  ;;  %18630 = vrot.lane.b32.xlu1 %v25046_v38, %s25611_s18 }
 0xec0   : > { %v16206_v33 = vadd.f32 %v16203_v26, %v16043_v29  ;;  %18632 = vrot.lane.b32.xlu0 %v25051_v47, %s25611_s18 }
 0xec1   : > { %v16198_v31 = vpop.permute.xlu1 %16197 }
 0xec2   : > { %v16202_v51 = vsel %vm1156_vm5, %v16196_v3, %v16198_v31  ;;  %v16200_v23 = vpop.permute.xlu0 %16199 }
 0xec3   : > { %v16207_v42 = vadd.f32 %v16202_v51, %v16044_v19  ;;  %v16201_v55 = vsel %vm1156_vm5, %v16198_v31, %v16200_v23  ;;  %v16204_v54 = vsel %vm1156_vm5, %v16200_v23, %v16194_v40  ;;  %18789 = vrot.lane.b32.xlu1 %v25054_v28, %s25612_s4  ;;  %vm25769_vm5 = vmmov %vm25766_vm0 }
 0xec4   : > { %v16205_v38 = vadd.f32 %v16204_v54, %v16042_v25  ;;  %v16208_v21 = vadd.f32 %v16201_v55, %v16045_v63  ;;  %18791 = vrot.lane.b32.xlu0 %v25059_v50, %s25612_s4 }
 0xec5   : > { %v16357_v47 = vpop.permute.xlu1 %16356 }
 0xec6   : > { %v16359_v0 = vpop.permute.xlu0 %16358 }
 0xec7   : > { %v16366_v36 = vsel %vm1332_vm6, %v16357_v47, %v16359_v0  ;;  %18793 = vrot.lane.b32.xlu1 %v25056_v1, %s25612_s4 }
 0xec8   : > { %v16369_v24 = vadd.f32 %v16366_v36, %v16206_v33  ;;  %18795 = vrot.lane.b32.xlu0 %v25061_v10, %s25612_s4  ;;  %s25823_s4 = sld [smem:[#allocation4_spill]] }
 0xec9   : > { %v16361_v27 = vpop.permute.xlu1 %16360 }
 0xeca   : > { %v16365_v28 = vsel %vm1332_vm6, %v16359_v0, %v16361_v27  ;;  %v16363_v57 = vpop.permute.xlu0 %16362 }
 0xecb   : > { %v16370_v59 = vadd.f32 %v16365_v28, %v16207_v42  ;;  %v16364_v50 = vsel %vm1332_vm6, %v16361_v27, %v16363_v57  ;;  %v16367_v22 = vsel %vm1332_vm6, %v16363_v57, %v16357_v47  ;;  %18952 = vrot.lane.b32.xlu1 %v25064_v17, %s25613_s5  ;;  %vm25770_vm6 = vcmp.lt.s32.totalorder %v21676_v13, 18 }
 0xecc   : > { %v16368_v1 = vadd.f32 %v16367_v22, %v16205_v38  ;;  %v16371_v37 = vadd.f32 %v16364_v50, %v16208_v21  ;;  %18954 = vrot.lane.b32.xlu0 %v25069_v49, %s25613_s5 }
 0xecd   : > { %v16520_v10 = vpop.permute.xlu1 %16519 }
 0xece   : > { %v16522_v60 = vpop.permute.xlu0 %16521  ;;  %s25825_s24 = sshll.u32 %s25823_s4, 2 }
 0xecf   : > { %v16529_v15 = vsel %vm1508_vm7, %v16520_v10, %v16522_v60  ;;  %18956 = vrot.lane.b32.xlu1 %v25066_v16, %s25613_s5  ;;  %s599_s29 = scalar_lea.vmem %s25826_s28, %s25825_s24 }
 0xed0   : > { %v16532_v12 = vadd.f32 %v16529_v15, %v16369_v24  ;;  %18958 = vrot.lane.b32.xlu0 %v25071_v9, %s25613_s5 }
 0xed1   : > { %v16524_v11 = vpop.permute.xlu1 %16523 }
 0xed2   : > { %v16528_v17 = vsel %vm1508_vm7, %v16522_v60, %v16524_v11  ;;  %v16526_v29 = vpop.permute.xlu0 %16525 }
 0xed3   : > { %v16533_v18 = vadd.f32 %v16528_v17, %v16370_v59  ;;  %v16527_v49 = vsel %vm1508_vm7, %v16524_v11, %v16526_v29  ;;  %v16530_v43 = vsel %vm1508_vm7, %v16526_v29, %v16520_v10  ;;  %19115 = vrot.lane.b32.xlu1 %v25075_v45, %s25614_s3  ;;  %vm25771_vm7 = vmmov %vm25770_vm6 }
 0xed4   : > { %v16531_v16 = vadd.f32 %v16530_v43, %v16368_v1  ;;  %v16534_v7 = vadd.f32 %v16527_v49, %v16371_v37  ;;  %19117 = vrot.lane.b32.xlu0 %v25081_v44, %s25614_s3 }
 0xed5   : > { %v16683_v9 = vpop.permute.xlu1 %16682 }
 0xed6   : > { %v16685_v19 = vpop.permute.xlu0 %16684 }
 0xed7   : > { %v16692_v48 = vsel %vm1684_vm8, %v16683_v9, %v16685_v19  ;;  %19119 = vrot.lane.b32.xlu1 %v25077_v58, %s25614_s3 }
 0xed8   : > { %v16695_v34 = vadd.f32 %v16692_v48, %v16532_v12  ;;  %19121 = vrot.lane.b32.xlu0 %v25083_v41, %s25614_s3 }
 0xed9   : > { %v16687_v25 = vpop.permute.xlu1 %16686 }
 0xeda   : > { %v16691_v45 = vsel %vm1684_vm8, %v16685_v19, %v16687_v25  ;;  %v16689_v63 = vpop.permute.xlu0 %16688 }
 0xedb   : > { %v16696_v40 = vadd.f32 %v16691_v45, %v16533_v18  ;;  %v16690_v44 = vsel %vm1684_vm8, %v16687_v25, %v16689_v63  ;;  %v16693_v3 = vsel %vm1684_vm8, %v16689_v63, %v16683_v9  ;;  %19280 = vrot.lane.b32.xlu1 %v25093_v62, %s25615_s20  ;;  %vm25772_vm8 = vmmov %vm25770_vm6 }
 0xedc   : > { %v16694_v58 = vadd.f32 %v16693_v3, %v16531_v16  ;;  %v16697_v26 = vadd.f32 %v16690_v44, %v16534_v7  ;;  %19278 = vrot.lane.b32.xlu0 %v25087_v32, %s25615_s20 }
 0xedd   : > { %v16846_v41 = vpop.permute.xlu1 %16845 }
 0xede   : > { %v16848_v33 = vpop.permute.xlu0 %16847 }
 0xedf   : > { %v16855_v31 = vsel %vm1860_vm9, %v16846_v41, %v16848_v33  ;;  %19284 = vrot.lane.b32.xlu1 %v25095_v2, %s25615_s20 }
 0xee0   : > { %v16858_v51 = vadd.f32 %v16855_v31, %v16695_v34  ;;  %19282 = vrot.lane.b32.xlu0 %v25089_v35, %s25615_s20 }
 0xee1   : > { %v16850_v23 = vpop.permute.xlu1 %16849 }
 0xee2   : > { %v16854_v62 = vsel %vm1860_vm9, %v16848_v33, %v16850_v23  ;;  %v16852_v42 = vpop.permute.xlu0 %16851 }
 0xee3   : > { %v16859_v55 = vadd.f32 %v16854_v62, %v16696_v40  ;;  %v16853_v32 = vsel %vm1860_vm9, %v16850_v23, %v16852_v42  ;;  %v16856_v54 = vsel %vm1860_vm9, %v16852_v42, %v16846_v41  ;;  %19443 = vrot.lane.b32.xlu1 %v25105_v56, %s25616_s26  ;;  %vm25773_vm9 = vmmov %vm25770_vm6 }
 0xee4   : > { %v16857_v2 = vadd.f32 %v16856_v54, %v16694_v58  ;;  %v16860_v38 = vadd.f32 %v16853_v32, %v16697_v26  ;;  %19441 = vrot.lane.b32.xlu0 %v25099_v20, %s25616_s26 }
 0xee5   : > { %v17009_v35 = vpop.permute.xlu1 %17008 }
 0xee6   : > { %v17011_v21 = vpop.permute.xlu0 %17010 }
 0xee7   : > { %v17018_v47 = vsel %vm25766_vm0, %v17009_v35, %v17011_v21  ;;  %19447 = vrot.lane.b32.xlu1 %v25107_v30, %s25616_s26  ;;  %vm25780_vm0 = vmmov %vm25779_vm1 }
 0xee8   : > { %v17021_v0 = vadd.f32 %v17018_v47, %v16858_v51  ;;  %19445 = vrot.lane.b32.xlu0 %v25101_v46, %s25616_s26 }
 0xee9   : > { %v17013_v36 = vpop.permute.xlu1 %17012 }
 0xeea   : > { %v17017_v56 = vsel %vm25767_vm3, %v17011_v21, %v17013_v36  ;;  %v17015_v24 = vpop.permute.xlu0 %17014  ;;  %vm25781_vm3 = vmmov %vm25780_vm0 }
 0xeeb   : > { %v17022_v27 = vadd.f32 %v17017_v56, %v16859_v55  ;;  %v17016_v20 = vsel %vm25768_vm4, %v17013_v36, %v17015_v24  ;;  %v17019_v28 = vsel %vm25769_vm5, %v17015_v24, %v17009_v35  ;;  %19606 = vrot.lane.b32.xlu1 %v25117_v6, %s25617_s19  ;;  %vm25782_vm4 = vcmp.lt.s32.totalorder %v21676_v13, 127 }
 0xeec   : > { %v17020_v30 = vadd.f32 %v17019_v28, %v16857_v2  ;;  %v17023_v57 = vadd.f32 %v17016_v20, %v16860_v38  ;;  %19604 = vrot.lane.b32.xlu0 %v25111_v61, %s25617_s19  ;;  %vm25783_vm5 = vmmov %vm25782_vm4 }
 0xeed   : > { %v17172_v46 = vpop.permute.xlu1 %17171 }
 0xeee   : > { %v17174_v59 = vpop.permute.xlu0 %17173 }
 0xeef   : > { %v17181_v50 = vsel %vm25770_vm6, %v17172_v46, %v17174_v59  ;;  %19610 = vrot.lane.b32.xlu1 %v25119_v4, %s25617_s19  ;;  %vm25784_vm6 = vmmov %vm25782_vm4 }
 0xef0   : > { %v17184_v22 = vadd.f32 %v17181_v50, %v17021_v0  ;;  %19608 = vrot.lane.b32.xlu0 %v25113_v39, %s25617_s19 }
 0xef1   : > { %v17176_v1 = vpop.permute.xlu1 %17175 }
 0xef2   : > { %v17180_v6 = vsel %vm25771_vm7, %v17174_v59, %v17176_v1  ;;  %v17178_v37 = vpop.permute.xlu0 %17177  ;;  %vm25785_vm7 = vmmov %vm25782_vm4 }
 0xef3   : > { %v17185_v10 = vadd.f32 %v17180_v6, %v17022_v27  ;;  %v17179_v61 = vsel %vm25772_vm8, %v17176_v1, %v17178_v37  ;;  %v17182_v60 = vsel %vm25773_vm9, %v17178_v37, %v17172_v46  ;;  %vm25786_vm8 = vcmp.lt.s32.totalorder %v21676_v13, 126 }
 0xef4   : > { %v17183_v15 = vadd.f32 %v17182_v60, %v17020_v30  ;;  %v17186_v12 = vadd.f32 %v17179_v61, %v17023_v57  ;;  %vm25787_vm9 = vmmov %vm25786_vm8 }
 0xef5   : > { %v17335_v11 = vpop.permute.xlu1 %17334 }
 0xef6   : > { %v17337_v4 = vpop.permute.xlu0 %17336 }
 0xef7   : > { %v17344_v17 = vsel %vm25774_vm2, %v17335_v11, %v17337_v4  ;;  %vm25788_vm2 = vmmov %vm25786_vm8 }
 0xef8   : > { %v17347_v39 = vadd.f32 %v17344_v17, %v17184_v22 }
 0xef9   : > { %v17339_v29 = vpop.permute.xlu1 %17338 }
 0xefa   : > { %v17343_v18 = vsel %vm25775_vm13, %v17337_v4, %v17339_v29  ;;  %v17341_v49 = vpop.permute.xlu0 %17340  ;;  %vm25789_vm13 = vmmov %vm25788_vm2 }
 0xefb   : > { %v17348_v43 = vadd.f32 %v17343_v18, %v17185_v10  ;;  %v17342_v16 = vsel %vm25776_vm10, %v17339_v29, %v17341_v49  ;;  %v17345_v7 = vsel %vm25777_vm11, %v17341_v49, %v17335_v11  ;;  %vm25790_vm10 = vcmp.lt.s32.totalorder %v21676_v13, 110 }
 0xefc   : > { %v17346_v9 = vadd.f32 %v17345_v7, %v17183_v15  ;;  %v17349_v19 = vadd.f32 %v17342_v16, %v17186_v12  ;;  %vm25791_vm11 = vmmov %vm25790_vm10 }
 0xefd   : > { %v17498_v48 = vpop.permute.xlu1 %17497 }
 0xefe   : > { %v17500_v34 = vpop.permute.xlu0 %17499 }
 0xeff   : > { %v17507_v25 = vsel %vm25778_vm12, %v17498_v48, %v17500_v34  ;;  %vm25792_vm12 = vmmov %vm25790_vm10 }
 0xf00   : > { %v17510_v45 = vadd.f32 %v17507_v25, %v17347_v39 }
 0xf01   : > { %v17502_v63 = vpop.permute.xlu1 %17501 }
 0xf02   : > { %v17506_v40 = vsel %vm25779_vm1, %v17500_v34, %v17502_v63  ;;  %v17504_v44 = vpop.permute.xlu0 %17503  ;;  %v17661_v3 = vadd.f32 %v24989_v52, %v17510_v45  ;;  %vm25793_vm1 = vmmov %vm25790_vm10 }
 0xf03   : > { %v17511_v58 = vadd.f32 %v17506_v40, %v17348_v43  ;;  %v17505_v26 = vsel %vm25780_vm0, %v17502_v63, %v17504_v44  ;;  %v17508_v41 = vsel %vm25781_vm3, %v17504_v44, %v17498_v48  ;;  %vm25794_vm0 = vcmp.lt.s32.totalorder %v21676_v13, 109 }
 0xf04   : > { %v17509_v33 = vadd.f32 %v17508_v41, %v17346_v9  ;;  %v17512_v31 = vadd.f32 %v17505_v26, %v17349_v19  ;;  %vm25795_vm3 = vmmov %vm25794_vm0 }
 0xf05   : > { %v17812_v51 = vpop.permute.xlu1 %17811  ;;  %v17662_v23 = vadd.f32 %v24986_v5, %v17511_v58 }
 0xf06   : > { %v17660_v62 = vadd.f32 %v24984_v8, %v17509_v33  ;;  %v17814_v42 = vpop.permute.xlu0 %17813  ;;  %v17663_v55 = vadd.f32 %v24991_v53, %v17512_v31 }
 0xf07   : > { %v17821_v52 = vsel %vm25782_vm4, %v17812_v51, %v17814_v42  ;;  %vm25796_vm4 = vmmov %vm25794_vm0 }
 0xf08   : > { %v17823_v32 = vadd.f32 %v17821_v52, %v17660_v62  ;;  %v21413_v62 = vmov 1966171168  }
 0xf09   : > { %v17816_v54 = vpop.permute.xlu1 %17815 }
 0xf0a   : > { %v17820_v2 = vsel %vm25783_vm5, %v17814_v42, %v17816_v54  ;;  %v17818_v38 = vpop.permute.xlu0 %17817  ;;  %v25353_v42 = vunpack.c.l.s4 %v21413_v62  ;;  %vm25797_vm5 = vmmov %vm25794_vm0 }
 0xf0b   : > { %v17824_v35 = vadd.f32 %v17820_v2, %v17661_v3  ;;  %v17819_v21 = vsel %vm25784_vm6, %v17816_v54, %v17818_v38  ;;  %v17822_v5 = vsel %vm25785_vm7, %v17818_v38, %v17812_v51  ;;  %vm25798_vm6 = vcmp.lt.s32.totalorder %v21676_v13, 108 }
 0xf0c   : > { %v17825_v8 = vadd.f32 %v17819_v21, %v17662_v23  ;;  %v17826_v47 = vadd.f32 %v17822_v5, %v17663_v55  ;;  %vm25799_vm7 = vmmov %vm25798_vm6 }
 0xf0d   : > { %v17975_v0 = vpop.permute.xlu1 %17974 }
 0xf0e   : > { %v17977_v53 = vpop.permute.xlu0 %17976 }
 0xf0f   : > { %v17984_v36 = vsel %vm25786_vm8, %v17975_v0, %v17977_v53  ;;  %vm25800_vm8 = vmmov %vm25798_vm6 }
 0xf10   : > { %v17986_v56 = vadd.f32 %v17984_v36, %v17823_v32 }
 0xf11   : > { %v17979_v24 = vpop.permute.xlu1 %17978 }
 0xf12   : > { %v17983_v27 = vsel %vm25787_vm9, %v17977_v53, %v17979_v24  ;;  %v17981_v20 = vpop.permute.xlu0 %17980  ;;  %vm25801_vm9 = vmmov %vm25798_vm6 }
 0xf13   : > { %v17987_v28 = vadd.f32 %v17983_v27, %v17824_v35  ;;  %v17985_v30 = vsel %vm25788_vm2, %v17981_v20, %v17975_v0  ;;  %v17982_v63 = vsel %vm25789_vm13, %v17979_v24, %v17981_v20  ;;  %vm25802_vm2 = vcmp.lt.s32.totalorder %v21676_v13, 107 }
 0xf14   : > { %v17989_v57 = vadd.f32 %v17985_v30, %v17826_v47  ;;  %v17988_v31 = vadd.f32 %v17982_v63, %v17825_v8  ;;  %vm25803_vm13 = vmmov %vm25802_vm2 }
 0xf15   : > { %v18138_v46 = vpop.permute.xlu1 %18137 }
 0xf16   : > { %v18140_v59 = vpop.permute.xlu0 %18139 }
 0xf17   : > { %v18147_v40 = vsel %vm25790_vm10, %v18138_v46, %v18140_v59  ;;  %vm25804_vm10 = vmmov %vm25802_vm2 }
 0xf18   : > { %v18149_v51 = vadd.f32 %v18147_v40, %v17986_v56 }
 0xf19   : > { %v18142_v50 = vpop.permute.xlu1 %18141 }
 0xf1a   : > { %v18144_v22 = vpop.permute.xlu0 %18143  ;;  %v18146_v26 = vsel %vm25792_vm12, %v18140_v59, %v18142_v50  ;;  %vm25806_vm12 = vcmp.lt.s32.totalorder %v21676_v13, 106 }
 0xf1b   : > { %v18148_v3 = vsel %vm25791_vm11, %v18144_v22, %v18138_v46  ;;  %v18145_v41 = vsel %vm25793_vm1, %v18142_v50, %v18144_v22  ;;  %v18150_v38 = vadd.f32 %v18146_v26, %v17987_v28  ;;  %vm25805_vm11 = vmmov %vm25802_vm2 }
 0xf1c   : > { %v18152_v55 = vadd.f32 %v18148_v3, %v17989_v57  ;;  %v18151_v35 = vadd.f32 %v18145_v41, %v17988_v31  ;;  %vm25807_vm1 = vmmov %vm25806_vm12 }
 0xf1d   : > { %v18301_v1 = vpop.permute.xlu1 %18300 }
 0xf1e   : > { %v18303_v6 = vpop.permute.xlu0 %18302 }
 0xf1f   : > { %v18310_v33 = vsel %vm25794_vm0, %v18301_v1, %v18303_v6  ;;  %vm25808_vm0 = vmmov %vm25807_vm1 }
 0xf20   : > { %v18312_v21 = vadd.f32 %v18310_v33, %v18149_v51 }
 0xf21   : > { %v18305_v37 = vpop.permute.xlu1 %18304 }
 0xf22   : > { %v18307_v10 = vpop.permute.xlu0 %18306  ;;  %v18309_v52 = vsel %vm25796_vm4, %v18303_v6, %v18305_v37  ;;  %vm25810_vm4 = vcmp.lt.s32.totalorder %v21676_v13, 90 }
 0xf23   : > { %v18311_v23 = vsel %vm25795_vm3, %v18307_v10, %v18301_v1  ;;  %v18308_v32 = vsel %vm25797_vm5, %v18305_v37, %v18307_v10  ;;  %v18313_v56 = vadd.f32 %v18309_v52, %v18150_v38  ;;  %vm25809_vm3 = vmmov %vm25808_vm0 }
 0xf24   : > { %v18315_v47 = vadd.f32 %v18311_v23, %v18152_v55  ;;  %v18314_v24 = vadd.f32 %v18308_v32, %v18151_v35  ;;  %vm25811_vm5 = vmmov %vm25810_vm4 }
 0xf25   : > { %v18464_v61 = vpop.permute.xlu1 %18463 }
 0xf26   : > { %v18466_v60 = vpop.permute.xlu0 %18465 }
 0xf27   : > { %v18473_v54 = vsel %vm25798_vm6, %v18464_v61, %v18466_v60  ;;  %vm25812_vm6 = vmmov %vm25810_vm4 }
 0xf28   : > { %v18475_v27 = vadd.f32 %v18473_v54, %v18312_v21 }
 0xf29   : > { %v18468_v15 = vpop.permute.xlu1 %18467 }
 0xf2a   : > { %v18470_v12 = vpop.permute.xlu0 %18469  ;;  %v18472_v0 = vsel %vm25800_vm8, %v18466_v60, %v18468_v15  ;;  %vm25814_vm8 = vcmp.lt.s32.totalorder %v21676_v13, 89 }
 0xf2b   : > { %v18474_v5 = vsel %vm25799_vm7, %v18470_v12, %v18464_v61  ;;  %v18471_v53 = vsel %vm25801_vm9, %v18468_v15, %v18470_v12  ;;  %v18476_v50 = vadd.f32 %v18472_v0, %v18313_v56  ;;  %vm25813_vm7 = vmmov %vm25810_vm4 }
 0xf2c   : > { %v18478_v28 = vadd.f32 %v18474_v5, %v18315_v47  ;;  %v18477_v22 = vadd.f32 %v18471_v53, %v18314_v24  ;;  %vm25815_vm9 = vmmov %vm25814_vm8  ;;  %v19642_v53 = vunpack.c.0.s8 %v25353_v42 }
 0xf2d   : > { %v18627_v11 = vpop.permute.xlu1 %18626 }
 0xf2e   : > { %v18629_v4 = vpop.permute.xlu0 %18628 }
 0xf2f   : > { %v18636_v36 = vsel %vm25802_vm2, %v18627_v11, %v18629_v4  ;;  %vm25816_vm2 = vmmov %vm25814_vm8 }
 0xf30   : > { %v18638_v1 = vadd.f32 %v18636_v36, %v18475_v27 }
 0xf31   : > { %v18631_v17 = vpop.permute.xlu1 %18630 }
 0xf32   : > { %v18633_v39 = vpop.permute.xlu0 %18632  ;;  %v18635_v30 = vsel %vm25804_vm10, %v18629_v4, %v18631_v17  ;;  %vm25818_vm10 = vcmp.lt.s32.totalorder %v21676_v13, 88  ;;  %v25827_v13 = vlaneseq }
 0xf33   : > { %v18637_v20 = vsel %vm25803_vm13, %v18633_v39, %v18627_v11  ;;  %v18634_v57 = vsel %vm25805_vm11, %v18631_v17, %v18633_v39  ;;  %v18639_v12 = vadd.f32 %v18635_v30, %v18476_v50  ;;  %vm25817_vm13 = vmmov %vm25816_vm2 }
 0xf34   : > { %v18641_v10 = vadd.f32 %v18637_v20, %v18478_v28  ;;  %v18640_v11 = vadd.f32 %v18634_v57, %v18477_v22  ;;  %vm25819_vm11 = vmmov %vm25818_vm10  ;;  %v25822_v28 = vld [vmem:[#allocation6_spill] sm:$0xff] }
 0xf35   : > { %v18790_v29 = vpop.permute.xlu1 %18789  ;;  %v19629_v30 = vrot.slane %v25133_v14, %v25822_v28 }
 0xf36   : > { %v18792_v18 = vpop.permute.xlu0 %18791 }
 0xf37   : > { %v18799_v46 = vsel %vm25806_vm12, %v18790_v29, %v18792_v18  ;;  %vm25820_vm12 = vmmov %vm25818_vm10 }
 0xf38   : > { %v18801_v4 = vadd.f32 %v18799_v46, %v18638_v1 }
 0xf39   : > { %v18794_v49 = vpop.permute.xlu1 %18793 }
 0xf3a   : > { %v18796_v43 = vpop.permute.xlu0 %18795  ;;  %v18798_v61 = vsel %vm25808_vm0, %v18792_v18, %v18794_v49 }
 0xf3b   : > { %v18800_v6 = vsel %vm25807_vm1, %v18796_v43, %v18790_v29  ;;  %v18797_v60 = vsel %vm25809_vm3, %v18794_v49, %v18796_v43  ;;  %v18802_v43 = vadd.f32 %v18798_v61, %v18639_v12  ;;  %vm25821_vm1 = vmmov %vm25818_vm10 }
 0xf3c   : > { %v18804_v39 = vadd.f32 %v18800_v6, %v18641_v10  ;;  %v18803_v40 = vadd.f32 %v18797_v60, %v18640_v11  ;;  %v25824_v6 = vld [vmem:[#allocation5_spill] sm:$0xff] }
 0xf3d   : > { %v18953_v16 = vpop.permute.xlu1 %18952 }
 0xf3e   : > { %v18955_v7 = vpop.permute.xlu0 %18954 }
 0xf3f   : > { %v18962_v15 = vsel %vm25810_vm4, %v18953_v16, %v18955_v7 }
 0xf40   : > { %v18964_v3 = vadd.f32 %v18962_v15, %v18801_v4 }
 0xf41   : > { %v18957_v9 = vpop.permute.xlu1 %18956 }
 0xf42   : > { %v18959_v19 = vpop.permute.xlu0 %18958  ;;  %v18961_v29 = vsel %vm25812_vm6, %v18955_v7, %v18957_v9 }
 0xf43   : > { %v18963_v17 = vsel %vm25811_vm5, %v18959_v19, %v18953_v16  ;;  %v18960_v63 = vsel %vm25813_vm7, %v18957_v9, %v18959_v19  ;;  %v18965_v33 = vadd.f32 %v18961_v29, %v18802_v43 }
 0xf44   : > { %v18967_v41 = vadd.f32 %v18963_v17, %v18804_v39  ;;  %v18966_v31 = vadd.f32 %v18960_v63, %v18803_v40 }
 0xf45   : > { %v19116_v48 = vpop.permute.xlu1 %19115 }
 0xf46   : > { %v25329_v34 = vpop.permute.xlu0 %19117 }
 0xf47   : > { %v19125_v18 = vsel %vm25814_vm8, %v19116_v48, %v25329_v34 }
 0xf49   : > { %v25331_v25 = vpop.permute.xlu1 %19119 }
 0xf4a   : > { %v25333_v45 = vpop.permute.xlu0 %19121  ;;  %v19124_v7 = vsel %vm25816_vm2, %v25329_v34, %v25331_v25 }
 0xf4b   : > { %v19126_v26 = vsel %vm25815_vm9, %v25333_v45, %v19116_v48  ;;  %v19123_v9 = vsel %vm25817_vm13, %v25331_v25, %v25333_v45  ;;  %v19127_v48 = vadd.f32 %v19125_v18, %v18964_v3  ;;  %v19128_v55 = vadd.f32 %v19124_v7, %v18965_v33 }
 0xf4c   : > { %v19130_v23 = vadd.f32 %v19126_v26, %v18967_v41  ;;  %v19129_v52 = vadd.f32 %v19123_v9, %v18966_v31 }
 0xf4d   : > { %v25339_v44 = vpop.permute.xlu1 %19280 }
 0xf4e   : > { %v25343_v58 = vpop.permute.xlu0 %19278 }
 0xf4f   : > { %v19288_v19 = vsel %vm25818_vm10, %v25343_v58, %v25339_v44 }
 0xf50   : > { %v19290_v32 = vadd.f32 %v19288_v19, %v19127_v48 }
 0xf51   : > { %v19285_v2 = vpop.permute.xlu1 %19284 }
 0xf52   : > { %v19283_v8 = vpop.permute.xlu0 %19282  ;;  %v19289_v51 = vsel %vm25819_vm11, %v19285_v2, %v25343_v58 }
 0xf53   : > { %v19286_v34 = vsel %vm25820_vm12, %v19283_v8, %v19285_v2  ;;  %v19287_v25 = vsel %vm25821_vm1, %v25339_v44, %v19283_v8  ;;  %v19293_v58 = vadd.f32 %v19289_v51, %v19130_v23 }
 0xf54   : > { %v19291_v21 = vadd.f32 %v19287_v25, %v19128_v55  ;;  %v19292_v5 = vadd.f32 %v19286_v34, %v19129_v52 }
 0xf55   : > { %v19444_v59 = vpop.permute.xlu1 %19443 }
 0xf56   : > { %v19442_v37 = vpop.permute.xlu0 %19441 }
 0xf57   : > { %v19451_v45 = vsel %vm4659_vm14, %v19442_v37, %v19444_v59 }
 0xf58   : > { %v19453_v8 = vadd.f32 %v19451_v45, %v19290_v32 }
 0xf59   : > { %v19448_v49 = vpop.permute.xlu1 %19447 }
 0xf5a   : > { %v19446_v16 = vpop.permute.xlu0 %19445  ;;  %v19452_v54 = vsel %vm4659_vm14, %v19448_v49, %v19442_v37  ;;  %v19645_v37 = vsub.s32 %v19642_v53, %v25824_v6 }
 0xf5b   : > { %v19449_v35 = vsel %vm4659_vm14, %v19446_v16, %v19448_v49  ;;  %v19450_v2 = vsel %vm4659_vm14, %v19444_v59, %v19446_v16  ;;  %v19456_v47 = vadd.f32 %v19452_v54, %v19293_v58  ;;  %vm19665_vm14 = vcmp.lt.s32.totalorder %v25827_v13, 512 }
 0xf5c   : > { %v19454_v36 = vadd.f32 %v19450_v2, %v19291_v21  ;;  %v19455_v56 = vadd.f32 %v19449_v35, %v19292_v5 }
 0xf5d   : > { %v19607_v62 = vpop.permute.xlu1 %19606 }
 0xf5e   : > { %v19605_v38 = vpop.permute.xlu0 %19604 }
 0xf5f   : > { %v19614_v44 = vsel %vm4835_vm15, %v19605_v38, %v19607_v62 }
 0xf60   : > { %v19616_v24 = vadd.f32 %v19614_v44, %v19453_v8 }
 0xf61   : > { %v19611_v0 = vpop.permute.xlu1 %19610 }
 0xf62   : > { %v19615_v27 = vsel %vm4835_vm15, %v19611_v0, %v19605_v38  ;;  %v19609_v20 = vpop.permute.xlu0 %19608  ;;  %v19630_v1 = vadd.f32 %v19629_v30, %v19616_v24 }
 0xf63   : > { %v19619_v57 = vadd.f32 %v19615_v27, %v19456_v47  ;;  %v19612_v46 = vsel %vm4835_vm15, %v19609_v20, %v19611_v0  ;;  %v19613_v59 = vsel %vm4835_vm15, %v19607_v62, %v19609_v20 }
 0xf64   : > { %v19617_v50 = vadd.f32 %v19613_v59, %v19454_v36  ;;  %v19618_v42 = vadd.f32 %v19612_v46, %v19455_v56 }
 0xf65   : > { %v19633_v22 = vadd.f32 %v19629_v30, %v19619_v57 }
 0xf66   : > { %v19631_v10 = vadd.f32 %v19629_v30, %v19617_v50  ;;  %v19632_v61 = vadd.f32 %v19629_v30, %v19618_v42 }
 0xf68   : > { %v19638_v60 = vcombine.low %v19630_v1, %v19631_v10  ;;  %v19639_v15 = vcombine.low %v19632_v61, %v19633_v22 }
 0xf6a   : > { %v19646_v12 = vrot.slane %v19638_v60, %v19645_v37  ;;  %v19653_v14 = vrot.slane %v19639_v15, %v19645_v37 }
 0xf6c   : > { %v19654_v11 = vcombine.low %v19646_v12, %v19653_v14 }
 0xf6e   : > { %v19661_v4 = vrot.slane %v19654_v11, %v19645_v37 }
 0xf70   : > { %19667 = vst.msk [vmem:[%s599_s29] sm:$0xf] %vm19665_vm14, %v19661_v4 }
 0xf71 PF: > { %s25828_s18 = sld [smem:[#allocation3_spill]] }
 0xf77   : > { %s31_s20 = sadd.s32 1, %s25828_s18  }
 0xf78   : > { %p28_p4 = scmp.ge.s32.totalorder %s31_s20, 4  }
 0xf7a   :  { %30 = sbr.rel (!%p28_p4) target bundleno = 19 (0x13), region = 222 }

</bundles_post_ra>
